<compile_context>
chip_gen: v5e
topology: v5e:2x2
jax: 0.10.0
libtpu: 0.0.40
codegen_flags: <defaults>
</compile_context>

<pallas_src>
import functools

import jax
import jax.numpy as jnp
from jax.experimental import pallas as pl
from jax.experimental.pallas import tpu as pltpu

LANE = 128  # TPU lane width; channel dims are padded to multiples of this.


def _round_up(x, m):
    return ((x + m - 1) // m) * m


# -----------------------------------------------------------------------------
# Fused conv (+ optional shortcut + residual add + ReLU) Pallas kernel
# -----------------------------------------------------------------------------

def _conv_kernel(x_ref, w_ref, b_ref, *rest, kh, kw, H, W, act_slope, shortcut):
    """One (batch, cout_tile, cin_tile) grid step of a same-padded conv.

    x_ref : (Hp, Wp, TK)      spatially padded activation, one K tile (bf16)
    w_ref : (kh, kw, TK, TN)  conv weights, one (K, N) tile            (bf16)
    b_ref : (1, TN)           bias                                     (f32)

    shortcut == "none":     rest = (o_ref, acc_ref)
    shortcut == "identity": rest = (res_ref(H,W,TN), o_ref, acc_ref)
    shortcut == "conv":     rest = (x0_ref(H,W,C0p), wsc_ref(C0p,TN), o_ref, acc_ref)
    """
    if shortcut == "identity":
        res_ref, o_ref, acc_ref = rest
    elif shortcut == "conv":
        x0_ref, wsc_ref, o_ref, acc_ref = rest
    else:
        o_ref, acc_ref = rest

    k_idx = pl.program_id(2)

    @pl.when(k_idx == 0)
    def _init():
        acc_ref[...] = jnp.zeros_like(acc_ref)

    # In-kernel "im2col": kh*kw shifted reads of the VMEM block, accumulated
    # as MXU dots into the f32 scratch accumulator. The patch matrix is never
    # materialized in HBM.
    tk = x_ref.shape[-1]
    acc = acc_ref[...]
    for i in range(kh):
        for j in range(kw):
            xs = x_ref[i:i + H, j:j + W, :].reshape(H * W, tk)
            acc = acc + jnp.dot(xs, w_ref[i, j],
                                preferred_element_type=jnp.float32)
    acc_ref[...] = acc

    @pl.when(k_idx == pl.num_programs(2) - 1)
    def _finalize():
        out = acc_ref[...] + b_ref[...].astype(jnp.float32)   # f32 epilogue
        if shortcut == "identity":
            res = res_ref[...].reshape(H * W, res_ref.shape[-1])
            out = jnp.maximum(out + res.astype(jnp.float32), 0.0)
        elif shortcut == "conv":
            x0 = x0_ref[...].reshape(H * W, x0_ref.shape[-1])
            out = out + jnp.dot(x0, wsc_ref[...],
                                preferred_element_type=jnp.float32)
            out = jnp.maximum(out, 0.0)
        else:
            out = jnp.maximum(out, act_slope * out)            # (leaky-)ReLU
        o_ref[...] = out.reshape(o_ref.shape).astype(o_ref.dtype)


def _conv_pallas(x_pad, w, b, *, H, W, act_slope, shortcut,
                 res=None, x0=None, wsc=None, out_dtype=jnp.bfloat16):
    """Same-padded conv as a tiled Pallas GEMM over NHWC activations."""
    B, Hp, Wp, cin_p = x_pad.shape
    kh, kw, _, cout_p = w.shape
    assert cin_p % LANE == 0 and cout_p % LANE == 0
    assert Hp == H + kh - 1 and Wp == W + kw - 1
    assert W % 8 == 0, "W must be a multiple of 8 (sublane) for in-kernel reshape"
    TK = TN = LANE
    grid = (B, cout_p // TN, cin_p // TK)

    in_specs = [
        pl.BlockSpec((None, Hp, Wp, TK), lambda bb, n, k: (bb, 0, 0, k)),
        pl.BlockSpec((kh, kw, TK, TN), lambda bb, n, k: (0, 0, k, n)),
        pl.BlockSpec((1, TN), lambda bb, n, k: (0, n)),
    ]
    args = [x_pad, w, b]
    if shortcut == "identity":
        assert res is not None and res.shape[-1] == cout_p
        in_specs.append(pl.BlockSpec((None, H, W, TN),
                                     lambda bb, n, k: (bb, 0, 0, n)))
        args.append(res)
    elif shortcut == "conv":
        c0_p = x0.shape[-1]
        in_specs.append(pl.BlockSpec((None, H, W, c0_p),
                                     lambda bb, n, k: (bb, 0, 0, 0)))
        in_specs.append(pl.BlockSpec((c0_p, TN), lambda bb, n, k: (0, n)))
        args += [x0, wsc]

    out_spec = pl.BlockSpec((None, H, W, TN), lambda bb, n, k: (bb, 0, 0, n))

    flops = 2 * B * H * W * kh * kw * cin_p * cout_p
    if shortcut == "conv":
        flops += 2 * B * H * W * x0.shape[-1] * cout_p
    bytes_accessed = int(
        sum(int(a.size) * a.dtype.itemsize for a in args)
        + B * H * W * cout_p * jnp.dtype(out_dtype).itemsize)

    kernel = functools.partial(_conv_kernel, kh=kh, kw=kw, H=H, W=W,
                               act_slope=act_slope, shortcut=shortcut)
    return pl.pallas_call(
        kernel,
        out_shape=jax.ShapeDtypeStruct((B, H, W, cout_p), out_dtype),
        grid_spec=pltpu.PrefetchScalarGridSpec(
            num_scalar_prefetch=0,
            grid=grid,
            in_specs=in_specs,
            out_specs=out_spec,
            scratch_shapes=[pltpu.VMEM((H * W, TN), jnp.float32)],
        ),
        compiler_params=pltpu.CompilerParams(
            dimension_semantics=("parallel", "parallel", "arbitrary"),
            vmem_limit_bytes=32 * 1024 * 1024,
        ),
        cost_estimate=pl.CostEstimate(flops=int(flops), transcendentals=0,
                                      bytes_accessed=bytes_accessed),
    )(*args)


# -----------------------------------------------------------------------------
# ResidualBlock module (eval-mode forward, deterministic parameter init)
# -----------------------------------------------------------------------------

class ResidualBlockPallas:
    """Pallas-TPU port of the PyTorch ResidualBlock forward pass."""

    def __init__(self, in_channels, channels, kernel_sizes, batchnorm=False,
                 dropout=0.0, activation_type="relu", activation_params=None,
                 key=None):
        assert channels and kernel_sizes
        assert len(channels) == len(kernel_sizes)
        assert all(k % 2 == 1 for k in kernel_sizes)
        if activation_type not in ("relu", "lrelu"):
            raise ValueError("Unsupported activation type")
        # TODO(synk): batchnorm=True (nn.BatchNorm2d) not ported; only the
        # default batchnorm=False path is implemented.
        assert not batchnorm, "batchnorm not supported in this Pallas port"
        # nn.Dropout2d is the identity in eval mode; forward is eval-mode.
        activation_params = dict(activation_params or {})
        self.act_slope = (float(activation_params.get("negative_slope", 0.01))
                          if activation_type == "lrelu" else 0.0)

        self.in_channels = int(in_channels)
        self.channels = [int(c) for c in channels]
        self.kernel_sizes = [int(k) for k in kernel_sizes]

        key = jax.random.PRNGKey(42) if key is None else key
        chan = [self.in_channels] + self.channels

        self.conv_w, self.conv_b = [], []      # padded bf16 weights / f32 bias
        self._ref_w, self._ref_b = [], []      # raw f32 params (pure-JAX ref)
        for i, k in enumerate(self.kernel_sizes):
            cin, cout = chan[i], chan[i + 1]
            key, kw_, kb_ = jax.random.split(key, 3)
            bound = 1.0 / float(cin * k * k) ** 0.5
            w = jax.random.uniform(kw_, (cout, cin, k, k), jnp.float32,
                                   -bound, bound)
            b = jax.random.uniform(kb_, (cout,), jnp.float32, -bound, bound)
            self._ref_w.append(w)
            self._ref_b.append(b)
            cin_p, cout_p = _round_up(cin, LANE), _round_up(cout, LANE)
            # (Cout,Cin,kh,kw) -> (kh,kw,Cin,Cout), zero-pad channels to 128.
            w_hwio = jnp.transpose(w, (2, 3, 1, 0))
            w_hwio = jnp.pad(w_hwio, ((0, 0), (0, 0),
                                      (0, cin_p - cin), (0, cout_p - cout)))
            self.conv_w.append(w_hwio.astype(jnp.bfloat16))
            self.conv_b.append(jnp.pad(b, (0, cout_p - cout)).reshape(1, cout_p))

        self.use_conv_shortcut = self.in_channels != self.channels[-1]
        self._ref_wsc = None
        self.wsc = None
        if self.use_conv_shortcut:
            key, ks_ = jax.random.split(key)
            bound = 1.0 / float(self.in_channels) ** 0.5
            wsc = jax.random.uniform(
                ks_, (self.channels[-1], self.in_channels, 1, 1),
                jnp.float32, -bound, bound)
            self._ref_wsc = wsc
            c0_p = _round_up(self.in_channels, LANE)
            cn_p = _round_up(self.channels[-1], LANE)
            wsc_mat = jnp.pad(jnp.transpose(wsc[:, :, 0, 0], (1, 0)),
                              ((0, c0_p - self.in_channels),
                               (0, cn_p - self.channels[-1])))
            self.wsc = wsc_mat.astype(jnp.bfloat16)

        self._jit_forward = jax.jit(self._forward)

    # -- forward ---------------------------------------------------------

    def _conv_layer(self, i, h, H, W, *, shortcut, x0=None, out_dtype):
        k = self.kernel_sizes[i]
        p = (k - 1) // 2
        hp = jnp.pad(h, ((0, 0), (p, p), (p, p), (0, 0)))
        return _conv_pallas(
            hp, self.conv_w[i], self.conv_b[i], H=H, W=W,
            act_slope=self.act_slope, shortcut=shortcut,
            res=x0 if shortcut == "identity" else None,
            x0=x0 if shortcut == "conv" else None,
            wsc=self.wsc if shortcut == "conv" else None,
            out_dtype=out_dtype)

    def _forward(self, x_nchw):
        B, C, H, W = x_nchw.shape
        assert C == self.in_channels
        c0_p = _round_up(C, LANE)
        # NCHW -> NHWC, zero-pad channels to the lane width, bf16 MXU inputs.
        x0 = jnp.transpose(x_nchw.astype(jnp.float32), (0, 2, 3, 1))
        x0 = jnp.pad(x0, ((0, 0), (0, 0), (0, 0), (0, c0_p - C)))
        x0 = x0.astype(jnp.bfloat16)

        h = x0
        L = len(self.channels)
        for i in range(L - 1):                     # CONV -> ACT (dropout/bn off)
            h = self._conv_layer(i, h, H, W, shortcut="none",
                                 out_dtype=jnp.bfloat16)
        # Last CONV fused with shortcut path + residual add + final ReLU.
        mode = "conv" if self.use_conv_shortcut else "identity"
        out_p = self._conv_layer(L - 1, h, H, W, shortcut=mode, x0=x0,
                                 out_dtype=jnp.float32)
        out = out_p[..., :self.channels[-1]]       # drop lane padding
        return jnp.transpose(out, (0, 3, 1, 2))    # back to NCHW

    def __call__(self, x_nchw):
        return self._jit_forward(x_nchw)

    # -- pure-JAX reference (f32 XLA convs) -------------------------------

    def reference(self, x_nchw):
        dn = ("NCHW", "OIHW", "NCHW")
        x = x_nchw.astype(jnp.float32)
        h = x
        L = len(self.channels)
        for i in range(L):
            k = self.kernel_sizes[i]
            p = (k - 1) // 2
            h = jax.lax.conv_general_dilated(h, self._ref_w[i], (1, 1),
                                             [(p, p), (p, p)],
                                             dimension_numbers=dn)
            h = h + self._ref_b[i].reshape(1, -1, 1, 1)
            if i < L - 1:
                h = jnp.maximum(h, self.act_slope * h)
        if self.use_conv_shortcut:
            sc = jax.lax.conv_general_dilated(x, self._ref_wsc, (1, 1),
                                              [(0, 0), (0, 0)],
                                              dimension_numbers=dn)
        else:
            sc = x
        return jnp.maximum(h + sc, 0.0)


# -----------------------------------------------------------------------------
# Main
# -----------------------------------------------------------------------------

if __name__ == "__main__":
    key = jax.random.PRNGKey(0)
    B, C, H, W = 2, 4, 16, 16
    x = jax.random.normal(key, (B, C, H, W), jnp.float32)   # NCHW like PyTorch

    # Case 1: 1x1-conv shortcut (in_channels != channels[-1]).
    block = ResidualBlockPallas(in_channels=C, channels=[8, 16],
                                kernel_sizes=[3, 3],
                                key=jax.random.PRNGKey(123))
    out = jax.block_until_ready(block(x))
    assert out.shape == (B, 16, H, W), out.shape
    err = float(jnp.max(jnp.abs(out - block.reference(x))))
    assert err < 1e-1, f"conv-shortcut block mismatch: {err}"

    # Case 2: identity shortcut (in_channels == channels[-1]).
    block_id = ResidualBlockPallas(in_channels=C, channels=[8, 4],
                                   kernel_sizes=[3, 3],
                                   key=jax.random.PRNGKey(7))
    out_id = jax.block_until_ready(block_id(x))
    assert out_id.shape == (B, 4, H, W), out_id.shape
    err_id = float(jnp.max(jnp.abs(out_id - block_id.reference(x))))
    assert err_id < 1e-1, f"identity-shortcut block mismatch: {err_id}"

    print("KERNEL_OK")
</pallas_src>

<mosaic_0001>
module attributes {stable_mosaic.version = 11 : i64} {
  func.func @_conv_kernel(%arg0: i32, %arg1: i32, %arg2: i32, %arg3: memref<1x18x18x128xbf16, #tpu.memory_space<vmem>>, %arg4: memref<3x3x128x128xbf16, #tpu.memory_space<vmem>>, %arg5: memref<1x128xf32, #tpu.memory_space<vmem>>, %arg6: memref<1x16x16x128xbf16, #tpu.memory_space<vmem>>, %arg7: memref<256x128xf32, #tpu.memory_space<vmem>>) attributes {dimension_semantics = [#tpu.dimension_semantics<parallel>, #tpu.dimension_semantics<parallel>, #tpu.dimension_semantics<arbitrary>], iteration_bounds = array<i64: 2, 1, 1>, scalar_prefetch = 0 : i64, scratch_operands = 1 : i64, tpu.core_type = #tpu.core_type<tc>, window_params = [{transform_indices = @transform_0, window_bounds = array<i64: 1, 18, 18, 128>}, {transform_indices = @transform_1, window_bounds = array<i64: 3, 3, 128, 128>}, {transform_indices = @transform_2, window_bounds = array<i64: 1, 128>}, {transform_indices = @transform_3, window_bounds = array<i64: 1, 16, 16, 128>}]} {
    %c0_i32 = arith.constant 0 : i32
    %0 = arith.cmpi eq, %arg2, %c0_i32 : i32
    %1 = arith.extui %0 : i1 to i32
    %c0_i32_0 = arith.constant 0 : i32
    %2 = arith.cmpi ne, %1, %c0_i32_0 : i32
    scf.if %2 {
      %cst_84 = arith.constant 0.000000e+00 : f32
      %71 = vector.broadcast %cst_84 : f32 to vector<256x128xf32>
      %c0_85 = arith.constant 0 : index
      %c0_86 = arith.constant 0 : index
      %72 = vector.load %arg7[%c0_85, %c0_86] : memref<256x128xf32, #tpu.memory_space<vmem>>, vector<256x128xf32>
      tpu.vector_store %arg7[%c0_85, %c0_86], %71 {strides = array<i32>} : memref<256x128xf32, #tpu.memory_space<vmem>>, vector<256x128xf32>,
    } else {
    }
    %c0 = arith.constant 0 : index
    %c0_1 = arith.constant 0 : index
    %3 = vector.load %arg7[%c0, %c0_1] : memref<256x128xf32, #tpu.memory_space<vmem>>, vector<256x128xf32>
    %c0_2 = arith.constant 0 : index
    %c0_3 = arith.constant 0 : index
    %c0_4 = arith.constant 0 : index
    %c0_5 = arith.constant 0 : index
    %4 = vector.load %arg3[%c0_2, %c0_3, %c0_4, %c0_5] : memref<1x18x18x128xbf16, #tpu.memory_space<vmem>>, vector<1x16x16x128xbf16>
    %5 = vector.shape_cast %4 : vector<1x16x16x128xbf16> to vector<16x16x128xbf16>
    %6 = vector.shape_cast %5 : vector<16x16x128xbf16> to vector<256x128xbf16>
    %c0_6 = arith.constant 0 : index
    %c0_7 = arith.constant 0 : index
    %c0_8 = arith.constant 0 : index
    %c0_9 = arith.constant 0 : index
    %7 = vector.load %arg4[%c0_6, %c0_7, %c0_8, %c0_9] : memref<3x3x128x128xbf16, #tpu.memory_space<vmem>>, vector<1x1x128x128xbf16>
    %8 = vector.shape_cast %7 : vector<1x1x128x128xbf16> to vector<128x128xbf16>
    %cst = arith.constant dense<0.000000e+00> : vector<256x128xf32>
    %9 = tpu.matmul %6, %8, %cst {dimension_numbers = #tpu.dot_dimension_numbers<[1], [0], [0], [1], [0, 0, 1, 1], [], []>} : vector<256x128xbf16>, vector<128x128xbf16>, vector<256x128xf32> -> vector<256x128xf32>
    %10 = arith.addf %3, %9 : vector<256x128xf32>
    %c0_10 = arith.constant 0 : index
    %c0_11 = arith.constant 0 : index
    %c1 = arith.constant 1 : index
    %c0_12 = arith.constant 0 : index
    %11 = vector.load %arg3[%c0_10, %c0_11, %c1, %c0_12] : memref<1x18x18x128xbf16, #tpu.memory_space<vmem>>, vector<1x16x16x128xbf16>
    %12 = vector.shape_cast %11 : vector<1x16x16x128xbf16> to vector<16x16x128xbf16>
    %13 = vector.shape_cast %12 : vector<16x16x128xbf16> to vector<256x128xbf16>
    %c0_13 = arith.constant 0 : index
    %c1_14 = arith.constant 1 : index
    %c0_15 = arith.constant 0 : index
    %c0_16 = arith.constant 0 : index
    %14 = vector.load %arg4[%c0_13, %c1_14, %c0_15, %c0_16] : memref<3x3x128x128xbf16, #tpu.memory_space<vmem>>, vector<1x1x128x128xbf16>
    %15 = vector.shape_cast %14 : vector<1x1x128x128xbf16> to vector<128x128xbf16>
    %cst_17 = arith.constant dense<0.000000e+00> : vector<256x128xf32>
    %16 = tpu.matmul %13, %15, %cst_17 {dimension_numbers = #tpu.dot_dimension_numbers<[1], [0], [0], [1], [0, 0, 1, 1], [], []>} : vector<256x128xbf16>, vector<128x128xbf16>, vector<256x128xf32> -> vector<256x128xf32>
    %17 = arith.addf %10, %16 : vector<256x128xf32>
    %c0_18 = arith.constant 0 : index
    %c0_19 = arith.constant 0 : index
    %c2 = arith.constant 2 : index
    %c0_20 = arith.constant 0 : index
    %18 = vector.load %arg3[%c0_18, %c0_19, %c2, %c0_20] : memref<1x18x18x128xbf16, #tpu.memory_space<vmem>>, vector<1x16x16x128xbf16>
    %19 = vector.shape_cast %18 : vector<1x16x16x128xbf16> to vector<16x16x128xbf16>
    %20 = vector.shape_cast %19 : vector<16x16x128xbf16> to vector<256x128xbf16>
    %c0_21 = arith.constant 0 : index
    %c2_22 = arith.constant 2 : index
    %c0_23 = arith.constant 0 : index
    %c0_24 = arith.constant 0 : index
    %21 = vector.load %arg4[%c0_21, %c2_22, %c0_23, %c0_24] : memref<3x3x128x128xbf16, #tpu.memory_space<vmem>>, vector<1x1x128x128xbf16>
    %22 = vector.shape_cast %21 : vector<1x1x128x128xbf16> to vector<128x128xbf16>
    %cst_25 = arith.constant dense<0.000000e+00> : vector<256x128xf32>
    %23 = tpu.matmul %20, %22, %cst_25 {dimension_numbers = #tpu.dot_dimension_numbers<[1], [0], [0], [1], [0, 0, 1, 1], [], []>} : vector<256x128xbf16>, vector<128x128xbf16>, vector<256x128xf32> -> vector<256x128xf32>
    %24 = arith.addf %17, %23 : vector<256x128xf32>
    %c0_26 = arith.constant 0 : index
    %c1_27 = arith.constant 1 : index
    %c0_28 = arith.constant 0 : index
    %c0_29 = arith.constant 0 : index
    %25 = vector.load %arg3[%c0_26, %c1_27, %c0_28, %c0_29] : memref<1x18x18x128xbf16, #tpu.memory_space<vmem>>, vector<1x16x16x128xbf16>
    %26 = vector.shape_cast %25 : vector<1x16x16x128xbf16> to vector<16x16x128xbf16>
    %27 = vector.shape_cast %26 : vector<16x16x128xbf16> to vector<256x128xbf16>
    %c1_30 = arith.constant 1 : index
    %c0_31 = arith.constant 0 : index
    %c0_32 = arith.constant 0 : index
    %c0_33 = arith.constant 0 : index
    %28 = vector.load %arg4[%c1_30, %c0_31, %c0_32, %c0_33] : memref<3x3x128x128xbf16, #tpu.memory_space<vmem>>, vector<1x1x128x128xbf16>
    %29 = vector.shape_cast %28 : vector<1x1x128x128xbf16> to vector<128x128xbf16>
    %cst_34 = arith.constant dense<0.000000e+00> : vector<256x128xf32>
    %30 = tpu.matmul %27, %29, %cst_34 {dimension_numbers = #tpu.dot_dimension_numbers<[1], [0], [0], [1], [0, 0, 1, 1], [], []>} : vector<256x128xbf16>, vector<128x128xbf16>, vector<256x128xf32> -> vector<256x128xf32>
    %31 = arith.addf %24, %30 : vector<256x128xf32>
    %c0_35 = arith.constant 0 : index
    %c1_36 = arith.constant 1 : index
    %c1_37 = arith.constant 1 : index
    %c0_38 = arith.constant 0 : index
    %32 = vector.load %arg3[%c0_35, %c1_36, %c1_37, %c0_38] : memref<1x18x18x128xbf16, #tpu.memory_space<vmem>>, vector<1x16x16x128xbf16>
    %33 = vector.shape_cast %32 : vector<1x16x16x128xbf16> to vector<16x16x128xbf16>
    %34 = vector.shape_cast %33 : vector<16x16x128xbf16> to vector<256x128xbf16>
    %c1_39 = arith.constant 1 : index
    %c1_40 = arith.constant 1 : index
    %c0_41 = arith.constant 0 : index
    %c0_42 = arith.constant 0 : index
    %35 = vector.load %arg4[%c1_39, %c1_40, %c0_41, %c0_42] : memref<3x3x128x128xbf16, #tpu.memory_space<vmem>>, vector<1x1x128x128xbf16>
    %36 = vector.shape_cast %35 : vector<1x1x128x128xbf16> to vector<128x128xbf16>
    %cst_43 = arith.constant dense<0.000000e+00> : vector<256x128xf32>
    %37 = tpu.matmul %34, %36, %cst_43 {dimension_numbers = #tpu.dot_dimension_numbers<[1], [0], [0], [1], [0, 0, 1, 1], [], []>} : vector<256x128xbf16>, vector<128x128xbf16>, vector<256x128xf32> -> vector<256x128xf32>
    %38 = arith.addf %31, %37 : vector<256x128xf32>
    %c0_44 = arith.constant 0 : index
    %c1_45 = arith.constant 1 : index
    %c2_46 = arith.constant 2 : index
    %c0_47 = arith.constant 0 : index
    %39 = vector.load %arg3[%c0_44, %c1_45, %c2_46, %c0_47] : memref<1x18x18x128xbf16, #tpu.memory_space<vmem>>, vector<1x16x16x128xbf16>
    %40 = vector.shape_cast %39 : vector<1x16x16x128xbf16> to vector<16x16x128xbf16>
    %41 = vector.shape_cast %40 : vector<16x16x128xbf16> to vector<256x128xbf16>
    %c1_48 = arith.constant 1 : index
    %c2_49 = arith.constant 2 : index
    %c0_50 = arith.constant 0 : index
    %c0_51 = arith.constant 0 : index
    %42 = vector.load %arg4[%c1_48, %c2_49, %c0_50, %c0_51] : memref<3x3x128x128xbf16, #tpu.memory_space<vmem>>, vector<1x1x128x128xbf16>
    %43 = vector.shape_cast %42 : vector<1x1x128x128xbf16> to vector<128x128xbf16>
    %cst_52 = arith.constant dense<0.000000e+00> : vector<256x128xf32>
    %44 = tpu.matmul %41, %43, %cst_52 {dimension_numbers = #tpu.dot_dimension_numbers<[1], [0], [0], [1], [0, 0, 1, 1], [], []>} : vector<256x128xbf16>, vector<128x128xbf16>, vector<256x128xf32> -> vector<256x128xf32>
    %45 = arith.addf %38, %44 : vector<256x128xf32>
    %c0_53 = arith.constant 0 : index
    %c2_54 = arith.constant 2 : index
    %c0_55 = arith.constant 0 : index
    %c0_56 = arith.constant 0 : index
    %46 = vector.load %arg3[%c0_53, %c2_54, %c0_55, %c0_56] : memref<1x18x18x128xbf16, #tpu.memory_space<vmem>>, vector<1x16x16x128xbf16>
    %47 = vector.shape_cast %46 : vector<1x16x16x128xbf16> to vector<16x16x128xbf16>
    %48 = vector.shape_cast %47 : vector<16x16x128xbf16> to vector<256x128xbf16>
    %c2_57 = arith.constant 2 : index
    %c0_58 = arith.constant 0 : index
    %c0_59 = arith.constant 0 : index
    %c0_60 = arith.constant 0 : index
    %49 = vector.load %arg4[%c2_57, %c0_58, %c0_59, %c0_60] : memref<3x3x128x128xbf16, #tpu.memory_space<vmem>>, vector<1x1x128x128xbf16>
    %50 = vector.shape_cast %49 : vector<1x1x128x128xbf16> to vector<128x128xbf16>
    %cst_61 = arith.constant dense<0.000000e+00> : vector<256x128xf32>
    %51 = tpu.matmul %48, %50, %cst_61 {dimension_numbers = #tpu.dot_dimension_numbers<[1], [0], [0], [1], [0, 0, 1, 1], [], []>} : vector<256x128xbf16>, vector<128x128xbf16>, vector<256x128xf32> -> vector<256x128xf32>
    %52 = arith.addf %45, %51 : vector<256x128xf32>
    %c0_62 = arith.constant 0 : index
    %c2_63 = arith.constant 2 : index
    %c1_64 = arith.constant 1 : index
    %c0_65 = arith.constant 0 : index
    %53 = vector.load %arg3[%c0_62, %c2_63, %c1_64, %c0_65] : memref<1x18x18x128xbf16, #tpu.memory_space<vmem>>, vector<1x16x16x128xbf16>
    %54 = vector.shape_cast %53 : vector<1x16x16x128xbf16> to vector<16x16x128xbf16>
    %55 = vector.shape_cast %54 : vector<16x16x128xbf16> to vector<256x128xbf16>
    %c2_66 = arith.constant 2 : index
    %c1_67 = arith.constant 1 : index
    %c0_68 = arith.constant 0 : index
    %c0_69 = arith.constant 0 : index
    %56 = vector.load %arg4[%c2_66, %c1_67, %c0_68, %c0_69] : memref<3x3x128x128xbf16, #tpu.memory_space<vmem>>, vector<1x1x128x128xbf16>
    %57 = vector.shape_cast %56 : vector<1x1x128x128xbf16> to vector<128x128xbf16>
    %cst_70 = arith.constant dense<0.000000e+00> : vector<256x128xf32>
    %58 = tpu.matmul %55, %57, %cst_70 {dimension_numbers = #tpu.dot_dimension_numbers<[1], [0], [0], [1], [0, 0, 1, 1], [], []>} : vector<256x128xbf16>, vector<128x128xbf16>, vector<256x128xf32> -> vector<256x128xf32>
    %59 = arith.addf %52, %58 : vector<256x128xf32>
    %c0_71 = arith.constant 0 : index
    %c2_72 = arith.constant 2 : index
    %c2_73 = arith.constant 2 : index
    %c0_74 = arith.constant 0 : index
    %60 = vector.load %arg3[%c0_71, %c2_72, %c2_73, %c0_74] : memref<1x18x18x128xbf16, #tpu.memory_space<vmem>>, vector<1x16x16x128xbf16>
    %61 = vector.shape_cast %60 : vector<1x16x16x128xbf16> to vector<16x16x128xbf16>
    %62 = vector.shape_cast %61 : vector<16x16x128xbf16> to vector<256x128xbf16>
    %c2_75 = arith.constant 2 : index
    %c2_76 = arith.constant 2 : index
    %c0_77 = arith.constant 0 : index
    %c0_78 = arith.constant 0 : index
    %63 = vector.load %arg4[%c2_75, %c2_76, %c0_77, %c0_78] : memref<3x3x128x128xbf16, #tpu.memory_space<vmem>>, vector<1x1x128x128xbf16>
    %64 = vector.shape_cast %63 : vector<1x1x128x128xbf16> to vector<128x128xbf16>
    %cst_79 = arith.constant dense<0.000000e+00> : vector<256x128xf32>
    %65 = tpu.matmul %62, %64, %cst_79 {dimension_numbers = #tpu.dot_dimension_numbers<[1], [0], [0], [1], [0, 0, 1, 1], [], []>} : vector<256x128xbf16>, vector<128x128xbf16>, vector<256x128xf32> -> vector<256x128xf32>
    %66 = arith.addf %59, %65 : vector<256x128xf32>
    %c0_80 = arith.constant 0 : index
    %c0_81 = arith.constant 0 : index
    %67 = vector.load %arg7[%c0_80, %c0_81] : memref<256x128xf32, #tpu.memory_space<vmem>>, vector<256x128xf32>
    tpu.vector_store %arg7[%c0_80, %c0_81], %66 {strides = array<i32>} : memref<256x128xf32, #tpu.memory_space<vmem>>, vector<256x128xf32>,
    %c0_i32_82 = arith.constant 0 : i32
    %68 = arith.cmpi eq, %arg2, %c0_i32_82 : i32
    %69 = arith.extui %68 : i1 to i32
    %c0_i32_83 = arith.constant 0 : i32
    %70 = arith.cmpi ne, %69, %c0_i32_83 : i32
    scf.if %70 {
      %c0_84 = arith.constant 0 : index
      %c0_85 = arith.constant 0 : index
      %71 = vector.load %arg7[%c0_84, %c0_85] : memref<256x128xf32, #tpu.memory_space<vmem>>, vector<256x128xf32>
      %c0_86 = arith.constant 0 : index
      %c0_87 = arith.constant 0 : index
      %72 = vector.load %arg5[%c0_86, %c0_87] : memref<1x128xf32, #tpu.memory_space<vmem>>, vector<1x128xf32>
      %73 = vector.broadcast %72 : vector<1x128xf32> to vector<256x128xf32>
      %74 = arith.addf %71, %73 : vector<256x128xf32>
      %cst_88 = arith.constant 0.000000e+00 : f32
      %75 = vector.broadcast %cst_88 : f32 to vector<256x128xf32>
      %76 = arith.mulf %75, %74 : vector<256x128xf32>
      %77 = arith.maximumf %74, %76 : vector<256x128xf32>
      %78 = vector.shape_cast %77 : vector<256x128xf32> to vector<16x16x128xf32>
      %79 = arith.truncf %78 : vector<16x16x128xf32> to vector<16x16x128xbf16>
      %c0_89 = arith.constant 0 : index
      %c0_90 = arith.constant 0 : index
      %c0_91 = arith.constant 0 : index
      %c0_92 = arith.constant 0 : index
      %80 = vector.load %arg6[%c0_89, %c0_90, %c0_91, %c0_92] : memref<1x16x16x128xbf16, #tpu.memory_space<vmem>>, vector<1x16x16x128xbf16>
      %81 = vector.shape_cast %80 : vector<1x16x16x128xbf16> to vector<16x16x128xbf16>
      %82 = vector.shape_cast %79 : vector<16x16x128xbf16> to vector<1x16x16x128xbf16>
      tpu.vector_store %arg6[%c0_89, %c0_90, %c0_91, %c0_92], %82 {strides = array<i32>} : memref<1x16x16x128xbf16, #tpu.memory_space<vmem>>, vector<1x16x16x128xbf16>,
    } else {
    }
    return
  }
  func.func @transform_0(%arg0: i32, %arg1: i32, %arg2: i32) -> (i32, i32, i32, i32) {
    %c0_i32 = arith.constant 0 : i32
    %c0_i32_0 = arith.constant 0 : i32
    %c0_i32_1 = arith.constant 0 : i32
    return %arg0, %c0_i32, %c0_i32_0, %arg2 : i32, i32, i32, i32
  }
  func.func @transform_1(%arg0: i32, %arg1: i32, %arg2: i32) -> (i32, i32, i32, i32) {
    %c0_i32 = arith.constant 0 : i32
    %c0_i32_0 = arith.constant 0 : i32
    %c0_i32_1 = arith.constant 0 : i32
    return %c0_i32, %c0_i32_0, %arg2, %arg1 : i32, i32, i32, i32
  }
  func.func @transform_2(%arg0: i32, %arg1: i32, %arg2: i32) -> (i32, i32) {
    %c0_i32 = arith.constant 0 : i32
    %c0_i32_0 = arith.constant 0 : i32
    return %c0_i32, %arg1 : i32, i32
  }
  func.func @transform_3(%arg0: i32, %arg1: i32, %arg2: i32) -> (i32, i32, i32, i32) {
    %c0_i32 = arith.constant 0 : i32
    %c0_i32_0 = arith.constant 0 : i32
    %c0_i32_1 = arith.constant 0 : i32
    return %arg0, %c0_i32, %c0_i32_0, %arg1 : i32, i32, i32, i32
  }
}

module attributes {stable_mosaic.version = 11 : i64} {
  func.func @_conv_kernel(%arg0: i32, %arg1: i32, %arg2: i32, %arg3: memref<1x18x18x128xbf16, #tpu.memory_space<vmem>>, %arg4: memref<3x3x128x128xbf16, #tpu.memory_space<vmem>>, %arg5: memref<1x128xf32, #tpu.memory_space<vmem>>, %arg6: memref<1x16x16x128xbf16, #tpu.memory_space<vmem>>, %arg7: memref<128x128xbf16, #tpu.memory_space<vmem>>, %arg8: memref<1x16x16x128xf32, #tpu.memory_space<vmem>>, %arg9: memref<256x128xf32, #tpu.memory_space<vmem>>) attributes {dimension_semantics = [#tpu.dimension_semantics<parallel>, #tpu.dimension_semantics<parallel>, #tpu.dimension_semantics<arbitrary>], iteration_bounds = array<i64: 2, 1, 1>, scalar_prefetch = 0 : i64, scratch_operands = 1 : i64, tpu.core_type = #tpu.core_type<tc>, window_params = [{transform_indices = @transform_0, window_bounds = array<i64: 1, 18, 18, 128>}, {transform_indices = @transform_1, window_bounds = array<i64: 3, 3, 128, 128>}, {transform_indices = @transform_2, window_bounds = array<i64: 1, 128>}, {transform_indices = @transform_3, window_bounds = array<i64: 1, 16, 16, 128>}, {transform_indices = @transform_4, window_bounds = array<i64: 128, 128>}, {transform_indices = @transform_5, window_bounds = array<i64: 1, 16, 16, 128>}]} {
    %c0_i32 = arith.constant 0 : i32
    %0 = arith.cmpi eq, %arg2, %c0_i32 : i32
    %1 = arith.extui %0 : i1 to i32
    %c0_i32_0 = arith.constant 0 : i32
    %2 = arith.cmpi ne, %1, %c0_i32_0 : i32
    scf.if %2 {
      %cst_84 = arith.constant 0.000000e+00 : f32
      %71 = vector.broadcast %cst_84 : f32 to vector<256x128xf32>
      %c0_85 = arith.constant 0 : index
      %c0_86 = arith.constant 0 : index
      %72 = vector.load %arg9[%c0_85, %c0_86] : memref<256x128xf32, #tpu.memory_space<vmem>>, vector<256x128xf32>
      tpu.vector_store %arg9[%c0_85, %c0_86], %71 {strides = array<i32>} : memref<256x128xf32, #tpu.memory_space<vmem>>, vector<256x128xf32>,
    } else {
    }
    %c0 = arith.constant 0 : index
    %c0_1 = arith.constant 0 : index
    %3 = vector.load %arg9[%c0, %c0_1] : memref<256x128xf32, #tpu.memory_space<vmem>>, vector<256x128xf32>
    %c0_2 = arith.constant 0 : index
    %c0_3 = arith.constant 0 : index
    %c0_4 = arith.constant 0 : index
    %c0_5 = arith.constant 0 : index
    %4 = vector.load %arg3[%c0_2, %c0_3, %c0_4, %c0_5] : memref<1x18x18x128xbf16, #tpu.memory_space<vmem>>, vector<1x16x16x128xbf16>
    %5 = vector.shape_cast %4 : vector<1x16x16x128xbf16> to vector<16x16x128xbf16>
    %6 = vector.shape_cast %5 : vector<16x16x128xbf16> to vector<256x128xbf16>
    %c0_6 = arith.constant 0 : index
    %c0_7 = arith.constant 0 : index
    %c0_8 = arith.constant 0 : index
    %c0_9 = arith.constant 0 : index
    %7 = vector.load %arg4[%c0_6, %c0_7, %c0_8, %c0_9] : memref<3x3x128x128xbf16, #tpu.memory_space<vmem>>, vector<1x1x128x128xbf16>
    %8 = vector.shape_cast %7 : vector<1x1x128x128xbf16> to vector<128x128xbf16>
    %cst = arith.constant dense<0.000000e+00> : vector<256x128xf32>
    %9 = tpu.matmul %6, %8, %cst {dimension_numbers = #tpu.dot_dimension_numbers<[1], [0], [0], [1], [0, 0, 1, 1], [], []>} : vector<256x128xbf16>, vector<128x128xbf16>, vector<256x128xf32> -> vector<256x128xf32>
    %10 = arith.addf %3, %9 : vector<256x128xf32>
    %c0_10 = arith.constant 0 : index
    %c0_11 = arith.constant 0 : index
    %c1 = arith.constant 1 : index
    %c0_12 = arith.constant 0 : index
    %11 = vector.load %arg3[%c0_10, %c0_11, %c1, %c0_12] : memref<1x18x18x128xbf16, #tpu.memory_space<vmem>>, vector<1x16x16x128xbf16>
    %12 = vector.shape_cast %11 : vector<1x16x16x128xbf16> to vector<16x16x128xbf16>
    %13 = vector.shape_cast %12 : vector<16x16x128xbf16> to vector<256x128xbf16>
    %c0_13 = arith.constant 0 : index
    %c1_14 = arith.constant 1 : index
    %c0_15 = arith.constant 0 : index
    %c0_16 = arith.constant 0 : index
    %14 = vector.load %arg4[%c0_13, %c1_14, %c0_15, %c0_16] : memref<3x3x128x128xbf16, #tpu.memory_space<vmem>>, vector<1x1x128x128xbf16>
    %15 = vector.shape_cast %14 : vector<1x1x128x128xbf16> to vector<128x128xbf16>
    %cst_17 = arith.constant dense<0.000000e+00> : vector<256x128xf32>
    %16 = tpu.matmul %13, %15, %cst_17 {dimension_numbers = #tpu.dot_dimension_numbers<[1], [0], [0], [1], [0, 0, 1, 1], [], []>} : vector<256x128xbf16>, vector<128x128xbf16>, vector<256x128xf32> -> vector<256x128xf32>
    %17 = arith.addf %10, %16 : vector<256x128xf32>
    %c0_18 = arith.constant 0 : index
    %c0_19 = arith.constant 0 : index
    %c2 = arith.constant 2 : index
    %c0_20 = arith.constant 0 : index
    %18 = vector.load %arg3[%c0_18, %c0_19, %c2, %c0_20] : memref<1x18x18x128xbf16, #tpu.memory_space<vmem>>, vector<1x16x16x128xbf16>
    %19 = vector.shape_cast %18 : vector<1x16x16x128xbf16> to vector<16x16x128xbf16>
    %20 = vector.shape_cast %19 : vector<16x16x128xbf16> to vector<256x128xbf16>
    %c0_21 = arith.constant 0 : index
    %c2_22 = arith.constant 2 : index
    %c0_23 = arith.constant 0 : index
    %c0_24 = arith.constant 0 : index
    %21 = vector.load %arg4[%c0_21, %c2_22, %c0_23, %c0_24] : memref<3x3x128x128xbf16, #tpu.memory_space<vmem>>, vector<1x1x128x128xbf16>
    %22 = vector.shape_cast %21 : vector<1x1x128x128xbf16> to vector<128x128xbf16>
    %cst_25 = arith.constant dense<0.000000e+00> : vector<256x128xf32>
    %23 = tpu.matmul %20, %22, %cst_25 {dimension_numbers = #tpu.dot_dimension_numbers<[1], [0], [0], [1], [0, 0, 1, 1], [], []>} : vector<256x128xbf16>, vector<128x128xbf16>, vector<256x128xf32> -> vector<256x128xf32>
    %24 = arith.addf %17, %23 : vector<256x128xf32>
    %c0_26 = arith.constant 0 : index
    %c1_27 = arith.constant 1 : index
    %c0_28 = arith.constant 0 : index
    %c0_29 = arith.constant 0 : index
    %25 = vector.load %arg3[%c0_26, %c1_27, %c0_28, %c0_29] : memref<1x18x18x128xbf16, #tpu.memory_space<vmem>>, vector<1x16x16x128xbf16>
    %26 = vector.shape_cast %25 : vector<1x16x16x128xbf16> to vector<16x16x128xbf16>
    %27 = vector.shape_cast %26 : vector<16x16x128xbf16> to vector<256x128xbf16>
    %c1_30 = arith.constant 1 : index
    %c0_31 = arith.constant 0 : index
    %c0_32 = arith.constant 0 : index
    %c0_33 = arith.constant 0 : index
    %28 = vector.load %arg4[%c1_30, %c0_31, %c0_32, %c0_33] : memref<3x3x128x128xbf16, #tpu.memory_space<vmem>>, vector<1x1x128x128xbf16>
    %29 = vector.shape_cast %28 : vector<1x1x128x128xbf16> to vector<128x128xbf16>
    %cst_34 = arith.constant dense<0.000000e+00> : vector<256x128xf32>
    %30 = tpu.matmul %27, %29, %cst_34 {dimension_numbers = #tpu.dot_dimension_numbers<[1], [0], [0], [1], [0, 0, 1, 1], [], []>} : vector<256x128xbf16>, vector<128x128xbf16>, vector<256x128xf32> -> vector<256x128xf32>
    %31 = arith.addf %24, %30 : vector<256x128xf32>
    %c0_35 = arith.constant 0 : index
    %c1_36 = arith.constant 1 : index
    %c1_37 = arith.constant 1 : index
    %c0_38 = arith.constant 0 : index
    %32 = vector.load %arg3[%c0_35, %c1_36, %c1_37, %c0_38] : memref<1x18x18x128xbf16, #tpu.memory_space<vmem>>, vector<1x16x16x128xbf16>
    %33 = vector.shape_cast %32 : vector<1x16x16x128xbf16> to vector<16x16x128xbf16>
    %34 = vector.shape_cast %33 : vector<16x16x128xbf16> to vector<256x128xbf16>
    %c1_39 = arith.constant 1 : index
    %c1_40 = arith.constant 1 : index
    %c0_41 = arith.constant 0 : index
    %c0_42 = arith.constant 0 : index
    %35 = vector.load %arg4[%c1_39, %c1_40, %c0_41, %c0_42] : memref<3x3x128x128xbf16, #tpu.memory_space<vmem>>, vector<1x1x128x128xbf16>
    %36 = vector.shape_cast %35 : vector<1x1x128x128xbf16> to vector<128x128xbf16>
    %cst_43 = arith.constant dense<0.000000e+00> : vector<256x128xf32>
    %37 = tpu.matmul %34, %36, %cst_43 {dimension_numbers = #tpu.dot_dimension_numbers<[1], [0], [0], [1], [0, 0, 1, 1], [], []>} : vector<256x128xbf16>, vector<128x128xbf16>, vector<256x128xf32> -> vector<256x128xf32>
    %38 = arith.addf %31, %37 : vector<256x128xf32>
    %c0_44 = arith.constant 0 : index
    %c1_45 = arith.constant 1 : index
    %c2_46 = arith.constant 2 : index
    %c0_47 = arith.constant 0 : index
    %39 = vector.load %arg3[%c0_44, %c1_45, %c2_46, %c0_47] : memref<1x18x18x128xbf16, #tpu.memory_space<vmem>>, vector<1x16x16x128xbf16>
    %40 = vector.shape_cast %39 : vector<1x16x16x128xbf16> to vector<16x16x128xbf16>
    %41 = vector.shape_cast %40 : vector<16x16x128xbf16> to vector<256x128xbf16>
    %c1_48 = arith.constant 1 : index
    %c2_49 = arith.constant 2 : index
    %c0_50 = arith.constant 0 : index
    %c0_51 = arith.constant 0 : index
    %42 = vector.load %arg4[%c1_48, %c2_49, %c0_50, %c0_51] : memref<3x3x128x128xbf16, #tpu.memory_space<vmem>>, vector<1x1x128x128xbf16>
    %43 = vector.shape_cast %42 : vector<1x1x128x128xbf16> to vector<128x128xbf16>
    %cst_52 = arith.constant dense<0.000000e+00> : vector<256x128xf32>
    %44 = tpu.matmul %41, %43, %cst_52 {dimension_numbers = #tpu.dot_dimension_numbers<[1], [0], [0], [1], [0, 0, 1, 1], [], []>} : vector<256x128xbf16>, vector<128x128xbf16>, vector<256x128xf32> -> vector<256x128xf32>
    %45 = arith.addf %38, %44 : vector<256x128xf32>
    %c0_53 = arith.constant 0 : index
    %c2_54 = arith.constant 2 : index
    %c0_55 = arith.constant 0 : index
    %c0_56 = arith.constant 0 : index
    %46 = vector.load %arg3[%c0_53, %c2_54, %c0_55, %c0_56] : memref<1x18x18x128xbf16, #tpu.memory_space<vmem>>, vector<1x16x16x128xbf16>
    %47 = vector.shape_cast %46 : vector<1x16x16x128xbf16> to vector<16x16x128xbf16>
    %48 = vector.shape_cast %47 : vector<16x16x128xbf16> to vector<256x128xbf16>
    %c2_57 = arith.constant 2 : index
    %c0_58 = arith.constant 0 : index
    %c0_59 = arith.constant 0 : index
    %c0_60 = arith.constant 0 : index
    %49 = vector.load %arg4[%c2_57, %c0_58, %c0_59, %c0_60] : memref<3x3x128x128xbf16, #tpu.memory_space<vmem>>, vector<1x1x128x128xbf16>
    %50 = vector.shape_cast %49 : vector<1x1x128x128xbf16> to vector<128x128xbf16>
    %cst_61 = arith.constant dense<0.000000e+00> : vector<256x128xf32>
    %51 = tpu.matmul %48, %50, %cst_61 {dimension_numbers = #tpu.dot_dimension_numbers<[1], [0], [0], [1], [0, 0, 1, 1], [], []>} : vector<256x128xbf16>, vector<128x128xbf16>, vector<256x128xf32> -> vector<256x128xf32>
    %52 = arith.addf %45, %51 : vector<256x128xf32>
    %c0_62 = arith.constant 0 : index
    %c2_63 = arith.constant 2 : index
    %c1_64 = arith.constant 1 : index
    %c0_65 = arith.constant 0 : index
    %53 = vector.load %arg3[%c0_62, %c2_63, %c1_64, %c0_65] : memref<1x18x18x128xbf16, #tpu.memory_space<vmem>>, vector<1x16x16x128xbf16>
    %54 = vector.shape_cast %53 : vector<1x16x16x128xbf16> to vector<16x16x128xbf16>
    %55 = vector.shape_cast %54 : vector<16x16x128xbf16> to vector<256x128xbf16>
    %c2_66 = arith.constant 2 : index
    %c1_67 = arith.constant 1 : index
    %c0_68 = arith.constant 0 : index
    %c0_69 = arith.constant 0 : index
    %56 = vector.load %arg4[%c2_66, %c1_67, %c0_68, %c0_69] : memref<3x3x128x128xbf16, #tpu.memory_space<vmem>>, vector<1x1x128x128xbf16>
    %57 = vector.shape_cast %56 : vector<1x1x128x128xbf16> to vector<128x128xbf16>
    %cst_70 = arith.constant dense<0.000000e+00> : vector<256x128xf32>
    %58 = tpu.matmul %55, %57, %cst_70 {dimension_numbers = #tpu.dot_dimension_numbers<[1], [0], [0], [1], [0, 0, 1, 1], [], []>} : vector<256x128xbf16>, vector<128x128xbf16>, vector<256x128xf32> -> vector<256x128xf32>
    %59 = arith.addf %52, %58 : vector<256x128xf32>
    %c0_71 = arith.constant 0 : index
    %c2_72 = arith.constant 2 : index
    %c2_73 = arith.constant 2 : index
    %c0_74 = arith.constant 0 : index
    %60 = vector.load %arg3[%c0_71, %c2_72, %c2_73, %c0_74] : memref<1x18x18x128xbf16, #tpu.memory_space<vmem>>, vector<1x16x16x128xbf16>
    %61 = vector.shape_cast %60 : vector<1x16x16x128xbf16> to vector<16x16x128xbf16>
    %62 = vector.shape_cast %61 : vector<16x16x128xbf16> to vector<256x128xbf16>
    %c2_75 = arith.constant 2 : index
    %c2_76 = arith.constant 2 : index
    %c0_77 = arith.constant 0 : index
    %c0_78 = arith.constant 0 : index
    %63 = vector.load %arg4[%c2_75, %c2_76, %c0_77, %c0_78] : memref<3x3x128x128xbf16, #tpu.memory_space<vmem>>, vector<1x1x128x128xbf16>
    %64 = vector.shape_cast %63 : vector<1x1x128x128xbf16> to vector<128x128xbf16>
    %cst_79 = arith.constant dense<0.000000e+00> : vector<256x128xf32>
    %65 = tpu.matmul %62, %64, %cst_79 {dimension_numbers = #tpu.dot_dimension_numbers<[1], [0], [0], [1], [0, 0, 1, 1], [], []>} : vector<256x128xbf16>, vector<128x128xbf16>, vector<256x128xf32> -> vector<256x128xf32>
    %66 = arith.addf %59, %65 : vector<256x128xf32>
    %c0_80 = arith.constant 0 : index
    %c0_81 = arith.constant 0 : index
    %67 = vector.load %arg9[%c0_80, %c0_81] : memref<256x128xf32, #tpu.memory_space<vmem>>, vector<256x128xf32>
    tpu.vector_store %arg9[%c0_80, %c0_81], %66 {strides = array<i32>} : memref<256x128xf32, #tpu.memory_space<vmem>>, vector<256x128xf32>,
    %c0_i32_82 = arith.constant 0 : i32
    %68 = arith.cmpi eq, %arg2, %c0_i32_82 : i32
    %69 = arith.extui %68 : i1 to i32
    %c0_i32_83 = arith.constant 0 : i32
    %70 = arith.cmpi ne, %69, %c0_i32_83 : i32
    scf.if %70 {
      %c0_84 = arith.constant 0 : index
      %c0_85 = arith.constant 0 : index
      %71 = vector.load %arg9[%c0_84, %c0_85] : memref<256x128xf32, #tpu.memory_space<vmem>>, vector<256x128xf32>
      %c0_86 = arith.constant 0 : index
      %c0_87 = arith.constant 0 : index
      %72 = vector.load %arg5[%c0_86, %c0_87] : memref<1x128xf32, #tpu.memory_space<vmem>>, vector<1x128xf32>
      %73 = vector.broadcast %72 : vector<1x128xf32> to vector<256x128xf32>
      %74 = arith.addf %71, %73 : vector<256x128xf32>
      %c0_88 = arith.constant 0 : index
      %c0_89 = arith.constant 0 : index
      %c0_90 = arith.constant 0 : index
      %c0_91 = arith.constant 0 : index
      %75 = vector.load %arg6[%c0_88, %c0_89, %c0_90, %c0_91] : memref<1x16x16x128xbf16, #tpu.memory_space<vmem>>, vector<1x16x16x128xbf16>
      %76 = vector.shape_cast %75 : vector<1x16x16x128xbf16> to vector<16x16x128xbf16>
      %77 = vector.shape_cast %76 : vector<16x16x128xbf16> to vector<256x128xbf16>
      %c0_92 = arith.constant 0 : index
      %c0_93 = arith.constant 0 : index
      %78 = vector.load %arg7[%c0_92, %c0_93] : memref<128x128xbf16, #tpu.memory_space<vmem>>, vector<128x128xbf16>
      %cst_94 = arith.constant dense<0.000000e+00> : vector<256x128xf32>
      %79 = tpu.matmul %77, %78, %cst_94 {dimension_numbers = #tpu.dot_dimension_numbers<[1], [0], [0], [1], [0, 0, 1, 1], [], []>} : vector<256x128xbf16>, vector<128x128xbf16>, vector<256x128xf32> -> vector<256x128xf32>
      %80 = arith.addf %74, %79 : vector<256x128xf32>
      %cst_95 = arith.constant 0.000000e+00 : f32
      %81 = vector.broadcast %cst_95 : f32 to vector<256x128xf32>
      %82 = arith.maximumf %80, %81 : vector<256x128xf32>
      %83 = vector.shape_cast %82 : vector<256x128xf32> to vector<16x16x128xf32>
      %c0_96 = arith.constant 0 : index
      %c0_97 = arith.constant 0 : index
      %c0_98 = arith.constant 0 : index
      %c0_99 = arith.constant 0 : index
      %84 = vector.load %arg8[%c0_96, %c0_97, %c0_98, %c0_99] : memref<1x16x16x128xf32, #tpu.memory_space<vmem>>, vector<1x16x16x128xf32>
      %85 = vector.shape_cast %84 : vector<1x16x16x128xf32> to vector<16x16x128xf32>
      %86 = vector.shape_cast %83 : vector<16x16x128xf32> to vector<1x16x16x128xf32>
      tpu.vector_store %arg8[%c0_96, %c0_97, %c0_98, %c0_99], %86 {strides = array<i32>} : memref<1x16x16x128xf32, #tpu.memory_space<vmem>>, vector<1x16x16x128xf32>,
    } else {
    }
    return
  }
  func.func @transform_0(%arg0: i32, %arg1: i32, %arg2: i32) -> (i32, i32, i32, i32) {
    %c0_i32 = arith.constant 0 : i32
    %c0_i32_0 = arith.constant 0 : i32
    %c0_i32_1 = arith.constant 0 : i32
    return %arg0, %c0_i32, %c0_i32_0, %arg2 : i32, i32, i32, i32
  }
  func.func @transform_1(%arg0: i32, %arg1: i32, %arg2: i32) -> (i32, i32, i32, i32) {
    %c0_i32 = arith.constant 0 : i32
    %c0_i32_0 = arith.constant 0 : i32
    %c0_i32_1 = arith.constant 0 : i32
    return %c0_i32, %c0_i32_0, %arg2, %arg1 : i32, i32, i32, i32
  }
  func.func @transform_2(%arg0: i32, %arg1: i32, %arg2: i32) -> (i32, i32) {
    %c0_i32 = arith.constant 0 : i32
    %c0_i32_0 = arith.constant 0 : i32
    return %c0_i32, %arg1 : i32, i32
  }
  func.func @transform_3(%arg0: i32, %arg1: i32, %arg2: i32) -> (i32, i32, i32, i32) {
    %c0_i32 = arith.constant 0 : i32
    %c0_i32_0 = arith.constant 0 : i32
    %c0_i32_1 = arith.constant 0 : i32
    %c0_i32_2 = arith.constant 0 : i32
    return %arg0, %c0_i32, %c0_i32_0, %c0_i32_1 : i32, i32, i32, i32
  }
  func.func @transform_4(%arg0: i32, %arg1: i32, %arg2: i32) -> (i32, i32) {
    %c0_i32 = arith.constant 0 : i32
    %c0_i32_0 = arith.constant 0 : i32
    return %c0_i32, %arg1 : i32, i32
  }
  func.func @transform_5(%arg0: i32, %arg1: i32, %arg2: i32) -> (i32, i32, i32, i32) {
    %c0_i32 = arith.constant 0 : i32
    %c0_i32_0 = arith.constant 0 : i32
    %c0_i32_1 = arith.constant 0 : i32
    return %arg0, %c0_i32, %c0_i32_0, %arg1 : i32, i32, i32, i32
  }
}

</mosaic_0001>

<bundles_post_ra>
// kernel: _forward.2
= control target key start
LH: loop header
LB: loop body
LE: loop exit
PB: predicated region body
PF: predicated region fallthrough
CT: control target
= control target key end

     0   :  { %s6148_s12 = smov 0   ;;  %s6150_s13 = smov 0   ;;  %s7672_s0 = inlined_call_operand.vmem [shape: bf16[2,18,18,128], index: 0, kind: input, shape index: {}]   ;;  %s7673_s1 = inlined_call_operand.vmem [shape: bf16[3,3,128,128], index: 1, kind: input, shape index: {}]   ;;  %s7674_s2 = inlined_call_operand.vmem [shape: f32[1,128], index: 2, kind: input, shape index: {}]   ;;  %s7675_s3 = inlined_call_operand.vmem [shape: bf16[2,16,16,128], index: 3, kind: output, shape index: {}]  }
   0x1   :  { %s6152_s14 = smov 0  }
   0x2 LB: > { %s32_s15 = sadd.s32 1, %s6122_s13  ;;  %p4951_p0 = scmp.ge.s32.totalorder %s6126_s14, 1  ;;  %s6126_s14 = sphi %s6152_s14, %s13_s14   ;;  %s6122_s13 = sphi %s6150_s13, %s7697_s13   ;;  %s6118_s12 = sphi %s6148_s12, %s7696_s12  }
   0x3   : > { %p34_p1 = scmp.ge.s32.totalorder %s32_s15, 2  ;;  %p187_p2 = scmp.lt.s32.totalorder %s6126_s14, 3 }
   0x5   : > { %s7699_s15 = smov (%p34_p1, %s32_s15), 0  ;;  %p188_p3 = pnand %p4951_p0, %p187_p2 }
   0x7   : > { %191 = sbr.rel (%p188_p3) target bundleno = 759 (0x2f7), region = 32 }
   0xc   : > { %v5829_v0 = vld [vmem:[%s7673_s1 + $0x38] sm:$0xff]  ;;  %v5828_v1 = vld [vmem:[%s7673_s1 + $0x30] sm:$0xff]  ;;  %v5827_v2 = vld [vmem:[%s7673_s1 + $0x28] sm:$0xff]  ;;  %p228_p4 = scmp.lt.s32.totalorder %s6118_s12, 1  ;;  %vm685_vm0 = vsmask.f32 3328 }
   0xd   : > { %6021 = vmatpush.bf16.msra.mxu1 %v5829_v0  ;;  %6022 = vmatpush.bf16.msra.mxu2 %v5829_v0  ;;  %v5826_v3 = vld [vmem:[%s7673_s1 + $0x20] sm:$0xff]  ;;  %v5825_v4 = vld [vmem:[%s7673_s1 + $0x18] sm:$0xff]  ;;  %v5824_v5 = vld [vmem:[%s7673_s1 + $0x10] sm:$0xff]  ;;  %vm686_vm1 = vsmask.f32 7440  ;;  %vm1386_vm2 = vcmask 1042432  }
   0xe   : > { %6023 = vmatpush.bf16.msra.mxu3 %v5829_v0  ;;  %516 = vmatpush.bf16.msra.mxu0 %v5829_v0  ;;  %s7701_s12 = smov (!%p228_p4, %s6118_s12), 1  ;;  %v5823_v6 = vld [vmem:[%s7673_s1 + $0x8] sm:$0xff]  ;;  %v5822_v7 = vld [vmem:[%s7673_s1] sm:$0xff]  ;;  %v5845_v8 = vld [vmem:[%s7673_s1 + $0xb8] sm:$0xff]  ;;  %vm1387_vm3 = vcmask 1046532  }
   0xf   : > { %s6045_s30 = smul.u32 216, %s7701_s12  ;;  %v5869_v9 = vld [vmem:[%s7673_s1 + $0xf8] sm:$0xff]  ;;  %v5844_v16 = vld [vmem:[%s7673_s1 + $0xb0] sm:$0xff]  ;;  %v5843_v20 = vld [vmem:[%s7673_s1 + $0xa8] sm:$0xff]  ;;  %s5805_s6 = sshll.u32 %s7701_s12, 7 }
  0x10   : > { %v5837_v14 = vld [vmem:[%s7673_s1 + $0x78] sm:$0xff]  ;;  %v5868_v17 = vld [vmem:[%s7673_s1 + $0xf0] sm:$0xff]  ;;  %v5867_v21 = vld [vmem:[%s7673_s1 + $0xe8] sm:$0xff]  ;;  %s7445_s9 = scalar_lea.vmem %s7675_s3, %s5805_s6 }
  0x11   : > { %6024 = vmatpush.bf16.msra.mxu1 %v5828_v1  ;;  %6025 = vmatpush.bf16.msra.mxu2 %v5828_v1  ;;  %s6200_s8 = scalar_lea.vmem %s7672_s0, %s6045_s30  ;;  %v5877_v15 = vld [vmem:[%s7673_s1 + $0x138] sm:$0xff]  ;;  %v5836_v18 = vld [vmem:[%s7673_s1 + $0x70] sm:$0xff]  ;;  %v5835_v22 = vld [vmem:[%s7673_s1 + $0x68] sm:$0xff] }
  0x12   : > { %6026 = vmatpush.bf16.msra.mxu3 %v5828_v1  ;;  %517 = vmatpush.bf16.msra.mxu0 %v5828_v1  ;;  %v5810_v10 = vld [vmem:[%s6200_s8 + $0x30] sm:$0xff]  ;;  %v5814_v11 = vld [vmem:[%s6200_s8 + $0x60] sm:$0xff]  ;;  %v5875_v23 = vld [vmem:[%s7673_s1 + $0x128] sm:$0xff] }
  0x13   : > { %v5818_v12 = vld [vmem:[%s6200_s8 + $0x90] sm:$0xff]  ;;  %v5806_v13 = vld [vmem:[%s6200_s8] sm:$0xff]  ;;  %v5841_v28 = vld [vmem:[%s7673_s1 + $0x98] sm:$0xff] }
  0x14   : > { %v5876_v19 = vld [vmem:[%s7673_s1 + $0x130] sm:$0xff]  ;;  %v5842_v24 = vld [vmem:[%s7673_s1 + $0xa0] sm:$0xff]  ;;  %v5865_v29 = vld [vmem:[%s7673_s1 + $0xd8] sm:$0xff] }
  0x15   : > { %6027 = vmatpush.bf16.msra.mxu1 %v5827_v2  ;;  %6028 = vmatpush.bf16.msra.mxu2 %v5827_v2  ;;  %v5866_v25 = vld [vmem:[%s7673_s1 + $0xe0] sm:$0xff]  ;;  %v5815_v31 = vld [vmem:[%s6200_s8 + $0x6c] sm:$0xff]  ;;  %v5833_v34 = vld [vmem:[%s7673_s1 + $0x58] sm:$0xff] }
  0x16   : > { %6029 = vmatpush.bf16.msra.mxu3 %v5827_v2  ;;  %518 = vmatpush.bf16.msra.mxu0 %v5827_v2  ;;  %v5834_v26 = vld [vmem:[%s7673_s1 + $0x60] sm:$0xff]  ;;  %v5807_v33 = vld [vmem:[%s6200_s8 + $0xc] sm:$0xff]  ;;  %v5873_v35 = vld [vmem:[%s7673_s1 + $0x118] sm:$0xff] }
  0x17   : > { %v5874_v27 = vld [vmem:[%s7673_s1 + $0x120] sm:$0xff]  ;;  %v5840_v36 = vld [vmem:[%s7673_s1 + $0x90] sm:$0xff]  ;;  %v5839_v40 = vld [vmem:[%s7673_s1 + $0x88] sm:$0xff] }
  0x18   : > { %v5811_v30 = vld [vmem:[%s6200_s8 + $0x3c] sm:$0xff]  ;;  %v5864_v37 = vld [vmem:[%s7673_s1 + $0xd0] sm:$0xff]  ;;  %v5863_v41 = vld [vmem:[%s7673_s1 + $0xc8] sm:$0xff] }
  0x19   : > { %6030 = vmatpush.bf16.msra.mxu1 %v5826_v3  ;;  %6031 = vmatpush.bf16.msra.mxu2 %v5826_v3  ;;  %v5819_v32 = vld [vmem:[%s6200_s8 + $0x9c] sm:$0xff]  ;;  %v5832_v38 = vld [vmem:[%s7673_s1 + $0x50] sm:$0xff]  ;;  %v5831_v42 = vld [vmem:[%s7673_s1 + $0x48] sm:$0xff] }
  0x1a   : > { %6032 = vmatpush.bf16.msra.mxu3 %v5826_v3  ;;  %519 = vmatpush.bf16.msra.mxu0 %v5826_v3  ;;  %v5872_v39 = vld [vmem:[%s7673_s1 + $0x110] sm:$0xff]  ;;  %v5871_v43 = vld [vmem:[%s7673_s1 + $0x108] sm:$0xff]  ;;  %v5838_v44 = vld [vmem:[%s7673_s1 + $0x80] sm:$0xff] }
  0x1b   : > { %v5862_v45 = vld [vmem:[%s7673_s1 + $0xc0] sm:$0xff]  ;;  %v5812_v48 = vld [vmem:[%s6200_s8 + $0x48] sm:$0xff]  ;;  %v5816_v49 = vld [vmem:[%s6200_s8 + $0x78] sm:$0xff] }
  0x1c   : > { %v5830_v46 = vld [vmem:[%s7673_s1 + $0x40] sm:$0xff]  ;;  %v5820_v50 = vld [vmem:[%s6200_s8 + $0xa8] sm:$0xff]  ;;  %v5808_v51 = vld [vmem:[%s6200_s8 + $0x18] sm:$0xff] }
  0x1d   : > { %6033 = vmatpush.bf16.msra.mxu1 %v5825_v4  ;;  %6034 = vmatpush.bf16.msra.mxu2 %v5825_v4  ;;  %v5870_v47 = vld [vmem:[%s7673_s1 + $0x100] sm:$0xff]  ;;  %v5307_v54 = vld [vmem:[%s6200_s8 + $0xc] sm:$0xf]  ;;  %v5909_v55 = vld [vmem:[%s7673_s1 + $0x1b8] sm:$0xff] }
  0x1e   : > { %6035 = vmatpush.bf16.msra.mxu3 %v5825_v4  ;;  %520 = vmatpush.bf16.msra.mxu0 %v5825_v4  ;;  %v637_v52 = vld [vmem:[%s6200_s8] sm:$0xf]  ;;  %v6312_v53 = vld [vmem:[%s6200_s8 + $0x4] sm:$0xf]  ;;  %v5308_v56 = vld [vmem:[%s6200_s8 + $0x10] sm:$0xf] }
  0x1f   : > { %v5917_v57 = vld [vmem:[%s7673_s1 + $0x1f8] sm:$0xff]  ;;  %v689_v60 = vshrl.u32 %v637_v52, 16  ;;  %v692_v61 = vshll.u32 %v637_v52, 16  ;;  %v698_v62 = vshll.u32 %v6312_v53, 16  ;;  %v702_v63 = vshrl.u32 %v6312_v53, 16  ;;  %vm6339_vm4 = vmor %vm685_vm0, %vm686_vm1 }
  0x20   : > { %v5885_v58 = vld [vmem:[%s7673_s1 + $0x178] sm:$0xff]  ;;  %v2115_v0 = vshrl.u32 %v5307_v54, 16  ;;  %v2118_v1 = vshll.u32 %v5307_v54, 16  ;;  %v2124_v2 = vshll.u32 %v5308_v56, 16  ;;  %v2128_v3 = vshrl.u32 %v5308_v56, 16  ;;  %vm6344_vm5 = vmor %vm1386_vm2, %vm1387_vm3 }
  0x21   : > { %6036 = vmatpush.bf16.msra.mxu1 %v5824_v5  ;;  %6037 = vmatpush.bf16.msra.mxu2 %v5824_v5  ;;  %v5925_v59 = vld [vmem:[%s7673_s1 + $0x238] sm:$0xff]  ;;  %v639_v4 = vld [vmem:[%s6200_s8 + $0x8] sm:$0x1] }
  0x22   : > { %6038 = vmatpush.bf16.msra.mxu3 %v5824_v5  ;;  %521 = vmatpush.bf16.msra.mxu0 %v5824_v5  ;;  %v691_v5 = vrot.slane %v689_v60, 4 }
  0x25   : > { %6039 = vmatpush.bf16.msra.mxu1 %v5823_v6  ;;  %6040 = vmatpush.bf16.msra.mxu2 %v5823_v6 }
  0x26   : > { %6041 = vmatpush.bf16.msra.mxu3 %v5823_v6  ;;  %522 = vmatpush.bf16.msra.mxu0 %v5823_v6  ;;  %v694_v6 = vrot.slane %v692_v61, 5 }
  0x29   : > { %6042 = vmatpush.bf16.msra.mxu1 %v5822_v7  ;;  %6043 = vmatpush.bf16.msra.mxu2 %v5822_v7 }
  0x2a   : > { %6044 = vmatpush.bf16.msra.mxu3 %v5822_v7  ;;  %523 = vmatpush.bf16.msra.mxu0 %v5822_v7  ;;  %v700_v7 = vrot.slane %v698_v62, 5 }
  0x2c   : > { %544 = vmatmul.bf16.vlgmr.msra.gmra.mxu1 %v5810_v10  ;;  %564 = vmatmul.bf16.vlgmr.msra.gmra.mxu2 %v5814_v11  ;;  %v2120_v10 = vrot.slane %v2118_v1, 5  ;;  %v2126_v11 = vrot.slane %v2124_v2, 5 }
  0x2d   : > { %1630 = vmatpush.bf16.msrb.mxu2 %v5845_v8  ;;  %584 = vmatmul.bf16.vlgmr.msra.gmra.mxu3 %v5818_v12  ;;  %v704_v8 = vrot.slane %v702_v63, 4  ;;  %v2130_v12 = vrot.slane %v2128_v3, 4 }
  0x2e   : > { %1945 = vmatpush.bf16.msrb.mxu3 %v5869_v9  ;;  %524 = vmatmul.bf16.vlgmr.msra.gmra.mxu0 %v5806_v13  ;;  %v2117_v9 = vrot.slane %v2115_v0, 4  ;;  %v5309_v13 = vld [vmem:[%s6200_s8 + $0x14] sm:$0x1] }
  0x2f   : > { %1201 = vmatpush.bf16.msrb.mxu1 %v5837_v14  ;;  %2627 = vmatpush.bf16.msrb.mxu0 %v5877_v15  ;;  %v708_v14 = vshll.u32 %v639_v4, 16  ;;  %v5813_v15 = vld [vmem:[%s6200_s8 + $0x54] sm:$0xff] }
  0x31   : > { %1631 = vmatpush.bf16.msrb.mxu2 %v5844_v16  ;;  %v695_v16 = vor.u32 %v694_v6, %v691_v5 }
  0x32   : > { %1946 = vmatpush.bf16.msrb.mxu3 %v5868_v17  ;;  %v705_v17 = vor.u32 %v704_v8, %v700_v7  ;;  %v5312_v8 = vld [vmem:[%s6200_s8 + $0x20] sm:$0x1] }
  0x33   : > { %1202 = vmatpush.bf16.msrb.mxu1 %v5836_v18  ;;  %2628 = vmatpush.bf16.msrb.mxu0 %v5876_v19  ;;  %v1391_v18 = vrot.slane %v6312_v53, 5  ;;  %v5817_v19 = vld [vmem:[%s6200_s8 + $0x84] sm:$0xff] }
  0x35   : > { %1632 = vmatpush.bf16.msrb.mxu2 %v5843_v20  ;;  %v1322_v20 = vld [vmem:[%s6200_s8] sm:$0xe] }
  0x36   : > { %1947 = vmatpush.bf16.msrb.mxu3 %v5867_v21  ;;  %v2121_v21 = vor.u32 %v2120_v10, %v2117_v9 }
  0x37   : > { %1203 = vmatpush.bf16.msrb.mxu1 %v5835_v22  ;;  %2629 = vmatpush.bf16.msrb.mxu0 %v5875_v23  ;;  %v2131_v22 = vor.u32 %v2130_v12, %v2126_v11  ;;  %v2134_v23 = vshll.u32 %v5309_v13, 16  ;;  %v1323_v12 = vld [vmem:[%s6200_s8 + $0xc] sm:$0xe] }
  0x39   : > { %1633 = vmatpush.bf16.msrb.mxu2 %v5842_v24  ;;  %v5821_v24 = vld [vmem:[%s6200_s8 + $0xb4] sm:$0xff] }
  0x3a   : > { %1948 = vmatpush.bf16.msrb.mxu3 %v5866_v25  ;;  %v5809_v25 = vld [vmem:[%s6200_s8 + $0x24] sm:$0xff] }
  0x3b   : > { %1204 = vmatpush.bf16.msrb.mxu1 %v5834_v26  ;;  %2630 = vmatpush.bf16.msrb.mxu0 %v5874_v27  ;;  %v710_v26 = vrot.slane %v708_v14, 5  ;;  %v5846_v14 = vld [vmem:[%s6200_s8 + $0xc] sm:$0xff] }
  0x3c   : > { %549 = vmatmul.bf16.gmra.mxu1 %v5811_v30  ;;  %569 = vmatmul.bf16.gmra.mxu2 %v5815_v31  ;;  %v5099_v30 = vrot.slane %v1322_v20, 9  ;;  %v1393_v31 = vrot.slane %v1391_v18, 4 }
  0x3d   : > { %1634 = vmatpush.bf16.msrb.mxu2 %v5841_v28  ;;  %589 = vmatmul.bf16.gmra.mxu3 %v5819_v32  ;;  %v696_v28 = vrot.slane %v695_v16, 4  ;;  %v640_v32 = vld [vmem:[%s6200_s8 + $0xc] sm:$0xf] }
  0x3e   : > { %1949 = vmatpush.bf16.msrb.mxu3 %v5865_v29  ;;  %529 = vmatmul.bf16.gmra.mxu0 %v5807_v33  ;;  %v706_v29 = vrot.slane %v705_v17, 4 }
  0x3f   : > { %1205 = vmatpush.bf16.msrb.mxu1 %v5833_v34  ;;  %2631 = vmatpush.bf16.msrb.mxu0 %v5873_v35  ;;  %v1394_v34 = vrot.slane %v639_v4, 5  ;;  %v2122_v35 = vrot.slane %v2121_v21, 4 }
  0x41   : > { %1635 = vmatpush.bf16.msrb.mxu2 %v5840_v36  ;;  %v2132_v36 = vrot.slane %v2131_v22, 4  ;;  %v5100_v22 = vrot.slane %v1323_v12, 9 }
  0x42   : > { %1950 = vmatpush.bf16.msrb.mxu3 %v5864_v37  ;;  %v2136_v37 = vrot.slane %v2134_v23, 5  ;;  %v643_v23 = vld [vmem:[%s6200_s8 + $0x18] sm:$0xf] }
  0x43   : > { %1206 = vmatpush.bf16.msrb.mxu1 %v5832_v38  ;;  %2632 = vmatpush.bf16.msrb.mxu0 %v5872_v39  ;;  %v6349_v38 = vld [vmem:[%s6200_s8 + $0x10] sm:$0xf]  ;;  %v713_v39 = vshrl.u32 %v640_v32, 16 }
  0x44   : > { %v1398_v13 = vrot.slane %v6349_v38, 5 }
  0x45   : > { %1636 = vmatpush.bf16.msrb.mxu2 %v5839_v40  ;;  %v716_v40 = vshll.u32 %v640_v32, 16 }
  0x46   : > { %1951 = vmatpush.bf16.msrb.mxu3 %v5863_v41  ;;  %v5310_v41 = vld [vmem:[%s6200_s8 + $0x18] sm:$0xf] }
  0x47   : > { %1207 = vmatpush.bf16.msrb.mxu1 %v5831_v42  ;;  %2633 = vmatpush.bf16.msrb.mxu0 %v5871_v43  ;;  %v5311_v42 = vld [vmem:[%s6200_s8 + $0x1c] sm:$0xf]  ;;  %v701_v43 = vsel %vm6339_vm4, %v696_v28, %v700_v7  ;;  %v2142_v52 = vshll.u32 %v5310_v41, 16  ;;  %v718_v56 = vrot.slane %v716_v40, 5  ;;  %v5313_v28 = vld [vmem:[%s6200_s8 + $0x24] sm:$0xf] }
  0x48   : > { %v2148_v53 = vshll.u32 %v5311_v42, 16  ;;  %v2152_v54 = vshrl.u32 %v5311_v42, 16  ;;  %v2163_v42 = vshrl.u32 %v5313_v28, 16 }
  0x49   : > { %1637 = vmatpush.bf16.msrb.mxu2 %v5838_v44  ;;  %v1392_v44 = vsel %vm6344_vm5, %v5099_v30, %v1391_v18  ;;  %v2144_v3 = vrot.slane %v2142_v52, 5  ;;  %v2158_v18 = vshll.u32 %v5312_v8, 16 }
  0x4a   : > { %1952 = vmatpush.bf16.msrb.mxu3 %v5862_v45  ;;  %v722_v45 = vshll.u32 %v6349_v38, 16  ;;  %v6370_v4 = vrot.slane %v2148_v53, 5  ;;  %v2154_v5 = vrot.slane %v2152_v54, 4 }
  0x4b   : > { %1208 = vmatpush.bf16.msrb.mxu1 %v5830_v46  ;;  %2634 = vmatpush.bf16.msrb.mxu0 %v5870_v47  ;;  %v726_v46 = vshrl.u32 %v6349_v38, 16  ;;  %v711_v47 = vsel %vm6339_vm4, %v706_v29, %v710_v26  ;;  %v5314_v29 = vld [vmem:[%s6200_s8 + $0x28] sm:$0xf]  ;;  %v2160_v32 = vrot.slane %v2158_v18, 5  ;;  %v740_v38 = vshll.u32 %v643_v23, 16 }
  0x4c   : > { %554 = vmatmul.bf16.gmra.mxu1 %v5812_v48  ;;  %574 = vmatmul.bf16.gmra.mxu2 %v5816_v49  ;;  %v1395_v48 = vsel %vm6344_vm5, %v1393_v31, %v1394_v34  ;;  %v2127_v49 = vsel %vm6339_vm4, %v2122_v35, %v2126_v11  ;;  %v6368_v60 = vrot.slane %v722_v45, 5  ;;  %v1090_v62 = vunpack.c.l.b16 %v711_v47  ;;  %v5908_v34 = vld [vmem:[%s7673_s1 + $0x1b0] sm:$0xff] }
  0x4d   : > { %594 = vmatmul.bf16.gmra.mxu3 %v5820_v50  ;;  %3368 = vmatpush.bf16.msra.mxu2 %v5909_v55  ;;  %v2137_v50 = vsel %vm6339_vm4, %v2132_v36, %v2136_v37  ;;  %v715_v55 = vrot.slane %v713_v39, 4  ;;  %v728_v61 = vrot.slane %v726_v46, 4  ;;  %v1519_v63 = vunpack.c.l.b16 %v1395_v48  ;;  %v5916_v35 = vld [vmem:[%s7673_s1 + $0x1f0] sm:$0xff] }
  0x4e   : > { %534 = vmatmul.bf16.gmra.mxu0 %v5808_v51  ;;  %4050 = vmatpush.bf16.msra.mxu3 %v5917_v57  ;;  %v2139_v51 = vshrl.u32 %v5310_v41, 16  ;;  %v1089_v57 = vunpack.c.l.b16 %v701_v43  ;;  %v2515_v0 = vunpack.c.l.b16 %v2127_v49  ;;  %v2516_v1 = vunpack.c.l.b16 %v2137_v50  ;;  %v5884_v36 = vld [vmem:[%s7673_s1 + $0x170] sm:$0xff] }
  0x4f   : > { %3053 = vmatpush.bf16.msra.mxu1 %v5885_v58  ;;  %4476 = vmatpush.bf16.msra.mxu0 %v5925_v59  ;;  %v1518_v58 = vunpack.c.l.b16 %v1392_v44  ;;  %v642_v59 = vld [vmem:[%s6200_s8 + $0x14] sm:$0x1]  ;;  %v719_v6 = vor.u32 %v718_v56, %v715_v55  ;;  %v729_v9 = vor.u32 %v728_v61, %v6368_v60  ;;  %v2155_v17 = vor.u32 %v2154_v5, %v6370_v4 }
  0x50   : > { %v2141_v2 = vrot.slane %v2139_v51, 4  ;;  %v732_v7 = vshll.u32 %v642_v59, 16  ;;  %v1121_v10 = vpack.c.b16 %v1090_v62, %v1089_v57  ;;  %v1401_v26 = vrot.slane %v642_v59, 5  ;;  %v5924_v41 = vld [vmem:[%s7673_s1 + $0x230] sm:$0xff] }
  0x51   : > { %v1550_v11 = vpack.c.b16 %v1519_v63, %v1518_v58  ;;  %v730_v21 = vrot.slane %v729_v9, 4  ;;  %v2156_v31 = vrot.slane %v2155_v17, 4  ;;  %v737_v37 = vshrl.u32 %v643_v23, 16  ;;  %3369 = vmatpush.bf16.msra.mxu2 %v5908_v34  ;;  %v645_v58 = vld [vmem:[%s6200_s8 + $0x20] sm:$0x1] }
  0x52   : > { %v2145_v16 = vor.u32 %v2144_v3, %v2141_v2  ;;  %v734_v20 = vrot.slane %v732_v7, 5  ;;  %v2166_v43 = vshll.u32 %v5313_v28, 16  ;;  %4051 = vmatpush.bf16.msra.mxu3 %v5916_v35  ;;  %v2172_v46 = vshll.u32 %v5314_v29, 16  ;;  %v5315_v3 = vld [vmem:[%s6200_s8 + $0x2c] sm:$0x1] }
  0x53   : > { %v2176_v47 = vshrl.u32 %v5314_v29, 16  ;;  %3054 = vmatpush.bf16.msra.mxu1 %v5884_v36  ;;  %4477 = vmatpush.bf16.msra.mxu0 %v5924_v41  ;;  %v1399_v48 = vsel %vm6344_vm5, %v5100_v22, %v1398_v13  ;;  %v2161_v51 = vsel %vm6339_vm4, %v2156_v31, %v2160_v32  ;;  %v739_v52 = vrot.slane %v737_v37, 4  ;;  %v5316_v32 = vld [vmem:[%s6200_s8 + $0x30] sm:$0xf] }
  0x54   : > { %v2146_v30 = vrot.slane %v2145_v16, 4  ;;  %v735_v45 = vsel %vm6339_vm4, %v730_v21, %v734_v20  ;;  %v742_v53 = vrot.slane %v740_v38, 5  ;;  %v2165_v59 = vrot.slane %v2163_v42, 4  ;;  %v646_v16 = vld [vmem:[%s6200_s8 + $0x24] sm:$0xf] }
  0x55   : > { %v1092_v57 = vunpack.c.l.b16 %v735_v45  ;;  %v1520_v61 = vunpack.c.l.b16 %v1399_v48  ;;  %v2174_v63 = vrot.slane %v2172_v46, 5  ;;  %v2518_v2 = vunpack.c.l.b16 %v2161_v51  ;;  %v6419_v20 = vld [vmem:[%s6200_s8 + $0x28] sm:$0xf]  ;;  %v5317_v38 = vld [vmem:[%s6200_s8 + $0x34] sm:$0xf] }
  0x56   : > { %v2151_v50 = vsel %vm6339_vm4, %v2146_v30, %v6370_v4  ;;  %v743_v4 = vor.u32 %v742_v53, %v739_v52  ;;  %v1408_v23 = vrot.slane %v645_v58, 5  ;;  %v761_v28 = vshrl.u32 %v646_v16, 16 }
  0x57   : > { %v764_v29 = vshll.u32 %v646_v16, 16  ;;  %v770_v30 = vshll.u32 %v6419_v20, 16  ;;  %v774_v31 = vshrl.u32 %v6419_v20, 16  ;;  %v2187_v46 = vshrl.u32 %v5316_v32, 16  ;;  %v6450_v16 = vld [vmem:[%s6200_s8 + $0x34] sm:$0xf] }
  0x58   : > { %v744_v17 = vrot.slane %v743_v4, 4  ;;  %v763_v41 = vrot.slane %v761_v28, 4  ;;  %v2196_v48 = vshll.u32 %v5317_v38, 16  ;;  %v1325_v4 = vld [vmem:[%s6200_s8 + $0x24] sm:$0xe] }
  0x59   : > { %v766_v42 = vrot.slane %v764_v29, 5  ;;  %v776_v45 = vrot.slane %v774_v31, 4  ;;  %v794_v31 = vshll.u32 %v6450_v16, 16 }
  0x5c   : > { %559 = vmatmul.bf16.gmra.mxu1 %v5813_v15  ;;  %579 = vmatmul.bf16.gmra.mxu2 %v5817_v19  ;;  %v2547_v15 = vpack.c.b16 %v2516_v1, %v2515_v0  ;;  %v720_v19 = vrot.slane %v719_v6, 4  ;;  %v2178_v0 = vrot.slane %v2176_v47, 4  ;;  %v2517_v1 = vunpack.c.l.b16 %v2151_v50 }
  0x5d   : > { %599 = vmatmul.bf16.gmra.mxu3 %v5821_v24  ;;  %v6380_v24 = vld [vmem:[%s6200_s8 + $0x1c] sm:$0xf]  ;;  %v756_v6 = vshll.u32 %v645_v58, 16  ;;  %v2190_v47 = vshll.u32 %v5316_v32, 16  ;;  %v798_v32 = vshrl.u32 %v6450_v16, 16 }
  0x5e   : > { %539 = vmatmul.bf16.gmra.mxu0 %v5809_v25  ;;  %v1400_v25 = vrot.slane %v1398_v13, 4  ;;  %v746_v39 = vshll.u32 %v6380_v24, 16  ;;  %v750_v40 = vshrl.u32 %v6380_v24, 16  ;;  %v725_v44 = vsel %vm6339_vm4, %v720_v19, %v6368_v60 }
  0x5f   : > { %v1091_v56 = vunpack.c.l.b16 %v725_v44  ;;  %v2168_v60 = vrot.slane %v2166_v43, 5  ;;  %v1405_v7 = vrot.slane %v6380_v24, 5  ;;  %v2179_v12 = vor.u32 %v2178_v0, %v2174_v63  ;;  %v648_v43 = vld [vmem:[%s6200_s8 + $0x2c] sm:$0x1]  ;;  %v5318_v0 = vld [vmem:[%s6200_s8 + $0x38] sm:$0x1] }
  0x60   : > { %v1402_v49 = vsel %vm6344_vm5, %v1400_v25, %v1401_v26  ;;  %v748_v54 = vrot.slane %v746_v39, 5  ;;  %v752_v55 = vrot.slane %v750_v40, 4  ;;  %v2182_v13 = vshll.u32 %v5315_v3, 16 }
  0x61   : > { %v1521_v62 = vunpack.c.l.b16 %v1402_v49  ;;  %v2169_v8 = vor.u32 %v2168_v60, %v2165_v59  ;;  %v1122_v9 = vpack.c.b16 %v1092_v57, %v1091_v56  ;;  %v758_v19 = vrot.slane %v756_v6, 5 }
  0x62   : > { %v753_v5 = vor.u32 %v752_v55, %v748_v54  ;;  %v1407_v22 = vrot.slane %v1405_v7, 4  ;;  %v2180_v24 = vrot.slane %v2179_v12, 4  ;;  %v2184_v26 = vrot.slane %v2182_v13, 5 }
  0x63   : > { %v2170_v25 = vrot.slane %v2169_v8, 4  ;;  %v749_v34 = vsel %vm6339_vm4, %v744_v17, %v748_v54  ;;  %v6438_v44 = vrot.slane %v770_v30, 5  ;;  %v2200_v49 = vshrl.u32 %v5317_v38, 16  ;;  %v5319_v17 = vld [vmem:[%s6200_s8 + $0x3c] sm:$0xf]  ;;  %v5883_v38 = vld [vmem:[%s7673_s1 + $0x168] sm:$0xff] }
  0x64   : > { %v754_v18 = vrot.slane %v753_v5, 4  ;;  %v1409_v37 = vsel %vm6344_vm5, %v1407_v22, %v1408_v23  ;;  %v2185_v40 = vsel %vm6339_vm4, %v2180_v24, %v2184_v26  ;;  %v1093_v50 = vunpack.c.l.b16 %v749_v34  ;;  %v5848_v5 = vld [vmem:[%s6200_s8 + $0x24] sm:$0xff]  ;;  %v5320_v22 = vld [vmem:[%s6200_s8 + $0x40] sm:$0xf]  ;;  %3055 = vmatpush.bf16.msra.mxu1 %v5883_v38 }
  0x65   : > { %v2175_v39 = vsel %vm6339_vm4, %v2170_v25, %v2174_v63  ;;  %v1523_v53 = vunpack.c.l.b16 %v1409_v37  ;;  %v2520_v55 = vunpack.c.l.b16 %v2185_v40  ;;  %v780_v56 = vshll.u32 %v648_v43, 16  ;;  %v5915_v23 = vld [vmem:[%s7673_s1 + $0x1e8] sm:$0xff] }
  0x66   : > { %v759_v35 = vsel %vm6339_vm4, %v754_v18, %v758_v19  ;;  %v2519_v54 = vunpack.c.l.b16 %v2175_v39  ;;  %v767_v57 = vor.u32 %v766_v42, %v763_v41  ;;  %v777_v58 = vor.u32 %v776_v45, %v6438_v44  ;;  %4052 = vmatpush.bf16.msra.mxu3 %v5915_v23  ;;  %v5923_v45 = vld [vmem:[%s7673_s1 + $0x228] sm:$0xff] }
  0x67   : > { %v1094_v51 = vunpack.c.l.b16 %v759_v35  ;;  %v2189_v59 = vrot.slane %v2187_v46, 4  ;;  %v2192_v60 = vrot.slane %v2190_v47, 5  ;;  %v1412_v63 = vrot.slane %v6419_v20, 5  ;;  %4478 = vmatpush.bf16.msra.mxu0 %v5923_v45  ;;  %v5322_v23 = vld [vmem:[%s6200_s8 + $0x48] sm:$0xf] }
  0x68   : > { %v2549_v3 = vpack.c.b16 %v2520_v55, %v2519_v54  ;;  %v768_v6 = vrot.slane %v767_v57, 4  ;;  %v782_v8 = vrot.slane %v780_v56, 5  ;;  %v5102_v12 = vrot.slane %v1325_v4, 9  ;;  %v5321_v57 = vld [vmem:[%s6200_s8 + $0x44] sm:$0x1]  ;;  %v5849_v4 = vld [vmem:[%s6200_s8 + $0x30] sm:$0xff] }
  0x69   : > { %v1414_v13 = vrot.slane %v1412_v63, 4  ;;  %v2211_v34 = vshrl.u32 %v5319_v17, 16  ;;  %v2214_v35 = vshll.u32 %v5319_v17, 16  ;;  %v2224_v37 = vshrl.u32 %v5320_v22, 16 }
  0x6a   : > { %v773_v18 = vsel %vm6339_vm4, %v768_v6, %v6438_v44  ;;  %v1413_v29 = vsel %vm6344_vm5, %v5102_v12, %v1412_v63 }
  0x6b   : > { %v1095_v39 = vunpack.c.l.b16 %v773_v18  ;;  %v1524_v46 = vunpack.c.l.b16 %v1413_v29  ;;  %v2226_v54 = vrot.slane %v2224_v37, 4 }
  0x6c   : > { %1209 = vmatmul.bf16.vlgmr.msrb.gmra.mxu1 %v1121_v10  ;;  %1638 = vmatmul.bf16.vlgmr.msrb.gmra.mxu2 %v1550_v11  ;;  %v1551_v10 = vpack.c.b16 %v1521_v62, %v1520_v61  ;;  %v1324_v11 = vld [vmem:[%s6200_s8 + $0x18] sm:$0xe]  ;;  %v6441_v61 = vrot.slane %v2196_v48, 5  ;;  %v2202_v62 = vrot.slane %v2200_v49, 4  ;;  %v796_v48 = vrot.slane %v794_v31, 5 }
  0x6d   : > { %1953 = vmatmul.bf16.vlgmr.msrb.gmra.mxu3 %v5846_v14  ;;  %v5847_v14 = vld [vmem:[%s6200_s8 + $0x18] sm:$0xff]  ;;  %v5101_v21 = vrot.slane %v1324_v11, 9  ;;  %v2206_v11 = vshll.u32 %v5318_v0, 16  ;;  %v800_v49 = vrot.slane %v798_v32, 4  ;;  %v1326_v0 = vld [vmem:[%s6200_s8 + $0x30] sm:$0xe] }
  0x6e   : > { %2635 = vmatmul.bf16.vlgmr.msrb.gmra.mxu0 %v2547_v15  ;;  %v2548_v15 = vpack.c.b16 %v2518_v2, %v2517_v1  ;;  %v1123_v1 = vpack.c.b16 %v1094_v51, %v1093_v50  ;;  %v651_v50 = vld [vmem:[%s6200_s8 + $0x38] sm:$0x1]  ;;  %v2213_v51 = vrot.slane %v2211_v34, 4 }
  0x6f   : > { %v1406_v36 = vsel %vm6344_vm5, %v5101_v21, %v1405_v7  ;;  %v778_v7 = vrot.slane %v777_v58, 4  ;;  %v5907_v21 = vld [vmem:[%s7673_s1 + $0x1a8] sm:$0xff]  ;;  %v2208_v24 = vrot.slane %v2206_v11, 5  ;;  %v5103_v11 = vrot.slane %v1326_v0, 9 }
  0x70   : > { %v1522_v52 = vunpack.c.l.b16 %v1406_v36  ;;  %3370 = vmatpush.bf16.msra.mxu2 %v5907_v21  ;;  %v2220_v36 = vshll.u32 %v5320_v22, 16 }
  0x71   : > { %v783_v19 = vsel %vm6339_vm4, %v778_v7, %v782_v8  ;;  %v652_v7 = vld [vmem:[%s6200_s8 + $0x3c] sm:$0xf]  ;;  %v6489_v8 = vld [vmem:[%s6200_s8 + $0x40] sm:$0xf] }
  0x72   : > { %v1552_v2 = vpack.c.b16 %v1523_v53, %v1522_v52  ;;  %v1096_v40 = vunpack.c.l.b16 %v783_v19  ;;  %v2216_v52 = vrot.slane %v2214_v35, 5  ;;  %v2222_v53 = vrot.slane %v2220_v36, 5 }
  0x73   : > { %v809_v17 = vshrl.u32 %v652_v7, 16  ;;  %v812_v18 = vshll.u32 %v652_v7, 16  ;;  %v818_v19 = vshll.u32 %v6489_v8, 16  ;;  %v2235_v35 = vshrl.u32 %v5322_v23, 16  ;;  %v655_v7 = vld [vmem:[%s6200_s8 + $0x48] sm:$0xf] }
  0x74   : > { %v2238_v36 = vshll.u32 %v5322_v23, 16  ;;  %v836_v23 = vshll.u32 %v655_v7, 16 }
  0x75   : > { %v814_v31 = vrot.slane %v812_v18, 5  ;;  %v6507_v32 = vrot.slane %v818_v19, 5 }
  0x7c   : > { %1214 = vmatmul.bf16.gmra.mxu1 %v1122_v9  ;;  %1643 = vmatmul.bf16.gmra.mxu2 %v1551_v10  ;;  %v2193_v9 = vor.u32 %v2192_v60, %v2189_v59  ;;  %v2203_v10 = vor.u32 %v2202_v62, %v6441_v61  ;;  %v1124_v59 = vpack.c.b16 %v1096_v40, %v1095_v39  ;;  %v1419_v62 = vrot.slane %v6450_v16, 5 }
  0x7d   : > { %1958 = vmatmul.bf16.gmra.mxu3 %v5847_v14  ;;  %v1415_v14 = vrot.slane %v648_v43, 5  ;;  %v801_v60 = vor.u32 %v800_v49, %v796_v48  ;;  %v2240_v49 = vrot.slane %v2238_v36, 5 }
  0x7e   : > { %2640 = vmatmul.bf16.gmra.mxu0 %v2548_v15  ;;  %v649_v15 = vld [vmem:[%s6200_s8 + $0x30] sm:$0xf]  ;;  %v2194_v20 = vrot.slane %v2193_v9, 4  ;;  %v2204_v25 = vrot.slane %v2203_v10, 4  ;;  %v1421_v12 = vrot.slane %v1419_v62, 4 }
  0x7f   : > { %v785_v26 = vshrl.u32 %v649_v15, 16  ;;  %v788_v28 = vshll.u32 %v649_v15, 16  ;;  %v1416_v30 = vsel %vm6344_vm5, %v1414_v13, %v1415_v14  ;;  %v802_v9 = vrot.slane %v801_v60, 4 }
  0x80   : > { %v2199_v41 = vsel %vm6339_vm4, %v2194_v20, %v6441_v61  ;;  %v2209_v42 = vsel %vm6339_vm4, %v2204_v25, %v2208_v24  ;;  %v1525_v47 = vunpack.c.l.b16 %v1416_v30  ;;  %v804_v61 = vshll.u32 %v651_v50, 16  ;;  %v5323_v25 = vld [vmem:[%s6200_s8 + $0x4c] sm:$0xf] }
  0x81   : > { %v787_v43 = vrot.slane %v785_v26, 4  ;;  %v790_v44 = vrot.slane %v788_v28, 5  ;;  %v2521_v55 = vunpack.c.l.b16 %v2199_v41  ;;  %v2522_v56 = vunpack.c.l.b16 %v2209_v42 }
  0x82   : > { %v1553_v63 = vpack.c.b16 %v1525_v47, %v1524_v46  ;;  %v806_v10 = vrot.slane %v804_v61, 5  ;;  %v1422_v13 = vrot.slane %v651_v50, 5  ;;  %v822_v20 = vshrl.u32 %v6489_v8, 16 }
  0x83   : > { %v791_v58 = vor.u32 %v790_v44, %v787_v43  ;;  %v1420_v24 = vsel %vm6344_vm5, %v5103_v11, %v1419_v62  ;;  %v811_v30 = vrot.slane %v809_v17, 4  ;;  %v2244_v37 = vshll.u32 %v5323_v25, 16  ;;  %v654_v43 = vld [vmem:[%s6200_s8 + $0x44] sm:$0x1] }
  0x84   : > { %v807_v22 = vsel %vm6339_vm4, %v802_v9, %v806_v10  ;;  %v1423_v26 = vsel %vm6344_vm5, %v1421_v12, %v1422_v13  ;;  %v824_v34 = vrot.slane %v822_v20, 4  ;;  %v2248_v38 = vshrl.u32 %v5323_v25, 16  ;;  %v5906_v9 = vld [vmem:[%s7673_s1 + $0x1a0] sm:$0xff]  ;;  %v5326_v20 = vld [vmem:[%s6200_s8 + $0x58] sm:$0xf] }
  0x85   : > { %v792_v6 = vrot.slane %v791_v58, 4  ;;  %v1098_v40 = vunpack.c.l.b16 %v807_v22  ;;  %v1526_v41 = vunpack.c.l.b16 %v1420_v24  ;;  %v1527_v42 = vunpack.c.l.b16 %v1423_v26  ;;  %v5914_v10 = vld [vmem:[%s7673_s1 + $0x1e0] sm:$0xff]  ;;  %3371 = vmatpush.bf16.msra.mxu2 %v5906_v9  ;;  %v658_v9 = vld [vmem:[%s6200_s8 + $0x54] sm:$0xf] }
  0x86   : > { %v815_v46 = vor.u32 %v814_v31, %v811_v30  ;;  %v825_v47 = vor.u32 %v824_v34, %v6507_v32  ;;  %v6511_v50 = vrot.slane %v2244_v37, 5  ;;  %4053 = vmatpush.bf16.msra.mxu3 %v5914_v10  ;;  %v833_v22 = vshrl.u32 %v655_v7, 16  ;;  %v5882_v26 = vld [vmem:[%s7673_s1 + $0x160] sm:$0xff] }
  0x87   : > { %v797_v21 = vsel %vm6339_vm4, %v792_v6, %v796_v48  ;;  %v2237_v48 = vrot.slane %v2235_v35, 4  ;;  %v1429_v6 = vrot.slane %v654_v43, 5  ;;  %v2268_v35 = vshll.u32 %v5326_v20, 16  ;;  %3056 = vmatpush.bf16.msra.mxu1 %v5882_v26  ;;  %v5922_v37 = vld [vmem:[%s7673_s1 + $0x220] sm:$0xff] }
  0x88   : > { %v1097_v39 = vunpack.c.l.b16 %v797_v21  ;;  %v816_v61 = vrot.slane %v815_v46, 4  ;;  %v2272_v36 = vshrl.u32 %v5326_v20, 16  ;;  %4479 = vmatpush.bf16.msra.mxu0 %v5922_v37 }
  0x89   : > { %v2241_v0 = vor.u32 %v2240_v49, %v2237_v48  ;;  %v657_v48 = vld [vmem:[%s6200_s8 + $0x50] sm:$0x1] }
  0x8a   : > { %v821_v11 = vsel %vm6339_vm4, %v816_v61, %v6507_v32  ;;  %v852_v61 = vshll.u32 %v657_v48, 16 }
  0x8b   : > { %v2242_v12 = vrot.slane %v2241_v0, 4  ;;  %v5851_v0 = vld [vmem:[%s6200_s8 + $0x48] sm:$0xff] }
  0x8c   : > { %1219 = vmatmul.bf16.gmra.mxu1 %v1123_v1  ;;  %1648 = vmatmul.bf16.gmra.mxu2 %v1552_v2  ;;  %v2217_v1 = vor.u32 %v2216_v52, %v2213_v51  ;;  %v2227_v2 = vor.u32 %v2226_v54, %v2222_v53  ;;  %v2250_v51 = vrot.slane %v2248_v38, 4  ;;  %v828_v52 = vshll.u32 %v654_v43, 16  ;;  %v5324_v54 = vld [vmem:[%s6200_s8 + $0x50] sm:$0x1] }
  0x8d   : > { %1963 = vmatmul.bf16.gmra.mxu3 %v5848_v5  ;;  %v2550_v5 = vpack.c.b16 %v2522_v56, %v2521_v55  ;;  %v1125_v55 = vpack.c.b16 %v1098_v40, %v1097_v39  ;;  %v1554_v56 = vpack.c.b16 %v1527_v42, %v1526_v41  ;;  %v2247_v32 = vsel %vm6339_vm4, %v2242_v12, %v6511_v50 }
  0x8e   : > { %2645 = vmatmul.bf16.gmra.mxu0 %v2549_v3  ;;  %v2230_v3 = vshll.u32 %v5321_v57, 16  ;;  %v2218_v14 = vrot.slane %v2217_v1, 4  ;;  %v2228_v15 = vrot.slane %v2227_v2, 4  ;;  %v1327_v57 = vld [vmem:[%s6200_s8 + $0x3c] sm:$0xe]  ;;  %v2251_v1 = vor.u32 %v2250_v51, %v6511_v50 }
  0x8f   : > { %v2254_v2 = vshll.u32 %v5324_v54, 16  ;;  %v1099_v38 = vunpack.c.l.b16 %v821_v11  ;;  %v835_v42 = vrot.slane %v833_v22, 4  ;;  %v838_v43 = vrot.slane %v836_v23, 5 }
  0x90   : > { %v2232_v16 = vrot.slane %v2230_v3, 5  ;;  %v2223_v28 = vsel %vm6339_vm4, %v2218_v14, %v2222_v53  ;;  %v1426_v53 = vrot.slane %v6489_v8, 5  ;;  %v830_v3 = vrot.slane %v828_v52, 5  ;;  %v6524_v8 = vld [vmem:[%s6200_s8 + $0x4c] sm:$0xf] }
  0x91   : > { %v2523_v44 = vunpack.c.l.b16 %v2223_v28  ;;  %v2252_v13 = vrot.slane %v2251_v1, 4  ;;  %v2256_v14 = vrot.slane %v2254_v2, 5  ;;  %v842_v25 = vshll.u32 %v6524_v8, 16 }
  0x92   : > { %v2233_v29 = vsel %vm6339_vm4, %v2228_v15, %v2232_v16  ;;  %v5325_v15 = vld [vmem:[%s6200_s8 + $0x54] sm:$0xf]  ;;  %v846_v24 = vshrl.u32 %v6524_v8, 16  ;;  %v2525_v46 = vunpack.c.l.b16 %v2247_v32  ;;  %v6567_v51 = vrot.slane %v2268_v35, 5 }
  0x93   : > { %v2524_v45 = vunpack.c.l.b16 %v2233_v29  ;;  %v2259_v29 = vshrl.u32 %v5325_v15, 16  ;;  %v2262_v30 = vshll.u32 %v5325_v15, 16  ;;  %v2257_v34 = vsel %vm6339_vm4, %v2252_v13, %v2256_v14  ;;  %v6585_v13 = vld [vmem:[%s6200_s8 + $0x58] sm:$0xf] }
  0x94   : > { %v2274_v52 = vrot.slane %v2272_v36, 4  ;;  %v1433_v2 = vrot.slane %v6524_v8, 5  ;;  %v854_v12 = vrot.slane %v852_v61, 5  ;;  %v1436_v15 = vrot.slane %v657_v48, 5 }
  0x95   : > { %v2551_v60 = vpack.c.b16 %v2524_v45, %v2523_v44  ;;  %v6564_v44 = vrot.slane %v842_v25, 5  ;;  %v848_v45 = vrot.slane %v846_v24, 4  ;;  %v2261_v49 = vrot.slane %v2259_v29, 4  ;;  %v5329_v25 = vld [vmem:[%s6200_s8 + $0x64] sm:$0xf] }
  0x96   : > { %v2264_v50 = vrot.slane %v2262_v30, 5  ;;  %v1435_v14 = vrot.slane %v1433_v2, 4  ;;  %v857_v22 = vshrl.u32 %v658_v9, 16  ;;  %v860_v23 = vshll.u32 %v658_v9, 16 }
  0x97   : > { %v866_v26 = vshll.u32 %v6585_v13, 16  ;;  %v870_v29 = vshrl.u32 %v6585_v13, 16 }
  0x9c   : > { %1224 = vmatmul.bf16.gmra.mxu1 %v1124_v59  ;;  %1653 = vmatmul.bf16.gmra.mxu2 %v1553_v63  ;;  %v5850_v59 = vld [vmem:[%s6200_s8 + $0x3c] sm:$0xff]  ;;  %v826_v63 = vrot.slane %v825_v47, 4  ;;  %v2526_v47 = vunpack.c.l.b16 %v2257_v34 }
  0x9d   : > { %1968 = vmatmul.bf16.gmra.mxu3 %v5849_v4  ;;  %v5104_v4 = vrot.slane %v1327_v57, 9 }
  0x9e   : > { %2650 = vmatmul.bf16.gmra.mxu0 %v2550_v5  ;;  %v1428_v5 = vrot.slane %v1426_v53, 4  ;;  %v831_v17 = vsel %vm6339_vm4, %v826_v63, %v830_v3  ;;  %v2552_v1 = vpack.c.b16 %v2526_v47, %v2525_v46  ;;  %v2265_v3 = vor.u32 %v2264_v50, %v2261_v49 }
  0x9f   : > { %v1427_v18 = vsel %vm6344_vm5, %v5104_v4, %v1426_v53  ;;  %v1100_v39 = vunpack.c.l.b16 %v831_v17  ;;  %v862_v46 = vrot.slane %v860_v23, 5  ;;  %v6613_v49 = vrot.slane %v866_v26, 5  ;;  %v661_v26 = vld [vmem:[%s6200_s8 + $0x60] sm:$0xf] }
  0xa0   : > { %v1430_v19 = vsel %vm6344_vm5, %v1428_v5, %v1429_v6  ;;  %v1528_v40 = vunpack.c.l.b16 %v1427_v18  ;;  %v1328_v5 = vld [vmem:[%s6200_s8 + $0x48] sm:$0xe]  ;;  %v2275_v6 = vor.u32 %v2274_v52, %v6567_v51  ;;  %v2266_v17 = vrot.slane %v2265_v3, 4  ;;  %v5328_v18 = vld [vmem:[%s6200_s8 + $0x60] sm:$0xf] }
  0xa1   : > { %v1529_v41 = vunpack.c.l.b16 %v1430_v19  ;;  %v1126_v54 = vpack.c.b16 %v1100_v39, %v1099_v38  ;;  %v5105_v8 = vrot.slane %v1328_v5, 9  ;;  %v2283_v35 = vshrl.u32 %v5328_v18, 16 }
  0xa2   : > { %v2276_v19 = vrot.slane %v2275_v6, 4  ;;  %v2286_v36 = vshll.u32 %v5328_v18, 16  ;;  %v1437_v39 = vsel %vm6344_vm5, %v1435_v14, %v1436_v15  ;;  %v872_v50 = vrot.slane %v870_v29, 4  ;;  %v5852_v14 = vld [vmem:[%s6200_s8 + $0x54] sm:$0xff]  ;;  %v6634_v29 = vld [vmem:[%s6200_s8 + $0x64] sm:$0xf] }
  0xa3   : > { %v1555_v57 = vpack.c.b16 %v1529_v41, %v1528_v40  ;;  %v1434_v38 = vsel %vm6344_vm5, %v5105_v8, %v1433_v2  ;;  %v2292_v40 = vshll.u32 %v5329_v25, 16  ;;  %v2296_v41 = vshrl.u32 %v5329_v25, 16  ;;  %v5330_v2 = vld [vmem:[%s6200_s8 + $0x68] sm:$0x1] }
  0xa4   : > { %v1530_v52 = vunpack.c.l.b16 %v1434_v38  ;;  %v873_v5 = vor.u32 %v872_v50, %v6613_v49 }
  0xa6   : > { %v874_v23 = vrot.slane %v873_v5, 4 }
  0xa9   : > { %v6516_v58 = vpop.f32.mrf.mxu1 }
  0xab   : > { %v6519_v62 = vpop.f32.mrf.mxu0 }
  0xac   : > { %1229 = vmatmul.bf16.gmra.mxu1 %v1125_v55  ;;  %1658 = vmatmul.bf16.gmra.mxu2 %v1554_v56  ;;  %v5327_v55 = vld [vmem:[%s6200_s8 + $0x5c] sm:$0x1] }
  0xad   : > { %1973 = vmatmul.bf16.gmra.mxu3 %v5850_v59  ;;  %v839_v59 = vor.u32 %v838_v43, %v835_v42  ;;  %v2278_v7 = vshll.u32 %v5327_v55, 16  ;;  %v2271_v43 = vsel %vm6339_vm4, %v2266_v17, %v6567_v51  ;;  %v660_v55 = vld [vmem:[%s6200_s8 + $0x5c] sm:$0x1]  ;;  %v6616_v51 = vrot.slane %v2292_v40, 5  ;;  %v1329_v17 = vld [vmem:[%s6200_s8 + $0x54] sm:$0xe] }
  0xae   : > { %2655 = vmatmul.bf16.gmra.mxu0 %v2551_v60  ;;  %v849_v60 = vor.u32 %v848_v45, %v6564_v44  ;;  %v859_v45 = vrot.slane %v857_v22, 4  ;;  %v876_v6 = vshll.u32 %v660_v55, 16  ;;  %v5331_v40 = vld [vmem:[%s6200_s8 + $0x6c] sm:$0xf] }
  0xaf   : > { %v6536_v16 = vpop.f32.mrf.mxu2  ;;  %v840_v10 = vrot.slane %v839_v59, 4  ;;  %v2280_v20 = vrot.slane %v2278_v7, 5  ;;  %v2288_v59 = vrot.slane %v2286_v36, 5 }
  0xb0   : > { %v6545_v21 = vpop.f32.mrf.mxu3  ;;  %v850_v11 = vrot.slane %v849_v60, 4  ;;  %v2527_v60 = vunpack.c.l.b16 %v2271_v43  ;;  %v878_v25 = vrot.slane %v876_v6, 5  ;;  %v881_v43 = vshrl.u32 %v661_v26, 16 }
  0xb1   : > { %v6552_v28 = vpop.f32.mrf.mxu1  ;;  %v845_v32 = vsel %vm6339_vm4, %v840_v10, %v6564_v44  ;;  %v2281_v44 = vsel %vm6339_vm4, %v2276_v19, %v2280_v20  ;;  %v2302_v19 = vshll.u32 %v5330_v2, 16 }
  0xb2   : > { %v855_v34 = vsel %vm6339_vm4, %v850_v11, %v854_v12  ;;  %v1101_v47 = vunpack.c.l.b16 %v845_v32  ;;  %v2528_v61 = vunpack.c.l.b16 %v2281_v44  ;;  %v1440_v11 = vrot.slane %v6585_v13, 5 }
  0xb3   : > { %v6554_v31 = vpop.f32.mrf.mxu0  ;;  %v1102_v48 = vunpack.c.l.b16 %v855_v34  ;;  %v5106_v13 = vrot.slane %v1329_v17, 9  ;;  %v1443_v34 = vrot.slane %v660_v55, 5  ;;  %v2304_v38 = vrot.slane %v2302_v19, 5  ;;  %v663_v17 = vld [vmem:[%s6200_s8 + $0x68] sm:$0x1] }
  0xb4   : > { %v2553_v15 = vpack.c.b16 %v2528_v61, %v2527_v60  ;;  %v1442_v32 = vrot.slane %v1440_v11, 4  ;;  %v884_v44 = vshll.u32 %v661_v26, 16  ;;  %v2310_v60 = vshll.u32 %v5331_v40, 16 }
  0xb5   : > { %v1127_v9 = vpack.c.b16 %v1102_v48, %v1101_v47  ;;  %v5332_v47 = vld [vmem:[%s6200_s8 + $0x70] sm:$0xf]  ;;  %v1441_v55 = vsel %vm6344_vm5, %v5106_v13, %v1440_v11  ;;  %v883_v6 = vrot.slane %v881_v43, 4 }
  0xb6   : > { %v2320_v2 = vshrl.u32 %v5332_v47, 16 }
  0xb7   : > { %v6569_v53 = vpop.f32.mrf.mxu2 }
  0xb8   : > { %v6572_v56 = vpop.f32.mrf.mxu3 }
  0xb9   : > { %v6575_v63 = vpop.f32.mrf.mxu1 }
  0xbb   : > { %v6579_v4 = vpop.f32.mrf.mxu0 }
  0xbc   : > { %1234 = vmatmul.bf16.gmra.mxu1 %v1126_v54  ;;  %1663 = vmatmul.bf16.gmra.mxu2 %v1555_v57  ;;  %v1531_v54 = vunpack.c.l.b16 %v1437_v39  ;;  %v2285_v57 = vrot.slane %v2283_v35, 4  ;;  %v5905_v39 = vld [vmem:[%s7673_s1 + $0x198] sm:$0xff] }
  0xbd   : > { %1978 = vmatmul.bf16.gmra.mxu3 %v5851_v0  ;;  %v2298_v0 = vrot.slane %v2296_v41, 4  ;;  %v5913_v41 = vld [vmem:[%s7673_s1 + $0x1d8] sm:$0xff]  ;;  %3372 = vmatpush.bf16.msra.mxu2 %v5905_v39 }
  0xbe   : > { %2660 = vmatmul.bf16.gmra.mxu0 %v2552_v1  ;;  %v863_v1 = vor.u32 %v862_v46, %v859_v45  ;;  %v1556_v10 = vpack.c.b16 %v1531_v54, %v1530_v52  ;;  %v2289_v12 = vor.u32 %v2288_v59, %v2285_v57  ;;  %v890_v45 = vshll.u32 %v6634_v29, 16  ;;  %4054 = vmatpush.bf16.msra.mxu3 %v5913_v41 }
  0xbf   : > { %v6589_v24 = vpop.f32.mrf.mxu2  ;;  %v2299_v18 = vor.u32 %v2298_v0, %v6616_v51  ;;  %v894_v46 = vshrl.u32 %v6634_v29, 16  ;;  %v879_v52 = vsel %vm6339_vm4, %v874_v23, %v878_v25  ;;  %v1444_v57 = vsel %vm6344_vm5, %v1442_v32, %v1443_v34 }
  0xc0   : > { %v6593_v30 = vpop.f32.mrf.mxu3  ;;  %v864_v22 = vrot.slane %v863_v1, 4  ;;  %v2290_v35 = vrot.slane %v2289_v12, 4  ;;  %v2307_v59 = vshrl.u32 %v5331_v40, 16  ;;  %v2316_v1 = vshll.u32 %v5332_v47, 16  ;;  %v5881_v12 = vld [vmem:[%s7673_s1 + $0x158] sm:$0xff] }
  0xc1   : > { %v6600_v37 = vpop.f32.mrf.mxu1  ;;  %v2300_v36 = vrot.slane %v2299_v18, 4  ;;  %v896_v11 = vrot.slane %v894_v46, 4  ;;  %v1532_v18 = vunpack.c.l.b16 %v1441_v55  ;;  %v1533_v19 = vunpack.c.l.b16 %v1444_v57  ;;  %3057 = vmatpush.bf16.msra.mxu1 %v5881_v12  ;;  %v1330_v40 = vld [vmem:[%s6200_s8 + $0x60] sm:$0xe] }
  0xc2   : > { %v869_v50 = vsel %vm6339_vm4, %v864_v22, %v6613_v49  ;;  %v2295_v49 = vsel %vm6339_vm4, %v2290_v35, %v6616_v51  ;;  %v5921_v51 = vld [vmem:[%s7673_s1 + $0x218] sm:$0xff]  ;;  %v2309_v22 = vrot.slane %v2307_v59, 4  ;;  %v2312_v23 = vrot.slane %v2310_v60, 5 }
  0xc3   : > { %v6606_v42 = vpop.f32.mrf.mxu0  ;;  %v2305_v0 = vsel %vm6339_vm4, %v2300_v36, %v2304_v38  ;;  %4480 = vmatpush.bf16.msra.mxu0 %v5921_v51  ;;  %v2529_v25 = vunpack.c.l.b16 %v2295_v49  ;;  %v6677_v13 = vrot.slane %v2316_v1, 5  ;;  %v2322_v32 = vrot.slane %v2320_v2, 4  ;;  %v5333_v38 = vld [vmem:[%s6200_s8 + $0x74] sm:$0x1] }
  0xc4   : > { %v2530_v26 = vunpack.c.l.b16 %v2305_v0  ;;  %v900_v36 = vshll.u32 %v663_v17, 16  ;;  %v1447_v41 = vrot.slane %v6634_v29, 5  ;;  %v2313_v46 = vor.u32 %v2312_v23, %v2309_v22 }
  0xc5   : > { %v2323_v55 = vor.u32 %v2322_v32, %v6677_v13  ;;  %v2326_v57 = vshll.u32 %v5333_v38, 16  ;;  %v5107_v0 = vrot.slane %v1330_v40, 9  ;;  %v1450_v2 = vrot.slane %v663_v17, 5 }
  0xc6   : > { %v902_v49 = vrot.slane %v900_v36, 5  ;;  %v1449_v1 = vrot.slane %v1447_v41, 4 }
  0xc7   : > { %v6619_v3 = vpop.f32.mrf.mxu2  ;;  %v2324_v12 = vrot.slane %v2323_v55, 4  ;;  %v2328_v51 = vrot.slane %v2326_v57, 5  ;;  %v1448_v32 = vsel %vm6344_vm5, %v5107_v0, %v1447_v41 }
  0xc8   : > { %v6622_v7 = vpop.f32.mrf.mxu3 }
  0xc9   : > { %7680 = vst [vmem:[#allocation3_spill] sm:$0xff] %v6622_v7  ;;  %v6625_v8 = vpop.f32.mrf.mxu1 }
  0xcb   : > { %v6630_v20 = vpop.f32.mrf.mxu0 }
  0xcc   : > { %1239 = vmatmul.bf16.gmra.mxu1 %v1127_v9  ;;  %1668 = vmatmul.bf16.gmra.mxu2 %v1556_v10  ;;  %v886_v9 = vrot.slane %v884_v44, 5  ;;  %v6668_v10 = vrot.slane %v890_v45, 5  ;;  %v1557_v45 = vpack.c.b16 %v1533_v19, %v1532_v18 }
  0xcd   : > { %1983 = vmatmul.bf16.gmra.mxu3 %v5852_v14  ;;  %v1103_v14 = vunpack.c.l.b16 %v869_v50  ;;  %v5853_v50 = vld [vmem:[%s6200_s8 + $0x60] sm:$0xff] }
  0xce   : > { %2665 = vmatmul.bf16.gmra.mxu0 %v2553_v15  ;;  %v1104_v15 = vunpack.c.l.b16 %v879_v52  ;;  %v887_v34 = vor.u32 %v886_v9, %v883_v6  ;;  %v897_v35 = vor.u32 %v896_v11, %v6668_v10  ;;  %v2554_v52 = vpack.c.b16 %v2530_v26, %v2529_v25  ;;  %v664_v6 = vld [vmem:[%s6200_s8 + $0x6c] sm:$0xf]  ;;  %v6695_v9 = vld [vmem:[%s6200_s8 + $0x70] sm:$0xf] }
  0xcf   : > { %v6646_v48 = vpop.f32.mrf.mxu2  ;;  %v2314_v11 = vrot.slane %v2313_v46, 4  ;;  %v905_v18 = vshrl.u32 %v664_v6, 16  ;;  %v908_v19 = vshll.u32 %v664_v6, 16  ;;  %v914_v22 = vshll.u32 %v6695_v9, 16 }
  0xd0   : > { %v6653_v54 = vpop.f32.mrf.mxu3  ;;  %v1128_v44 = vpack.c.b16 %v1104_v15, %v1103_v14  ;;  %v888_v60 = vrot.slane %v887_v34, 4  ;;  %v898_v29 = vrot.slane %v897_v35, 4  ;;  %v5334_v14 = vld [vmem:[%s6200_s8 + $0x78] sm:$0xf]  ;;  %v5335_v15 = vld [vmem:[%s6200_s8 + $0x7c] sm:$0xf]  ;;  %v1451_v34 = vsel %vm6344_vm5, %v1449_v1, %v1450_v2 }
  0xd1   : > { %7681 = vst [vmem:[#allocation4_spill] sm:$0xff] %v6653_v54  ;;  %v6659_v61 = vpop.f32.mrf.mxu1  ;;  %v918_v23 = vshrl.u32 %v6695_v9, 16  ;;  %v2331_v36 = vshrl.u32 %v5334_v14, 16  ;;  %v2334_v38 = vshll.u32 %v5334_v14, 16  ;;  %v2340_v40 = vshll.u32 %v5335_v15, 16 }
  0xd2   : > { %v893_v17 = vsel %vm6339_vm4, %v888_v60, %v6668_v10  ;;  %v903_v26 = vsel %vm6339_vm4, %v898_v29, %v902_v49  ;;  %v2319_v10 = vsel %vm6339_vm4, %v2314_v11, %v6677_v13  ;;  %v2329_v46 = vsel %vm6339_vm4, %v2324_v12, %v2328_v51  ;;  %v666_v1 = vld [vmem:[%s6200_s8 + $0x74] sm:$0x1]  ;;  %v5336_v14 = vld [vmem:[%s6200_s8 + $0x80] sm:$0x1] }
  0xd3   : > { %v6666_v5 = vpop.f32.mrf.mxu0  ;;  %v6723_v55 = vrot.slane %v914_v22, 5  ;;  %v920_v57 = vrot.slane %v918_v23, 4  ;;  %v1105_v60 = vunpack.c.l.b16 %v893_v17  ;;  %v1106_v29 = vunpack.c.l.b16 %v903_v26 }
  0xd4   : > { %v1534_v49 = vunpack.c.l.b16 %v1448_v32  ;;  %v1535_v0 = vunpack.c.l.b16 %v1451_v34  ;;  %v2333_v2 = vrot.slane %v2331_v36, 4  ;;  %v2336_v6 = vrot.slane %v2334_v38, 5  ;;  %v1331_v34 = vld [vmem:[%s6200_s8 + $0x6c] sm:$0xe] }
  0xd5   : > { %v6726_v13 = vrot.slane %v2340_v40, 5  ;;  %v2531_v12 = vunpack.c.l.b16 %v2319_v10  ;;  %v2532_v51 = vunpack.c.l.b16 %v2329_v46  ;;  %v1129_v22 = vpack.c.b16 %v1106_v29, %v1105_v60  ;;  %v5854_v10 = vld [vmem:[%s6200_s8 + $0x6c] sm:$0xff] }
  0xd6   : > { %v924_v23 = vshll.u32 %v666_v1, 16  ;;  %v1454_v17 = vrot.slane %v6695_v9, 5  ;;  %v1558_v32 = vpack.c.b16 %v1535_v0, %v1534_v49  ;;  %v2337_v36 = vor.u32 %v2336_v6, %v2333_v2  ;;  %v667_v9 = vld [vmem:[%s6200_s8 + $0x78] sm:$0xf]  ;;  %v6743_v2 = vld [vmem:[%s6200_s8 + $0x7c] sm:$0xf] }
  0xd7   : > { %v6681_v39 = vpop.f32.mrf.mxu2  ;;  %v2350_v40 = vshll.u32 %v5336_v14, 16  ;;  %v2555_v46 = vpack.c.b16 %v2532_v51, %v2531_v12  ;;  %v5108_v49 = vrot.slane %v1331_v34, 9  ;;  %v5337_v51 = vld [vmem:[%s6200_s8 + $0x84] sm:$0xf]  ;;  %v932_v14 = vshll.u32 %v667_v9, 16 }
  0xd8   : > { %v6685_v43 = vpop.f32.mrf.mxu3  ;;  %v926_v29 = vrot.slane %v924_v23, 5  ;;  %v1456_v0 = vrot.slane %v1454_v17, 4  ;;  %v2338_v6 = vrot.slane %v2337_v36, 4  ;;  %v938_v23 = vshll.u32 %v6743_v2, 16 }
  0xd9   : > { %7682 = vst [vmem:[#allocation5_spill] sm:$0xff] %v6685_v43  ;;  %v6687_v47 = vpop.f32.mrf.mxu1  ;;  %v2352_v12 = vrot.slane %v2350_v40, 5 }
  0xdb   : > { %v6691_v59 = vpop.f32.mrf.mxu0 }
  0xdc   : > { %1244 = vmatmul.bf16.gmra.mxu1 %v1128_v44  ;;  %1673 = vmatmul.bf16.gmra.mxu2 %v1557_v45  ;;  %v2344_v44 = vshrl.u32 %v5335_v15, 16 }
  0xdd   : > { %1988 = vmatmul.bf16.gmra.mxu3 %v5853_v50  ;;  %v907_v50 = vrot.slane %v905_v18, 4  ;;  %v921_v18 = vor.u32 %v920_v57, %v6723_v55 }
  0xde   : > { %2670 = vmatmul.bf16.gmra.mxu0 %v2554_v52  ;;  %v910_v52 = vrot.slane %v908_v19, 5  ;;  %v2346_v11 = vrot.slane %v2344_v44, 4 }
  0xdf   : > { %v6701_v25 = vpop.f32.mrf.mxu2  ;;  %v922_v60 = vrot.slane %v921_v18, 4  ;;  %v5338_v18 = vld [vmem:[%s6200_s8 + $0x88] sm:$0xf] }
  0xe0   : > { %v6712_v35 = vpop.f32.mrf.mxu3  ;;  %v911_v15 = vor.u32 %v910_v52, %v907_v50  ;;  %v2347_v38 = vor.u32 %v2346_v11, %v6726_v13 }
  0xe1   : > { %7683 = vst [vmem:[#allocation6_spill] sm:$0xff] %v6712_v35  ;;  %v6714_v45 = vpop.f32.mrf.mxu1  ;;  %v927_v36 = vsel %vm6339_vm4, %v922_v60, %v926_v29  ;;  %v2343_v60 = vsel %vm6339_vm4, %v2338_v6, %v6726_v13  ;;  %v5920_v13 = vld [vmem:[%s7673_s1 + $0x210] sm:$0xff] }
  0xe2   : > { %v912_v57 = vrot.slane %v911_v15, 4  ;;  %v2348_v11 = vrot.slane %v2347_v38, 4  ;;  %v5904_v15 = vld [vmem:[%s7673_s1 + $0x190] sm:$0xff]  ;;  %v1455_v38 = vsel %vm6344_vm5, %v5108_v49, %v1454_v17  ;;  %v934_v49 = vrot.slane %v932_v14, 5  ;;  %v6779_v14 = vld [vmem:[%s6200_s8 + $0x80] sm:$0x1]  ;;  %4481 = vmatpush.bf16.msra.mxu0 %v5920_v13 }
  0xe3   : > { %v6721_v41 = vpop.f32.mrf.mxu0  ;;  %3373 = vmatpush.bf16.msra.mxu2 %v5904_v15 }
  0xe4   : > { %v2353_v17 = vsel %vm6339_vm4, %v2348_v11, %v2352_v12  ;;  %v1108_v11 = vunpack.c.l.b16 %v927_v36  ;;  %v1536_v12 = vunpack.c.l.b16 %v1455_v38  ;;  %v948_v36 = vshll.u32 %v6779_v14, 16  ;;  %v5339_v38 = vld [vmem:[%s6200_s8 + $0x8c] sm:$0x1] }
  0xe5   : > { %v2374_v43 = vshll.u32 %v5339_v38, 16 }
  0xe7   : > { %v6730_v19 = vpop.f32.mrf.mxu2 }
  0xe8   : > { %v6733_v26 = vpop.f32.mrf.mxu3 }
  0xe9   : > { %7684 = vst [vmem:[#allocation7_spill] sm:$0xff] %v6733_v26  ;;  %v1210_v44 = vpop.f32.mrf.mxu1  ;;  %v1457_v26 = vrot.slane %v666_v1, 5  ;;  %v5912_v1 = vld [vmem:[%s7673_s1 + $0x1d0] sm:$0xff] }
  0xea   : > { %v1290_v50 = vadd.f32 %v1210_v44, %v6519_v62  ;;  %v929_v62 = vshrl.u32 %v667_v9, 16  ;;  %v2355_v44 = vshrl.u32 %v5337_v51, 16  ;;  %4055 = vmatpush.bf16.msra.mxu3 %v5912_v1  ;;  %v2368_v9 = vshrl.u32 %v5338_v18, 16 }
  0xeb   : > { %v6739_v52 = vpop.f32.mrf.mxu0  ;;  %v1458_v40 = vsel %vm6344_vm5, %v1456_v0, %v1457_v26 }
  0xec   : > { %1249 = vmatmul.bf16.gmra.mxu1 %v1129_v22  ;;  %1678 = vmatmul.bf16.gmra.mxu2 %v1558_v32  ;;  %v917_v22 = vsel %vm6339_vm4, %v912_v57, %v6723_v55  ;;  %v942_v32 = vshrl.u32 %v6743_v2, 16  ;;  %v2358_v55 = vshll.u32 %v5337_v51, 16  ;;  %v2364_v57 = vshll.u32 %v5338_v18, 16  ;;  %v5880_v18 = vld [vmem:[%s7673_s1 + $0x150] sm:$0xff] }
  0xed   : > { %1993 = vmatmul.bf16.gmra.mxu3 %v5854_v10  ;;  %v931_v29 = vrot.slane %v929_v62, 4  ;;  %v1107_v6 = vunpack.c.l.b16 %v917_v22  ;;  %v1537_v62 = vunpack.c.l.b16 %v1458_v40  ;;  %3058 = vmatpush.bf16.msra.mxu1 %v5880_v18  ;;  %v1332_v18 = vld [vmem:[%s6200_s8 + $0x78] sm:$0xe] }
  0xee   : > { %2675 = vmatmul.bf16.gmra.mxu0 %v2555_v46  ;;  %v944_v51 = vrot.slane %v942_v32, 4  ;;  %v6781_v1 = vrot.slane %v2364_v57, 5  ;;  %v2533_v32 = vunpack.c.l.b16 %v2343_v60 }
  0xef   : > { %v1639_v34 = vpop.f32.mrf.mxu2 }
  0xf0   : > { %v1719_v10 = vadd.f32 %v1639_v34, %v1290_v50  ;;  %v1954_v46 = vpop.f32.mrf.mxu3  ;;  %v6770_v50 = vrot.slane %v938_v23, 5  ;;  %v2370_v23 = vrot.slane %v2368_v9, 4  ;;  %v2534_v34 = vunpack.c.l.b16 %v2353_v17 }
  0xf1   : > { %v1212_v35 = vpop.f32.mrf.mxu1  ;;  %v1559_v9 = vpack.c.b16 %v1537_v62, %v1536_v12  ;;  %v6795_v12 = vld [vmem:[%s6200_s8 + $0x88] sm:$0xf]  ;;  %v5109_v62 = vrot.slane %v1332_v18, 9 }
  0xf2   : > { %v2034_v26 = vadd.f32 %v1954_v46, %v1719_v10  ;;  %v1291_v0 = vadd.f32 %v1212_v35, %v6554_v31  ;;  %v2357_v31 = vrot.slane %v2355_v44, 4  ;;  %v2360_v35 = vrot.slane %v2358_v55, 5 }
  0xf3   : > { %v2638_v15 = vpop.f32.mrf.mxu0  ;;  %v935_v10 = vor.u32 %v934_v49, %v931_v29  ;;  %v945_v22 = vor.u32 %v944_v51, %v6770_v50  ;;  %v1130_v46 = vpack.c.b16 %v1108_v11, %v1107_v6  ;;  %v1461_v44 = vrot.slane %v6743_v2, 5  ;;  %v5855_v29 = vld [vmem:[%s6200_s8 + $0x78] sm:$0xff] }
  0xf4   : > { %v2361_v13 = vor.u32 %v2360_v35, %v2357_v31  ;;  %v2371_v60 = vor.u32 %v2370_v23, %v6781_v1  ;;  %v2556_v49 = vpack.c.b16 %v2534_v34, %v2533_v32  ;;  %v950_v11 = vrot.slane %v948_v36, 5  ;;  %v5340_v34 = vld [vmem:[%s6200_s8 + $0x90] sm:$0xf] }
  0xf5   : > { %v936_v51 = vrot.slane %v935_v10, 4  ;;  %v1463_v31 = vrot.slane %v1461_v44, 4  ;;  %v1464_v35 = vrot.slane %v6779_v14, 5  ;;  %v5341_v10 = vld [vmem:[%s6200_s8 + $0x94] sm:$0xf]  ;;  %v6801_v38 = vadd.f32 %v6739_v52, %v2034_v26 }
  0xf6   : > { %v2362_v23 = vrot.slane %v2361_v13, 4  ;;  %v2372_v32 = vrot.slane %v2371_v60, 4  ;;  %v2379_v26 = vshrl.u32 %v5340_v34, 16  ;;  %v2392_v18 = vshrl.u32 %v5341_v10, 16 }
  0xf7   : > { %v1641_v40 = vpop.f32.mrf.mxu2  ;;  %7685 = vst [vmem:[#allocation8_spill] sm:$0xff] %v6801_v38  ;;  %v941_v14 = vsel %vm6339_vm4, %v936_v51, %v6770_v50  ;;  %v1462_v60 = vsel %vm6344_vm5, %v5109_v62, %v1461_v44  ;;  %v1465_v50 = vsel %vm6344_vm5, %v1463_v31, %v1464_v35  ;;  %v672_v62 = vld [vmem:[%s6200_s8 + $0x8c] sm:$0x1]  ;;  %v1468_v31 = vrot.slane %v6795_v12, 5  ;;  %v1333_v35 = vld [vmem:[%s6200_s8 + $0x84] sm:$0xe] }
  0xf8   : > { %v1720_v55 = vadd.f32 %v1641_v40, %v1291_v0  ;;  %v1956_v57 = vpop.f32.mrf.mxu3  ;;  %v946_v0 = vrot.slane %v945_v22, 4  ;;  %v670_v40 = vld [vmem:[%s6200_s8 + $0x84] sm:$0xf]  ;;  %v2376_v22 = vrot.slane %v2374_v43, 5  ;;  %v673_v38 = vld [vmem:[%s6200_s8 + $0x90] sm:$0xf] }
  0xf9   : > { %v1215_v17 = vpop.f32.mrf.mxu1  ;;  %v953_v36 = vshrl.u32 %v670_v40, 16 }
  0xfa   : > { %v2035_v54 = vadd.f32 %v1956_v57, %v1720_v55  ;;  %v1292_v6 = vadd.f32 %v1215_v17, %v6579_v4  ;;  %v956_v55 = vshll.u32 %v670_v40, 16  ;;  %v962_v57 = vshll.u32 %v6795_v12, 16 }
  0xfb   : > { %v6791_v2 = vpop.f32.mrf.mxu0  ;;  %v2367_v17 = vsel %vm6339_vm4, %v2362_v23, %v6781_v1  ;;  %v955_v51 = vrot.slane %v953_v36, 4  ;;  %v1538_v36 = vunpack.c.l.b16 %v1462_v60 }
  0xfc   : > { %1254 = vmatmul.bf16.gmra.mxu1 %v1130_v46  ;;  %1683 = vmatmul.bf16.gmra.mxu2 %v1559_v9  ;;  %v6803_v4 = vadd.f32 %v2638_v15, %v2035_v54  ;;  %v951_v46 = vsel %vm6339_vm4, %v946_v0, %v950_v11  ;;  %v966_v9 = vshrl.u32 %v6795_v12, 16  ;;  %v2382_v54 = vshll.u32 %v5340_v34, 16 }
  0xfd   : > { %1998 = vmatmul.bf16.gmra.mxu3 %v5855_v29  ;;  %v2388_v15 = vshll.u32 %v5341_v10, 16  ;;  %v958_v0 = vrot.slane %v956_v55, 5  ;;  %v6821_v11 = vrot.slane %v962_v57, 5  ;;  %v2381_v10 = vrot.slane %v2379_v26, 4  ;;  %v5342_v57 = vld [vmem:[%s6200_s8 + $0x98] sm:$0x1] }
  0xfe   : > { %7686 = vst [vmem:[#allocation9_spill] sm:$0xff] %v6803_v4  ;;  %2680 = vmatmul.bf16.gmra.mxu0 %v2556_v49  ;;  %v2377_v49 = vsel %vm6339_vm4, %v2372_v32, %v2376_v22  ;;  %v968_v34 = vrot.slane %v966_v9, 4  ;;  %v2384_v1 = vrot.slane %v2382_v54, 5  ;;  %v1109_v32 = vunpack.c.l.b16 %v941_v14 }
  0xff   : > { %v1644_v52 = vpop.f32.mrf.mxu2  ;;  %v6827_v23 = vrot.slane %v2388_v15, 5  ;;  %v1110_v22 = vunpack.c.l.b16 %v951_v46  ;;  %v1539_v55 = vunpack.c.l.b16 %v1465_v50  ;;  %v2535_v4 = vunpack.c.l.b16 %v2367_v17 }
 0x100   : > { %v1721_v43 = vadd.f32 %v1644_v52, %v1292_v6  ;;  %v1959_v13 = vpop.f32.mrf.mxu3  ;;  %v2394_v52 = vrot.slane %v2392_v18, 4  ;;  %v969_v9 = vor.u32 %v968_v34, %v6821_v11  ;;  %v1470_v12 = vrot.slane %v1468_v31, 4 }
 0x101   : > { %v1217_v29 = vpop.f32.mrf.mxu1  ;;  %v1471_v54 = vrot.slane %v672_v62, 5  ;;  %v2385_v15 = vor.u32 %v2384_v1, %v2381_v10  ;;  %v2398_v14 = vshll.u32 %v5342_v57, 16  ;;  %v1131_v50 = vpack.c.b16 %v1110_v22, %v1109_v32  ;;  %v5343_v32 = vld [vmem:[%s6200_s8 + $0x9c] sm:$0xf]  ;;  %v5344_v57 = vld [vmem:[%s6200_s8 + $0xa0] sm:$0xf] }
 0x102   : > { %v2036_v6 = vadd.f32 %v1959_v13, %v1721_v43  ;;  %v1293_v40 = vadd.f32 %v1217_v29, %v6606_v42  ;;  %v2536_v43 = vunpack.c.l.b16 %v2377_v49  ;;  %v959_v42 = vor.u32 %v958_v0, %v955_v51  ;;  %v5856_v51 = vld [vmem:[%s6200_s8 + $0x84] sm:$0xff] }
 0x103   : > { %v2643_v44 = vpop.f32.mrf.mxu0  ;;  %v972_v13 = vshll.u32 %v672_v62, 16  ;;  %v5110_v29 = vrot.slane %v1333_v35, 9  ;;  %v2395_v18 = vor.u32 %v2394_v52, %v6827_v23  ;;  %v1560_v17 = vpack.c.b16 %v1539_v55, %v1538_v36  ;;  %v6842_v52 = vld [vmem:[%s6200_s8 + $0x94] sm:$0xf] }
 0x104   : > { %v2557_v0 = vpack.c.b16 %v2536_v43, %v2535_v4  ;;  %v960_v34 = vrot.slane %v959_v42, 4  ;;  %v970_v1 = vrot.slane %v969_v9, 4  ;;  %v6847_v22 = vsel %vm6344_vm5, %v1470_v12, %v1471_v54 }
 0x105   : > { %v974_v35 = vrot.slane %v972_v13, 5  ;;  %v2386_v4 = vrot.slane %v2385_v15, 4  ;;  %v2396_v36 = vrot.slane %v2395_v18, 4  ;;  %v2400_v55 = vrot.slane %v2398_v14, 5 }
 0x106   : > { %v980_v43 = vshll.u32 %v673_v38, 16  ;;  %v6851_v42 = vadd.f32 %v6791_v2, %v2036_v6  ;;  %v986_v13 = vshll.u32 %v6842_v52, 16  ;;  %v990_v9 = vshrl.u32 %v6842_v52, 16 }
 0x107   : > { %v1646_v26 = vpop.f32.mrf.mxu2  ;;  %v2403_v12 = vshrl.u32 %v5343_v32, 16  ;;  %v2412_v2 = vshll.u32 %v5344_v57, 16  ;;  %v2416_v6 = vshrl.u32 %v5344_v57, 16  ;;  %v975_v54 = vsel %vm6339_vm4, %v970_v1, %v974_v35 }
 0x108   : > { %v1722_v46 = vadd.f32 %v1646_v26, %v1293_v40  ;;  %v1961_v60 = vpop.f32.mrf.mxu3  ;;  %v6839_v40 = vsel %vm6344_vm5, %v5110_v29, %v1468_v31  ;;  %v5903_v29 = vld [vmem:[%s7673_s1 + $0x188] sm:$0xff]  ;;  %v2406_v26 = vshll.u32 %v5343_v32, 16  ;;  %v1541_v18 = vunpack.c.l.b16 %v6847_v22 }
 0x109   : > { %v1220_v49 = vpop.f32.mrf.mxu1  ;;  %v1540_v15 = vunpack.c.l.b16 %v6839_v40  ;;  %v2391_v14 = vsel %vm6339_vm4, %v2386_v4, %v6827_v23  ;;  %3374 = vmatpush.bf16.msra.mxu2 %v5903_v29  ;;  %v2405_v35 = vrot.slane %v2403_v12, 4  ;;  %v2418_v22 = vrot.slane %v2416_v6, 4  ;;  %v5879_v4 = vld [vmem:[%s7673_s1 + $0x148] sm:$0xff] }
 0x10a   : > { %v2037_v7 = vadd.f32 %v1961_v60, %v1722_v46  ;;  %v1294_v62 = vadd.f32 %v1220_v49, %v6630_v20  ;;  %v977_v20 = vshrl.u32 %v673_v38, 16  ;;  %v5911_v38 = vld [vmem:[%s7673_s1 + $0x1c8] sm:$0xff]  ;;  %v2408_v1 = vrot.slane %v2406_v26, 5  ;;  %3059 = vmatpush.bf16.msra.mxu1 %v5879_v4  ;;  %v1334_v26 = vld [vmem:[%s6200_s8 + $0x90] sm:$0xe] }
 0x10b   : > { %v6835_v10 = vpop.f32.mrf.mxu0  ;;  %4056 = vmatpush.bf16.msra.mxu3 %v5911_v38  ;;  %v1112_v57 = vunpack.c.l.b16 %v975_v54  ;;  %v1561_v54 = vpack.c.b16 %v1541_v18, %v1540_v15 }
 0x10c   : > { %1259 = vmatmul.bf16.gmra.mxu1 %v1131_v50  ;;  %1688 = vmatmul.bf16.gmra.mxu2 %v1560_v17  ;;  %v6853_v31 = vadd.f32 %v2643_v44, %v2037_v7  ;;  %v965_v7 = vsel %vm6339_vm4, %v960_v34, %v6821_v11  ;;  %v2401_v11 = vsel %vm6339_vm4, %v2396_v36, %v2400_v55  ;;  %v979_v50 = vrot.slane %v977_v20, 4  ;;  %v5919_v36 = vld [vmem:[%s7673_s1 + $0x208] sm:$0xff] }
 0x10d   : > { %2003 = vmatmul.bf16.gmra.mxu3 %v5856_v51  ;;  %v982_v17 = vrot.slane %v980_v43, 5  ;;  %v675_v51 = vld [vmem:[%s6200_s8 + $0x98] sm:$0x1]  ;;  %v992_v34 = vrot.slane %v990_v9, 4  ;;  %v1111_v55 = vunpack.c.l.b16 %v965_v7  ;;  %v2537_v20 = vunpack.c.l.b16 %v2391_v14  ;;  %4482 = vmatpush.bf16.msra.mxu0 %v5919_v36 }
 0x10e   : > { %2685 = vmatmul.bf16.gmra.mxu0 %v2557_v0  ;;  %v6876_v0 = vrot.slane %v986_v13, 5  ;;  %v2538_v43 = vunpack.c.l.b16 %v2401_v11  ;;  %v5345_v13 = vld [vmem:[%s6200_s8 + $0xa4] sm:$0x1]  ;;  %v996_v9 = vshll.u32 %v675_v51, 16  ;;  %v2409_v38 = vor.u32 %v2408_v1, %v2405_v35 }
 0x10f   : > { %v1649_v44 = vpop.f32.mrf.mxu2  ;;  %v983_v29 = vor.u32 %v982_v17, %v979_v50  ;;  %v2422_v6 = vshll.u32 %v5345_v13, 16  ;;  %v1132_v7 = vpack.c.b16 %v1112_v57, %v1111_v55  ;;  %v5857_v17 = vld [vmem:[%s6200_s8 + $0x90] sm:$0xff]  ;;  %v1478_v35 = vrot.slane %v675_v51, 5  ;;  %v676_v55 = vld [vmem:[%s6200_s8 + $0x9c] sm:$0xf] }
 0x110   : > { %v1723_v46 = vadd.f32 %v1649_v44, %v1294_v62  ;;  %v1964_v60 = vpop.f32.mrf.mxu3  ;;  %v6879_v62 = vrot.slane %v2412_v2, 5  ;;  %v993_v12 = vor.u32 %v992_v34, %v6876_v0  ;;  %v2558_v14 = vpack.c.b16 %v2538_v43, %v2537_v20  ;;  %v6898_v57 = vld [vmem:[%s6200_s8 + $0xa0] sm:$0xf]  ;;  %v5346_v20 = vld [vmem:[%s6200_s8 + $0xa8] sm:$0xf] }
 0x111   : > { %v1222_v49 = vpop.f32.mrf.mxu1  ;;  %v998_v11 = vrot.slane %v996_v9, 5  ;;  %v984_v34 = vrot.slane %v983_v29, 4  ;;  %v2410_v1 = vrot.slane %v2409_v38, 4  ;;  %v5347_v29 = vld [vmem:[%s6200_s8 + $0xac] sm:$0xf]  ;;  %v1010_v38 = vshll.u32 %v6898_v57, 16 }
 0x112   : > { %v2038_v40 = vadd.f32 %v1964_v60, %v1723_v46  ;;  %v1295_v23 = vadd.f32 %v1222_v49, %v6666_v5  ;;  %v1475_v5 = vrot.slane %v6842_v52, 5  ;;  %v2419_v2 = vor.u32 %v2418_v22, %v6879_v62 }
 0x113   : > { %v2648_v32 = vpop.f32.mrf.mxu0  ;;  %v5111_v52 = vrot.slane %v1334_v26, 9  ;;  %v994_v4 = vrot.slane %v993_v12, 4 }
 0x114   : > { %v1477_v49 = vrot.slane %v1475_v5, 4  ;;  %v2420_v18 = vrot.slane %v2419_v2, 4  ;;  %v6902_v43 = vadd.f32 %v6835_v10, %v2038_v40  ;;  %v2415_v10 = vsel %vm6339_vm4, %v2410_v1, %v6879_v62 }
 0x115   : > { %v1476_v51 = vsel %vm6344_vm5, %v5111_v52, %v1475_v5  ;;  %v999_v12 = vsel %vm6339_vm4, %v994_v4, %v998_v11  ;;  %v1014_v5 = vshrl.u32 %v6898_v57, 16  ;;  %v2427_v2 = vshrl.u32 %v5346_v20, 16 }
 0x116   : > { %v1479_v9 = vsel %vm6344_vm5, %v1477_v49, %v1478_v35  ;;  %v1114_v62 = vunpack.c.l.b16 %v999_v12  ;;  %v1542_v11 = vunpack.c.l.b16 %v1476_v51  ;;  %v1482_v51 = vrot.slane %v6898_v57, 5 }
 0x117   : > { %v1651_v44 = vpop.f32.mrf.mxu2  ;;  %v1543_v52 = vunpack.c.l.b16 %v1479_v9 }
 0x118   : > { %v1724_v46 = vadd.f32 %v1651_v44, %v1295_v23  ;;  %v1966_v60 = vpop.f32.mrf.mxu3  ;;  %v2424_v23 = vrot.slane %v2422_v6, 5 }
 0x119   : > { %v1225_v50 = vpop.f32.mrf.mxu1  ;;  %v1562_v9 = vpack.c.b16 %v1543_v52, %v1542_v11  ;;  %v679_v11 = vld [vmem:[%s6200_s8 + $0xa8] sm:$0xf] }
 0x11a   : > { %v2039_v22 = vadd.f32 %v1966_v60, %v1724_v46  ;;  %v1296_v36 = vadd.f32 %v1225_v50, %v6691_v59  ;;  %v989_v59 = vsel %vm6339_vm4, %v984_v34, %v6876_v0  ;;  %v2425_v40 = vsel %vm6339_vm4, %v2420_v18, %v2424_v23  ;;  %v678_v18 = vld [vmem:[%s6200_s8 + $0xa4] sm:$0x1] }
 0x11b   : > { %v6894_v15 = vpop.f32.mrf.mxu0  ;;  %v1004_v0 = vshll.u32 %v676_v55, 16  ;;  %v1113_v60 = vunpack.c.l.b16 %v989_v59  ;;  %v2539_v34 = vunpack.c.l.b16 %v2415_v10  ;;  %v2540_v4 = vunpack.c.l.b16 %v2425_v40 }
 0x11c   : > { %1264 = vmatmul.bf16.gmra.mxu1 %v1132_v7  ;;  %1693 = vmatmul.bf16.gmra.mxu2 %v1561_v54  ;;  %v6904_v13 = vadd.f32 %v2648_v32, %v2039_v22  ;;  %v1001_v32 = vshrl.u32 %v676_v55, 16  ;;  %v2430_v7 = vshll.u32 %v5346_v20, 16  ;;  %v2436_v54 = vshll.u32 %v5347_v29, 16 }
 0x11d   : > { %2008 = vmatmul.bf16.gmra.mxu3 %v5857_v17  ;;  %v1006_v1 = vrot.slane %v1004_v0, 5  ;;  %v6924_v22 = vrot.slane %v1010_v38, 5  ;;  %v2429_v23 = vrot.slane %v2427_v2, 4  ;;  %v1133_v10 = vpack.c.b16 %v1114_v62, %v1113_v60 }
 0x11e   : > { %2690 = vmatmul.bf16.gmra.mxu0 %v2558_v14  ;;  %v2440_v14 = vshrl.u32 %v5347_v29, 16  ;;  %v1003_v35 = vrot.slane %v1001_v32, 4  ;;  %v2432_v55 = vrot.slane %v2430_v7, 5  ;;  %v6927_v20 = vrot.slane %v2436_v54, 5  ;;  %v5348_v29 = vld [vmem:[%s6200_s8 + $0xb0] sm:$0x1] }
 0x11f   : > { %v1654_v26 = vpop.f32.mrf.mxu2  ;;  %v5858_v7 = vld [vmem:[%s6200_s8 + $0x9c] sm:$0xff]  ;;  %v1484_v54 = vrot.slane %v1482_v51, 4 }
 0x120   : > { %v1725_v6 = vadd.f32 %v1654_v26, %v1296_v36  ;;  %v1969_v44 = vpop.f32.mrf.mxu3  ;;  %v1016_v36 = vrot.slane %v1014_v5, 4  ;;  %v2442_v59 = vrot.slane %v2440_v14, 4  ;;  %v1007_v40 = vor.u32 %v1006_v1, %v1003_v35  ;;  %v6939_v1 = vld [vmem:[%s6200_s8 + $0xac] sm:$0xf] }
 0x121   : > { %v1227_v46 = vpop.f32.mrf.mxu1  ;;  %v1020_v26 = vshll.u32 %v678_v18, 16  ;;  %v2559_v5 = vpack.c.b16 %v2540_v4, %v2539_v34  ;;  %v2433_v2 = vor.u32 %v2432_v55, %v2429_v23  ;;  %v1485_v14 = vrot.slane %v678_v18, 5 }
 0x122   : > { %v2040_v49 = vadd.f32 %v1969_v44, %v1725_v6  ;;  %v1297_v50 = vadd.f32 %v1227_v46, %v6721_v41  ;;  %v1335_v41 = vld [vmem:[%s6200_s8 + $0x9c] sm:$0xe]  ;;  %v1017_v32 = vor.u32 %v1016_v36, %v6924_v22  ;;  %v2443_v6 = vor.u32 %v2442_v59, %v6927_v20  ;;  %v5349_v36 = vld [vmem:[%s6200_s8 + $0xb4] sm:$0xf] }
 0x123   : > { %v2653_v17 = vpop.f32.mrf.mxu0  ;;  %v5112_v57 = vrot.slane %v1335_v41, 9  ;;  %v2446_v46 = vshll.u32 %v5348_v29, 16  ;;  %v1008_v52 = vrot.slane %v1007_v40, 4  ;;  %v2434_v34 = vrot.slane %v2433_v2, 4 }
 0x124   : > { %v1018_v35 = vrot.slane %v1017_v32, 4  ;;  %v2444_v4 = vrot.slane %v2443_v6, 4  ;;  %v6943_v23 = vadd.f32 %v6894_v15, %v2040_v49  ;;  %v1486_v59 = vsel %vm6344_vm5, %v1484_v54, %v1485_v14  ;;  %v5910_v15 = vld [vmem:[%s7673_s1 + $0x1c0] sm:$0xff] }
 0x125   : > { %v1483_v55 = vsel %vm6344_vm5, %v5112_v57, %v1482_v51  ;;  %v2448_v41 = vrot.slane %v2446_v46, 5  ;;  %v1025_v29 = vshrl.u32 %v679_v11, 16  ;;  %v1038_v51 = vshrl.u32 %v6939_v1, 16  ;;  %4057 = vmatpush.bf16.msra.mxu3 %v5910_v15 }
 0x126   : > { %v1013_v32 = vsel %vm6339_vm4, %v1008_v52, %v6924_v22  ;;  %v1545_v57 = vunpack.c.l.b16 %v1486_v59  ;;  %v2439_v54 = vsel %vm6339_vm4, %v2434_v34, %v6927_v20  ;;  %v5918_v20 = vld [vmem:[%s7673_s1 + $0x200] sm:$0xff]  ;;  %v681_v34 = vld [vmem:[%s6200_s8 + $0xb0] sm:$0x1] }
 0x127   : > { %v1656_v12 = vpop.f32.mrf.mxu2  ;;  %v2449_v22 = vsel %vm6339_vm4, %v2444_v4, %v2448_v41  ;;  %v1027_v14 = vrot.slane %v1025_v29, 4  ;;  %v1115_v59 = vunpack.c.l.b16 %v1013_v32  ;;  %v1336_v29 = vld [vmem:[%s6200_s8 + $0xa8] sm:$0xe]  ;;  %4483 = vmatpush.bf16.msra.mxu0 %v5918_v20 }
 0x128   : > { %v1726_v0 = vadd.f32 %v1656_v12, %v1297_v50  ;;  %v1971_v38 = vpop.f32.mrf.mxu3  ;;  %v1022_v50 = vrot.slane %v1020_v26, 5  ;;  %v5350_v12 = vld [vmem:[%s6200_s8 + $0xb8] sm:$0xf]  ;;  %v5113_v32 = vrot.slane %v1336_v29, 9 }
 0x129   : > { %v1230_v44 = vpop.f32.mrf.mxu1  ;;  %v2460_v6 = vshll.u32 %v5350_v12, 16 }
 0x12a   : > { %v2041_v60 = vadd.f32 %v1971_v38, %v1726_v0  ;;  %v1298_v49 = vadd.f32 %v1230_v44, %v6516_v58  ;;  %v1023_v26 = vsel %vm6339_vm4, %v1018_v35, %v1022_v50  ;;  %v2451_v0 = vshrl.u32 %v5349_v36, 16  ;;  %v5878_v50 = vld [vmem:[%s7673_s1 + $0x140] sm:$0xff] }
 0x12b   : > { %v6935_v62 = vpop.f32.mrf.mxu0  ;;  %v2454_v38 = vshll.u32 %v5349_v36, 16  ;;  %v1544_v58 = vunpack.c.l.b16 %v1483_v55  ;;  %v2464_v44 = vshrl.u32 %v5350_v12, 16  ;;  %v1040_v35 = vrot.slane %v1038_v51, 4  ;;  %3060 = vmatpush.bf16.msra.mxu1 %v5878_v50 }
 0x12c   : > { %1269 = vmatmul.bf16.gmra.mxu1 %v1133_v10  ;;  %1698 = vmatmul.bf16.gmra.mxu2 %v1562_v9  ;;  %v6945_v18 = vadd.f32 %v2653_v17, %v2041_v60  ;;  %v5902_v9 = vld [vmem:[%s7673_s1 + $0x180] sm:$0xff]  ;;  %v1028_v17 = vshll.u32 %v679_v11, 16  ;;  %v1034_v10 = vshll.u32 %v6939_v1, 16  ;;  %v1489_v36 = vrot.slane %v6939_v1, 5 }
 0x12d   : > { %2013 = vmatmul.bf16.gmra.mxu3 %v5858_v7  ;;  %3375 = vmatpush.bf16.msra.mxu2 %v5902_v9  ;;  %v2453_v4 = vrot.slane %v2451_v0, 4  ;;  %v2456_v55 = vrot.slane %v2454_v38, 5  ;;  %v1116_v41 = vunpack.c.l.b16 %v1023_v26  ;;  %v6982_v9 = vrot.slane %v2460_v6, 5 }
 0x12e   : > { %7687 = vst [vmem:[#allocation10_spill] sm:$0xff] %v6945_v18  ;;  %2695 = vmatmul.bf16.gmra.mxu0 %v2559_v5  ;;  %v1030_v11 = vrot.slane %v1028_v17, 5  ;;  %v6971_v52 = vrot.slane %v1034_v10, 5  ;;  %v2466_v12 = vrot.slane %v2464_v44, 4  ;;  %v1563_v15 = vpack.c.b16 %v1545_v57, %v1544_v58  ;;  %v5351_v10 = vld [vmem:[%s6200_s8 + $0xbc] sm:$0x1] }
 0x12f   : > { %v1659_v40 = vpop.f32.mrf.mxu2  ;;  %v2542_v17 = vunpack.c.l.b16 %v2449_v22  ;;  %v1044_v0 = vshll.u32 %v681_v34, 16  ;;  %v1491_v26 = vrot.slane %v1489_v36, 4  ;;  %v1134_v50 = vpack.c.b16 %v1116_v41, %v1115_v59  ;;  %v5859_v22 = vld [vmem:[%s6200_s8 + $0xa8] sm:$0xff] }
 0x130   : > { %v1727_v5 = vadd.f32 %v1659_v40, %v1298_v49  ;;  %v1974_v2 = vpop.f32.mrf.mxu3  ;;  %v2541_v49 = vunpack.c.l.b16 %v2439_v54  ;;  %v1031_v40 = vor.u32 %v1030_v11, %v1027_v14  ;;  %v1041_v1 = vor.u32 %v1040_v35, %v6971_v52 }
 0x131   : > { %v1232_v7 = vpop.f32.mrf.mxu1  ;;  %v2467_v58 = vor.u32 %v2466_v12, %v6982_v9  ;;  %v2470_v57 = vshll.u32 %v5351_v10, 16  ;;  %v1046_v14 = vrot.slane %v1044_v0, 5  ;;  %v1490_v35 = vsel %vm6344_vm5, %v5113_v32, %v1489_v36  ;;  %v682_v12 = vld [vmem:[%s6200_s8 + $0xb4] sm:$0xf]  ;;  %v6071_v36 = vld [vmem:[%s6200_s8 + $0x10] sm:$0xf] }
 0x132   : > { %v2042_v46 = vadd.f32 %v1974_v2, %v1727_v5  ;;  %v1299_v51 = vadd.f32 %v1232_v7, %v6552_v28  ;;  %v1492_v5 = vrot.slane %v681_v34, 5  ;;  %v2457_v2 = vor.u32 %v2456_v55, %v2453_v4 }
 0x133   : > { %v2658_v60 = vpop.f32.mrf.mxu0  ;;  %v2560_v20 = vpack.c.b16 %v2542_v17, %v2541_v49  ;;  %v1032_v7 = vrot.slane %v1031_v40, 4  ;;  %v1042_v11 = vrot.slane %v1041_v1, 4  ;;  %v2468_v55 = vrot.slane %v2467_v58, 4  ;;  %v6072_v17 = vld [vmem:[%s6200_s8 + $0x14] sm:$0x1] }
 0x134   : > { %v1493_v34 = vsel %vm6344_vm5, %v1491_v26, %v1492_v5  ;;  %v2458_v4 = vrot.slane %v2457_v2, 4  ;;  %v2472_v59 = vrot.slane %v2470_v57, 5  ;;  %v6994_v41 = vadd.f32 %v6935_v62, %v2042_v46  ;;  %v7006_v40 = vld [vmem:[%s6200_s8 + $0xb8] sm:$0xf]  ;;  %v5352_v62 = vld [vmem:[%s6200_s8 + $0xc0] sm:$0xf] }
 0x135   : > { %v2814_v49 = vrot.slane %v6071_v36, 5  ;;  %v2817_v10 = vrot.slane %v6072_v17, 5  ;;  %v1547_v1 = vunpack.c.l.b16 %v1493_v34  ;;  %v1052_v5 = vshll.u32 %v682_v12, 16 }
 0x136   : > { %v2463_v0 = vsel %vm6339_vm4, %v2458_v4, %v6982_v9  ;;  %v2473_v26 = vsel %vm6339_vm4, %v2468_v55, %v2472_v59  ;;  %v2478_v58 = vshll.u32 %v5352_v62, 16  ;;  %v7020_v4 = vld [vmem:[%s6200_s8 + $0xbc] sm:$0x1] }
 0x137   : > { %v1661_v38 = vpop.f32.mrf.mxu2  ;;  %v2816_v57 = vrot.slane %v2814_v49, 4  ;;  %v1054_v59 = vrot.slane %v1052_v5, 5 }
 0x138   : > { %v1728_v6 = vadd.f32 %v1661_v38, %v1299_v51  ;;  %v1976_v44 = vpop.f32.mrf.mxu3  ;;  %v5353_v38 = vld [vmem:[%s6200_s8 + $0xc4] sm:$0xf] }
 0x139   : > { %v1235_v54 = vpop.f32.mrf.mxu1  ;;  %v2484_v9 = vshll.u32 %v5353_v38, 16 }
 0x13a   : > { %v2043_v18 = vadd.f32 %v1976_v44, %v1728_v6  ;;  %v1300_v51 = vadd.f32 %v1235_v54, %v6575_v63  ;;  %v1058_v6 = vshll.u32 %v7006_v40, 16  ;;  %v1062_v44 = vshrl.u32 %v7006_v40, 16 }
 0x13b   : > { %v2661_v28 = vpop.f32.mrf.mxu0 }
 0x13c   : > { %1274 = vmatmul.bf16.gmra.mxu1 %v1134_v50  ;;  %1703 = vmatmul.bf16.gmra.mxu2 %v1563_v15  ;;  %v6996_v29 = vadd.f32 %v2658_v60, %v2043_v18  ;;  %v1037_v15 = vsel %vm6339_vm4, %v1032_v7, %v6971_v52  ;;  %v1047_v18 = vsel %vm6339_vm4, %v1042_v11, %v1046_v14  ;;  %v1546_v60 = vunpack.c.l.b16 %v1490_v35 }
 0x13d   : > { %2018 = vmatmul.bf16.gmra.mxu3 %v5859_v22  ;;  %v1049_v52 = vshrl.u32 %v682_v12, 16  ;;  %v2475_v50 = vshrl.u32 %v5352_v62, 16  ;;  %v1117_v7 = vunpack.c.l.b16 %v1037_v15  ;;  %v1118_v14 = vunpack.c.l.b16 %v1047_v18  ;;  %v1337_v15 = vld [vmem:[%s6200_s8 + $0xb4] sm:$0xe] }
 0x13e   : > { %2700 = vmatmul.bf16.gmra.mxu0 %v2560_v20  ;;  %v2488_v20 = vshrl.u32 %v5353_v38, 16  ;;  %v2543_v11 = vunpack.c.l.b16 %v2463_v0  ;;  %v2544_v35 = vunpack.c.l.b16 %v2473_v26  ;;  %v1564_v34 = vpack.c.b16 %v1547_v1, %v1546_v60 }
 0x13f   : > { %v1664_v46 = vpop.f32.mrf.mxu2  ;;  %v1051_v55 = vrot.slane %v1049_v52, 4  ;;  %v7024_v36 = vrot.slane %v1058_v6, 5  ;;  %v1064_v17 = vrot.slane %v1062_v44, 4  ;;  %v2480_v62 = vrot.slane %v2478_v58, 5  ;;  %v5354_v52 = vld [vmem:[%s6200_s8 + $0xc8] sm:$0x1] }
 0x140   : > { %v1729_v32 = vadd.f32 %v1664_v46, %v1300_v51  ;;  %v1979_v63 = vpop.f32.mrf.mxu3  ;;  %v2477_v51 = vrot.slane %v2475_v50, 4  ;;  %v5403_v46 = vld [vmem:[%s6200_s8 + $0xc] sm:$0xe]  ;;  %v7029_v18 = vrot.slane %v2484_v9, 5  ;;  %v2490_v60 = vrot.slane %v2488_v20, 4  ;;  %v5860_v58 = vld [vmem:[%s6200_s8 + $0xb4] sm:$0xff] }
 0x141   : > { %v1237_v2 = vpop.f32.mrf.mxu1  ;;  %v5419_v1 = vrot.slane %v5403_v46, 9  ;;  %v1496_v26 = vrot.slane %v7006_v40, 5  ;;  %v1055_v44 = vor.u32 %v1054_v59, %v1051_v55  ;;  %v5114_v9 = vrot.slane %v1337_v15, 9  ;;  %v7045_v46 = vld [vmem:[%s6200_s8 + $0x1c] sm:$0xf] }
 0x142   : > { %v2044_v54 = vadd.f32 %v1979_v63, %v1729_v32  ;;  %v1301_v38 = vadd.f32 %v1237_v2, %v6600_v37  ;;  %v1135_v32 = vpack.c.b16 %v1118_v14, %v1117_v7  ;;  %v2561_v63 = vpack.c.b16 %v2544_v35, %v2543_v11 }
 0x143   : > { %v2663_v22 = vpop.f32.mrf.mxu0  ;;  %v2815_v37 = vsel %vm6344_vm5, %v5419_v1, %v2814_v49  ;;  %v2818_v2 = vsel %vm6344_vm5, %v2816_v57, %v2817_v10  ;;  %v2481_v11 = vor.u32 %v2480_v62, %v2477_v51  ;;  %v2491_v35 = vor.u32 %v2490_v60, %v7029_v18  ;;  %v5627_v57 = vld [vmem:[%s6200_s8 + $0x18] sm:$0xf] }
 0x144   : > { %v7022_v12 = vadd.f32 %v2661_v28, %v2044_v54  ;;  %v1068_v28 = vshll.u32 %v7020_v4, 16  ;;  %v1065_v54 = vor.u32 %v1064_v17, %v7024_v36  ;;  %v2941_v20 = vunpack.c.l.b16 %v2815_v37 }
 0x145   : > { %v2942_v7 = vunpack.c.l.b16 %v2818_v2  ;;  %v2494_v55 = vshll.u32 %v5354_v52, 16  ;;  %v1498_v10 = vrot.slane %v1496_v26, 4  ;;  %v1056_v17 = vrot.slane %v1055_v44, 4 }
 0x146   : > { %v1070_v49 = vrot.slane %v1068_v28, 5  ;;  %v1066_v15 = vrot.slane %v1065_v54, 4  ;;  %v1497_v51 = vsel %vm6344_vm5, %v5114_v9, %v1496_v26  ;;  %v1499_v62 = vrot.slane %v7020_v4, 5 }
 0x147   : > { %v1666_v0 = vpop.f32.mrf.mxu2  ;;  %v7041_v59 = vpack.c.b16 %v2942_v7, %v2941_v20  ;;  %v2482_v1 = vrot.slane %v2481_v11, 4  ;;  %v3538_v28 = vshrl.u32 %v5627_v57, 16  ;;  %v3541_v52 = vshll.u32 %v5627_v57, 16 }
 0x148   : > { %v1730_v5 = vadd.f32 %v1666_v0, %v1301_v38  ;;  %v1981_v6 = vpop.f32.mrf.mxu3  ;;  %v2496_v0 = vrot.slane %v2494_v55, 5  ;;  %v1061_v4 = vsel %vm6339_vm4, %v1056_v17, %v7024_v36  ;;  %v1500_v26 = vsel %vm6344_vm5, %v1498_v10, %v1499_v62  ;;  %v5629_v55 = vld [vmem:[%s6200_s8 + $0x20] sm:$0x1] }
 0x149   : > { %v1240_v50 = vpop.f32.mrf.mxu1  ;;  %v3540_v9 = vrot.slane %v3538_v28, 4  ;;  %v3543_v20 = vrot.slane %v3541_v52, 5  ;;  %v3557_v62 = vshll.u32 %v5629_v55, 16  ;;  %v5861_v52 = vld [vmem:[%s6200_s8 + $0xc0] sm:$0xff] }
 0x14a   : > { %v2045_v40 = vadd.f32 %v1981_v6, %v1730_v5  ;;  %v1302_v60 = vadd.f32 %v1240_v50, %v6625_v8  ;;  %v3551_v5 = vshrl.u32 %v7045_v46, 16  ;;  %v1071_v8 = vsel %vm6339_vm4, %v1066_v15, %v1070_v49 }
 0x14b   : > { %v2666_v14 = vpop.f32.mrf.mxu0  ;;  %v1548_v50 = vunpack.c.l.b16 %v1497_v51  ;;  %v1120_v11 = vunpack.c.l.b16 %v1071_v8  ;;  %v3544_v15 = vor.u32 %v3543_v20, %v3540_v9 }
 0x14c   : > { %1279 = vmatmul.bf16.gmra.mxu1 %v1135_v32  ;;  %1708 = vmatmul.bf16.gmra.mxu2 %v1564_v34  ;;  %v7047_v38 = vadd.f32 %v2663_v22, %v2045_v40  ;;  %v2492_v34 = vrot.slane %v2491_v35, 4  ;;  %v3547_v22 = vshll.u32 %v7045_v46, 16  ;;  %v3553_v36 = vrot.slane %v3551_v5, 4 }
 0x14d   : > { %2023 = vmatmul.bf16.gmra.mxu3 %v5860_v58  ;;  %v2487_v58 = vsel %vm6339_vm4, %v2482_v1, %v7029_v18  ;;  %v1119_v40 = vunpack.c.l.b16 %v1061_v4  ;;  %v1549_v35 = vunpack.c.l.b16 %v1500_v26  ;;  %v4240_v26 = vrot.slane %v5629_v55, 5 }
 0x14e   : > { %2705 = vmatmul.bf16.gmra.mxu0 %v2561_v63  ;;  %v2497_v54 = vsel %vm6339_vm4, %v2492_v34, %v2496_v0  ;;  %v3549_v7 = vrot.slane %v3547_v22, 5  ;;  %v2545_v10 = vunpack.c.l.b16 %v2487_v58  ;;  %v7079_v58 = vld [vmem:[%s6200_s8 + $0x28] sm:$0xf] }
 0x14f   : > { %v1669_v32 = vpop.f32.mrf.mxu2  ;;  %v2546_v57 = vunpack.c.l.b16 %v2497_v54  ;;  %v1136_v34 = vpack.c.b16 %v1120_v11, %v1119_v40  ;;  %v1565_v0 = vpack.c.b16 %v1549_v35, %v1548_v50  ;;  %v5630_v50 = vld [vmem:[%s6200_s8 + $0x24] sm:$0xf] }
 0x150   : > { %v1731_v63 = vadd.f32 %v1669_v32, %v1302_v60  ;;  %v1984_v6 = vpop.f32.mrf.mxu3  ;;  %v3554_v51 = vor.u32 %v3553_v36, %v3549_v7  ;;  %v4237_v32 = vrot.slane %v7045_v46, 5  ;;  %v3565_v55 = vshll.u32 %v5630_v50, 16 }
 0x151   : > { %v1242_v44 = vpop.f32.mrf.mxu1  ;;  %v2562_v22 = vpack.c.b16 %v2546_v57, %v2545_v10  ;;  %v3571_v10 = vshll.u32 %v7079_v58, 16  ;;  %v3575_v57 = vshrl.u32 %v7079_v58, 16 }
 0x152   : > { %v2046_v37 = vadd.f32 %v1984_v6, %v1731_v63  ;;  %v1303_v17 = vadd.f32 %v1242_v44, %v6659_v61  ;;  %v3545_v6 = vrot.slane %v3544_v15, 4  ;;  %v3555_v61 = vrot.slane %v3554_v51, 4 }
 0x153   : > { %v2668_v2 = vpop.f32.mrf.mxu0  ;;  %v3559_v44 = vrot.slane %v3557_v62, 5  ;;  %v4239_v8 = vrot.slane %v4237_v32, 4 }
 0x154   : > { %v7068_v49 = vadd.f32 %v2666_v14, %v2046_v37  ;;  %v5723_v14 = vld [vmem:[%s6200_s8 + $0x18] sm:$0xe]  ;;  %v3550_v9 = vsel %vm6339_vm4, %v3545_v6, %v3549_v7 }
 0x155   : > { %v5739_v4 = vrot.slane %v5723_v14, 9  ;;  %v3560_v40 = vsel %vm6339_vm4, %v3555_v61, %v3559_v44  ;;  %v4241_v11 = vsel %vm6344_vm5, %v4239_v8, %v4240_v26  ;;  %v5886_v6 = vld [vmem:[%s6200_s8 + $0x18] sm:$0xff] }
 0x156   : > { %v3939_v15 = vunpack.c.l.b16 %v3560_v40  ;;  %v4365_v62 = vunpack.c.l.b16 %v4241_v11  ;;  %v6073_v44 = vld [vmem:[%s6200_s8 + $0x1c] sm:$0xf]  ;;  %v5404_v26 = vld [vmem:[%s6200_s8 + $0x18] sm:$0xe]  ;;  %v5633_v11 = vld [vmem:[%s6200_s8 + $0x30] sm:$0xf] }
 0x157   : > { %v1671_v18 = vpop.f32.mrf.mxu2  ;;  %v5420_v40 = vrot.slane %v5404_v26, 9 }
 0x158   : > { %v1732_v60 = vadd.f32 %v1671_v18, %v1303_v17  ;;  %v1986_v1 = vpop.f32.mrf.mxu3  ;;  %v3938_v18 = vunpack.c.l.b16 %v3550_v9 }
 0x159   : > { %v1245_v28 = vpop.f32.mrf.mxu1 }
 0x15a   : > { %v2047_v5 = vadd.f32 %v1986_v1, %v1732_v60  ;;  %v1304_v46 = vadd.f32 %v1245_v28, %v6687_v47  ;;  %v3562_v47 = vshrl.u32 %v5630_v50, 16  ;;  %v3970_v61 = vpack.c.b16 %v3939_v15, %v3938_v18 }
 0x15b   : > { %v2671_v63 = vpop.f32.mrf.mxu0 }
 0x15c   : > { %1284 = vmatmul.bf16.gmra.mxu1 %v1136_v34  ;;  %1713 = vmatmul.bf16.gmra.mxu2 %v1565_v0  ;;  %v7074_v37 = vadd.f32 %v2668_v2, %v2047_v5  ;;  %v4238_v2 = vsel %vm6344_vm5, %v5739_v4, %v4237_v32  ;;  %v3564_v1 = vrot.slane %v3562_v47, 4  ;;  %v3567_v34 = vrot.slane %v3565_v55, 5  ;;  %v6074_v55 = vld [vmem:[%s6200_s8 + $0x20] sm:$0x1] }
 0x15d   : > { %2028 = vmatmul.bf16.gmra.mxu3 %v5861_v52  ;;  %v4364_v51 = vunpack.c.l.b16 %v4238_v2  ;;  %v7093_v0 = vrot.slane %v3571_v10, 5  ;;  %v3577_v32 = vrot.slane %v3575_v57, 4  ;;  %v5632_v52 = vld [vmem:[%s6200_s8 + $0x2c] sm:$0x1]  ;;  %v2821_v4 = vrot.slane %v6073_v44, 5 }
 0x15e   : > { %2710 = vmatmul.bf16.gmra.mxu0 %v2562_v22  ;;  %v2824_v10 = vrot.slane %v6074_v55, 5 }
 0x15f   : > { %v1674_v54 = vpop.f32.mrf.mxu2  ;;  %v4396_v8 = vpack.c.b16 %v4365_v62, %v4364_v51  ;;  %v3578_v50 = vor.u32 %v3577_v32, %v7093_v0  ;;  %v2823_v2 = vrot.slane %v2821_v4, 4 }
 0x160   : > { %v1733_v20 = vadd.f32 %v1674_v54, %v1304_v46  ;;  %v1989_v36 = vpop.f32.mrf.mxu3  ;;  %v3568_v46 = vor.u32 %v3567_v34, %v3564_v1  ;;  %v3581_v54 = vshll.u32 %v5632_v52, 16  ;;  %v3586_v1 = vshrl.u32 %v5633_v11, 16 }
 0x161   : > { %v1247_v35 = vpop.f32.mrf.mxu1  ;;  %v3589_v34 = vshll.u32 %v5633_v11, 16 }
 0x162   : > { %v2048_v7 = vadd.f32 %v1989_v36, %v1733_v20  ;;  %v1305_v28 = vadd.f32 %v1247_v35, %v6714_v45  ;;  %v4244_v20 = vrot.slane %v7079_v58, 5  ;;  %v5724_v36 = vld [vmem:[%s6200_s8 + $0x24] sm:$0xe]  ;;  %v7106_v35 = vld [vmem:[%s6200_s8 + $0x34] sm:$0xf]  ;;  %v3569_v57 = vrot.slane %v3568_v46, 4 }
 0x163   : > { %v2673_v17 = vpop.f32.mrf.mxu0  ;;  %v3583_v18 = vrot.slane %v3581_v54, 5  ;;  %v5740_v15 = vrot.slane %v5724_v36, 9  ;;  %v3595_v32 = vshll.u32 %v7106_v35, 16  ;;  %v3591_v26 = vrot.slane %v3589_v34, 5 }
 0x164   : > { %v7091_v60 = vadd.f32 %v2671_v63, %v2048_v7  ;;  %v3579_v7 = vrot.slane %v3578_v50, 4  ;;  %v4246_v51 = vrot.slane %v4244_v20, 4  ;;  %v4251_v34 = vrot.slane %v7106_v35, 5 }
 0x165   : > { %v7127_v46 = vrot.slane %v3595_v32, 5 }
 0x166   : > { %v3584_v44 = vsel %vm6339_vm4, %v3579_v7, %v3583_v18  ;;  %v5405_v18 = vld [vmem:[%s6200_s8 + $0x24] sm:$0xe] }
 0x167   : > { %v1676_v22 = vpop.f32.mrf.mxu2 }
 0x168   : > { %v1734_v14 = vadd.f32 %v1676_v22, %v1305_v28  ;;  %v1991_v5 = vpop.f32.mrf.mxu3 }
 0x169   : > { %v1250_v63 = vpop.f32.mrf.mxu1 }
 0x16a   : > { %v2049_v45 = vadd.f32 %v1991_v5, %v1734_v14  ;;  %v1306_v58 = vadd.f32 %v1250_v63, %v6536_v16  ;;  %v2822_v5 = vsel %vm6344_vm5, %v5420_v40, %v2821_v4  ;;  %v2825_v16 = vsel %vm6344_vm5, %v2823_v2, %v2824_v10  ;;  %v6075_v10 = vld [vmem:[%s6200_s8 + $0x28] sm:$0xf] }
 0x16b   : > { %v2676_v9 = vpop.f32.mrf.mxu0  ;;  %v4245_v63 = vsel %vm6344_vm5, %v5740_v15, %v4244_v20  ;;  %v3588_v4 = vrot.slane %v3586_v1, 4  ;;  %v2943_v54 = vunpack.c.l.b16 %v2822_v5  ;;  %v3941_v2 = vunpack.c.l.b16 %v3584_v44  ;;  %v5887_v1 = vld [vmem:[%s6200_s8 + $0x24] sm:$0xff] }
 0x16c   : > { %3061 = vmatmul.bf16.vlgmr.msra.gmra.mxu1 %v7041_v59  ;;  %3376 = vmatmul.bf16.vlgmr.msra.gmra.mxu2 %v5886_v6  ;;  %v7108_v47 = vadd.f32 %v2673_v17, %v2049_v45  ;;  %v4247_v59 = vrot.slane %v5632_v52, 5  ;;  %v3599_v17 = vshrl.u32 %v7106_v35, 16  ;;  %v3574_v52 = vsel %vm6339_vm4, %v3569_v57, %v7093_v0  ;;  %v5635_v45 = vld [vmem:[%s6200_s8 + $0x38] sm:$0x1] }
 0x16d   : > { %4058 = vmatmul.bf16.vlgmr.msra.gmra.mxu3 %v3970_v61  ;;  %v2944_v0 = vunpack.c.l.b16 %v2825_v16  ;;  %v3940_v40 = vunpack.c.l.b16 %v3574_v52  ;;  %v4366_v11 = vunpack.c.l.b16 %v4245_v63  ;;  %v2828_v57 = vrot.slane %v6075_v10, 5  ;;  %v6076_v52 = vld [vmem:[%s6200_s8 + $0x2c] sm:$0x1] }
 0x16e   : > { %4484 = vmatmul.bf16.vlgmr.msra.gmra.mxu0 %v4396_v8  ;;  %v4248_v8 = vsel %vm6344_vm5, %v4246_v51, %v4247_v59  ;;  %v3601_v50 = vrot.slane %v3599_v17, 4  ;;  %v3605_v51 = vshll.u32 %v5635_v45, 16  ;;  %v5421_v5 = vrot.slane %v5405_v18, 9 }
 0x16f   : > { %v1679_v62 = vpop.f32.mrf.mxu2  ;;  %v4367_v55 = vunpack.c.l.b16 %v4248_v8  ;;  %v3971_v17 = vpack.c.b16 %v3941_v2, %v3940_v40  ;;  %v2830_v16 = vrot.slane %v2828_v57, 4  ;;  %v4254_v35 = vrot.slane %v5635_v45, 5  ;;  %v7145_v40 = vld [vmem:[%s6200_s8 + $0x40] sm:$0xf] }
 0x170   : > { %v1735_v28 = vadd.f32 %v1679_v62, %v1306_v58  ;;  %v1994_v22 = vpop.f32.mrf.mxu3  ;;  %v3592_v58 = vor.u32 %v3591_v26, %v3588_v4  ;;  %v3602_v15 = vor.u32 %v3601_v50, %v7127_v46  ;;  %v2974_v62 = vpack.c.b16 %v2944_v0, %v2943_v54  ;;  %v5636_v0 = vld [vmem:[%s6200_s8 + $0x3c] sm:$0xf] }
 0x171   : > { %v1252_v14 = vpop.f32.mrf.mxu1  ;;  %v3607_v8 = vrot.slane %v3605_v51, 5  ;;  %v4253_v26 = vrot.slane %v4251_v34, 4  ;;  %v3623_v51 = vshrl.u32 %v7145_v40, 16 }
 0x172   : > { %v2050_v6 = vadd.f32 %v1994_v22, %v1735_v28  ;;  %v1307_v20 = vadd.f32 %v1252_v14, %v6569_v53  ;;  %v4397_v28 = vpack.c.b16 %v4367_v55, %v4366_v11  ;;  %v5725_v53 = vld [vmem:[%s6200_s8 + $0x30] sm:$0xe]  ;;  %v3593_v44 = vrot.slane %v3592_v58, 4 }
 0x173   : > { %v2678_v61 = vpop.f32.mrf.mxu0  ;;  %v3603_v63 = vrot.slane %v3602_v15, 4  ;;  %v5741_v4 = vrot.slane %v5725_v53, 9  ;;  %v2829_v11 = vsel %vm6344_vm5, %v5421_v5, %v2828_v57  ;;  %v3610_v57 = vshrl.u32 %v5636_v0, 16 }
 0x174   : > { %v7130_v36 = vadd.f32 %v2676_v9, %v2050_v6  ;;  %v2831_v6 = vrot.slane %v6076_v52, 5  ;;  %v3598_v45 = vsel %vm6339_vm4, %v3593_v44, %v7127_v46  ;;  %v3613_v58 = vshll.u32 %v5636_v0, 16 }
 0x175   : > { %v3608_v10 = vsel %vm6339_vm4, %v3603_v63, %v3607_v8  ;;  %v3619_v15 = vshll.u32 %v7145_v40, 16  ;;  %v3612_v53 = vrot.slane %v3610_v57, 4  ;;  %v5639_v57 = vld [vmem:[%s6200_s8 + $0x48] sm:$0xf] }
 0x176   : > { %v2832_v55 = vsel %vm6344_vm5, %v2830_v16, %v2831_v6  ;;  %v3625_v16 = vrot.slane %v3623_v51, 4  ;;  %v5638_v6 = vld [vmem:[%s6200_s8 + $0x44] sm:$0x1]  ;;  %v6078_v51 = vld [vmem:[%s6200_s8 + $0x38] sm:$0x1] }
 0x177   : > { %v1681_v7 = vpop.f32.mrf.mxu2  ;;  %v7164_v5 = vrot.slane %v3619_v15, 5 }
 0x178   : > { %v1736_v59 = vadd.f32 %v1681_v7, %v1307_v20  ;;  %v1996_v9 = vpop.f32.mrf.mxu3  ;;  %v4255_v7 = vsel %vm6344_vm5, %v4253_v26, %v4254_v35  ;;  %v5888_v26 = vld [vmem:[%s6200_s8 + $0x30] sm:$0xff] }
 0x179   : > { %v1255_v32 = vpop.f32.mrf.mxu1 }
 0x17a   : > { %v2051_v22 = vadd.f32 %v1996_v9, %v1736_v59  ;;  %v1308_v54 = vadd.f32 %v1255_v32, %v6589_v24  ;;  %v4252_v24 = vsel %vm6344_vm5, %v5741_v4, %v4251_v34  ;;  %v2945_v9 = vunpack.c.l.b16 %v2829_v11  ;;  %v5406_v11 = vld [vmem:[%s6200_s8 + $0x30] sm:$0xe] }
 0x17b   : > { %v2681_v14 = vpop.f32.mrf.mxu0  ;;  %v3943_v32 = vunpack.c.l.b16 %v3608_v10  ;;  %v4368_v34 = vunpack.c.l.b16 %v4252_v24  ;;  %v4258_v10 = vrot.slane %v7145_v40, 5  ;;  %v5726_v24 = vld [vmem:[%s6200_s8 + $0x3c] sm:$0xe] }
 0x17c   : > { %3066 = vmatmul.bf16.gmra.mxu1 %v2974_v62  ;;  %3381 = vmatmul.bf16.gmra.mxu2 %v5887_v1  ;;  %v7140_v50 = vadd.f32 %v2678_v61, %v2051_v22  ;;  %v2946_v62 = vunpack.c.l.b16 %v2832_v55  ;;  %v3942_v1 = vunpack.c.l.b16 %v3598_v45  ;;  %v3615_v22 = vrot.slane %v3613_v58, 5  ;;  %v7176_v58 = vld [vmem:[%s6200_s8 + $0x4c] sm:$0xf] }
 0x17d   : > { %4063 = vmatmul.bf16.gmra.mxu3 %v3971_v17  ;;  %v4369_v17 = vunpack.c.l.b16 %v4255_v7  ;;  %v3626_v45 = vor.u32 %v3625_v16, %v7164_v5  ;;  %v5422_v7 = vrot.slane %v5406_v11, 9  ;;  %v5742_v40 = vrot.slane %v5726_v24, 9 }
 0x17e   : > { %4489 = vmatmul.bf16.gmra.mxu0 %v4397_v28  ;;  %v2975_v4 = vpack.c.b16 %v2946_v62, %v2945_v9  ;;  %v3972_v35 = vpack.c.b16 %v3943_v32, %v3942_v1  ;;  %v3616_v55 = vor.u32 %v3615_v22, %v3612_v53  ;;  %v3634_v22 = vshrl.u32 %v5639_v57, 16 }
 0x17f   : > { %v1684_v2 = vpop.f32.mrf.mxu2  ;;  %v3627_v62 = vrot.slane %v3626_v45, 4  ;;  %v3637_v16 = vshll.u32 %v5639_v57, 16 }
 0x180   : > { %v1737_v61 = vadd.f32 %v1684_v2, %v1308_v54  ;;  %v1999_v20 = vpop.f32.mrf.mxu3  ;;  %v6077_v54 = vld [vmem:[%s6200_s8 + $0x34] sm:$0xf]  ;;  %v4398_v2 = vpack.c.b16 %v4369_v17, %v4368_v34  ;;  %v3617_v9 = vrot.slane %v3616_v55, 4  ;;  %v4260_v34 = vrot.slane %v4258_v10, 4 }
 0x181   : > { %v1257_v18 = vpop.f32.mrf.mxu1  ;;  %v4261_v17 = vrot.slane %v5638_v6, 5  ;;  %v3639_v11 = vrot.slane %v3637_v16, 5  ;;  %v4265_v16 = vrot.slane %v7176_v58, 5 }
 0x182   : > { %v2052_v46 = vadd.f32 %v1999_v20, %v1737_v61  ;;  %v1309_v52 = vadd.f32 %v1257_v18, %v6619_v3  ;;  %v3629_v3 = vshll.u32 %v5638_v6, 16  ;;  %v3622_v6 = vsel %vm6339_vm4, %v3617_v9, %v7164_v5 }
 0x183   : > { %v2683_v59 = vpop.f32.mrf.mxu0 }
 0x184   : > { %v7162_v28 = vadd.f32 %v2681_v14, %v2052_v46  ;;  %v2835_v14 = vrot.slane %v6077_v54, 5  ;;  %v2838_v46 = vrot.slane %v6078_v51, 5  ;;  %v3631_v1 = vrot.slane %v3629_v3, 5 }
 0x186   : > { %v2837_v18 = vrot.slane %v2835_v14, 4  ;;  %v3632_v54 = vsel %vm6339_vm4, %v3627_v62, %v3631_v1  ;;  %v5407_v1 = vld [vmem:[%s6200_s8 + $0x3c] sm:$0xe] }
 0x187   : > { %v1686_v44 = vpop.f32.mrf.mxu2 }
 0x188   : > { %v1738_v63 = vadd.f32 %v1686_v44, %v1309_v52  ;;  %v2001_v8 = vpop.f32.mrf.mxu3  ;;  %v3643_v52 = vshll.u32 %v7176_v58, 16 }
 0x189   : > { %v1260_v0 = vpop.f32.mrf.mxu1 }
 0x18a   : > { %v2053_v61 = vadd.f32 %v2001_v8, %v1738_v63  ;;  %v1310_v32 = vadd.f32 %v1260_v0, %v6646_v48  ;;  %v2839_v48 = vsel %vm6344_vm5, %v2837_v18, %v2838_v46  ;;  %v4259_v0 = vsel %vm6344_vm5, %v5742_v40, %v4258_v10  ;;  %v6079_v46 = vld [vmem:[%s6200_s8 + $0x40] sm:$0xf] }
 0x18b   : > { %v2686_v20 = vpop.f32.mrf.mxu0  ;;  %v7197_v55 = vrot.slane %v3643_v52, 5  ;;  %v2948_v5 = vunpack.c.l.b16 %v2839_v48  ;;  %v3945_v18 = vunpack.c.l.b16 %v3632_v54  ;;  %v4370_v57 = vunpack.c.l.b16 %v4259_v0 }
 0x18c   : > { %3071 = vmatmul.bf16.gmra.mxu1 %v2975_v4  ;;  %3386 = vmatmul.bf16.gmra.mxu2 %v5888_v26  ;;  %v7178_v15 = vadd.f32 %v2683_v59, %v2053_v61  ;;  %v3647_v59 = vshrl.u32 %v7176_v58, 16  ;;  %v2836_v4 = vsel %vm6344_vm5, %v5422_v7, %v2835_v14  ;;  %v3636_v14 = vrot.slane %v3634_v22, 4  ;;  %v5641_v61 = vld [vmem:[%s6200_s8 + $0x50] sm:$0x1]  ;;  %v5889_v22 = vld [vmem:[%s6200_s8 + $0x3c] sm:$0xff] }
 0x18d   : > { %4068 = vmatmul.bf16.gmra.mxu3 %v3972_v35  ;;  %v2947_v3 = vunpack.c.l.b16 %v2836_v4  ;;  %v3944_v7 = vunpack.c.l.b16 %v3622_v6  ;;  %v2842_v9 = vrot.slane %v6079_v46, 5  ;;  %v5423_v4 = vrot.slane %v5407_v1, 9  ;;  %v6080_v6 = vld [vmem:[%s6200_s8 + $0x44] sm:$0x1] }
 0x18e   : > { %4494 = vmatmul.bf16.gmra.mxu0 %v4398_v2  ;;  %v4262_v2 = vsel %vm6344_vm5, %v4260_v34, %v4261_v17  ;;  %v3649_v45 = vrot.slane %v3647_v59, 4  ;;  %v3653_v34 = vshll.u32 %v5641_v61, 16  ;;  %v4268_v58 = vrot.slane %v5641_v61, 5 }
 0x18f   : > { %v1689_v53 = vpop.f32.mrf.mxu2  ;;  %v4371_v51 = vunpack.c.l.b16 %v4262_v2  ;;  %v3973_v59 = vpack.c.b16 %v3945_v18, %v3944_v7  ;;  %v2844_v48 = vrot.slane %v2842_v9, 4  ;;  %v7215_v7 = vld [vmem:[%s6200_s8 + $0x58] sm:$0xf] }
 0x190   : > { %v1739_v44 = vadd.f32 %v1689_v53, %v1310_v32  ;;  %v2004_v63 = vpop.f32.mrf.mxu3  ;;  %v3640_v32 = vor.u32 %v3639_v11, %v3636_v14  ;;  %v3650_v40 = vor.u32 %v3649_v45, %v7197_v55  ;;  %v2976_v53 = vpack.c.b16 %v2948_v5, %v2947_v3  ;;  %v5642_v5 = vld [vmem:[%s6200_s8 + $0x54] sm:$0xf] }
 0x191   : > { %v1262_v8 = vpop.f32.mrf.mxu1  ;;  %v3655_v2 = vrot.slane %v3653_v34, 5  ;;  %v4267_v11 = vrot.slane %v4265_v16, 4  ;;  %v3671_v34 = vshrl.u32 %v7215_v7, 16 }
 0x192   : > { %v2054_v26 = vadd.f32 %v2004_v63, %v1739_v44  ;;  %v1311_v10 = vadd.f32 %v1262_v8, %v6681_v39  ;;  %v4399_v44 = vpack.c.b16 %v4371_v51, %v4370_v57  ;;  %v5727_v39 = vld [vmem:[%s6200_s8 + $0x48] sm:$0xe]  ;;  %v3641_v54 = vrot.slane %v3640_v32, 4 }
 0x193   : > { %v2688_v35 = vpop.f32.mrf.mxu0  ;;  %v3651_v0 = vrot.slane %v3650_v40, 4  ;;  %v5743_v14 = vrot.slane %v5727_v39, 9  ;;  %v2843_v57 = vsel %vm6344_vm5, %v5423_v4, %v2842_v9  ;;  %v3658_v9 = vshrl.u32 %v5642_v5, 16 }
 0x194   : > { %v7200_v24 = vadd.f32 %v2686_v20, %v2054_v26  ;;  %v2845_v26 = vrot.slane %v6080_v6, 5  ;;  %v3646_v61 = vsel %vm6339_vm4, %v3641_v54, %v7197_v55  ;;  %v3661_v32 = vshll.u32 %v5642_v5, 16 }
 0x195   : > { %v3656_v46 = vsel %vm6339_vm4, %v3651_v0, %v3655_v2  ;;  %v3667_v40 = vshll.u32 %v7215_v7, 16  ;;  %v3660_v39 = vrot.slane %v3658_v9, 4  ;;  %v5645_v9 = vld [vmem:[%s6200_s8 + $0x60] sm:$0xf] }
 0x196   : > { %v2846_v51 = vsel %vm6344_vm5, %v2844_v48, %v2845_v26  ;;  %v3673_v48 = vrot.slane %v3671_v34, 4  ;;  %v5644_v26 = vld [vmem:[%s6200_s8 + $0x5c] sm:$0x1]  ;;  %v6082_v34 = vld [vmem:[%s6200_s8 + $0x50] sm:$0x1] }
 0x197   : > { %v1691_v62 = vpop.f32.mrf.mxu2  ;;  %v7234_v4 = vrot.slane %v3667_v40, 5 }
 0x198   : > { %v1740_v17 = vadd.f32 %v1691_v62, %v1311_v10  ;;  %v2006_v20 = vpop.f32.mrf.mxu3  ;;  %v4269_v62 = vsel %vm6344_vm5, %v4267_v11, %v4268_v58  ;;  %v5890_v11 = vld [vmem:[%s6200_s8 + $0x48] sm:$0xff] }
 0x199   : > { %v1265_v52 = vpop.f32.mrf.mxu1 }
 0x19a   : > { %v2055_v63 = vadd.f32 %v2006_v20, %v1740_v17  ;;  %v1312_v3 = vadd.f32 %v1265_v52, %v6701_v25  ;;  %v4266_v25 = vsel %vm6344_vm5, %v5743_v14, %v4265_v16  ;;  %v2949_v20 = vunpack.c.l.b16 %v2843_v57  ;;  %v5408_v57 = vld [vmem:[%s6200_s8 + $0x48] sm:$0xe] }
 0x19b   : > { %v2691_v8 = vpop.f32.mrf.mxu0  ;;  %v3947_v52 = vunpack.c.l.b16 %v3656_v46  ;;  %v4372_v16 = vunpack.c.l.b16 %v4266_v25  ;;  %v4272_v46 = vrot.slane %v7215_v7, 5  ;;  %v5728_v25 = vld [vmem:[%s6200_s8 + $0x54] sm:$0xe] }
 0x19c   : > { %3076 = vmatmul.bf16.gmra.mxu1 %v2976_v53  ;;  %3391 = vmatmul.bf16.gmra.mxu2 %v5889_v22  ;;  %v7210_v45 = vadd.f32 %v2688_v35, %v2055_v63  ;;  %v2950_v53 = vunpack.c.l.b16 %v2846_v51  ;;  %v3946_v22 = vunpack.c.l.b16 %v3646_v61  ;;  %v3663_v63 = vrot.slane %v3661_v32, 5  ;;  %v7246_v32 = vld [vmem:[%s6200_s8 + $0x64] sm:$0xf] }
 0x19d   : > { %4073 = vmatmul.bf16.gmra.mxu3 %v3973_v59  ;;  %v4373_v59 = vunpack.c.l.b16 %v4269_v62  ;;  %v3674_v61 = vor.u32 %v3673_v48, %v7234_v4  ;;  %v5424_v62 = vrot.slane %v5408_v57, 9  ;;  %v5744_v7 = vrot.slane %v5728_v25, 9 }
 0x19e   : > { %4499 = vmatmul.bf16.gmra.mxu0 %v4399_v44  ;;  %v2977_v14 = vpack.c.b16 %v2950_v53, %v2949_v20  ;;  %v3974_v58 = vpack.c.b16 %v3947_v52, %v3946_v22  ;;  %v3664_v51 = vor.u32 %v3663_v63, %v3660_v39  ;;  %v3682_v63 = vshrl.u32 %v5645_v9, 16 }
 0x19f   : > { %v1694_v18 = vpop.f32.mrf.mxu2  ;;  %v3675_v53 = vrot.slane %v3674_v61, 4  ;;  %v3685_v48 = vshll.u32 %v5645_v9, 16 }
 0x1a0   : > { %v1741_v35 = vadd.f32 %v1694_v18, %v1312_v3  ;;  %v2009_v10 = vpop.f32.mrf.mxu3  ;;  %v6081_v3 = vld [vmem:[%s6200_s8 + $0x4c] sm:$0xf]  ;;  %v4400_v18 = vpack.c.b16 %v4373_v59, %v4372_v16  ;;  %v3665_v20 = vrot.slane %v3664_v51, 4  ;;  %v4274_v16 = vrot.slane %v4272_v46, 4 }
 0x1a1   : > { %v1267_v1 = vpop.f32.mrf.mxu1  ;;  %v4275_v59 = vrot.slane %v5644_v26, 5  ;;  %v3687_v57 = vrot.slane %v3685_v48, 5  ;;  %v4279_v48 = vrot.slane %v7246_v32, 5 }
 0x1a2   : > { %v2056_v55 = vadd.f32 %v2009_v10, %v1741_v35  ;;  %v1313_v6 = vadd.f32 %v1267_v1, %v6730_v19  ;;  %v3677_v19 = vshll.u32 %v5644_v26, 16  ;;  %v3670_v26 = vsel %vm6339_vm4, %v3665_v20, %v7234_v4 }
 0x1a3   : > { %v2693_v17 = vpop.f32.mrf.mxu0 }
 0x1a4   : > { %v7232_v44 = vadd.f32 %v2691_v8, %v2056_v55  ;;  %v2849_v8 = vrot.slane %v6081_v3, 5  ;;  %v2852_v55 = vrot.slane %v6082_v34, 5  ;;  %v3679_v22 = vrot.slane %v3677_v19, 5 }
 0x1a6   : > { %v2851_v1 = vrot.slane %v2849_v8, 4  ;;  %v3680_v3 = vsel %vm6339_vm4, %v3675_v53, %v3679_v22  ;;  %v5409_v22 = vld [vmem:[%s6200_s8 + $0x54] sm:$0xe] }
 0x1a7   : > { %v1696_v54 = vpop.f32.mrf.mxu2 }
 0x1a8   : > { %v1742_v0 = vadd.f32 %v1696_v54, %v1313_v6  ;;  %v2011_v2 = vpop.f32.mrf.mxu3  ;;  %v3691_v6 = vshll.u32 %v7246_v32, 16 }
 0x1a9   : > { %v1270_v5 = vpop.f32.mrf.mxu1 }
 0x1aa   : > { %v2057_v35 = vadd.f32 %v2011_v2, %v1742_v0  ;;  %v1314_v52 = vadd.f32 %v1270_v5, %v6545_v21  ;;  %v2853_v21 = vsel %vm6344_vm5, %v2851_v1, %v2852_v55  ;;  %v4273_v5 = vsel %vm6344_vm5, %v5744_v7, %v4272_v46  ;;  %v6083_v55 = vld [vmem:[%s6200_s8 + $0x58] sm:$0xf] }
 0x1ab   : > { %v2696_v10 = vpop.f32.mrf.mxu0  ;;  %v7267_v51 = vrot.slane %v3691_v6, 5  ;;  %v2952_v4 = vunpack.c.l.b16 %v2853_v21  ;;  %v3949_v1 = vunpack.c.l.b16 %v3680_v3  ;;  %v4374_v9 = vunpack.c.l.b16 %v4273_v5 }
 0x1ac   : > { %3081 = vmatmul.bf16.gmra.mxu1 %v2977_v14  ;;  %3396 = vmatmul.bf16.gmra.mxu2 %v5890_v11  ;;  %v7248_v40 = vadd.f32 %v2693_v17, %v2057_v35  ;;  %v3695_v17 = vshrl.u32 %v7246_v32, 16  ;;  %v2850_v14 = vsel %vm6344_vm5, %v5424_v62, %v2849_v8  ;;  %v3684_v8 = vrot.slane %v3682_v63, 4  ;;  %v5647_v35 = vld [vmem:[%s6200_s8 + $0x68] sm:$0x1]  ;;  %v5891_v63 = vld [vmem:[%s6200_s8 + $0x54] sm:$0xff] }
 0x1ad   : > { %4078 = vmatmul.bf16.gmra.mxu3 %v3974_v58  ;;  %v2951_v19 = vunpack.c.l.b16 %v2850_v14  ;;  %v3948_v62 = vunpack.c.l.b16 %v3670_v26  ;;  %v2856_v20 = vrot.slane %v6083_v55, 5  ;;  %v5425_v14 = vrot.slane %v5409_v22, 9  ;;  %v6084_v26 = vld [vmem:[%s6200_s8 + $0x5c] sm:$0x1] }
 0x1ae   : > { %4504 = vmatmul.bf16.gmra.mxu0 %v4400_v18  ;;  %v4276_v18 = vsel %vm6344_vm5, %v4274_v16, %v4275_v59  ;;  %v3697_v61 = vrot.slane %v3695_v17, 4  ;;  %v3701_v16 = vshll.u32 %v5647_v35, 16  ;;  %v4282_v32 = vrot.slane %v5647_v35, 5 }
 0x1af   : > { %v1699_v39 = vpop.f32.mrf.mxu2  ;;  %v4375_v34 = vunpack.c.l.b16 %v4276_v18  ;;  %v3975_v17 = vpack.c.b16 %v3949_v1, %v3948_v62  ;;  %v2858_v21 = vrot.slane %v2856_v20, 4  ;;  %v7285_v62 = vld [vmem:[%s6200_s8 + $0x70] sm:$0xf] }
 0x1b0   : > { %v1743_v54 = vadd.f32 %v1699_v39, %v1314_v52  ;;  %v2014_v0 = vpop.f32.mrf.mxu3  ;;  %v3688_v52 = vor.u32 %v3687_v57, %v3684_v8  ;;  %v3698_v7 = vor.u32 %v3697_v61, %v7267_v51  ;;  %v2978_v39 = vpack.c.b16 %v2952_v4, %v2951_v19  ;;  %v5648_v4 = vld [vmem:[%s6200_s8 + $0x6c] sm:$0xf] }
 0x1b1   : > { %v1272_v2 = vpop.f32.mrf.mxu1  ;;  %v3703_v18 = vrot.slane %v3701_v16, 5  ;;  %v4281_v57 = vrot.slane %v4279_v48, 4  ;;  %v3719_v16 = vshrl.u32 %v7285_v62, 16 }
 0x1b2   : > { %v2058_v11 = vadd.f32 %v2014_v0, %v1743_v54  ;;  %v1315_v46 = vadd.f32 %v1272_v2, %v6572_v56  ;;  %v4401_v54 = vpack.c.b16 %v4375_v34, %v4374_v9  ;;  %v5729_v56 = vld [vmem:[%s6200_s8 + $0x60] sm:$0xe]  ;;  %v3689_v3 = vrot.slane %v3688_v52, 4 }
 0x1b3   : > { %v2698_v58 = vpop.f32.mrf.mxu0  ;;  %v3699_v5 = vrot.slane %v3698_v7, 4  ;;  %v5745_v8 = vrot.slane %v5729_v56, 9  ;;  %v2857_v9 = vsel %vm6344_vm5, %v5425_v14, %v2856_v20  ;;  %v3706_v20 = vshrl.u32 %v5648_v4, 16 }
 0x1b4   : > { %v7270_v25 = vadd.f32 %v2696_v10, %v2058_v11  ;;  %v2859_v11 = vrot.slane %v6084_v26, 5  ;;  %v3694_v35 = vsel %vm6339_vm4, %v3689_v3, %v7267_v51  ;;  %v3709_v52 = vshll.u32 %v5648_v4, 16  ;;  %v7688_v26 = vld [vmem:[#allocation3_spill] sm:$0xff]  ;;  %v5650_v3 = vld [vmem:[%s6200_s8 + $0x74] sm:$0x1] }
 0x1b5   : > { %v3704_v55 = vsel %vm6339_vm4, %v3699_v5, %v3703_v18  ;;  %v3715_v7 = vshll.u32 %v7285_v62, 16  ;;  %v3708_v56 = vrot.slane %v3706_v20, 4  ;;  %v6085_v4 = vld [vmem:[%s6200_s8 + $0x64] sm:$0xf] }
 0x1b6   : > { %v2860_v34 = vsel %vm6344_vm5, %v2858_v21, %v2859_v11  ;;  %v3721_v21 = vrot.slane %v3719_v16, 4  ;;  %v7316_v16 = vld [vmem:[%s6200_s8 + $0x7c] sm:$0xf] }
 0x1b7   : > { %v1701_v53 = vpop.f32.mrf.mxu2  ;;  %v7304_v14 = vrot.slane %v3715_v7, 5  ;;  %v5651_v7 = vld [vmem:[%s6200_s8 + $0x78] sm:$0xf] }
 0x1b8   : > { %v1744_v59 = vadd.f32 %v1701_v53, %v1315_v46  ;;  %v2016_v10 = vpop.f32.mrf.mxu3  ;;  %v4283_v53 = vsel %vm6344_vm5, %v4281_v57, %v4282_v32  ;;  %v5892_v32 = vld [vmem:[%s6200_s8 + $0x60] sm:$0xff] }
 0x1b9   : > { %v1275_v6 = vpop.f32.mrf.mxu1 }
 0x1ba   : > { %v2059_v0 = vadd.f32 %v2016_v10, %v1744_v59  ;;  %v1316_v19 = vadd.f32 %v1275_v6, %v6593_v30  ;;  %v4280_v30 = vsel %vm6344_vm5, %v5745_v8, %v4279_v48  ;;  %v2953_v10 = vunpack.c.l.b16 %v2857_v9 }
 0x1bb   : > { %v2701_v2 = vpop.f32.mrf.mxu0  ;;  %v3951_v6 = vunpack.c.l.b16 %v3704_v55  ;;  %v4376_v48 = vunpack.c.l.b16 %v4280_v30 }
 0x1bc   : > { %3086 = vmatmul.bf16.gmra.mxu1 %v2978_v39  ;;  %3401 = vmatmul.bf16.gmra.mxu2 %v5891_v63  ;;  %v7280_v61 = vadd.f32 %v2698_v58, %v2059_v0  ;;  %v2954_v39 = vunpack.c.l.b16 %v2860_v34  ;;  %v3950_v63 = vunpack.c.l.b16 %v3694_v35  ;;  %v3711_v0 = vrot.slane %v3709_v52, 5  ;;  %v5410_v34 = vld [vmem:[%s6200_s8 + $0x60] sm:$0xe] }
 0x1bd   : > { %4083 = vmatmul.bf16.gmra.mxu3 %v3975_v17  ;;  %v4377_v17 = vunpack.c.l.b16 %v4283_v53  ;;  %v4286_v53 = vrot.slane %v7285_v62, 5  ;;  %v5426_v20 = vrot.slane %v5410_v34, 9 }
 0x1be   : > { %4509 = vmatmul.bf16.gmra.mxu0 %v4401_v54  ;;  %v2979_v57 = vpack.c.b16 %v2954_v39, %v2953_v10  ;;  %v3712_v35 = vor.u32 %v3711_v0, %v3708_v56  ;;  %v6086_v10 = vld [vmem:[%s6200_s8 + $0x68] sm:$0x1] }
 0x1bf   : > { %v1704_v1 = vpop.f32.mrf.mxu2  ;;  %v4402_v9 = vpack.c.b16 %v4377_v17, %v4376_v48  ;;  %v2866_v39 = vrot.slane %v6086_v10, 5  ;;  %v7689_v17 = vld [vmem:[#allocation4_spill] sm:$0xff]  ;;  %v4288_v0 = vrot.slane %v4286_v53, 4 }
 0x1c0   : > { %v1745_v58 = vadd.f32 %v1704_v1, %v1316_v19  ;;  %v2019_v46 = vpop.f32.mrf.mxu3  ;;  %v3976_v19 = vpack.c.b16 %v3951_v6, %v3950_v63  ;;  %v3713_v63 = vrot.slane %v3712_v35, 4 }
 0x1c1   : > { %v1277_v22 = vpop.f32.mrf.mxu1 }
 0x1c2   : > { %v2060_v51 = vadd.f32 %v2019_v46, %v1745_v58  ;;  %v1317_v11 = vadd.f32 %v1277_v22, %v7688_v26  ;;  %v3722_v58 = vor.u32 %v3721_v21, %v7304_v14  ;;  %v3725_v46 = vshll.u32 %v5650_v3, 16  ;;  %v5730_v22 = vld [vmem:[%s6200_s8 + $0x6c] sm:$0xe] }
 0x1c3   : > { %v2703_v59 = vpop.f32.mrf.mxu0  ;;  %v5746_v62 = vrot.slane %v5730_v22, 9  ;;  %v4289_v21 = vrot.slane %v5650_v3, 5  ;;  %v3718_v3 = vsel %vm6339_vm4, %v3713_v63, %v7304_v14 }
 0x1c4   : > { %v7302_v54 = vadd.f32 %v2701_v2, %v2060_v51  ;;  %v2863_v2 = vrot.slane %v6085_v4, 5  ;;  %v3723_v6 = vrot.slane %v3722_v58, 4  ;;  %v3727_v48 = vrot.slane %v3725_v46, 5 }
 0x1c5   : > { %v4287_v35 = vsel %vm6344_vm5, %v5746_v62, %v4286_v53  ;;  %v4290_v58 = vsel %vm6344_vm5, %v4288_v0, %v4289_v21  ;;  %v3952_v10 = vunpack.c.l.b16 %v3718_v3  ;;  %v6087_v62 = vld [vmem:[%s6200_s8 + $0x70] sm:$0xf] }
 0x1c6   : > { %v2865_v52 = vrot.slane %v2863_v2, 4  ;;  %v3728_v34 = vsel %vm6339_vm4, %v3723_v6, %v3727_v48  ;;  %v4378_v63 = vunpack.c.l.b16 %v4287_v35  ;;  %v4379_v53 = vunpack.c.l.b16 %v4290_v58  ;;  %v7690_v6 = vld [vmem:[#allocation5_spill] sm:$0xff] }
 0x1c7   : > { %v1706_v5 = vpop.f32.mrf.mxu2  ;;  %v2870_v0 = vrot.slane %v6087_v62, 5  ;;  %v6088_v35 = vld [vmem:[%s6200_s8 + $0x74] sm:$0x1] }
 0x1c8   : > { %v1746_v18 = vadd.f32 %v1706_v5, %v1317_v11  ;;  %v2021_v8 = vpop.f32.mrf.mxu3  ;;  %v3730_v11 = vshrl.u32 %v5651_v7, 16  ;;  %v3733_v5 = vshll.u32 %v5651_v7, 16  ;;  %v2867_v4 = vsel %vm6344_vm5, %v2865_v52, %v2866_v39  ;;  %v5653_v52 = vld [vmem:[%s6200_s8 + $0x80] sm:$0x1] }
 0x1c9   : > { %v1280_v1 = vpop.f32.mrf.mxu1  ;;  %v2956_v14 = vunpack.c.l.b16 %v2867_v4  ;;  %v3953_v39 = vunpack.c.l.b16 %v3728_v34  ;;  %v4403_v4 = vpack.c.b16 %v4379_v53, %v4378_v63  ;;  %v2873_v58 = vrot.slane %v6088_v35, 5  ;;  %v5654_v63 = vld [vmem:[%s6200_s8 + $0x84] sm:$0xf]  ;;  %v7355_v53 = vld [vmem:[%s6200_s8 + $0x88] sm:$0xf] }
 0x1ca   : > { %v2061_v55 = vadd.f32 %v2021_v8, %v1746_v18  ;;  %v1318_v56 = vadd.f32 %v1280_v1, %v7689_v17  ;;  %v3739_v18 = vshll.u32 %v7316_v16, 16  ;;  %v3735_v46 = vrot.slane %v3733_v5, 5 }
 0x1cb   : > { %v2706_v30 = vpop.f32.mrf.mxu0 }
 0x1cc   : > { %3091 = vmatmul.bf16.gmra.mxu1 %v2979_v57  ;;  %3406 = vmatmul.bf16.gmra.mxu2 %v5892_v32  ;;  %v7318_v51 = vadd.f32 %v2703_v59, %v2061_v55  ;;  %v3743_v59 = vshrl.u32 %v7316_v16, 16  ;;  %v7337_v55 = vrot.slane %v3739_v18, 5 }
 0x1cd   : > { %4088 = vmatmul.bf16.gmra.mxu3 %v3976_v19  ;;  %v2864_v19 = vsel %vm6344_vm5, %v5426_v20, %v2863_v2  ;;  %v3732_v2 = vrot.slane %v3730_v11, 4  ;;  %v3749_v11 = vshll.u32 %v5653_v52, 16 }
 0x1ce   : > { %4514 = vmatmul.bf16.gmra.mxu0 %v4402_v9  ;;  %v3745_v22 = vrot.slane %v3743_v59, 4  ;;  %v2955_v20 = vunpack.c.l.b16 %v2864_v19  ;;  %v5893_v59 = vld [vmem:[%s6200_s8 + $0x6c] sm:$0xff]  ;;  %v3977_v19 = vpack.c.b16 %v3953_v39, %v3952_v10  ;;  %v7691_v10 = vld [vmem:[#allocation6_spill] sm:$0xff] }
 0x1cf   : > { %v1709_v26 = vpop.f32.mrf.mxu2  ;;  %v3736_v21 = vor.u32 %v3735_v46, %v3732_v2  ;;  %v2872_v2 = vrot.slane %v2870_v0, 4 }
 0x1d0   : > { %v1747_v8 = vadd.f32 %v1709_v26, %v1318_v56  ;;  %v2024_v57 = vpop.f32.mrf.mxu3  ;;  %v5411_v56 = vld [vmem:[%s6200_s8 + $0x6c] sm:$0xe]  ;;  %v3746_v26 = vor.u32 %v3745_v22, %v7337_v55  ;;  %v2980_v18 = vpack.c.b16 %v2956_v14, %v2955_v20 }
 0x1d1   : > { %v1282_v32 = vpop.f32.mrf.mxu1  ;;  %v5427_v34 = vrot.slane %v5411_v56, 9  ;;  %v3737_v46 = vrot.slane %v3736_v21, 4  ;;  %v2874_v62 = vsel %vm6344_vm5, %v2872_v2, %v2873_v58 }
 0x1d2   : > { %v2062_v1 = vadd.f32 %v2024_v57, %v1747_v8  ;;  %v1319_v48 = vadd.f32 %v1282_v32, %v7690_v6  ;;  %v4293_v8 = vrot.slane %v7316_v16, 5  ;;  %v5731_v32 = vld [vmem:[%s6200_s8 + $0x78] sm:$0xe]  ;;  %v3747_v22 = vrot.slane %v3746_v26, 4 }
 0x1d3   : > { %v2708_v9 = vpop.f32.mrf.mxu0  ;;  %v3751_v6 = vrot.slane %v3749_v11, 5  ;;  %v5747_v20 = vrot.slane %v5731_v32, 9  ;;  %v4296_v16 = vrot.slane %v5653_v52, 5  ;;  %v2871_v56 = vsel %vm6344_vm5, %v5427_v34, %v2870_v0 }
 0x1d4   : > { %v7340_v7 = vadd.f32 %v2706_v30, %v2062_v1  ;;  %v4295_v14 = vrot.slane %v4293_v8, 4  ;;  %v3742_v52 = vsel %vm6339_vm4, %v3737_v46, %v7337_v55  ;;  %v3754_v0 = vshrl.u32 %v5654_v63, 16 }
 0x1d5   : > { %v3752_v26 = vsel %vm6339_vm4, %v3747_v22, %v3751_v6  ;;  %v4294_v11 = vsel %vm6344_vm5, %v5747_v20, %v4293_v8  ;;  %v2958_v32 = vunpack.c.l.b16 %v2874_v62  ;;  %v7692_v20 = vld [vmem:[#allocation7_spill] sm:$0xff] }
 0x1d6   : > { %v3955_v34 = vunpack.c.l.b16 %v3752_v26  ;;  %v4380_v8 = vunpack.c.l.b16 %v4294_v11  ;;  %v3756_v2 = vrot.slane %v3754_v0, 4  ;;  %v5412_v26 = vld [vmem:[%s6200_s8 + $0x78] sm:$0xe] }
 0x1d7   : > { %v1711_v17 = vpop.f32.mrf.mxu2 }
 0x1d8   : > { %v1748_v5 = vadd.f32 %v1711_v17, %v1319_v48  ;;  %v2026_v30 = vpop.f32.mrf.mxu3 }
 0x1d9   : > { %v1285_v57 = vpop.f32.mrf.mxu1 }
 0x1da   : > { %v2063_v3 = vadd.f32 %v2026_v30, %v1748_v5  ;;  %v1320_v39 = vadd.f32 %v1285_v57, %v7691_v10  ;;  %v4297_v5 = vsel %vm6344_vm5, %v4295_v14, %v4296_v16  ;;  %v3767_v57 = vshrl.u32 %v7355_v53, 16  ;;  %v5656_v16 = vld [vmem:[%s6200_s8 + $0x8c] sm:$0x1] }
 0x1db   : > { %v2711_v1 = vpop.f32.mrf.mxu0  ;;  %v4381_v35 = vunpack.c.l.b16 %v4297_v5  ;;  %v3773_v0 = vshll.u32 %v5656_v16, 16 }
 0x1dc   : > { %3096 = vmatmul.bf16.gmra.mxu1 %v2980_v18  ;;  %3411 = vmatmul.bf16.gmra.mxu2 %v5893_v59  ;;  %v7350_v48 = vadd.f32 %v2708_v9, %v2063_v3  ;;  %v3757_v18 = vshll.u32 %v5654_v63, 16  ;;  %v3763_v59 = vshll.u32 %v7355_v53, 16  ;;  %v3954_v3 = vunpack.c.l.b16 %v3742_v52  ;;  %v6089_v52 = vld [vmem:[%s6200_s8 + $0x7c] sm:$0xf] }
 0x1dd   : > { %4093 = vmatmul.bf16.gmra.mxu3 %v3977_v19  ;;  %v3769_v6 = vrot.slane %v3767_v57, 4  ;;  %v5732_v57 = vld [vmem:[%s6200_s8 + $0x84] sm:$0xe] }
 0x1de   : > { %4519 = vmatmul.bf16.gmra.mxu0 %v4403_v4  ;;  %v2957_v4 = vunpack.c.l.b16 %v2871_v56  ;;  %v3759_v46 = vrot.slane %v3757_v18, 5  ;;  %v3765_v22 = vrot.slane %v3763_v59, 5  ;;  %v5894_v56 = vld [vmem:[%s6200_s8 + $0x78] sm:$0xff]  ;;  %v3978_v62 = vpack.c.b16 %v3955_v34, %v3954_v3  ;;  %v5657_v34 = vld [vmem:[%s6200_s8 + $0x90] sm:$0xf] }
 0x1df   : > { %v1714_v17 = vpop.f32.mrf.mxu2  ;;  %v4300_v59 = vrot.slane %v7355_v53, 5 }
 0x1e0   : > { %v1749_v9 = vadd.f32 %v1714_v17, %v1320_v39  ;;  %v2029_v21 = vpop.f32.mrf.mxu3  ;;  %v2981_v17 = vpack.c.b16 %v2958_v32, %v2957_v4  ;;  %v3760_v11 = vor.u32 %v3759_v46, %v3756_v2  ;;  %v3770_v5 = vor.u32 %v3769_v6, %v3765_v22  ;;  %v6090_v32 = vld [vmem:[%s6200_s8 + $0x80] sm:$0x1]  ;;  %v7693_v46 = vld [vmem:[#allocation8_spill] sm:$0xff] }
 0x1e1   : > { %v1287_v30 = vpop.f32.mrf.mxu1  ;;  %v2880_v3 = vrot.slane %v6090_v32, 5  ;;  %v3775_v2 = vrot.slane %v3773_v0, 5  ;;  %v4302_v53 = vrot.slane %v4300_v59, 4 }
 0x1e2   : > { %v2064_v55 = vadd.f32 %v2029_v21, %v1749_v9  ;;  %v1321_v14 = vadd.f32 %v1287_v30, %v7692_v20  ;;  %v2877_v9 = vrot.slane %v6089_v52, 5  ;;  %v4404_v21 = vpack.c.b16 %v4381_v35, %v4380_v8 }
 0x1e3   : > { %v2713_v19 = vpop.f32.mrf.mxu0  ;;  %v3761_v8 = vrot.slane %v3760_v11, 4  ;;  %v3771_v35 = vrot.slane %v3770_v5, 4 }
 0x1e4   : > { %v7372_v58 = vadd.f32 %v2711_v1, %v2064_v55  ;;  %v5428_v55 = vrot.slane %v5412_v26, 9  ;;  %v2879_v4 = vrot.slane %v2877_v9, 4 }
 0x1e7   : > { %v1716_v10 = vpop.f32.mrf.mxu2 }
 0x1e8   : > { %v1750_v39 = vadd.f32 %v1716_v10, %v1321_v14  ;;  %v2031_v63 = vpop.f32.mrf.mxu3  ;;  %v5748_v14 = vrot.slane %v5732_v57, 9  ;;  %v4303_v10 = vrot.slane %v5656_v16, 5  ;;  %v3776_v16 = vsel %vm6339_vm4, %v3771_v35, %v3775_v2 }
 0x1e9   : > { %v3062_v1 = vpop.f32.mrf.mxu1 }
 0x1ea   : > { %v2065_v18 = vadd.f32 %v2031_v63, %v1750_v39  ;;  %v3142_v6 = vadd.f32 %v3062_v1, %v7693_v46  ;;  %v7387_v39 = vld [vmem:[%s6200_s8 + $0x94] sm:$0xf]  ;;  %v3766_v1 = vsel %vm6339_vm4, %v3761_v8, %v3765_v22  ;;  %v4304_v57 = vsel %vm6344_vm5, %v4302_v53, %v4303_v10  ;;  %v5659_v10 = vld [vmem:[%s6200_s8 + $0x98] sm:$0x1] }
 0x1eb   : > { %v4485_v30 = vpop.f32.mrf.mxu0  ;;  %v3787_v11 = vshll.u32 %v7387_v39, 16  ;;  %v3791_v5 = vshrl.u32 %v7387_v39, 16  ;;  %v4383_v35 = vunpack.c.l.b16 %v4304_v57 }
 0x1ec   : > { %3101 = vmatmul.bf16.gmra.mxu1 %v2981_v17  ;;  %3416 = vmatmul.bf16.gmra.mxu2 %v5894_v56  ;;  %v7383_v20 = vadd.f32 %v2713_v19, %v2065_v18  ;;  %v3778_v17 = vshrl.u32 %v5657_v34, 16  ;;  %v3781_v56 = vshll.u32 %v5657_v34, 16  ;;  %v2878_v19 = vsel %vm6344_vm5, %v5428_v55, %v2877_v9 }
 0x1ed   : > { %4098 = vmatmul.bf16.gmra.mxu3 %v3978_v62  ;;  %v2881_v62 = vsel %vm6344_vm5, %v2879_v4, %v2880_v3  ;;  %v4301_v9 = vsel %vm6344_vm5, %v5748_v14, %v4300_v59  ;;  %v2959_v22 = vunpack.c.l.b16 %v2878_v19  ;;  %v3956_v3 = vunpack.c.l.b16 %v3766_v1  ;;  %v7408_v59 = vld [vmem:[%s7674_s2] ss:$0 sm:$0xff]  ;;  %v7694_v14 = vld [vmem:[#allocation9_spill] sm:$0xff]  ;;  %v5895_v1 = vld [vmem:[%s6200_s8 + $0x84] sm:$0xff] }
 0x1ee   : > { %4524 = vmatmul.bf16.gmra.mxu0 %v4404_v21  ;;  %v3780_v55 = vrot.slane %v3778_v17, 4  ;;  %v3783_v4 = vrot.slane %v3781_v56, 5  ;;  %v2960_v32 = vunpack.c.l.b16 %v2881_v62  ;;  %v3957_v34 = vunpack.c.l.b16 %v3776_v16  ;;  %v6091_v17 = vld [vmem:[%s6200_s8 + $0x88] sm:$0xf] }
 0x1ef   : > { %v3377_v63 = vpop.f32.mrf.mxu2  ;;  %v4382_v8 = vunpack.c.l.b16 %v4301_v9  ;;  %v7403_v2 = vrot.slane %v3787_v11, 5  ;;  %v3793_v46 = vrot.slane %v3791_v5, 4  ;;  %v2884_v56 = vrot.slane %v6091_v17, 5 }
 0x1f0   : > { %v3457_v52 = vadd.f32 %v3377_v63, %v3142_v6  ;;  %v4059_v26 = vpop.f32.mrf.mxu3  ;;  %v2982_v62 = vpack.c.b16 %v2960_v32, %v2959_v22  ;;  %v3979_v16 = vpack.c.b16 %v3957_v34, %v3956_v3  ;;  %v3797_v9 = vshll.u32 %v5659_v10, 16 }
 0x1f1   : > { %v3064_v21 = vpop.f32.mrf.mxu1  ;;  %v4405_v5 = vpack.c.b16 %v4383_v35, %v4382_v8 }
 0x1f2   : > { %v4139_v0 = vadd.f32 %v4059_v26, %v3457_v52  ;;  %v3143_v53 = vadd.f32 %v3064_v21, %v7694_v14  ;;  %v3784_v52 = vor.u32 %v3783_v4, %v3780_v55  ;;  %v4307_v21 = vrot.slane %v7387_v39, 5  ;;  %v5733_v55 = vld [vmem:[%s6200_s8 + $0x90] sm:$0xe] }
 0x1f3   : > { %v4487_v18 = vpop.f32.mrf.mxu0  ;;  %v3799_v39 = vrot.slane %v3797_v9, 5  ;;  %v5749_v8 = vrot.slane %v5733_v55, 9 }
 0x1f4   : > { %v4565_v6 = vadd.f32 %v4485_v30, %v4139_v0  ;;  %v5413_v30 = vld [vmem:[%s6200_s8 + $0x84] sm:$0xe]  ;;  %v3794_v0 = vor.u32 %v3793_v46, %v7403_v2  ;;  %v3785_v32 = vrot.slane %v3784_v52, 4  ;;  %v4309_v35 = vrot.slane %v4307_v21, 4  ;;  %v5660_v46 = vld [vmem:[%s6200_s8 + $0x9c] sm:$0xf] }
 0x1f5   : > { %v5429_v4 = vrot.slane %v5413_v30, 9  ;;  %v4310_v30 = vrot.slane %v5659_v10, 5  ;;  %v3802_v9 = vshrl.u32 %v5660_v46, 16 }
 0x1f6   : > { %v4668_v57 = vadd.f32 %v7408_v59, %v4565_v6  ;;  %v3795_v34 = vrot.slane %v3794_v0, 4 }
 0x1f7   : > { %v3379_v63 = vpop.f32.mrf.mxu2 }
 0x1f8   : > { %v3458_v26 = vadd.f32 %v3379_v63, %v3143_v53  ;;  %v4061_v19 = vpop.f32.mrf.mxu3  ;;  %v2886_v53 = vrot.slane %v2884_v56, 4  ;;  %v6092_v63 = vld [vmem:[%s6200_s8 + $0x8c] sm:$0x1]  ;;  %v4700_v6 = vmul.f32 0.0, %v4668_v57 }
 0x1f9   : > { %v3067_v11 = vpop.f32.mrf.mxu1  ;;  %v2887_v22 = vrot.slane %v6092_v63, 5  ;;  %v7424_v63 = vld [vmem:[%s6200_s8 + $0xa0] sm:$0xf] }
 0x1fa   : > { %v4140_v14 = vadd.f32 %v4061_v19, %v3458_v26  ;;  %v3144_v19 = vadd.f32 %v3067_v11, %v6851_v42  ;;  %v3805_v42 = vshll.u32 %v5660_v46, 16  ;;  %v3800_v11 = vsel %vm6339_vm4, %v3795_v34, %v3799_v39 }
 0x1fb   : > { %v4490_v17 = vpop.f32.mrf.mxu0  ;;  %v3815_v55 = vshrl.u32 %v7424_v63, 16 }
 0x1fc   : > { %v4566_v3 = vadd.f32 %v4487_v18, %v4140_v14  ;;  %3106 = vmatmul.bf16.gmra.mxu1 %v2982_v62  ;;  %3421 = vmatmul.bf16.gmra.mxu2 %v5895_v1  ;;  %v2885_v18 = vsel %vm6344_vm5, %v5429_v4, %v2884_v56  ;;  %v2888_v62 = vsel %vm6344_vm5, %v2886_v53, %v2887_v22  ;;  %v3811_v14 = vshll.u32 %v7424_v63, 16 }
 0x1fd   : > { %4103 = vmatmul.bf16.gmra.mxu3 %v3979_v16  ;;  %v3790_v1 = vsel %vm6339_vm4, %v3785_v32, %v7403_v2  ;;  %v4308_v56 = vsel %vm6344_vm5, %v5749_v8, %v4307_v21  ;;  %v4732_v4 = vmax.f32 %v4668_v57, %v4700_v6  ;;  %v4311_v32 = vsel %vm6344_vm5, %v4309_v35, %v4310_v30 }
 0x1fe   : > { %4529 = vmatmul.bf16.gmra.mxu0 %v4405_v5  ;;  %v4669_v26 = vadd.f32 %v7408_v59, %v4566_v3  ;;  %v2961_v3 = vunpack.c.l.b16 %v2885_v18  ;;  %v2962_v21 = vunpack.c.l.b16 %v2888_v62  ;;  %v3958_v34 = vunpack.c.l.b16 %v3790_v1 }
 0x1ff   : > { %v3382_v52 = vpop.f32.mrf.mxu2  ;;  %v3959_v8 = vunpack.c.l.b16 %v3800_v11  ;;  %v3804_v57 = vrot.slane %v3802_v9, 4  ;;  %v3807_v46 = vrot.slane %v3805_v42, 5  ;;  %v4384_v6 = vunpack.c.l.b16 %v4308_v56  ;;  %v5414_v11 = vld [vmem:[%s6200_s8 + $0x90] sm:$0xe]  ;;  %v6093_v42 = vld [vmem:[%s6200_s8 + $0x94] sm:$0xf] }
 0x200   : > { %v4701_v16 = vmul.f32 0.0, %v4669_v26  ;;  %v3459_v5 = vadd.f32 %v3382_v52, %v3144_v19  ;;  %v4064_v0 = vpop.f32.mrf.mxu3  ;;  %v7447_v35 = vrot.slane %v3811_v14, 5  ;;  %v3817_v19 = vrot.slane %v3815_v55, 4 }
 0x201   : > { %v3069_v10 = vpop.f32.mrf.mxu1  ;;  %v2983_v62 = vpack.c.b16 %v2962_v21, %v2961_v3  ;;  %v3980_v9 = vpack.c.b16 %v3959_v8, %v3958_v34  ;;  %v3808_v56 = vor.u32 %v3807_v46, %v3804_v57  ;;  %v5734_v3 = vld [vmem:[%s6200_s8 + $0x9c] sm:$0xe]  ;;  %v5430_v21 = vrot.slane %v5414_v11, 9  ;;  %v6094_v8 = vld [vmem:[%s6200_s8 + $0x98] sm:$0x1] }
 0x202   : > { %v4733_v53 = vmax.f32 %v4669_v26, %v4701_v16  ;;  %v4141_v2 = vadd.f32 %v4064_v0, %v3459_v5  ;;  %v4385_v26 = vunpack.c.l.b16 %v4311_v32  ;;  %v3145_v52 = vadd.f32 %v3069_v10, %v6853_v31  ;;  %v5662_v16 = vld [vmem:[%s6200_s8 + $0xa4] sm:$0x1]  ;;  %v5896_v0 = vld [vmem:[%s6200_s8 + $0x90] sm:$0xff] }
 0x203   : > { %v4492_v22 = vpop.f32.mrf.mxu0  ;;  %v3821_v55 = vshll.u32 %v5662_v16, 16  ;;  %v4314_v31 = vrot.slane %v7424_v63, 5  ;;  %v2894_v57 = vrot.slane %v6094_v8, 5  ;;  %v3809_v46 = vrot.slane %v3808_v56, 4 }
 0x204   : > { %v5929_v39 = vpack.c.bf16 %v4733_v53, %v4732_v4  ;;  %v4567_v30 = vadd.f32 %v4490_v17, %v4141_v2  ;;  %v2891_v4 = vrot.slane %v6093_v42, 5  ;;  %v4406_v53 = vpack.c.b16 %v4385_v26, %v4384_v6  ;;  %v5663_v6 = vld [vmem:[%s6200_s8 + $0xa8] sm:$0xf] }
 0x205   : > { %v3818_v17 = vor.u32 %v3817_v19, %v7447_v35  ;;  %v3823_v19 = vrot.slane %v3821_v55, 5  ;;  %v5750_v63 = vrot.slane %v5734_v3, 9  ;;  %v3826_v11 = vshrl.u32 %v5663_v6, 16 }
 0x206   : > { %5930 = vst [vmem:[%s7445_s9] sm:$0xff] %v5929_v39   ;;  %v4670_v10 = vadd.f32 %v7408_v59, %v4567_v30  ;;  %v2893_v39 = vrot.slane %v2891_v4, 4  ;;  %v3829_v42 = vshll.u32 %v5663_v6, 16  ;;  %v3814_v55 = vsel %vm6339_vm4, %v3809_v46, %v7447_v35 }
 0x207   : > { %v3384_v18 = vpop.f32.mrf.mxu2  ;;  %v3819_v26 = vrot.slane %v3818_v17, 4 }
 0x208   : > { %v3460_v1 = vadd.f32 %v3384_v18, %v3145_v52  ;;  %v4066_v5 = vpop.f32.mrf.mxu3  ;;  %v4316_v52 = vrot.slane %v4314_v31, 4  ;;  %v4702_v30 = vmul.f32 0.0, %v4670_v10  ;;  %v2895_v17 = vsel %vm6344_vm5, %v2893_v39, %v2894_v57 }
 0x209   : > { %v3072_v14 = vpop.f32.mrf.mxu1  ;;  %v3828_v57 = vrot.slane %v3826_v11, 4  ;;  %v3831_v46 = vrot.slane %v3829_v42, 5 }
 0x20a   : > { %v4142_v2 = vadd.f32 %v4066_v5, %v3460_v1  ;;  %v3146_v1 = vadd.f32 %v3072_v14, %v6902_v43  ;;  %v4315_v14 = vsel %vm6344_vm5, %v5750_v63, %v4314_v31  ;;  %v4734_v3 = vmax.f32 %v4670_v10, %v4702_v30 }
 0x20b   : > { %v4495_v32 = vpop.f32.mrf.mxu0  ;;  %v3960_v31 = vunpack.c.l.b16 %v3814_v55  ;;  %v4386_v63 = vunpack.c.l.b16 %v4315_v14  ;;  %v3832_v42 = vor.u32 %v3831_v46, %v3828_v57  ;;  %v6096_v46 = vld [vmem:[%s6200_s8 + $0xa4] sm:$0x1] }
 0x20c   : > { %v4568_v34 = vadd.f32 %v4492_v22, %v4142_v2  ;;  %3111 = vmatmul.bf16.gmra.mxu1 %v2983_v62  ;;  %3426 = vmatmul.bf16.gmra.mxu2 %v5896_v0  ;;  %v4317_v22 = vrot.slane %v5662_v16, 5  ;;  %v7464_v62 = vld [vmem:[%s6200_s8 + $0xac] sm:$0xf]  ;;  %v2892_v0 = vsel %vm6344_vm5, %v5430_v21, %v2891_v4  ;;  %v3824_v16 = vsel %vm6339_vm4, %v3819_v26, %v3823_v19 }
 0x20d   : > { %4108 = vmatmul.bf16.gmra.mxu3 %v3980_v9  ;;  %v3835_v4 = vshll.u32 %v7464_v62, 16  ;;  %v3839_v2 = vshrl.u32 %v7464_v62, 16  ;;  %v2963_v8 = vunpack.c.l.b16 %v2892_v0  ;;  %v2964_v26 = vunpack.c.l.b16 %v2895_v17  ;;  %v6095_v0 = vld [vmem:[%s6200_s8 + $0xa0] sm:$0xf] }
 0x20e   : > { %4534 = vmatmul.bf16.gmra.mxu0 %v4406_v53  ;;  %v4671_v18 = vadd.f32 %v7408_v59, %v4568_v34  ;;  %v4318_v35 = vsel %vm6344_vm5, %v4316_v52, %v4317_v22  ;;  %v3961_v19 = vunpack.c.l.b16 %v3824_v16  ;;  %v5665_v52 = vld [vmem:[%s6200_s8 + $0xb0] sm:$0x1]  ;;  %v2898_v11 = vrot.slane %v6095_v0, 5  ;;  %v5897_v17 = vld [vmem:[%s6200_s8 + $0x9c] sm:$0xff]  ;;  %v7498_v0 = vld [vmem:[%s6200_s8 + $0xb8] sm:$0xf] }
 0x20f   : > { %v3387_v5 = vpop.f32.mrf.mxu2  ;;  %v7481_v10 = vrot.slane %v3835_v4, 5  ;;  %v3841_v30 = vrot.slane %v3839_v2, 4  ;;  %v5415_v16 = vld [vmem:[%s6200_s8 + $0x9c] sm:$0xe] }
 0x210   : > { %v4703_v9 = vmul.f32 0.0, %v4671_v18  ;;  %v3461_v56 = vadd.f32 %v3387_v5, %v3146_v1  ;;  %v4069_v53 = vpop.f32.mrf.mxu3  ;;  %v4387_v1 = vunpack.c.l.b16 %v4318_v35  ;;  %v3981_v55 = vpack.c.b16 %v3961_v19, %v3960_v31 }
 0x211   : > { %v3074_v43 = vpop.f32.mrf.mxu1  ;;  %v3842_v2 = vor.u32 %v3841_v30, %v7481_v10  ;;  %v5431_v35 = vrot.slane %v5415_v16, 9  ;;  %v2900_v57 = vrot.slane %v2898_v11, 4 }
 0x212   : > { %v4735_v21 = vmax.f32 %v4671_v18, %v4703_v9  ;;  %v4143_v34 = vadd.f32 %v4069_v53, %v3461_v56  ;;  %v3147_v5 = vadd.f32 %v3074_v43, %v6904_v13  ;;  %v2984_v53 = vpack.c.b16 %v2964_v26, %v2963_v8 }
 0x213   : > { %v4497_v39 = vpop.f32.mrf.mxu0  ;;  %v4407_v4 = vpack.c.b16 %v4387_v1, %v4386_v63  ;;  %v4321_v13 = vrot.slane %v7464_v62, 5  ;;  %v2901_v8 = vrot.slane %v6096_v46, 5  ;;  %v3843_v31 = vrot.slane %v3842_v2, 4  ;;  %v5666_v1 = vld [vmem:[%s6200_s8 + $0xb4] sm:$0xf] }
 0x214   : > { %v5934_v6 = vpack.c.bf16 %v4735_v21, %v4734_v3  ;;  %v4569_v18 = vadd.f32 %v4495_v32, %v4143_v34  ;;  %v3845_v32 = vshll.u32 %v5665_v52, 16  ;;  %v5735_v34 = vld [vmem:[%s6200_s8 + $0xa8] sm:$0xe]  ;;  %v3850_v16 = vshrl.u32 %v5666_v1, 16 }
 0x215   : > { %v5751_v62 = vrot.slane %v5735_v34, 9  ;;  %v4323_v63 = vrot.slane %v4321_v13, 4  ;;  %v3863_v2 = vshrl.u32 %v7498_v0, 16 }
 0x216   : > { %6006 = vst [vmem:[%s7445_s9 + $0x8] sm:$0xff] %v5934_v6   ;;  %v4672_v43 = vadd.f32 %v7408_v59, %v4569_v18  ;;  %v3833_v6 = vrot.slane %v3832_v42, 4  ;;  %v3847_v19 = vrot.slane %v3845_v32, 5  ;;  %v2902_v42 = vsel %vm6344_vm5, %v2900_v57, %v2901_v8 }
 0x217   : > { %v3389_v22 = vpop.f32.mrf.mxu2  ;;  %v2966_v46 = vunpack.c.l.b16 %v2902_v42 }
 0x218   : > { %v3462_v9 = vadd.f32 %v3389_v22, %v3147_v5  ;;  %v4071_v56 = vpop.f32.mrf.mxu3  ;;  %v4704_v30 = vmul.f32 0.0, %v4672_v43  ;;  %v4324_v22 = vrot.slane %v5665_v52, 5  ;;  %v3848_v52 = vsel %vm6339_vm4, %v3843_v31, %v3847_v19 }
 0x219   : > { %v3077_v14 = vpop.f32.mrf.mxu1 }
 0x21a   : > { %v4144_v3 = vadd.f32 %v4071_v56, %v3462_v9  ;;  %v3148_v5 = vadd.f32 %v3077_v14, %v6943_v23  ;;  %v3838_v56 = vsel %vm6339_vm4, %v3833_v6, %v7481_v10  ;;  %v4322_v14 = vsel %vm6344_vm5, %v5751_v62, %v4321_v13 }
 0x21b   : > { %v4500_v21 = vpop.f32.mrf.mxu0  ;;  %v4736_v32 = vmax.f32 %v4672_v43, %v4704_v30  ;;  %v3962_v8 = vunpack.c.l.b16 %v3838_v56  ;;  %v3852_v13 = vrot.slane %v3850_v16, 4  ;;  %v4388_v19 = vunpack.c.l.b16 %v4322_v14  ;;  %v5898_v56 = vld [vmem:[%s6200_s8 + $0xa8] sm:$0xff] }
 0x21c   : > { %v4570_v26 = vadd.f32 %v4497_v39, %v4144_v3  ;;  %3116 = vmatmul.bf16.gmra.mxu1 %v2984_v53  ;;  %3431 = vmatmul.bf16.gmra.mxu2 %v5897_v17  ;;  %v2899_v39 = vsel %vm6344_vm5, %v5431_v35, %v2898_v11  ;;  %v3859_v11 = vshll.u32 %v7498_v0, 16  ;;  %v4325_v35 = vsel %vm6344_vm5, %v4323_v63, %v4324_v22  ;;  %v5668_v63 = vld [vmem:[%s6200_s8 + $0xbc] sm:$0x1] }
 0x21d   : > { %4113 = vmatmul.bf16.gmra.mxu3 %v3981_v55  ;;  %v2965_v57 = vunpack.c.l.b16 %v2899_v39  ;;  %v4389_v43 = vunpack.c.l.b16 %v4325_v35 }
 0x21e   : > { %4539 = vmatmul.bf16.gmra.mxu0 %v4407_v4  ;;  %v4673_v18 = vadd.f32 %v7408_v59, %v4570_v26  ;;  %v3853_v4 = vshll.u32 %v5666_v1, 16  ;;  %v3963_v26 = vunpack.c.l.b16 %v3848_v52  ;;  %v7515_v62 = vrot.slane %v3859_v11, 5 }
 0x21f   : > { %v3392_v9 = vpop.f32.mrf.mxu2  ;;  %v3865_v1 = vrot.slane %v3863_v2, 4  ;;  %v4408_v14 = vpack.c.b16 %v4389_v43, %v4388_v19  ;;  %v3869_v11 = vshll.u32 %v5668_v63, 16 }
 0x220   : > { %v4705_v53 = vmul.f32 0.0, %v4673_v18  ;;  %v3463_v17 = vadd.f32 %v3392_v9, %v3148_v5  ;;  %v4074_v55 = vpop.f32.mrf.mxu3  ;;  %v3855_v31 = vrot.slane %v3853_v4, 5  ;;  %v2985_v9 = vpack.c.b16 %v2966_v46, %v2965_v57 }
 0x221   : > { %v3079_v23 = vpop.f32.mrf.mxu1  ;;  %v3871_v19 = vrot.slane %v3869_v11, 5 }
 0x222   : > { %v4737_v3 = vmax.f32 %v4673_v18, %v4705_v53  ;;  %v4145_v10 = vadd.f32 %v4074_v55, %v3463_v17  ;;  %v7695_v18 = vld [vmem:[#allocation10_spill] sm:$0xff]  ;;  %v3982_v53 = vpack.c.b16 %v3963_v26, %v3962_v8  ;;  %v5416_v17 = vld [vmem:[%s6200_s8 + $0xa8] sm:$0xe]  ;;  %v6097_v55 = vld [vmem:[%s6200_s8 + $0xac] sm:$0xf]  ;;  %v3856_v4 = vor.u32 %v3855_v31, %v3852_v13 }
 0x223   : > { %v4502_v34 = vpop.f32.mrf.mxu0  ;;  %v3149_v5 = vadd.f32 %v3079_v23, %v7695_v18  ;;  %v2905_v16 = vrot.slane %v6097_v55, 5  ;;  %v4328_v23 = vrot.slane %v7498_v0, 5  ;;  %v5432_v35 = vrot.slane %v5416_v17, 9  ;;  %v6098_v8 = vld [vmem:[%s6200_s8 + $0xb0] sm:$0x1] }
 0x224   : > { %v5939_v6 = vpack.c.bf16 %v4737_v3, %v4736_v32  ;;  %v4571_v30 = vadd.f32 %v4500_v21, %v4145_v10  ;;  %v3866_v21 = vor.u32 %v3865_v1, %v7515_v62  ;;  %v5736_v10 = vld [vmem:[%s6200_s8 + $0xb4] sm:$0xe]  ;;  %v3857_v26 = vrot.slane %v3856_v4, 4  ;;  %v5669_v13 = vld [vmem:[%s6200_s8 + $0xc0] sm:$0xf] }
 0x225   : > { %v2907_v46 = vrot.slane %v2905_v16, 4  ;;  %v5752_v0 = vrot.slane %v5736_v10, 9  ;;  %v4330_v43 = vrot.slane %v4328_v23, 4 }
 0x226   : > { %6007 = vst [vmem:[%s7445_s9 + $0x10] sm:$0xff] %v5939_v6   ;;  %v4674_v2 = vadd.f32 %v7408_v59, %v4571_v30  ;;  %v2908_v6 = vrot.slane %v6098_v8, 5  ;;  %v3867_v31 = vrot.slane %v3866_v21, 4  ;;  %v3862_v4 = vsel %vm6339_vm4, %v3857_v26, %v7515_v62 }
 0x227   : > { %v3394_v22 = vpop.f32.mrf.mxu2 }
 0x228   : > { %v3464_v39 = vadd.f32 %v3394_v22, %v3149_v5  ;;  %v4076_v42 = vpop.f32.mrf.mxu3  ;;  %v4706_v1 = vmul.f32 0.0, %v4674_v2  ;;  %v7532_v5 = vld [vmem:[%s6200_s8 + $0xc4] sm:$0xf]  ;;  %v2909_v55 = vsel %vm6344_vm5, %v2907_v46, %v2908_v6 }
 0x229   : > { %v3082_v52 = vpop.f32.mrf.mxu1  ;;  %v2968_v6 = vunpack.c.l.b16 %v2909_v55 }
 0x22a   : > { %v4146_v32 = vadd.f32 %v4076_v42, %v3464_v39  ;;  %v3150_v18 = vadd.f32 %v3082_v52, %v6994_v41  ;;  %v3874_v39 = vshrl.u32 %v5669_v13, 16  ;;  %v3877_v42 = vshll.u32 %v5669_v13, 16 }
 0x22b   : > { %v4505_v3 = vpop.f32.mrf.mxu0  ;;  %v4329_v52 = vsel %vm6344_vm5, %v5752_v0, %v4328_v23  ;;  %v4738_v21 = vmax.f32 %v4674_v2, %v4706_v1  ;;  %v3964_v23 = vunpack.c.l.b16 %v3862_v4 }
 0x22c   : > { %v4572_v57 = vadd.f32 %v4502_v34, %v4146_v32  ;;  %3121 = vmatmul.bf16.gmra.mxu1 %v2985_v9  ;;  %3436 = vmatmul.bf16.gmra.mxu2 %v5898_v56  ;;  %v4331_v34 = vrot.slane %v5668_v63, 5  ;;  %v2906_v9 = vsel %vm6344_vm5, %v5432_v35, %v2905_v16  ;;  %v3872_v63 = vsel %vm6339_vm4, %v3867_v31, %v3871_v19 }
 0x22d   : > { %4118 = vmatmul.bf16.gmra.mxu3 %v3982_v53  ;;  %v3883_v16 = vshll.u32 %v7532_v5, 16  ;;  %v2967_v35 = vunpack.c.l.b16 %v2906_v9  ;;  %v3879_v46 = vrot.slane %v3877_v42, 5  ;;  %v3965_v26 = vunpack.c.l.b16 %v3872_v63 }
 0x22e   : > { %4544 = vmatmul.bf16.gmra.mxu0 %v4408_v14  ;;  %v4675_v30 = vadd.f32 %v7408_v59, %v4572_v57  ;;  %v3887_v14 = vshrl.u32 %v7532_v5, 16  ;;  %v4332_v62 = vsel %vm6344_vm5, %v4330_v43, %v4331_v34  ;;  %v3876_v57 = vrot.slane %v3874_v39, 4  ;;  %v5671_v43 = vld [vmem:[%s6200_s8 + $0xc8] sm:$0x1] }
 0x22f   : > { %v3397_v22 = vpop.f32.mrf.mxu2  ;;  %v4390_v13 = vunpack.c.l.b16 %v4329_v52  ;;  %v4391_v31 = vunpack.c.l.b16 %v4332_v62  ;;  %v7549_v2 = vrot.slane %v3883_v16, 5  ;;  %v2986_v42 = vpack.c.b16 %v2968_v6, %v2967_v35 }
 0x230   : > { %v4707_v56 = vmul.f32 0.0, %v4675_v30  ;;  %v3465_v53 = vadd.f32 %v3397_v22, %v3150_v18  ;;  %v4079_v17 = vpop.f32.mrf.mxu3  ;;  %v3889_v19 = vrot.slane %v3887_v14, 4  ;;  %v6099_v18 = vld [vmem:[%s6200_s8 + $0xb8] sm:$0xf]  ;;  %v3880_v22 = vor.u32 %v3879_v46, %v3876_v57  ;;  %v5737_v14 = vld [vmem:[%s6200_s8 + $0xc0] sm:$0xe] }
 0x231   : > { %v3084_v41 = vpop.f32.mrf.mxu1  ;;  %v2912_v34 = vrot.slane %v6099_v18, 5  ;;  %v4409_v4 = vpack.c.b16 %v4391_v31, %v4390_v13 }
 0x232   : > { %v4739_v11 = vmax.f32 %v4675_v30, %v4707_v56  ;;  %v4147_v32 = vadd.f32 %v4079_v17, %v3465_v53  ;;  %v3151_v1 = vadd.f32 %v3084_v41, %v6996_v29  ;;  %v5899_v56 = vld [vmem:[%s6200_s8 + $0xb4] sm:$0xff]  ;;  %v3983_v53 = vpack.c.b16 %v3965_v26, %v3964_v23  ;;  %v5672_v23 = vld [vmem:[%s6200_s8 + $0xcc] sm:$0xf] }
 0x233   : > { %v4507_v10 = vpop.f32.mrf.mxu0  ;;  %v5417_v17 = vld [vmem:[%s6200_s8 + $0xb4] sm:$0xe]  ;;  %v3890_v63 = vor.u32 %v3889_v19, %v7549_v2  ;;  %v4335_v29 = vrot.slane %v7532_v5, 5  ;;  %v3881_v35 = vrot.slane %v3880_v22, 4  ;;  %v5753_v5 = vrot.slane %v5737_v14, 9 }
 0x234   : > { %v5944_v8 = vpack.c.bf16 %v4739_v11, %v4738_v21  ;;  %v4573_v0 = vadd.f32 %v4505_v3, %v4147_v32  ;;  %v3893_v3 = vshll.u32 %v5671_v43, 16  ;;  %v5433_v21 = vrot.slane %v5417_v17, 9  ;;  %v6100_v32 = vld [vmem:[%s6200_s8 + $0xbc] sm:$0x1] }
 0x235   : > { %v2914_v11 = vrot.slane %v2912_v34, 4  ;;  %v2915_v62 = vrot.slane %v6100_v32, 5  ;;  %v3891_v46 = vrot.slane %v3890_v63, 4  ;;  %v4337_v6 = vrot.slane %v4335_v29, 4 }
 0x236   : > { %6008 = vst [vmem:[%s7445_s9 + $0x18] sm:$0xff] %v5944_v8   ;;  %v4676_v41 = vadd.f32 %v7408_v59, %v4573_v0  ;;  %v3895_v8 = vrot.slane %v3893_v3, 5  ;;  %v4338_v19 = vrot.slane %v5671_v43, 5  ;;  %v7566_v0 = vld [vmem:[%s6200_s8 + $0xd0] sm:$0xf]  ;;  %v3886_v18 = vsel %vm6339_vm4, %v3881_v35, %v7549_v2 }
 0x237   : > { %v3399_v30 = vpop.f32.mrf.mxu2  ;;  %v3911_v17 = vshrl.u32 %v7566_v0, 16 }
 0x238   : > { %v3466_v9 = vadd.f32 %v3399_v30, %v3151_v1  ;;  %v4081_v39 = vpop.f32.mrf.mxu3  ;;  %v4708_v26 = vmul.f32 0.0, %v4676_v41  ;;  %v2916_v30 = vsel %vm6344_vm5, %v2914_v11, %v2915_v62  ;;  %v3896_v43 = vsel %vm6339_vm4, %v3891_v46, %v3895_v8 }
 0x239   : > { %v3087_v55 = vpop.f32.mrf.mxu1  ;;  %v4339_v3 = vsel %vm6344_vm5, %v4337_v6, %v4338_v19  ;;  %v2970_v14 = vunpack.c.l.b16 %v2916_v30  ;;  %v3967_v32 = vunpack.c.l.b16 %v3896_v43  ;;  %v3913_v46 = vrot.slane %v3911_v17, 4  ;;  %v5900_v19 = vld [vmem:[%s6200_s8 + $0xc0] sm:$0xff] }
 0x23a   : > { %v4148_v52 = vadd.f32 %v4081_v39, %v3466_v9  ;;  %v3152_v31 = vadd.f32 %v3087_v55, %v7022_v12  ;;  %v4740_v55 = vmax.f32 %v4676_v41, %v4708_v26  ;;  %v4393_v41 = vunpack.c.l.b16 %v4339_v3  ;;  %v6101_v30 = vld [vmem:[%s6200_s8 + $0xc4] sm:$0xf] }
 0x23b   : > { %v4510_v16 = vpop.f32.mrf.mxu0 }
 0x23c   : > { %v4574_v57 = vadd.f32 %v4507_v10, %v4148_v52  ;;  %3126 = vmatmul.bf16.gmra.mxu1 %v2986_v42  ;;  %3441 = vmatmul.bf16.gmra.mxu2 %v5899_v56  ;;  %v2913_v10 = vsel %vm6344_vm5, %v5433_v21, %v2912_v34  ;;  %v3898_v42 = vshrl.u32 %v5672_v23, 16  ;;  %v3901_v56 = vshll.u32 %v5672_v23, 16  ;;  %v5674_v23 = vld [vmem:[%s6200_s8 + $0xd4] sm:$0x1] }
 0x23d   : > { %4123 = vmatmul.bf16.gmra.mxu3 %v3983_v53  ;;  %v4336_v53 = vsel %vm6344_vm5, %v5753_v5, %v4335_v29  ;;  %v3907_v34 = vshll.u32 %v7566_v0, 16  ;;  %v2969_v52 = vunpack.c.l.b16 %v2913_v10  ;;  %v3966_v21 = vunpack.c.l.b16 %v3886_v18  ;;  %v5418_v10 = vld [vmem:[%s6200_s8 + $0xc0] sm:$0xe] }
 0x23e   : > { %4549 = vmatmul.bf16.gmra.mxu0 %v4409_v4  ;;  %v4677_v13 = vadd.f32 %v7408_v59, %v4574_v57  ;;  %v3900_v29 = vrot.slane %v3898_v42, 4  ;;  %v3903_v62 = vrot.slane %v3901_v56, 5  ;;  %v4392_v35 = vunpack.c.l.b16 %v4336_v53  ;;  %v5738_v53 = vld [vmem:[%s6200_s8 + $0xcc] sm:$0xe] }
 0x23f   : > { %v3402_v1 = vpop.f32.mrf.mxu2  ;;  %v3909_v57 = vrot.slane %v3907_v34, 5  ;;  %v2987_v26 = vpack.c.b16 %v2970_v14, %v2969_v52  ;;  %v2919_v18 = vrot.slane %v6101_v30, 5  ;;  %v3917_v56 = vshll.u32 %v5674_v23, 16 }
 0x240   : > { %v4709_v22 = vmul.f32 0.0, %v4677_v13  ;;  %v3467_v9 = vadd.f32 %v3402_v1, %v3152_v31  ;;  %v4084_v39 = vpop.f32.mrf.mxu3  ;;  %v3984_v1 = vpack.c.b16 %v3967_v32, %v3966_v21  ;;  %v5434_v34 = vrot.slane %v5418_v10, 9 }
 0x241   : > { %v3089_v12 = vpop.f32.mrf.mxu1  ;;  %v3914_v42 = vor.u32 %v3913_v46, %v3909_v57  ;;  %v3919_v14 = vrot.slane %v3917_v56, 5  ;;  %v5754_v21 = vrot.slane %v5738_v53, 9 }
 0x242   : > { %v4741_v4 = vmax.f32 %v4677_v13, %v4709_v22  ;;  %v4149_v2 = vadd.f32 %v4084_v39, %v3467_v9  ;;  %v3153_v5 = vadd.f32 %v3089_v12, %v7047_v38  ;;  %v3904_v22 = vor.u32 %v3903_v62, %v3900_v29 }
 0x243   : > { %v4512_v63 = vpop.f32.mrf.mxu0  ;;  %v4410_v39 = vpack.c.b16 %v4393_v41, %v4392_v35  ;;  %v3915_v52 = vrot.slane %v3914_v42, 4  ;;  %v4345_v62 = vrot.slane %v5674_v23, 5 }
 0x244   : > { %v5949_v11 = vpack.c.bf16 %v4741_v4, %v4740_v55  ;;  %v4575_v8 = vadd.f32 %v4510_v16, %v4149_v2  ;;  %v4342_v16 = vrot.slane %v7566_v0, 5  ;;  %v2921_v55 = vrot.slane %v2919_v18, 4  ;;  %v6102_v4 = vld [vmem:[%s6200_s8 + $0xc8] sm:$0x1] }
 0x245   : > { %v2922_v2 = vrot.slane %v6102_v4, 5  ;;  %v3905_v3 = vrot.slane %v3904_v22, 4 }
 0x246   : > { %6009 = vst [vmem:[%s7445_s9 + $0x20] sm:$0xff] %v5949_v11   ;;  %v4678_v38 = vadd.f32 %v7408_v59, %v4575_v8  ;;  %v4344_v11 = vrot.slane %v4342_v16, 4  ;;  %v2920_v8 = vsel %vm6344_vm5, %v5434_v34, %v2919_v18  ;;  %v5901_v34 = vld [vmem:[%s6200_s8 + $0xcc] sm:$0xff] }
 0x247   : > { %v3404_v6 = vpop.f32.mrf.mxu2  ;;  %v2971_v18 = vunpack.c.l.b16 %v2920_v8 }
 0x248   : > { %v3468_v13 = vadd.f32 %v3404_v6, %v3153_v5  ;;  %v4086_v31 = vpop.f32.mrf.mxu3  ;;  %v4710_v0 = vmul.f32 0.0, %v4678_v38  ;;  %v2923_v6 = vsel %vm6344_vm5, %v2921_v55, %v2922_v2  ;;  %v4346_v10 = vsel %vm6344_vm5, %v4344_v11, %v4345_v62 }
 0x249   : > { %v3092_v9 = vpop.f32.mrf.mxu1  ;;  %v2972_v22 = vunpack.c.l.b16 %v2923_v6  ;;  %v4395_v42 = vunpack.c.l.b16 %v4346_v10 }
 0x24a   : > { %v4150_v12 = vadd.f32 %v4086_v31, %v3468_v13  ;;  %v3154_v29 = vadd.f32 %v3092_v9, %v7068_v49  ;;  %v3920_v13 = vsel %vm6339_vm4, %v3915_v52, %v3919_v14  ;;  %v4343_v49 = vsel %vm6344_vm5, %v5754_v21, %v4342_v16 }
 0x24b   : > { %v4515_v43 = vpop.f32.mrf.mxu0  ;;  %v4742_v23 = vmax.f32 %v4678_v38, %v4710_v0  ;;  %v2988_v53 = vpack.c.b16 %v2972_v22, %v2971_v18 }
 0x24c   : > { %v4576_v17 = vadd.f32 %v4512_v63, %v4150_v12  ;;  %3131 = vmatmul.bf16.gmra.mxu1 %v2987_v26  ;;  %3446 = vmatmul.bf16.gmra.mxu2 %v5900_v19  ;;  %v3910_v26 = vsel %vm6339_vm4, %v3905_v3, %v3909_v57  ;;  %v4394_v57 = vunpack.c.l.b16 %v4343_v49 }
 0x24d   : > { %4128 = vmatmul.bf16.gmra.mxu3 %v3984_v1  ;;  %v3968_v9 = vunpack.c.l.b16 %v3910_v26 }
 0x24e   : > { %4554 = vmatmul.bf16.gmra.mxu0 %v4410_v39  ;;  %v4679_v32 = vadd.f32 %v7408_v59, %v4576_v17  ;;  %v3969_v39 = vunpack.c.l.b16 %v3920_v13  ;;  %v4411_v55 = vpack.c.b16 %v4395_v42, %v4394_v57 }
 0x24f   : > { %v3407_v35 = vpop.f32.mrf.mxu2 }
 0x250   : > { %v4711_v63 = vmul.f32 0.0, %v4679_v32  ;;  %v3469_v41 = vadd.f32 %v3407_v35, %v3154_v29  ;;  %v4089_v46 = vpop.f32.mrf.mxu3  ;;  %v3985_v33 = vpack.c.b16 %v3969_v39, %v3968_v9 }
 0x251   : > { %v3094_v5 = vpop.f32.mrf.mxu1 }
 0x252   : > { %v4743_v31 = vmax.f32 %v4679_v32, %v4711_v63  ;;  %v4151_v19 = vadd.f32 %v4089_v46, %v3469_v41  ;;  %v3155_v56 = vadd.f32 %v3094_v5, %v7074_v37 }
 0x253   : > { %v4517_v1 = vpop.f32.mrf.mxu0 }
 0x254   : > { %v5954_v30 = vpack.c.bf16 %v4743_v31, %v4742_v23  ;;  %v4577_v27 = vadd.f32 %v4515_v43, %v4151_v19 }
 0x256   : > { %6010 = vst [vmem:[%s7445_s9 + $0x28] sm:$0xff] %v5954_v30   ;;  %v4680_v4 = vadd.f32 %v7408_v59, %v4577_v27 }
 0x257   : > { %v3409_v16 = vpop.f32.mrf.mxu2 }
 0x258   : > { %v3470_v38 = vadd.f32 %v3409_v16, %v3155_v56  ;;  %v4091_v12 = vpop.f32.mrf.mxu3  ;;  %v4712_v43 = vmul.f32 0.0, %v4680_v4 }
 0x259   : > { %v3097_v17 = vpop.f32.mrf.mxu1 }
 0x25a   : > { %v4152_v2 = vadd.f32 %v4091_v12, %v3470_v38  ;;  %v3156_v14 = vadd.f32 %v3097_v17, %v7091_v60  ;;  %v4744_v62 = vmax.f32 %v4680_v4, %v4712_v43 }
 0x25b   : > { %v4520_v3 = vpop.f32.mrf.mxu0 }
 0x25c   : > { %v4578_v52 = vadd.f32 %v4517_v1, %v4152_v2  ;;  %3136 = vmatmul.bf16.gmra.mxu1 %v2988_v53  ;;  %3451 = vmatmul.bf16.gmra.mxu2 %v5901_v34 }
 0x25d   : > { %4133 = vmatmul.bf16.gmra.mxu3 %v3985_v33 }
 0x25e   : > { %4559 = vmatmul.bf16.gmra.mxu0 %v4411_v55  ;;  %v4681_v37 = vadd.f32 %v7408_v59, %v4578_v52 }
 0x25f   : > { %v3412_v21 = vpop.f32.mrf.mxu2 }
 0x260   : > { %v4713_v11 = vmul.f32 0.0, %v4681_v37  ;;  %v3471_v0 = vadd.f32 %v3412_v21, %v3156_v14  ;;  %v4094_v32 = vpop.f32.mrf.mxu3 }
 0x261   : > { %v3099_v29 = vpop.f32.mrf.mxu1 }
 0x262   : > { %v4745_v35 = vmax.f32 %v4681_v37, %v4713_v11  ;;  %v4153_v63 = vadd.f32 %v4094_v32, %v3471_v0  ;;  %v3157_v5 = vadd.f32 %v3099_v29, %v7108_v47 }
 0x263   : > { %v4522_v41 = vpop.f32.mrf.mxu0 }
 0x264   : > { %v5959_v46 = vpack.c.bf16 %v4745_v35, %v4744_v62  ;;  %v4579_v8 = vadd.f32 %v4520_v3, %v4153_v63 }
 0x266   : > { %6011 = vst [vmem:[%s7445_s9 + $0x30] sm:$0xff] %v5959_v46   ;;  %v4682_v60 = vadd.f32 %v7408_v59, %v4579_v8 }
 0x267   : > { %v3414_v6 = vpop.f32.mrf.mxu2 }
 0x268   : > { %v3472_v26 = vadd.f32 %v3414_v6, %v3157_v5  ;;  %v4096_v13 = vpop.f32.mrf.mxu3  ;;  %v4714_v1 = vmul.f32 0.0, %v4682_v60 }
 0x269   : > { %v3102_v49 = vpop.f32.mrf.mxu1 }
 0x26a   : > { %v4154_v23 = vadd.f32 %v4096_v13, %v3472_v26  ;;  %v3158_v30 = vadd.f32 %v3102_v49, %v7130_v36  ;;  %v4746_v57 = vmax.f32 %v4682_v60, %v4714_v1 }
 0x26b   : > { %v4525_v31 = vpop.f32.mrf.mxu0 }
 0x26c   : > { %v4580_v19 = vadd.f32 %v4522_v41, %v4154_v23 }
 0x26e   : > { %v4683_v10 = vadd.f32 %v7408_v59, %v4580_v19 }
 0x26f   : > { %v3417_v18 = vpop.f32.mrf.mxu2 }
 0x270   : > { %v4715_v22 = vmul.f32 0.0, %v4683_v10  ;;  %v3473_v9 = vadd.f32 %v3417_v18, %v3158_v30  ;;  %v4099_v39 = vpop.f32.mrf.mxu3 }
 0x271   : > { %v3104_v47 = vpop.f32.mrf.mxu1 }
 0x272   : > { %v4747_v42 = vmax.f32 %v4683_v10, %v4715_v22  ;;  %v4155_v27 = vadd.f32 %v4099_v39, %v3473_v9  ;;  %v3159_v12 = vadd.f32 %v3104_v47, %v7140_v50 }
 0x273   : > { %v4527_v56 = vpop.f32.mrf.mxu0 }
 0x274   : > { %v5964_v16 = vpack.c.bf16 %v4747_v42, %v4746_v57  ;;  %v4581_v38 = vadd.f32 %v4525_v31, %v4155_v27 }
 0x276   : > { %6012 = vst [vmem:[%s7445_s9 + $0x38] sm:$0xff] %v5964_v16   ;;  %v4684_v36 = vadd.f32 %v7408_v59, %v4581_v38 }
 0x277   : > { %v3419_v53 = vpop.f32.mrf.mxu2 }
 0x278   : > { %v3474_v34 = vadd.f32 %v3419_v53, %v3159_v12  ;;  %v4101_v17 = vpop.f32.mrf.mxu3  ;;  %v4716_v3 = vmul.f32 0.0, %v4684_v36 }
 0x279   : > { %v3107_v33 = vpop.f32.mrf.mxu1 }
 0x27a   : > { %v4156_v55 = vadd.f32 %v4101_v17, %v3474_v34  ;;  %v3160_v43 = vadd.f32 %v3107_v33, %v7162_v28  ;;  %v4748_v0 = vmax.f32 %v4684_v36, %v4716_v3 }
 0x27b   : > { %v4530_v4 = vpop.f32.mrf.mxu0 }
 0x27c   : > { %v4582_v2 = vadd.f32 %v4527_v56, %v4156_v55 }
 0x27e   : > { %v4685_v52 = vadd.f32 %v7408_v59, %v4582_v2 }
 0x27f   : > { %v3422_v37 = vpop.f32.mrf.mxu2 }
 0x280   : > { %v4717_v14 = vmul.f32 0.0, %v4685_v52  ;;  %v3475_v21 = vadd.f32 %v3422_v37, %v3160_v43  ;;  %v4104_v11 = vpop.f32.mrf.mxu3 }
 0x281   : > { %v3109_v50 = vpop.f32.mrf.mxu1 }
 0x282   : > { %v4749_v32 = vmax.f32 %v4685_v52, %v4717_v14  ;;  %v4157_v29 = vadd.f32 %v4104_v11, %v3475_v21  ;;  %v3161_v41 = vadd.f32 %v3109_v50, %v7178_v15 }
 0x283   : > { %v4532_v62 = vpop.f32.mrf.mxu0 }
 0x284   : > { %v5969_v35 = vpack.c.bf16 %v4749_v32, %v4748_v0  ;;  %v4583_v63 = vadd.f32 %v4530_v4, %v4157_v29 }
 0x286   : > { %6013 = vst [vmem:[%s7445_s9 + $0x40] sm:$0xff] %v5969_v35   ;;  %v4686_v28 = vadd.f32 %v7408_v59, %v4583_v63 }
 0x287   : > { %v3424_v46 = vpop.f32.mrf.mxu2 }
 0x288   : > { %v3476_v8 = vadd.f32 %v3424_v46, %v3161_v41  ;;  %v4106_v5 = vpop.f32.mrf.mxu3  ;;  %v4718_v60 = vmul.f32 0.0, %v4686_v28 }
 0x289   : > { %v3112_v6 = vpop.f32.mrf.mxu1 }
 0x28a   : > { %v4158_v26 = vadd.f32 %v4106_v5, %v3476_v8  ;;  %v3162_v31 = vadd.f32 %v3112_v6, %v7200_v24  ;;  %v4750_v18 = vmax.f32 %v4686_v28, %v4718_v60  ;;  %v7633_v24 = vld [vmem:[%s7674_s2] ss:$0 sm:$0xff] }
 0x28b   : > { %v4535_v13 = vpop.f32.mrf.mxu0 }
 0x28c   : > { %v4584_v49 = vadd.f32 %v4532_v62, %v4158_v26 }
 0x28e   : > { %v4687_v23 = vadd.f32 %v7408_v59, %v4584_v49 }
 0x28f   : > { %v3427_v19 = vpop.f32.mrf.mxu2 }
 0x290   : > { %v4719_v1 = vmul.f32 0.0, %v4687_v23  ;;  %v3477_v10 = vadd.f32 %v3427_v19, %v3162_v31  ;;  %v4109_v30 = vpop.f32.mrf.mxu3 }
 0x291   : > { %v3114_v15 = vpop.f32.mrf.mxu1 }
 0x292   : > { %v4751_v22 = vmax.f32 %v4687_v23, %v4719_v1  ;;  %v4159_v9 = vadd.f32 %v4109_v30, %v3477_v10  ;;  %v3163_v42 = vadd.f32 %v3114_v15, %v7210_v45 }
 0x293   : > { %v4537_v39 = vpop.f32.mrf.mxu0 }
 0x294   : > { %v5974_v47 = vpack.c.bf16 %v4751_v22, %v4750_v18  ;;  %v4585_v57 = vadd.f32 %v4535_v13, %v4159_v9 }
 0x296   : > { %6014 = vst [vmem:[%s7445_s9 + $0x48] sm:$0xff] %v5974_v47   ;;  %v4688_v38 = vadd.f32 %v7633_v24, %v4585_v57 }
 0x297   : > { %v3429_v27 = vpop.f32.mrf.mxu2 }
 0x298   : > { %v3478_v56 = vadd.f32 %v3429_v27, %v3163_v42  ;;  %v4111_v16 = vpop.f32.mrf.mxu3  ;;  %v4720_v17 = vmul.f32 0.0, %v4688_v38 }
 0x299   : > { %v3117_v59 = vpop.f32.mrf.mxu1 }
 0x29a   : > { %v4160_v12 = vadd.f32 %v4111_v16, %v3478_v56  ;;  %v3164_v45 = vadd.f32 %v3117_v59, %v7232_v44  ;;  %v4752_v52 = vmax.f32 %v4688_v38, %v4720_v17 }
 0x29b   : > { %v4540_v53 = vpop.f32.mrf.mxu0 }
 0x29c   : > { %v4586_v34 = vadd.f32 %v4537_v39, %v4160_v12 }
 0x29e   : > { %v4689_v33 = vadd.f32 %v7633_v24, %v4586_v34 }
 0x29f   : > { %v3432_v36 = vpop.f32.mrf.mxu2 }
 0x2a0   : > { %v4721_v55 = vmul.f32 0.0, %v4689_v33  ;;  %v3479_v4 = vadd.f32 %v3432_v36, %v3164_v45  ;;  %v4114_v2 = vpop.f32.mrf.mxu3 }
 0x2a1   : > { %v3119_v3 = vpop.f32.mrf.mxu1 }
 0x2a2   : > { %v4753_v43 = vmax.f32 %v4689_v33, %v4721_v55  ;;  %v4161_v37 = vadd.f32 %v4114_v2, %v3479_v4  ;;  %v3165_v50 = vadd.f32 %v3119_v3, %v7248_v40 }
 0x2a3   : > { %v4542_v14 = vpop.f32.mrf.mxu0 }
 0x2a4   : > { %v5979_v21 = vpack.c.bf16 %v4753_v43, %v4752_v52  ;;  %v4587_v11 = vadd.f32 %v4540_v53, %v4161_v37 }
 0x2a6   : > { %6015 = vst [vmem:[%s7445_s9 + $0x50] sm:$0xff] %v5979_v21   ;;  %v4690_v44 = vadd.f32 %v7633_v24, %v4587_v11 }
 0x2a7   : > { %v3434_v0 = vpop.f32.mrf.mxu2 }
 0x2a8   : > { %v3480_v32 = vadd.f32 %v3434_v0, %v3165_v50  ;;  %v4116_v29 = vpop.f32.mrf.mxu3  ;;  %v4722_v46 = vmul.f32 0.0, %v4690_v44 }
 0x2a9   : > { %v3122_v62 = vpop.f32.mrf.mxu1 }
 0x2aa   : > { %v4162_v35 = vadd.f32 %v4116_v29, %v3480_v32  ;;  %v3166_v5 = vadd.f32 %v3122_v62, %v7270_v25  ;;  %v4754_v49 = vmax.f32 %v4690_v44, %v4722_v46 }
 0x2ab   : > { %v4545_v63 = vpop.f32.mrf.mxu0 }
 0x2ac   : > { %v4588_v41 = vadd.f32 %v4542_v14, %v4162_v35 }
 0x2ae   : > { %v4691_v8 = vadd.f32 %v7633_v24, %v4588_v41 }
 0x2af   : > { %v3437_v6 = vpop.f32.mrf.mxu2 }
 0x2b0   : > { %v4723_v28 = vmul.f32 0.0, %v4691_v8  ;;  %v3481_v26 = vadd.f32 %v3437_v6, %v3166_v5  ;;  %v4119_v13 = vpop.f32.mrf.mxu3 }
 0x2b1   : > { %v3124_v40 = vpop.f32.mrf.mxu1 }
 0x2b2   : > { %v4755_v60 = vmax.f32 %v4691_v8, %v4723_v28  ;;  %v4163_v23 = vadd.f32 %v4119_v13, %v3481_v26  ;;  %v3167_v10 = vadd.f32 %v3124_v40, %v7280_v61 }
 0x2b3   : > { %v4547_v31 = vpop.f32.mrf.mxu0 }
 0x2b4   : > { %v5984_v19 = vpack.c.bf16 %v4755_v60, %v4754_v49  ;;  %v4589_v1 = vadd.f32 %v4545_v63, %v4163_v23 }
 0x2b6   : > { %6016 = vst [vmem:[%s7445_s9 + $0x58] sm:$0xff] %v5984_v19   ;;  %v4692_v25 = vadd.f32 %v7633_v24, %v4589_v1 }
 0x2b7   : > { %v3439_v30 = vpop.f32.mrf.mxu2 }
 0x2b8   : > { %v3482_v15 = vadd.f32 %v3439_v30, %v3167_v10  ;;  %v4121_v18 = vpop.f32.mrf.mxu3  ;;  %v4724_v57 = vmul.f32 0.0, %v4692_v25 }
 0x2b9   : > { %v3127_v22 = vpop.f32.mrf.mxu1 }
 0x2ba   : > { %v4164_v9 = vadd.f32 %v4121_v18, %v3482_v15  ;;  %v3168_v27 = vadd.f32 %v3127_v22, %v7302_v54  ;;  %v4756_v12 = vmax.f32 %v4692_v25, %v4724_v57 }
 0x2bb   : > { %v4550_v39 = vpop.f32.mrf.mxu0 }
 0x2bc   : > { %v4590_v47 = vadd.f32 %v4547_v31, %v4164_v9 }
 0x2be   : > { %v4693_v42 = vadd.f32 %v7633_v24, %v4590_v47 }
 0x2bf   : > { %v3442_v56 = vpop.f32.mrf.mxu2 }
 0x2c0   : > { %v4725_v16 = vmul.f32 0.0, %v4693_v42  ;;  %v3483_v59 = vadd.f32 %v3442_v56, %v3168_v27  ;;  %v4124_v38 = vpop.f32.mrf.mxu3 }
 0x2c1   : > { %v3129_v61 = vpop.f32.mrf.mxu1 }
 0x2c2   : > { %v4757_v53 = vmax.f32 %v4693_v42, %v4725_v16  ;;  %v4165_v34 = vadd.f32 %v4124_v38, %v3483_v59  ;;  %v3169_v36 = vadd.f32 %v3129_v61, %v7318_v51 }
 0x2c3   : > { %v4552_v17 = vpop.f32.mrf.mxu0 }
 0x2c4   : > { %v5989_v33 = vpack.c.bf16 %v4757_v53, %v4756_v12  ;;  %v4591_v45 = vadd.f32 %v4550_v39, %v4165_v34 }
 0x2c6   : > { %6017 = vst [vmem:[%s7445_s9 + $0x60] sm:$0xff] %v5989_v33   ;;  %v4694_v54 = vadd.f32 %v7633_v24, %v4591_v45 }
 0x2c7   : > { %v3444_v55 = vpop.f32.mrf.mxu2 }
 0x2c8   : > { %v3484_v4 = vadd.f32 %v3444_v55, %v3169_v36  ;;  %v4126_v2 = vpop.f32.mrf.mxu3  ;;  %v4726_v14 = vmul.f32 0.0, %v4694_v54 }
 0x2c9   : > { %v3132_v3 = vpop.f32.mrf.mxu1 }
 0x2ca   : > { %v4166_v52 = vadd.f32 %v4126_v2, %v3484_v4  ;;  %v3170_v11 = vadd.f32 %v3132_v3, %v7340_v7  ;;  %v4758_v62 = vmax.f32 %v4694_v54, %v4726_v14 }
 0x2cb   : > { %v4555_v37 = vpop.f32.mrf.mxu0 }
 0x2cc   : > { %v4592_v43 = vadd.f32 %v4552_v17, %v4166_v52 }
 0x2ce   : > { %v4695_v21 = vadd.f32 %v7633_v24, %v4592_v43 }
 0x2cf   : > { %v3447_v50 = vpop.f32.mrf.mxu2 }
 0x2d0   : > { %v4727_v0 = vmul.f32 0.0, %v4695_v21  ;;  %v3485_v32 = vadd.f32 %v3447_v50, %v3170_v11  ;;  %v4129_v29 = vpop.f32.mrf.mxu3 }
 0x2d1   : > { %v3134_v51 = vpop.f32.mrf.mxu1 }
 0x2d2   : > { %v4759_v44 = vmax.f32 %v4695_v21, %v4727_v0  ;;  %v4167_v35 = vadd.f32 %v4129_v29, %v3485_v32  ;;  %v3171_v46 = vadd.f32 %v3134_v51, %v7350_v48 }
 0x2d3   : > { %v4557_v8 = vpop.f32.mrf.mxu0 }
 0x2d4   : > { %v5994_v63 = vpack.c.bf16 %v4759_v44, %v4758_v62  ;;  %v4593_v41 = vadd.f32 %v4555_v37, %v4167_v35 }
 0x2d6   : > { %6018 = vst [vmem:[%s7445_s9 + $0x68] sm:$0xff] %v5994_v63   ;;  %v4696_v7 = vadd.f32 %v7633_v24, %v4593_v41 }
 0x2d7   : > { %v3449_v5 = vpop.f32.mrf.mxu2 }
 0x2d8   : > { %v3486_v6 = vadd.f32 %v3449_v5, %v3171_v46  ;;  %v4131_v28 = vpop.f32.mrf.mxu3  ;;  %v4728_v49 = vmul.f32 0.0, %v4696_v7 }
 0x2d9   : > { %v3137_v26 = vpop.f32.mrf.mxu1 }
 0x2da   : > { %v4168_v13 = vadd.f32 %v4131_v28, %v3486_v6  ;;  %v3172_v23 = vadd.f32 %v3137_v26, %v7372_v58  ;;  %v4760_v30 = vmax.f32 %v4696_v7, %v4728_v49 }
 0x2db   : > { %v4560_v48 = vpop.f32.mrf.mxu0 }
 0x2dc   : > { %v4594_v40 = vadd.f32 %v4557_v8, %v4168_v13 }
 0x2de   : > { %v4697_v60 = vadd.f32 %v7633_v24, %v4594_v40 }
 0x2df   : > { %v3452_v31 = vpop.f32.mrf.mxu2 }
 0x2e0   : > { %v4729_v19 = vmul.f32 0.0, %v4697_v60  ;;  %v3487_v1 = vadd.f32 %v3452_v31, %v3172_v23  ;;  %v4134_v10 = vpop.f32.mrf.mxu3 }
 0x2e1   : > { %v3139_v22 = vpop.f32.mrf.mxu1 }
 0x2e2   : > { %v4761_v15 = vmax.f32 %v4697_v60, %v4729_v19  ;;  %v4169_v18 = vadd.f32 %v4134_v10, %v3487_v1  ;;  %v3173_v39 = vadd.f32 %v3139_v22, %v7383_v20 }
 0x2e3   : > { %v4562_v56 = vpop.f32.mrf.mxu0 }
 0x2e4   : > { %v5999_v25 = vpack.c.bf16 %v4761_v15, %v4760_v30  ;;  %v4595_v9 = vadd.f32 %v4560_v48, %v4169_v18 }
 0x2e6   : > { %6019 = vst [vmem:[%s7445_s9 + $0x70] sm:$0xff] %v5999_v25   ;;  %v4698_v58 = vadd.f32 %v7633_v24, %v4595_v9 }
 0x2e7   : > { %v3454_v47 = vpop.f32.mrf.mxu2 }
 0x2e8   : > { %v3488_v57 = vadd.f32 %v3454_v47, %v3173_v39  ;;  %v4136_v42 = vpop.f32.mrf.mxu3  ;;  %v4730_v59 = vmul.f32 0.0, %v4698_v58 }
 0x2ea   : > { %v4170_v27 = vadd.f32 %v4136_v42, %v3488_v57  ;;  %v4762_v12 = vmax.f32 %v4698_v58, %v4730_v59 }
 0x2ec   : > { %v4596_v16 = vadd.f32 %v4562_v56, %v4170_v27 }
 0x2ee   : > { %v4699_v38 = vadd.f32 %v7633_v24, %v4596_v16 }
 0x2f0   : > { %v4731_v61 = vmul.f32 0.0, %v4699_v38 }
 0x2f2   : > { %v4763_v53 = vmax.f32 %v4699_v38, %v4731_v61 }
 0x2f4   : > { %v6004_v34 = vpack.c.bf16 %v4763_v53, %v4762_v12 }
 0x2f6   : > { %6020 = vst [vmem:[%s7445_s9 + $0x78] sm:$0xff] %v6004_v34  }
 0x2f7 PF: > { %s13_s14 = sadd.s32 1, %s6126_s14   ;;  %s7696_s12 = smov %s6122_s13 }
 0x2f8   : > { %p10_p5 = scmp.ge.s32.totalorder %s13_s14, 4   ;;  %s7697_s13 = smov %s7699_s15 }
 0x2fa   :  { %12 = sbr.rel (!%p10_p5) target bundleno = 2 (0x2), region = 86 }

// kernel: _forward.3
= control target key start
LH: loop header
LB: loop body
LE: loop exit
PB: predicated region body
PF: predicated region fallthrough
CT: control target
= control target key end

     0   :  { %s6530_s18 = smov 0   ;;  %s6532_s19 = smov 0   ;;  %s8035_s0 = inlined_call_operand.vmem [shape: bf16[2,18,18,128], index: 0, kind: input, shape index: {}]   ;;  %s8036_s1 = inlined_call_operand.vmem [shape: bf16[3,3,128,128], index: 1, kind: input, shape index: {}]   ;;  %s8037_s2 = inlined_call_operand.vmem [shape: f32[1,128], index: 2, kind: input, shape index: {}]   ;;  %s8038_s3 = inlined_call_operand.vmem [shape: bf16[2,16,16,128], index: 3, kind: input, shape index: {}]   ;;  %s8039_s4 = inlined_call_operand.vmem [shape: bf16[128,128], index: 4, kind: input, shape index: {}]   ;;  %s8040_s5 = inlined_call_operand.vmem [shape: f32[2,16,16,128], index: 5, kind: output, shape index: {}]  }
   0x1   :  { %s6534_s20 = smov 0  }
   0x2 LB: > { %s34_s21 = sadd.s32 1, %s6494_s19  ;;  %p5319_p0 = scmp.ge.s32.totalorder %s6498_s20, 1  ;;  %s6498_s20 = sphi %s6534_s20, %s15_s20   ;;  %s6494_s19 = sphi %s6532_s19, %s8056_s19   ;;  %s6490_s18 = sphi %s6530_s18, %s8055_s18  }
   0x3   : > { %p36_p1 = scmp.ge.s32.totalorder %s34_s21, 2  ;;  %p256_p2 = scmp.lt.s32.totalorder %s6498_s20, 3 }
   0x5   : > { %s8058_s21 = smov (%p36_p1, %s34_s21), 0  ;;  %p257_p3 = pnand %p5319_p0, %p256_p2 }
   0x7   : > { %260 = sbr.rel (%p257_p3) target bundleno = 821 (0x335), region = 40 }
   0xc   : > { %v6296_v0 = vld [vmem:[%s8036_s1 + $0x38] sm:$0xff]  ;;  %p310_p4 = scmp.lt.s32.totalorder %s6490_s18, 1  ;;  %v6295_v2 = vld [vmem:[%s8036_s1 + $0x30] sm:$0xff]  ;;  %v6294_v4 = vld [vmem:[%s8036_s1 + $0x28] sm:$0xff]  ;;  %vm776_vm0 = vsmask.f32 3328 }
   0xd   : > { %v6304_v1 = vld [vmem:[%s8036_s1 + $0x78] sm:$0xff]  ;;  %6417 = vmatpush.bf16.msra.mxu2 %v6296_v0  ;;  %v6303_v3 = vld [vmem:[%s8036_s1 + $0x70] sm:$0xff]  ;;  %607 = vmatpush.bf16.msra.mxu0 %v6296_v0  ;;  %v6302_v5 = vld [vmem:[%s8036_s1 + $0x68] sm:$0xff]  ;;  %vm777_vm1 = vsmask.f32 7440  ;;  %vm1477_vm3 = vcmask 1042432  }
   0xe   : > { %6425 = vmatpush.bf16.msra.mxu3 %v6304_v1  ;;  %s8060_s18 = smov (!%p310_p4, %s6490_s18), 1  ;;  %1292 = vmatpush.bf16.msra.mxu1 %v6304_v1  ;;  %v6293_v15 = vld [vmem:[%s8036_s1 + $0x20] sm:$0xff]  ;;  %v6292_v31 = vld [vmem:[%s8036_s1 + $0x18] sm:$0xff]  ;;  %v6291_v38 = vld [vmem:[%s8036_s1 + $0x10] sm:$0xff]  ;;  %vm1478_vm4 = vcmask 1046532  }
   0xf   : > { %s6433_s30 = smul.u32 216, %s8060_s18  ;;  %v6301_v16 = vld [vmem:[%s8036_s1 + $0x60] sm:$0xff]  ;;  %v6300_v32 = vld [vmem:[%s8036_s1 + $0x58] sm:$0xff]  ;;  %v6299_v39 = vld [vmem:[%s8036_s1 + $0x50] sm:$0xff]  ;;  %s6271_s25 = sshll.u32 %s8060_s18, 7 }
  0x10   : > { %vm6605_vm2 = vmor %vm776_vm0, %vm777_vm1  ;;  %v6290_v55 = vld [vmem:[%s8036_s1 + $0x8] sm:$0xff]  ;;  %s7580_s28 = scalar_lea.vmem %s8038_s3, %s6271_s25  ;;  %s6272_s6 = sshll.u32 %s8060_s18, 8 }
  0x11   : > { %6418 = vmatpush.bf16.msra.mxu2 %v6295_v2  ;;  %s6572_s12 = scalar_lea.vmem %s8035_s0, %s6433_s30  ;;  %608 = vmatpush.bf16.msra.mxu0 %v6295_v2  ;;  %v6298_v56 = vld [vmem:[%s8036_s1 + $0x48] sm:$0xff]  ;;  %vm6924_vm5 = vmor %vm1477_vm3, %vm1478_vm4  ;;  %s7819_s9 = scalar_lea.vmem %s8040_s5, %s6272_s6 }
  0x12   : > { %6426 = vmatpush.bf16.msra.mxu3 %v6303_v3  ;;  %1293 = vmatpush.bf16.msra.mxu1 %v6303_v3  ;;  %v752_v6 = vld [vmem:[%s6572_s12 + $0x60] sm:$0xf]  ;;  %v753_v7 = vld [vmem:[%s6572_s12 + $0x64] sm:$0xf]  ;;  %v754_v12 = vld [vmem:[%s6572_s12 + $0x68] sm:$0x1] }
  0x13   : > { %v972_v8 = vshrl.u32 %v752_v6, 16  ;;  %v975_v9 = vshll.u32 %v752_v6, 16  ;;  %v981_v10 = vshll.u32 %v753_v7, 16  ;;  %v985_v11 = vshrl.u32 %v753_v7, 16  ;;  %v728_v13 = vld [vmem:[%s6572_s12] sm:$0xf] }
  0x14   : > { %v6579_v14 = vld [vmem:[%s6572_s12 + $0x4] sm:$0xf]  ;;  %v780_v21 = vshrl.u32 %v728_v13, 16  ;;  %v783_v22 = vshll.u32 %v728_v13, 16  ;;  %v991_v24 = vshll.u32 %v754_v12, 16 }
  0x15   : > { %6419 = vmatpush.bf16.msra.mxu2 %v6294_v4  ;;  %v974_v17 = vrot.slane %v972_v8, 4  ;;  %v977_v18 = vrot.slane %v975_v9, 5  ;;  %v983_v19 = vrot.slane %v981_v10, 5  ;;  %v987_v20 = vrot.slane %v985_v11, 4  ;;  %609 = vmatpush.bf16.msra.mxu0 %v6294_v4  ;;  %v6589_v25 = vld [vmem:[%s6572_s12 + $0x8] sm:$0x1] }
  0x16   : > { %6427 = vmatpush.bf16.msra.mxu3 %v6302_v5  ;;  %1294 = vmatpush.bf16.msra.mxu1 %v6302_v5  ;;  %v789_v23 = vshll.u32 %v6579_v14, 16  ;;  %v793_v26 = vshrl.u32 %v6579_v14, 16  ;;  %v782_v28 = vrot.slane %v780_v21, 4  ;;  %v785_v29 = vrot.slane %v783_v22, 5  ;;  %v755_v45 = vld [vmem:[%s6572_s12 + $0x6c] sm:$0xf] }
  0x17   : > { %v978_v27 = vor.u32 %v977_v18, %v974_v17  ;;  %v988_v33 = vor.u32 %v987_v20, %v983_v19  ;;  %v799_v36 = vshll.u32 %v6589_v25, 16  ;;  %v993_v41 = vrot.slane %v991_v24, 5  ;;  %v756_v46 = vld [vmem:[%s6572_s12 + $0x70] sm:$0xf]  ;;  %v731_v49 = vld [vmem:[%s6572_s12 + $0xc] sm:$0xf] }
  0x18   : > { %v791_v30 = vrot.slane %v789_v23, 5  ;;  %v795_v34 = vrot.slane %v793_v26, 4  ;;  %v786_v35 = vor.u32 %v785_v29, %v782_v28  ;;  %v6613_v50 = vld [vmem:[%s6572_s12 + $0x10] sm:$0xf]  ;;  %v996_v52 = vshrl.u32 %v755_v45, 16  ;;  %v6289_v5 = vld [vmem:[%s8036_s1] sm:$0xff] }
  0x19   : > { %6420 = vmatpush.bf16.msra.mxu2 %v6293_v15  ;;  %610 = vmatpush.bf16.msra.mxu0 %v6293_v15  ;;  %v979_v40 = vrot.slane %v978_v27, 4  ;;  %v989_v43 = vrot.slane %v988_v33, 4  ;;  %v801_v48 = vrot.slane %v799_v36, 5  ;;  %v999_v53 = vshll.u32 %v755_v45, 16  ;;  %v6297_v6 = vld [vmem:[%s8036_s1 + $0x40] sm:$0xff]  ;;  %v6312_v17 = vld [vmem:[%s8036_s1 + $0xb8] sm:$0xff] }
  0x1a   : > { %6428 = vmatpush.bf16.msra.mxu3 %v6301_v16  ;;  %1295 = vmatpush.bf16.msra.mxu1 %v6301_v16  ;;  %v796_v37 = vor.u32 %v795_v34, %v791_v30  ;;  %v787_v44 = vrot.slane %v786_v35, 4  ;;  %v1005_v54 = vshll.u32 %v756_v46, 16  ;;  %v1009_v59 = vshrl.u32 %v756_v46, 16  ;;  %v757_v11 = vld [vmem:[%s6572_s12 + $0x74] sm:$0x1]  ;;  %v6336_v18 = vld [vmem:[%s8036_s1 + $0xf8] sm:$0xff] }
  0x1b   : > { %v984_v51 = vsel %vm6605_vm2, %v979_v40, %v983_v19  ;;  %v994_v57 = vsel %vm6605_vm2, %v989_v43, %v993_v41  ;;  %v804_v60 = vshrl.u32 %v731_v49, 16  ;;  %v807_v62 = vshll.u32 %v731_v49, 16  ;;  %v6649_v19 = vld [vmem:[%s6572_s12 + $0x14] sm:$0x1]  ;;  %v6281_v20 = vld [vmem:[%s6572_s12 + $0x60] sm:$0xff]  ;;  %v6344_v28 = vld [vmem:[%s8036_s1 + $0x138] sm:$0xff] }
  0x1c   : > { %v797_v47 = vrot.slane %v796_v37, 4  ;;  %v792_v58 = vsel %vm6605_vm2, %v787_v44, %v791_v30  ;;  %v813_v63 = vshll.u32 %v6613_v50, 16  ;;  %v817_v0 = vshrl.u32 %v6613_v50, 16  ;;  %v6273_v22 = vld [vmem:[%s6572_s12] sm:$0xff]  ;;  %v6352_v29 = vld [vmem:[%s8036_s1 + $0x178] sm:$0xff]  ;;  %v6311_v33 = vld [vmem:[%s8036_s1 + $0xb0] sm:$0xff] }
  0x1d   : > { %6421 = vmatpush.bf16.msra.mxu2 %v6292_v31  ;;  %611 = vmatpush.bf16.msra.mxu0 %v6292_v31  ;;  %v1196_v1 = vunpack.c.l.b16 %v984_v51  ;;  %v1197_v2 = vunpack.c.l.b16 %v994_v57  ;;  %v998_v3 = vrot.slane %v996_v52, 4  ;;  %v1001_v4 = vrot.slane %v999_v53, 5  ;;  %v6335_v34 = vld [vmem:[%s8036_s1 + $0xf0] sm:$0xff]  ;;  %v758_v35 = vld [vmem:[%s6572_s12 + $0x78] sm:$0xf]  ;;  %v6310_v53 = vld [vmem:[%s8036_s1 + $0xa8] sm:$0xff] }
  0x1e   : > { %6429 = vmatpush.bf16.msra.mxu3 %v6300_v32  ;;  %1296 = vmatpush.bf16.msra.mxu1 %v6300_v32  ;;  %v802_v61 = vsel %vm6605_vm2, %v797_v47, %v801_v48  ;;  %v1180_v7 = vunpack.c.l.b16 %v792_v58  ;;  %v6637_v9 = vrot.slane %v1005_v54, 5  ;;  %v1011_v10 = vrot.slane %v1009_v59, 4  ;;  %v759_v36 = vld [vmem:[%s6572_s12 + $0x7c] sm:$0xf]  ;;  %v6343_v40 = vld [vmem:[%s8036_s1 + $0x130] sm:$0xff]  ;;  %v6334_v54 = vld [vmem:[%s8036_s1 + $0xe8] sm:$0xff] }
  0x1f   : > { %v1181_v8 = vunpack.c.l.b16 %v802_v61  ;;  %v806_v12 = vrot.slane %v804_v60, 4  ;;  %v809_v13 = vrot.slane %v807_v62, 5  ;;  %v6640_v15 = vrot.slane %v813_v63, 5  ;;  %v734_v41 = vld [vmem:[%s6572_s12 + $0x18] sm:$0xf]  ;;  %v6351_v46 = vld [vmem:[%s8036_s1 + $0x170] sm:$0xff] }
  0x20   : > { %v819_v16 = vrot.slane %v817_v0, 4  ;;  %v1220_v21 = vpack.c.b16 %v1197_v2, %v1196_v1  ;;  %v1002_v24 = vor.u32 %v1001_v4, %v998_v3  ;;  %v1012_v26 = vor.u32 %v1011_v10, %v6637_v9  ;;  %v6678_v47 = vld [vmem:[%s6572_s12 + $0x1c] sm:$0xf]  ;;  %v6342_v63 = vld [vmem:[%s8036_s1 + $0x128] sm:$0xff] }
  0x21   : > { %6422 = vmatpush.bf16.msra.mxu2 %v6291_v38  ;;  %612 = vmatpush.bf16.msra.mxu0 %v6291_v38  ;;  %v1212_v23 = vpack.c.b16 %v1181_v8, %v1180_v7  ;;  %v1015_v27 = vshll.u32 %v757_v11, 16  ;;  %v810_v30 = vor.u32 %v809_v13, %v806_v12  ;;  %v823_v32 = vshll.u32 %v6649_v19, 16  ;;  %v6350_v0 = vld [vmem:[%s8036_s1 + $0x168] sm:$0xff]  ;;  %v760_v7 = vld [vmem:[%s6572_s12 + $0x80] sm:$0x1] }
  0x22   : > { %6430 = vmatpush.bf16.msra.mxu3 %v6299_v39  ;;  %1297 = vmatpush.bf16.msra.mxu1 %v6299_v39  ;;  %v820_v31 = vor.u32 %v819_v16, %v6640_v15  ;;  %v1003_v37 = vrot.slane %v1002_v24, 4  ;;  %v1013_v38 = vrot.slane %v1012_v26, 4  ;;  %v1020_v48 = vshrl.u32 %v758_v35, 16  ;;  %v6708_v12 = vld [vmem:[%s6572_s12 + $0x20] sm:$0x1]  ;;  %v6274_v24 = vld [vmem:[%s6572_s12 + $0xc] sm:$0xff] }
  0x23   : > { %v1017_v39 = vrot.slane %v1015_v27, 5  ;;  %v811_v43 = vrot.slane %v810_v30, 4  ;;  %v825_v45 = vrot.slane %v823_v32, 5  ;;  %v1023_v49 = vshll.u32 %v758_v35, 16 }
  0x24   : > { %v821_v44 = vrot.slane %v820_v31, 4  ;;  %v1029_v51 = vshll.u32 %v759_v36, 16  ;;  %v1033_v52 = vshrl.u32 %v759_v36, 16  ;;  %v1008_v57 = vsel %vm6605_vm2, %v1003_v37, %v6637_v9  ;;  %v6309_v37 = vld [vmem:[%s8036_s1 + $0xa0] sm:$0xff] }
  0x25   : > { %6423 = vmatpush.bf16.msra.mxu2 %v6290_v55  ;;  %613 = vmatpush.bf16.msra.mxu0 %v6290_v55  ;;  %v828_v55 = vshrl.u32 %v734_v41, 16  ;;  %v1018_v58 = vsel %vm6605_vm2, %v1013_v38, %v1017_v39  ;;  %v837_v59 = vshll.u32 %v6678_v47, 16  ;;  %v841_v60 = vshrl.u32 %v6678_v47, 16 }
  0x26   : > { %6431 = vmatpush.bf16.msra.mxu3 %v6298_v56  ;;  %1298 = vmatpush.bf16.msra.mxu1 %v6298_v56  ;;  %v831_v56 = vshll.u32 %v734_v41, 16  ;;  %v816_v61 = vsel %vm6605_vm2, %v811_v43, %v6640_v15  ;;  %v826_v62 = vsel %vm6605_vm2, %v821_v44, %v825_v45  ;;  %v1022_v1 = vrot.slane %v1020_v48, 4  ;;  %v6333_v41 = vld [vmem:[%s8036_s1 + $0xe0] sm:$0xff] }
  0x27   : > { %v1025_v2 = vrot.slane %v1023_v49, 5  ;;  %v6704_v3 = vrot.slane %v1029_v51, 5  ;;  %v1035_v4 = vrot.slane %v1033_v52, 4  ;;  %v830_v8 = vrot.slane %v828_v55, 4  ;;  %v6341_v43 = vld [vmem:[%s8036_s1 + $0x120] sm:$0xff] }
  0x28   : > { %v833_v9 = vrot.slane %v831_v56, 5  ;;  %v1182_v10 = vunpack.c.l.b16 %v816_v61  ;;  %v1183_v11 = vunpack.c.l.b16 %v826_v62  ;;  %v839_v13 = vrot.slane %v837_v59, 5  ;;  %v6349_v44 = vld [vmem:[%s8036_s1 + $0x160] sm:$0xff] }
  0x29   : > { %6424 = vmatpush.bf16.msra.mxu2 %v6289_v5  ;;  %614 = vmatpush.bf16.msra.mxu0 %v6289_v5  ;;  %v1198_v5 = vunpack.c.l.b16 %v1008_v57  ;;  %v843_v15 = vrot.slane %v841_v60, 4  ;;  %v1026_v16 = vor.u32 %v1025_v2, %v1022_v1  ;;  %v737_v45 = vld [vmem:[%s6572_s12 + $0x24] sm:$0xf]  ;;  %v763_v57 = vld [vmem:[%s6572_s12 + $0x8c] sm:$0x1] }
  0x2a   : > { %6432 = vmatpush.bf16.msra.mxu3 %v6297_v6  ;;  %1299 = vmatpush.bf16.msra.mxu1 %v6297_v6  ;;  %v1199_v6 = vunpack.c.l.b16 %v1018_v58  ;;  %v1213_v26 = vpack.c.b16 %v1183_v11, %v1182_v10  ;;  %v852_v58 = vshrl.u32 %v737_v45, 16  ;;  %v855_v59 = vshll.u32 %v737_v45, 16  ;;  %v6283_v10 = vld [vmem:[%s6572_s12 + $0x78] sm:$0xff] }
  0x2b   : > { %v844_v27 = vor.u32 %v843_v15, %v839_v13  ;;  %v1027_v30 = vrot.slane %v1026_v16, 4 }
  0x2c   : > { %655 = vmatmul.bf16.vlgmr.msra.gmra.mxu2 %v6281_v20  ;;  %615 = vmatmul.bf16.vlgmr.msra.gmra.mxu0 %v6273_v22  ;;  %v6282_v20 = vld [vmem:[%s6572_s12 + $0x6c] sm:$0xff]  ;;  %v834_v22 = vor.u32 %v833_v9, %v830_v8 }
  0x2d   : > { %1721 = vmatpush.bf16.msrb.mxu2 %v6312_v17  ;;  %1340 = vmatmul.bf16.vlgmr.msra.gmra.mxu3 %v1220_v21  ;;  %v1036_v17 = vor.u32 %v1035_v4, %v6704_v3  ;;  %v1221_v21 = vpack.c.b16 %v1199_v6, %v1198_v5  ;;  %v845_v38 = vrot.slane %v844_v27, 4  ;;  %v1032_v48 = vsel %vm6605_vm2, %v1027_v30, %v6704_v3  ;;  %v6745_v9 = vld [vmem:[%s6572_s12 + $0x2c] sm:$0x1]  ;;  %v740_v27 = vld [vmem:[%s6572_s12 + $0x30] sm:$0xf]  ;;  %v6332_v30 = vld [vmem:[%s8036_s1 + $0xd8] sm:$0xff] }
  0x2e   : > { %2036 = vmatpush.bf16.msrb.mxu3 %v6336_v18  ;;  %1300 = vmatmul.bf16.vlgmr.msra.gmra.mxu1 %v1212_v23  ;;  %v1039_v18 = vshll.u32 %v760_v7, 16  ;;  %v847_v23 = vshll.u32 %v6708_v12, 16  ;;  %v1200_v62 = vunpack.c.l.b16 %v1032_v48  ;;  %v1063_v4 = vshll.u32 %v763_v57, 16  ;;  %v766_v57 = vld [vmem:[%s6572_s12 + $0x98] sm:$0x1] }
  0x2f   : > { %2718 = vmatpush.bf16.msrb.mxu0 %v6344_v28  ;;  %3144 = vmatpush.bf16.msrb.mxu1 %v6352_v29  ;;  %v761_v28 = vld [vmem:[%s6572_s12 + $0x84] sm:$0xf]  ;;  %v762_v29 = vld [vmem:[%s6572_s12 + $0x88] sm:$0xf]  ;;  %v1037_v31 = vrot.slane %v1036_v17, 4  ;;  %v854_v5 = vrot.slane %v852_v58, 4 }
  0x30   : > { %v1041_v32 = vrot.slane %v1039_v18, 5  ;;  %v1044_v35 = vshrl.u32 %v761_v28, 16  ;;  %v1047_v36 = vshll.u32 %v761_v28, 16  ;;  %v1053_v39 = vshll.u32 %v762_v29, 16  ;;  %v6757_v28 = vld [vmem:[%s6572_s12 + $0x34] sm:$0xf] }
  0x31   : > { %1722 = vmatpush.bf16.msrb.mxu2 %v6311_v33  ;;  %v835_v33 = vrot.slane %v834_v22, 4  ;;  %v857_v6 = vrot.slane %v855_v59, 5  ;;  %v1065_v17 = vrot.slane %v1063_v4, 5  ;;  %v871_v22 = vshll.u32 %v6745_v9, 16  ;;  %v6284_v4 = vld [vmem:[%s6572_s12 + $0x84] sm:$0xff] }
  0x32   : > { %2037 = vmatpush.bf16.msrb.mxu3 %v6335_v34  ;;  %v849_v34 = vrot.slane %v847_v23, 5  ;;  %v1042_v49 = vsel %vm6605_vm2, %v1037_v31, %v1041_v32  ;;  %v1046_v52 = vrot.slane %v1044_v35, 4  ;;  %v1055_v55 = vrot.slane %v1053_v39, 5  ;;  %v764_v23 = vld [vmem:[%s6572_s12 + $0x90] sm:$0xf]  ;;  %v6340_v31 = vld [vmem:[%s8036_s1 + $0x118] sm:$0xff] }
  0x33   : > { %2719 = vmatpush.bf16.msrb.mxu0 %v6343_v40  ;;  %3145 = vmatpush.bf16.msrb.mxu1 %v6351_v46  ;;  %v1057_v40 = vshrl.u32 %v762_v29, 16  ;;  %v6730_v46 = vld [vmem:[%s6572_s12 + $0x28] sm:$0xf]  ;;  %v840_v51 = vsel %vm6605_vm2, %v835_v33, %v839_v13  ;;  %v6275_v13 = vld [vmem:[%s6572_s12 + $0x18] sm:$0xff]  ;;  %v889_v45 = vshrl.u32 %v6757_v28, 16 }
  0x34   : > { %v861_v60 = vshll.u32 %v6730_v46, 16  ;;  %v865_v61 = vshrl.u32 %v6730_v46, 16  ;;  %v6348_v32 = vld [vmem:[%s8036_s1 + $0x158] sm:$0xff] }
  0x35   : > { %1723 = vmatpush.bf16.msrb.mxu2 %v6310_v53  ;;  %v850_v53 = vsel %vm6605_vm2, %v845_v38, %v849_v34  ;;  %v1059_v56 = vrot.slane %v1057_v40, 4  ;;  %v1071_v38 = vshll.u32 %v764_v23, 16 }
  0x36   : > { %2038 = vmatpush.bf16.msrb.mxu3 %v6334_v54  ;;  %v1049_v54 = vrot.slane %v1047_v36, 5  ;;  %v1185_v1 = vunpack.c.l.b16 %v850_v53  ;;  %v863_v7 = vrot.slane %v861_v60, 5  ;;  %v867_v8 = vrot.slane %v865_v61, 4 }
  0x37   : > { %2720 = vmatpush.bf16.msrb.mxu0 %v6342_v63  ;;  %3146 = vmatpush.bf16.msrb.mxu1 %v6350_v0  ;;  %v1201_v63 = vunpack.c.l.b16 %v1042_v49  ;;  %v1184_v0 = vunpack.c.l.b16 %v840_v51  ;;  %v1060_v3 = vor.u32 %v1059_v56, %v1055_v55  ;;  %v873_v36 = vrot.slane %v871_v22, 5 }
  0x38   : > { %v1050_v2 = vor.u32 %v1049_v54, %v1046_v52  ;;  %v1073_v54 = vrot.slane %v1071_v38, 5  ;;  %v891_v61 = vrot.slane %v889_v45, 4 }
  0x39   : > { %1724 = vmatpush.bf16.msrb.mxu2 %v6309_v37  ;;  %v1222_v11 = vpack.c.b16 %v1201_v63, %v1200_v62  ;;  %v1214_v15 = vpack.c.b16 %v1185_v1, %v1184_v0  ;;  %v1061_v18 = vrot.slane %v1060_v3, 4  ;;  %v1068_v37 = vshrl.u32 %v764_v23, 16  ;;  %v6780_v0 = vld [vmem:[%s6572_s12 + $0x38] sm:$0x1] }
  0x3a   : > { %2039 = vmatpush.bf16.msrb.mxu3 %v6333_v41  ;;  %v1051_v16 = vrot.slane %v1050_v2, 4  ;;  %v876_v41 = vshrl.u32 %v740_v27, 16  ;;  %v1087_v3 = vshll.u32 %v766_v57, 16 }
  0x3b   : > { %2721 = vmatpush.bf16.msrb.mxu0 %v6341_v43  ;;  %3147 = vmatpush.bf16.msrb.mxu1 %v6349_v44  ;;  %v1066_v33 = vsel %vm6605_vm2, %v1061_v18, %v1065_v17  ;;  %v879_v43 = vshll.u32 %v740_v27, 16  ;;  %v885_v44 = vshll.u32 %v6757_v28, 16  ;;  %v1070_v53 = vrot.slane %v1068_v37, 4 }
  0x3c   : > { %660 = vmatmul.bf16.gmra.mxu2 %v6282_v20  ;;  %620 = vmatmul.bf16.gmra.mxu0 %v6274_v24  ;;  %v858_v20 = vor.u32 %v857_v6, %v854_v5  ;;  %v765_v24 = vld [vmem:[%s6572_s12 + $0x94] sm:$0xf]  ;;  %v1056_v29 = vsel %vm6605_vm2, %v1051_v16, %v1055_v55  ;;  %v1203_v49 = vunpack.c.l.b16 %v1066_v33  ;;  %v878_v58 = vrot.slane %v876_v41, 4  ;;  %v743_v33 = vld [vmem:[%s6572_s12 + $0x3c] sm:$0xf] }
  0x3d   : > { %1345 = vmatmul.bf16.gmra.mxu3 %v1221_v21  ;;  %v868_v21 = vor.u32 %v867_v8, %v863_v7  ;;  %v1077_v39 = vshll.u32 %v765_v24, 16  ;;  %v1081_v40 = vshrl.u32 %v765_v24, 16  ;;  %v1202_v48 = vunpack.c.l.b16 %v1056_v29  ;;  %v6307_v24 = vld [vmem:[%s8036_s1 + $0x90] sm:$0xff] }
  0x3e   : > { %1305 = vmatmul.bf16.gmra.mxu1 %v1213_v26  ;;  %v6308_v26 = vld [vmem:[%s8036_s1 + $0x98] sm:$0xff]  ;;  %v859_v34 = vrot.slane %v858_v20, 4  ;;  %2040 = vmatpush.bf16.msrb.mxu3 %v6332_v30  ;;  %v881_v59 = vrot.slane %v879_v43, 5  ;;  %v887_v60 = vrot.slane %v885_v44, 5  ;;  %v1074_v1 = vor.u32 %v1073_v54, %v1070_v53  ;;  %v6331_v30 = vld [vmem:[%s8036_s1 + $0xd0] sm:$0xff] }
  0x3f   : > { %v869_v35 = vrot.slane %v868_v21, 4  ;;  %1725 = vmatpush.bf16.msrb.mxu2 %v6308_v26  ;;  %2722 = vmatpush.bf16.msrb.mxu0 %v6340_v31  ;;  %v1079_v55 = vrot.slane %v1077_v39, 5  ;;  %v1083_v56 = vrot.slane %v1081_v40, 4  ;;  %v1223_v5 = vpack.c.b16 %v1203_v49, %v1202_v48  ;;  %v6339_v31 = vld [vmem:[%s8036_s1 + $0x110] sm:$0xff]  ;;  %v769_v44 = vld [vmem:[%s6572_s12 + $0xa4] sm:$0x1] }
  0x40   : > { %3148 = vmatpush.bf16.msrb.mxu1 %v6348_v32  ;;  %v864_v51 = vsel %vm6605_vm2, %v859_v34, %v863_v7  ;;  %v882_v6 = vor.u32 %v881_v59, %v878_v58  ;;  %v892_v7 = vor.u32 %v891_v61, %v887_v60  ;;  %v895_v8 = vshll.u32 %v6780_v0, 16  ;;  %v6347_v32 = vld [vmem:[%s8036_s1 + $0x150] sm:$0xff]  ;;  %v6801_v34 = vld [vmem:[%s6572_s12 + $0x40] sm:$0xf] }
  0x41   : > { %v874_v52 = vsel %vm6605_vm2, %v869_v35, %v873_v36  ;;  %v1186_v62 = vunpack.c.l.b16 %v864_v51  ;;  %v1084_v2 = vor.u32 %v1083_v56, %v1079_v55  ;;  %v1075_v16 = vrot.slane %v1074_v1, 4  ;;  %v6285_v1 = vld [vmem:[%s6572_s12 + $0x90] sm:$0xff] }
  0x42   : > { %v1187_v63 = vunpack.c.l.b16 %v874_v52  ;;  %v1089_v18 = vrot.slane %v1087_v3, 5  ;;  %v883_v20 = vrot.slane %v882_v6, 4  ;;  %v893_v21 = vrot.slane %v892_v7, 4  ;;  %2041 = vmatpush.bf16.msrb.mxu3 %v6331_v30  ;;  %v6277_v3 = vld [vmem:[%s6572_s12 + $0x30] sm:$0xff] }
  0x43   : > { %v1085_v17 = vrot.slane %v1084_v2, 4  ;;  %v897_v22 = vrot.slane %v895_v8, 5  ;;  %1726 = vmatpush.bf16.msrb.mxu2 %v6307_v24  ;;  %2723 = vmatpush.bf16.msrb.mxu0 %v6339_v31  ;;  %v1080_v35 = vsel %vm6605_vm2, %v1075_v16, %v1079_v55  ;;  %v900_v45 = vshrl.u32 %v743_v33, 16  ;;  %v6306_v16 = vld [vmem:[%s8036_s1 + $0x88] sm:$0xff] }
  0x44   : > { %v888_v37 = vsel %vm6605_vm2, %v883_v20, %v887_v60  ;;  %3149 = vmatpush.bf16.msrb.mxu1 %v6347_v32  ;;  %v903_v48 = vshll.u32 %v743_v33, 16  ;;  %v909_v49 = vshll.u32 %v6801_v34, 16  ;;  %v913_v51 = vshrl.u32 %v6801_v34, 16 }
  0x45   : > { %v1090_v36 = vsel %vm6605_vm2, %v1085_v17, %v1089_v18  ;;  %v898_v38 = vsel %vm6605_vm2, %v893_v21, %v897_v22  ;;  %v1204_v52 = vunpack.c.l.b16 %v1080_v35  ;;  %v1188_v54 = vunpack.c.l.b16 %v888_v37  ;;  %v746_v17 = vld [vmem:[%s6572_s12 + $0x48] sm:$0xf]  ;;  %v6827_v18 = vld [vmem:[%s6572_s12 + $0x4c] sm:$0xf] }
  0x46   : > { %v1205_v53 = vunpack.c.l.b16 %v1090_v36  ;;  %v1189_v55 = vunpack.c.l.b16 %v898_v38  ;;  %v1111_v58 = vshll.u32 %v769_v44, 16  ;;  %v902_v59 = vrot.slane %v900_v45, 4  ;;  %v6330_v21 = vld [vmem:[%s8036_s1 + $0xc8] sm:$0xff] }
  0x47   : > { %v905_v60 = vrot.slane %v903_v48, 5  ;;  %v911_v61 = vrot.slane %v909_v49, 5  ;;  %v6338_v22 = vld [vmem:[%s8036_s1 + $0x108] sm:$0xff]  ;;  %1727 = vmatpush.bf16.msrb.mxu2 %v6306_v16  ;;  %2042 = vmatpush.bf16.msrb.mxu3 %v6330_v21  ;;  %v924_v35 = vshrl.u32 %v746_v17, 16  ;;  %v927_v36 = vshll.u32 %v746_v17, 16  ;;  %v6305_v16 = vld [vmem:[%s8036_s1 + $0x80] sm:$0xff] }
  0x48   : > { %v1224_v2 = vpack.c.b16 %v1205_v53, %v1204_v52  ;;  %v1113_v7 = vrot.slane %v1111_v58, 5  ;;  %2724 = vmatpush.bf16.msrb.mxu0 %v6338_v22  ;;  %v933_v37 = vshll.u32 %v6827_v18, 16  ;;  %v937_v38 = vshrl.u32 %v6827_v18, 16  ;;  %v6850_v58 = vld [vmem:[%s6572_s12 + $0x50] sm:$0x1]  ;;  %v6329_v17 = vld [vmem:[%s8036_s1 + $0xc0] sm:$0xff] }
  0x49   : > { %v906_v8 = vor.u32 %v905_v60, %v902_v59  ;;  %v929_v52 = vrot.slane %v927_v36, 5  ;;  %v6345_v21 = vld [vmem:[%s8036_s1 + $0x140] sm:$0xff]  ;;  %v773_v22 = vld [vmem:[%s6572_s12 + $0xb4] sm:$0xf] }
  0x4a   : > { %v935_v53 = vrot.slane %v933_v37, 5 }
  0x4b   : > { %1728 = vmatpush.bf16.msrb.mxu2 %v6305_v16  ;;  %2043 = vmatpush.bf16.msrb.mxu3 %v6329_v17  ;;  %v6384_v17 = vld [vmem:[%s8036_s1 + $0x1f8] sm:$0xff] }
  0x4c   : > { %665 = vmatmul.bf16.gmra.mxu2 %v6283_v10  ;;  %625 = vmatmul.bf16.gmra.mxu0 %v6275_v13  ;;  %v6276_v10 = vld [vmem:[%s6572_s12 + $0x24] sm:$0xff]  ;;  %v767_v13 = vld [vmem:[%s6572_s12 + $0x9c] sm:$0xf] }
  0x4d   : > { %1350 = vmatmul.bf16.gmra.mxu3 %v1222_v11  ;;  %v1215_v11 = vpack.c.b16 %v1187_v63, %v1186_v62  ;;  %v1092_v23 = vshrl.u32 %v767_v13, 16  ;;  %v1095_v26 = vshll.u32 %v767_v13, 16  ;;  %v915_v62 = vrot.slane %v913_v51, 4  ;;  %v6815_v63 = vld [vmem:[%s6572_s12 + $0x44] sm:$0x1] }
  0x4e   : > { %1310 = vmatmul.bf16.gmra.mxu1 %v1214_v15  ;;  %v768_v15 = vld [vmem:[%s6572_s12 + $0xa0] sm:$0xf]  ;;  %v770_v13 = vld [vmem:[%s6572_s12 + $0xa8] sm:$0xf]  ;;  %v926_v51 = vrot.slane %v924_v35, 4 }
  0x4f   : > { %v1101_v27 = vshll.u32 %v768_v15, 16  ;;  %v1105_v29 = vshrl.u32 %v768_v15, 16  ;;  %v1094_v39 = vrot.slane %v1092_v23, 4  ;;  %v1097_v40 = vrot.slane %v1095_v26, 5  ;;  %v771_v15 = vld [vmem:[%s6572_s12 + $0xac] sm:$0xf]  ;;  %4141 = vmatpush.bf16.msra.mxu3 %v6384_v17 }
  0x50   : > { %v6346_v23 = vld [vmem:[%s8036_s1 + $0x148] sm:$0xff]  ;;  %v907_v26 = vrot.slane %v906_v8, 4  ;;  %v1116_v30 = vshrl.u32 %v770_v13, 16  ;;  %v1119_v31 = vshll.u32 %v770_v13, 16  ;;  %v1125_v32 = vshll.u32 %v771_v15, 16 }
  0x51   : > { %v1103_v41 = vrot.slane %v1101_v27, 5  ;;  %v1107_v43 = vrot.slane %v1105_v29, 4  ;;  %v1098_v56 = vor.u32 %v1097_v40, %v1094_v39  ;;  %v1129_v33 = vshrl.u32 %v771_v15, 16  ;;  %3150 = vmatpush.bf16.msrb.mxu1 %v6346_v23  ;;  %v774_v23 = vld [vmem:[%s6572_s12 + $0xb8] sm:$0xf] }
  0x52   : > { %v1118_v44 = vrot.slane %v1116_v30, 4  ;;  %v1121_v45 = vrot.slane %v1119_v31, 5  ;;  %v1127_v48 = vrot.slane %v1125_v32, 5  ;;  %v1140_v32 = vshrl.u32 %v773_v22, 16 }
  0x53   : > { %v1108_v57 = vor.u32 %v1107_v43, %v1103_v41  ;;  %v1131_v49 = vrot.slane %v1129_v33, 4  ;;  %v1143_v33 = vshll.u32 %v773_v22, 16  ;;  %v1149_v35 = vshll.u32 %v774_v23, 16 }
  0x54   : > { %v1122_v60 = vor.u32 %v1121_v45, %v1118_v44  ;;  %v1153_v36 = vshrl.u32 %v774_v23, 16 }
  0x55   : > { %v1109_v6 = vrot.slane %v1108_v57, 4  ;;  %v772_v57 = vld [vmem:[%s6572_s12 + $0xb0] sm:$0x1]  ;;  %3151 = vmatpush.bf16.msrb.mxu1 %v6345_v21 }
  0x57   : > { %v1114_v24 = vsel %vm6605_vm2, %v1109_v6, %v1113_v7  ;;  %v1123_v7 = vrot.slane %v1122_v60, 4  ;;  %v6287_v60 = vld [vmem:[%s6572_s12 + $0xa8] sm:$0xff] }
  0x58   : > { %v1207_v40 = vunpack.c.l.b16 %v1114_v24  ;;  %v749_v24 = vld [vmem:[%s6572_s12 + $0x54] sm:$0xf] }
  0x59   : > { %v948_v37 = vshrl.u32 %v749_v24, 16 }
  0x5c   : > { %670 = vmatmul.bf16.gmra.mxu2 %v6284_v4  ;;  %630 = vmatmul.bf16.gmra.mxu0 %v6276_v10  ;;  %v1216_v4 = vpack.c.b16 %v1189_v55, %v1188_v54  ;;  %v916_v10 = vor.u32 %v915_v62, %v911_v61  ;;  %v939_v54 = vrot.slane %v937_v38, 4  ;;  %v6286_v62 = vld [vmem:[%s6572_s12 + $0x9c] sm:$0xff]  ;;  %v951_v38 = vshll.u32 %v749_v24, 16 }
  0x5d   : > { %1355 = vmatmul.bf16.gmra.mxu3 %v1223_v5  ;;  %v1099_v5 = vrot.slane %v1098_v56, 4 }
  0x5e   : > { %1315 = vmatmul.bf16.gmra.mxu1 %v1215_v11  ;;  %v919_v11 = vshll.u32 %v6815_v63, 16  ;;  %v917_v27 = vrot.slane %v916_v10, 4 }
  0x5f   : > { %v1104_v20 = vsel %vm6605_vm2, %v1099_v5, %v1103_v41  ;;  %v912_v41 = vsel %vm6605_vm2, %v907_v26, %v911_v61  ;;  %v1132_v61 = vor.u32 %v1131_v49, %v1127_v48  ;;  %v6278_v5 = vld [vmem:[%s6572_s12 + $0x3c] sm:$0xff]  ;;  %v6871_v26 = vld [vmem:[%s6572_s12 + $0x58] sm:$0xf]  ;;  %v1145_v49 = vrot.slane %v1143_v33, 5 }
  0x60   : > { %v921_v29 = vrot.slane %v919_v11, 5  ;;  %v1206_v39 = vunpack.c.l.b16 %v1104_v20  ;;  %v1190_v55 = vunpack.c.l.b16 %v912_v41  ;;  %v6337_v20 = vld [vmem:[%s8036_s1 + $0x100] sm:$0xff] }
  0x61   : > { %v1133_v8 = vrot.slane %v1132_v61, 4  ;;  %2725 = vmatpush.bf16.msrb.mxu0 %v6337_v20 }
  0x62   : > { %v922_v43 = vsel %vm6605_vm2, %v917_v27, %v921_v29  ;;  %v1225_v59 = vpack.c.b16 %v1207_v40, %v1206_v39  ;;  %v1128_v27 = vsel %vm6605_vm2, %v1123_v7, %v1127_v48  ;;  %v957_v39 = vshll.u32 %v6871_v26, 16 }
  0x63   : > { %v1191_v56 = vunpack.c.l.b16 %v922_v43  ;;  %v961_v40 = vshrl.u32 %v6871_v26, 16  ;;  %v1208_v41 = vunpack.c.l.b16 %v1128_v27  ;;  %v1142_v48 = vrot.slane %v1140_v32, 4 }
  0x65   : > { %v1217_v6 = vpack.c.b16 %v1191_v56, %v1190_v55  ;;  %v953_v55 = vrot.slane %v951_v38, 5  ;;  %v959_v56 = vrot.slane %v957_v39, 5  ;;  %v6392_v39 = vld [vmem:[%s8036_s1 + $0x238] sm:$0xff] }
  0x66   : > { %4567 = vmatpush.bf16.msra.mxu0 %v6392_v39 }
  0x6c   : > { %675 = vmatmul.bf16.gmra.mxu2 %v6285_v1  ;;  %635 = vmatmul.bf16.gmra.mxu0 %v6277_v3  ;;  %v1135_v1 = vshll.u32 %v772_v57, 16  ;;  %v940_v3 = vor.u32 %v939_v54, %v935_v53  ;;  %v950_v54 = vrot.slane %v948_v37, 4  ;;  %v963_v57 = vrot.slane %v961_v40, 4 }
  0x6d   : > { %1360 = vmatmul.bf16.gmra.mxu3 %v1224_v2  ;;  %v930_v2 = vor.u32 %v929_v52, %v926_v51  ;;  %v1151_v51 = vrot.slane %v1149_v35, 5  ;;  %v1155_v52 = vrot.slane %v1153_v36, 4 }
  0x6e   : > { %1320 = vmatmul.bf16.gmra.mxu1 %v1216_v4  ;;  %v943_v4 = vshll.u32 %v6850_v58, 16  ;;  %v1137_v10 = vrot.slane %v1135_v1, 5  ;;  %v941_v13 = vrot.slane %v940_v3, 4 }
  0x6f   : > { %v931_v11 = vrot.slane %v930_v2, 4  ;;  %v1146_v2 = vor.u32 %v1145_v49, %v1142_v48  ;;  %v1156_v3 = vor.u32 %v1155_v52, %v1151_v51  ;;  %v1413_v48 = vld [vmem:[%s6572_s12] sm:$0xe]  ;;  %v1482_v49 = vrot.slane %v6579_v14, 5 }
  0x70   : > { %v945_v15 = vrot.slane %v943_v4, 5  ;;  %v1138_v29 = vsel %vm6605_vm2, %v1133_v8, %v1137_v10  ;;  %v6376_v8 = vld [vmem:[%s8036_s1 + $0x1b8] sm:$0xff]  ;;  %v5677_v10 = vld [vmem:[%s6572_s12 + $0xc] sm:$0xf] }
  0x71   : > { %v936_v30 = vsel %vm6605_vm2, %v931_v11, %v935_v53  ;;  %v1209_v43 = vunpack.c.l.b16 %v1138_v29  ;;  %v775_v53 = vld [vmem:[%s6572_s12 + $0xbc] sm:$0x1]  ;;  %v6895_v11 = vld [vmem:[%s6572_s12 + $0x10] sm:$0xf]  ;;  %3459 = vmatpush.bf16.msra.mxu2 %v6376_v8  ;;  %v2206_v23 = vshrl.u32 %v5677_v10, 16  ;;  %v2209_v24 = vshll.u32 %v5677_v10, 16 }
  0x72   : > { %v946_v31 = vsel %vm6605_vm2, %v941_v13, %v945_v15  ;;  %v1192_v44 = vunpack.c.l.b16 %v936_v30  ;;  %v1159_v4 = vshll.u32 %v775_v53, 16  ;;  %v1147_v13 = vrot.slane %v1146_v2, 4  ;;  %v6288_v53 = vld [vmem:[%s6572_s12 + $0xb4] sm:$0xff] }
  0x73   : > { %v1193_v45 = vunpack.c.l.b16 %v946_v31  ;;  %v1226_v61 = vpack.c.b16 %v1209_v43, %v1208_v41  ;;  %v1157_v15 = vrot.slane %v1156_v3, 4  ;;  %v2215_v27 = vshll.u32 %v6895_v11, 16 }
  0x74   : > { %v1161_v16 = vrot.slane %v1159_v4, 5  ;;  %v2219_v29 = vshrl.u32 %v6895_v11, 16  ;;  %v1152_v30 = vsel %vm6605_vm2, %v1147_v13, %v1151_v51  ;;  %v2208_v35 = vrot.slane %v2206_v23, 4  ;;  %v6930_v13 = vld [vmem:[%s6572_s12 + $0x1c] sm:$0xf] }
  0x75   : > { %v1218_v1 = vpack.c.b16 %v1193_v45, %v1192_v44  ;;  %v2211_v36 = vrot.slane %v2209_v24, 5  ;;  %v2217_v37 = vrot.slane %v2215_v27, 5  ;;  %v1210_v40 = vunpack.c.l.b16 %v1152_v30  ;;  %v5679_v45 = vld [vmem:[%s6572_s12 + $0x14] sm:$0x1] }
  0x76   : > { %v1162_v31 = vsel %vm6605_vm2, %v1157_v15, %v1161_v16  ;;  %v2221_v38 = vrot.slane %v2219_v29, 4  ;;  %v1484_v14 = vrot.slane %v1482_v49, 4  ;;  %v1485_v2 = vrot.slane %v6589_v25, 5 }
  0x77   : > { %v1211_v41 = vunpack.c.l.b16 %v1162_v31  ;;  %v2212_v51 = vor.u32 %v2211_v36, %v2208_v35  ;;  %v2908_v10 = vrot.slane %v5679_v45, 5  ;;  %v2239_v24 = vshll.u32 %v6930_v13, 16 }
  0x78   : > { %v2222_v52 = vor.u32 %v2221_v38, %v2217_v37  ;;  %v1486_v15 = vsel %vm6924_vm5, %v1484_v14, %v1485_v2  ;;  %v2243_v27 = vshrl.u32 %v6930_v13, 16  ;;  %v6959_v14 = vld [vmem:[%s6572_s12 + $0x28] sm:$0xf]  ;;  %v1492_v2 = vrot.slane %v6649_v19, 5 }
  0x79   : > { %v2213_v3 = vrot.slane %v2212_v51, 4  ;;  %v1610_v30 = vunpack.c.l.b16 %v1486_v15  ;;  %v2241_v38 = vrot.slane %v2239_v24, 5 }
  0x7a   : > { %v2223_v4 = vrot.slane %v2222_v52, 4  ;;  %v2245_v39 = vrot.slane %v2243_v27, 4 }
  0x7b   : > { %v2218_v16 = vsel %vm6605_vm2, %v2213_v3, %v2217_v37 }
  0x7c   : > { %680 = vmatmul.bf16.gmra.mxu2 %v6286_v62  ;;  %640 = vmatmul.bf16.gmra.mxu0 %v6278_v5  ;;  %v6279_v62 = vld [vmem:[%s6572_s12 + $0x48] sm:$0xff]  ;;  %v954_v5 = vor.u32 %v953_v55, %v950_v54  ;;  %v1227_v54 = vpack.c.b16 %v1211_v41, %v1210_v40  ;;  %v2225_v55 = vshll.u32 %v5679_v45, 16  ;;  %v2606_v31 = vunpack.c.l.b16 %v2218_v16  ;;  %v5682_v40 = vld [vmem:[%s6572_s12 + $0x20] sm:$0x1] }
  0x7d   : > { %1365 = vmatmul.bf16.gmra.mxu3 %v1225_v59  ;;  %v6885_v59 = vld [vmem:[%s6572_s12 + $0x5c] sm:$0x1]  ;;  %v1489_v45 = vrot.slane %v6613_v50, 5  ;;  %v2246_v52 = vor.u32 %v2245_v39, %v2241_v38  ;;  %v6375_v50 = vld [vmem:[%s8036_s1 + $0x1b0] sm:$0xff] }
  0x7e   : > { %1325 = vmatmul.bf16.gmra.mxu1 %v1217_v6  ;;  %v964_v6 = vor.u32 %v963_v57, %v959_v56  ;;  %v967_v7 = vshll.u32 %v6885_v59, 16  ;;  %v955_v20 = vrot.slane %v954_v5, 4  ;;  %v6416_v57 = vld [vmem:[%s8039_s4 + $0x38] sm:$0xff]  ;;  %3460 = vmatpush.bf16.msra.mxu2 %v6375_v50  ;;  %v6415_v50 = vld [vmem:[%s8039_s4 + $0x30] sm:$0xff] }
  0x7f   : > { %4983 = vmatpush.bf16.msra.mxu1 %v6416_v57  ;;  %v6408_v5 = vld [vmem:[%s7580_s28 + $0x78] sm:$0xff] }
  0x80   : > { %v965_v21 = vrot.slane %v964_v6, 4  ;;  %v969_v22 = vrot.slane %v967_v7, 5  ;;  %v960_v32 = vsel %vm6605_vm2, %v955_v20, %v959_v56  ;;  %v2905_v56 = vrot.slane %v6895_v11, 5  ;;  %v5680_v11 = vld [vmem:[%s6572_s12 + $0x18] sm:$0xf] }
  0x81   : > { %v1194_v43 = vunpack.c.l.b16 %v960_v32  ;;  %v2227_v6 = vrot.slane %v2225_v55, 5  ;;  %v2233_v23 = vshll.u32 %v5680_v11, 16 }
  0x82   : > { %v970_v33 = vsel %vm6605_vm2, %v965_v21, %v969_v22  ;;  %v2907_v8 = vrot.slane %v2905_v56, 4  ;;  %v2230_v22 = vshrl.u32 %v5680_v11, 16  ;;  %v2915_v11 = vrot.slane %v5682_v40, 5 }
  0x83   : > { %v1195_v44 = vunpack.c.l.b16 %v970_v33  ;;  %v2228_v17 = vsel %vm6605_vm2, %v2223_v4, %v2227_v6  ;;  %v2235_v37 = vrot.slane %v2233_v23, 5  ;;  %v2247_v4 = vrot.slane %v2246_v52, 4  ;;  %4984 = vmatpush.bf16.msra.mxu1 %v6415_v50 }
  0x84   : > { %v2909_v21 = vsel %vm6924_vm5, %v2907_v8, %v2908_v10  ;;  %v2607_v32 = vunpack.c.l.b16 %v2228_v17  ;;  %v2232_v36 = vrot.slane %v2230_v22, 4  ;;  %v2263_v17 = vshll.u32 %v6959_v14, 16 }
  0x85   : > { %v3033_v35 = vunpack.c.l.b16 %v2909_v21 }
  0x86   : > { %v2236_v51 = vor.u32 %v2235_v37, %v2232_v36  ;;  %v6983_v36 = vrot.slane %v2263_v17, 5 }
  0x88   : > { %v2237_v3 = vrot.slane %v2236_v51, 4 }
  0x8a   : > { %v2242_v23 = vsel %vm6605_vm2, %v2237_v3, %v2241_v38  ;;  %v6391_v38 = vld [vmem:[%s8036_s1 + $0x230] sm:$0xff] }
  0x8b   : > { %4568 = vmatpush.bf16.msra.mxu0 %v6391_v38 }
  0x8c   : > { %685 = vmatmul.bf16.gmra.mxu2 %v6287_v60  ;;  %645 = vmatmul.bf16.gmra.mxu0 %v6279_v62  ;;  %v6280_v60 = vld [vmem:[%s6572_s12 + $0x54] sm:$0xff]  ;;  %v5773_v62 = vld [vmem:[%s6572_s12 + $0xc] sm:$0xe] }
  0x8d   : > { %1370 = vmatmul.bf16.gmra.mxu3 %v1226_v61  ;;  %v1219_v61 = vpack.c.b16 %v1195_v44, %v1194_v43  ;;  %v5789_v7 = vrot.slane %v5773_v62, 9  ;;  %v6313_v43 = vld [vmem:[%s6572_s12 + $0xc] sm:$0xff]  ;;  %v2638_v44 = vpack.c.b16 %v2607_v32, %v2606_v31 }
  0x8e   : > { %1330 = vmatmul.bf16.gmra.mxu1 %v1218_v1  ;;  %v5469_v1 = vrot.slane %v1413_v48, 9 }
  0x8f   : > { %v2906_v20 = vsel %vm6924_vm5, %v5789_v7, %v2905_v56  ;;  %v2912_v56 = vrot.slane %v6930_v13, 5  ;;  %v6383_v7 = vld [vmem:[%s8036_s1 + $0x1f0] sm:$0xff] }
  0x90   : > { %v1483_v25 = vsel %vm6924_vm5, %v5469_v1, %v1482_v49  ;;  %v3032_v33 = vunpack.c.l.b16 %v2906_v20  ;;  %v1414_v49 = vld [vmem:[%s6572_s12 + $0xc] sm:$0xe]  ;;  %v1491_v1 = vrot.slane %v1489_v45, 4  ;;  %v2267_v20 = vshrl.u32 %v6959_v14, 16  ;;  %4142 = vmatpush.bf16.msra.mxu3 %v6383_v7 }
  0x91   : > { %v1609_v29 = vunpack.c.l.b16 %v1483_v25  ;;  %v5470_v62 = vrot.slane %v1414_v49, 9  ;;  %v2914_v10 = vrot.slane %v2912_v56, 4  ;;  %v1496_v49 = vrot.slane %v6678_v47, 5  ;;  %v5775_v47 = vld [vmem:[%s6572_s12 + $0x24] sm:$0xe] }
  0x92   : > { %v3064_v48 = vpack.c.b16 %v3033_v35, %v3032_v33  ;;  %v1493_v22 = vsel %vm6924_vm5, %v1491_v1, %v1492_v2  ;;  %v2269_v37 = vrot.slane %v2267_v20, 4  ;;  %v2919_v1 = vrot.slane %v6959_v14, 5  ;;  %v5686_v20 = vld [vmem:[%s6572_s12 + $0x30] sm:$0xf] }
  0x93   : > { %v1641_v41 = vpack.c.b16 %v1610_v30, %v1609_v29  ;;  %v1490_v21 = vsel %vm6924_vm5, %v5470_v62, %v1489_v45  ;;  %v2916_v31 = vsel %vm6924_vm5, %v2914_v10, %v2915_v11  ;;  %v1499_v11 = vrot.slane %v6708_v12, 5 }
  0x94   : > { %v1611_v39 = vunpack.c.l.b16 %v1490_v21  ;;  %v3035_v45 = vunpack.c.l.b16 %v2916_v31  ;;  %v7005_v21 = vld [vmem:[%s6572_s12 + $0x34] sm:$0xf] }
  0x95   : > { %v2287_v38 = vshll.u32 %v7005_v21, 16 }
  0x9c   : > { %690 = vmatmul.bf16.gmra.mxu2 %v6288_v53  ;;  %650 = vmatmul.bf16.gmra.mxu0 %v6280_v60  ;;  %v2249_v53 = vshll.u32 %v5682_v40, 16  ;;  %v5774_v60 = vld [vmem:[%s6572_s12 + $0x18] sm:$0xe]  ;;  %v1612_v40 = vunpack.c.l.b16 %v1493_v22 }
  0x9d   : > { %1375 = vmatmul.bf16.gmra.mxu3 %v1227_v54  ;;  %v5790_v8 = vrot.slane %v5774_v60, 9 }
  0x9e   : > { %1335 = vmatmul.bf16.gmra.mxu1 %v1219_v61  ;;  %v5683_v61 = vld [vmem:[%s6572_s12 + $0x24] sm:$0xf]  ;;  %v2251_v6 = vrot.slane %v2249_v53, 5  ;;  %v1415_v53 = vld [vmem:[%s6572_s12 + $0x18] sm:$0xe]  ;;  %v1642_v60 = vpack.c.b16 %v1612_v40, %v1611_v39  ;;  %v2291_v39 = vshrl.u32 %v7005_v21, 16 }
  0x9f   : > { %v2254_v13 = vshrl.u32 %v5683_v61, 16  ;;  %v2257_v16 = vshll.u32 %v5683_v61, 16  ;;  %v2913_v30 = vsel %vm6924_vm5, %v5790_v8, %v2912_v56  ;;  %v6314_v61 = vld [vmem:[%s6572_s12 + $0x18] sm:$0xff]  ;;  %v5471_v7 = vrot.slane %v1415_v53, 9 }
  0xa0   : > { %v2252_v29 = vsel %vm6605_vm2, %v2247_v4, %v2251_v6  ;;  %v1498_v8 = vrot.slane %v1496_v49, 4 }
  0xa1   : > { %v2256_v32 = vrot.slane %v2254_v13, 4  ;;  %v2259_v35 = vrot.slane %v2257_v16, 5  ;;  %v2921_v16 = vrot.slane %v2919_v1, 4 }
  0xa2   : > { %v1500_v12 = vsel %vm6924_vm5, %v1498_v8, %v1499_v11 }
  0xa9   : > { %v616_v54 = vpop.f32.mrf.mxu0 }
  0xab   : > { %v1301_v55 = vpop.f32.mrf.mxu1 }
  0xac   : > { %v6951_v57 = vadd.f32 %v1301_v55, %v616_v54  ;;  %1729 = vmatmul.bf16.vlgmr.msrb.gmra.mxu2 %v1641_v41  ;;  %2726 = vmatmul.bf16.vlgmr.msrb.gmra.mxu0 %v2638_v44  ;;  %v2608_v41 = vunpack.c.l.b16 %v2242_v23  ;;  %v3034_v44 = vunpack.c.l.b16 %v2913_v30  ;;  %v2260_v54 = vor.u32 %v2259_v35, %v2256_v32 }
  0xad   : > { %2044 = vmatmul.bf16.vlgmr.msrb.gmra.mxu3 %v6313_v43  ;;  %v2609_v43 = vunpack.c.l.b16 %v2252_v29  ;;  %v2270_v55 = vor.u32 %v2269_v37, %v6983_v36  ;;  %v2278_v35 = vshrl.u32 %v5686_v20, 16  ;;  %v2281_v37 = vshll.u32 %v5686_v20, 16 }
  0xae   : > { %3152 = vmatmul.bf16.vlgmr.msrb.gmra.mxu1 %v3064_v48  ;;  %v5685_v48 = vld [vmem:[%s6572_s12 + $0x2c] sm:$0x1]  ;;  %v3065_v3 = vpack.c.b16 %v3035_v45, %v3034_v44  ;;  %v2261_v13 = vrot.slane %v2260_v54, 4  ;;  %v1614_v44 = vunpack.c.l.b16 %v1500_v12  ;;  %v2289_v54 = vrot.slane %v2287_v38, 5 }
  0xaf   : > { %v656_v25 = vpop.f32.mrf.mxu2  ;;  %v2273_v62 = vshll.u32 %v5685_v48, 16  ;;  %v2639_v2 = vpack.c.b16 %v2609_v43, %v2608_v41  ;;  %v2271_v14 = vrot.slane %v2270_v55, 4  ;;  %v2922_v17 = vrot.slane %v5685_v48, 5 }
  0xb0   : > { %v1341_v15 = vpop.f32.mrf.mxu3  ;;  %v2283_v53 = vrot.slane %v2281_v37, 5  ;;  %v2293_v55 = vrot.slane %v2291_v39, 4 }
  0xb1   : > { %v6967_v19 = vadd.f32 %v1341_v15, %v656_v25  ;;  %v618_v24 = vpop.f32.mrf.mxu0  ;;  %v2275_v25 = vrot.slane %v2273_v62, 5  ;;  %v5791_v15 = vrot.slane %v5775_v47, 9  ;;  %v2923_v32 = vsel %vm6924_vm5, %v2921_v16, %v2922_v17  ;;  %v5776_v16 = vld [vmem:[%s6572_s12 + $0x30] sm:$0xe]  ;;  %v5689_v17 = vld [vmem:[%s6572_s12 + $0x3c] sm:$0xf] }
  0xb2   : > { %v1503_v47 = vrot.slane %v6730_v46, 5  ;;  %v2294_v8 = vor.u32 %v2293_v55, %v2289_v54  ;;  %v6374_v46 = vld [vmem:[%s8036_s1 + $0x1a8] sm:$0xff]  ;;  %v2302_v37 = vshrl.u32 %v5689_v17, 16 }
  0xb3   : > { %v1303_v27 = vpop.f32.mrf.mxu1  ;;  %v2276_v30 = vsel %vm6605_vm2, %v2271_v14, %v2275_v25  ;;  %v2920_v31 = vsel %vm6924_vm5, %v5791_v15, %v2919_v1  ;;  %v2926_v25 = vrot.slane %v7005_v21, 5  ;;  %3461 = vmatpush.bf16.msra.mxu2 %v6374_v46 }
  0xb4   : > { %v6981_v33 = vadd.f32 %v1303_v27, %v618_v24  ;;  %v1497_v24 = vsel %vm6924_vm5, %v5471_v7, %v1496_v49  ;;  %v2266_v27 = vsel %vm6605_vm2, %v2261_v13, %v6983_v36  ;;  %v2611_v48 = vunpack.c.l.b16 %v2276_v30  ;;  %v6382_v30 = vld [vmem:[%s8036_s1 + $0x1e8] sm:$0xff] }
  0xb5   : > { %v1613_v43 = vunpack.c.l.b16 %v1497_v24  ;;  %v2610_v45 = vunpack.c.l.b16 %v2266_v27  ;;  %v3036_v49 = vunpack.c.l.b16 %v2920_v31  ;;  %v1506_v24 = vrot.slane %v6745_v9, 5  ;;  %4143 = vmatpush.bf16.msra.mxu3 %v6382_v30 }
  0xb6   : > { %v2295_v21 = vrot.slane %v2294_v8, 4  ;;  %v5792_v31 = vrot.slane %v5776_v16, 9  ;;  %v1417_v16 = vld [vmem:[%s6572_s12 + $0x30] sm:$0xe] }
  0xb7   : > { %v658_v51 = vpop.f32.mrf.mxu2  ;;  %v1643_v50 = vpack.c.b16 %v1614_v44, %v1613_v43 }
  0xb8   : > { %v1343_v52 = vpop.f32.mrf.mxu3 }
  0xb9   : > { %v6992_v56 = vadd.f32 %v1343_v52, %v658_v51  ;;  %v621_v4 = vpop.f32.mrf.mxu0  ;;  %v3037_v51 = vunpack.c.l.b16 %v2923_v32  ;;  %v2280_v52 = vrot.slane %v2278_v35, 4  ;;  %v2928_v32 = vrot.slane %v2926_v25, 4 }
  0xbb   : > { %v1306_v6 = vpop.f32.mrf.mxu1  ;;  %v2284_v7 = vor.u32 %v2283_v53, %v2280_v52  ;;  %v2927_v53 = vsel %vm6924_vm5, %v5792_v31, %v2926_v25 }
  0xbc   : > { %v7000_v10 = vadd.f32 %v1306_v6, %v621_v4  ;;  %1734 = vmatmul.bf16.gmra.mxu2 %v1642_v60  ;;  %2731 = vmatmul.bf16.gmra.mxu0 %v2639_v2  ;;  %v5688_v60 = vld [vmem:[%s6572_s12 + $0x38] sm:$0x1]  ;;  %v6315_v2 = vld [vmem:[%s6572_s12 + $0x24] sm:$0xff]  ;;  %v3066_v4 = vpack.c.b16 %v3037_v51, %v3036_v49 }
  0xbd   : > { %2049 = vmatmul.bf16.gmra.mxu3 %v6314_v61  ;;  %v1416_v6 = vld [vmem:[%s6572_s12 + $0x24] sm:$0xe]  ;;  %v2297_v11 = vshll.u32 %v5688_v60, 16  ;;  %v2285_v12 = vrot.slane %v2284_v7, 4  ;;  %v2929_v35 = vrot.slane %v5688_v60, 5  ;;  %v2304_v60 = vrot.slane %v2302_v37, 4 }
  0xbe   : > { %3157 = vmatmul.bf16.gmra.mxu1 %v3065_v3  ;;  %v2640_v3 = vpack.c.b16 %v2611_v48, %v2610_v45  ;;  %v5472_v20 = vrot.slane %v1416_v6, 9  ;;  %v3038_v7 = vunpack.c.l.b16 %v2927_v53  ;;  %v5473_v37 = vrot.slane %v1417_v16, 9 }
  0xbf   : > { %v661_v22 = vpop.f32.mrf.mxu2  ;;  %v2299_v27 = vrot.slane %v2297_v11, 5  ;;  %v2290_v48 = vsel %vm6605_vm2, %v2285_v12, %v2289_v54  ;;  %v2930_v55 = vsel %vm6924_vm5, %v2928_v32, %v2929_v35  ;;  %v5691_v11 = vld [vmem:[%s6572_s12 + $0x44] sm:$0x1] }
  0xc0   : > { %v1346_v23 = vpop.f32.mrf.mxu3  ;;  %v1504_v44 = vsel %vm6924_vm5, %v5472_v20, %v1503_v47  ;;  %v3039_v8 = vunpack.c.l.b16 %v2930_v55  ;;  %v2321_v12 = vshll.u32 %v5691_v11, 16 }
  0xc1   : > { %v7014_v29 = vadd.f32 %v1346_v23, %v661_v22  ;;  %v623_v40 = vpop.f32.mrf.mxu0  ;;  %v1505_v22 = vrot.slane %v1503_v47, 4  ;;  %v7041_v23 = vld [vmem:[%s6572_s12 + $0x40] sm:$0xf]  ;;  %v2300_v52 = vsel %vm6605_vm2, %v2295_v21, %v2299_v27  ;;  %v6414_v27 = vld [vmem:[%s8039_s4 + $0x28] sm:$0xff] }
  0xc2   : > { %v2315_v43 = vshrl.u32 %v7041_v23, 16  ;;  %v2613_v6 = vunpack.c.l.b16 %v2300_v52  ;;  %v2933_v21 = vrot.slane %v7041_v23, 5  ;;  %v3067_v31 = vpack.c.b16 %v3039_v8, %v3038_v7  ;;  %4985 = vmatpush.bf16.msra.mxu1 %v6414_v27  ;;  %v5694_v27 = vld [vmem:[%s6572_s12 + $0x50] sm:$0x1] }
  0xc3   : > { %v1308_v36 = vpop.f32.mrf.mxu1  ;;  %v1507_v45 = vsel %vm6924_vm5, %v1505_v22, %v1506_v24  ;;  %v6316_v24 = vld [vmem:[%s6572_s12 + $0x30] sm:$0xff] }
  0xc4   : > { %v7024_v41 = vadd.f32 %v1308_v36, %v623_v40  ;;  %v2305_v40 = vshll.u32 %v5689_v17, 16  ;;  %v2311_v36 = vshll.u32 %v7041_v23, 16  ;;  %v2317_v54 = vrot.slane %v2315_v43, 4 }
  0xc5   : > { %v1616_v47 = vunpack.c.l.b16 %v1507_v45  ;;  %v2323_v43 = vrot.slane %v2321_v12, 5  ;;  %v2935_v45 = vrot.slane %v2933_v21, 4 }
  0xc7   : > { %v663_v61 = vpop.f32.mrf.mxu2 }
  0xc8   : > { %v1348_v62 = vpop.f32.mrf.mxu3 }
  0xc9   : > { %v7027_v1 = vadd.f32 %v1348_v62, %v663_v61  ;;  %v626_v13 = vpop.f32.mrf.mxu0  ;;  %v2307_v62 = vrot.slane %v2305_v40, 5  ;;  %v1513_v40 = vrot.slane %v6780_v0, 5 }
  0xcb   : > { %v1311_v14 = vpop.f32.mrf.mxu1  ;;  %v2308_v17 = vor.u32 %v2307_v62, %v2304_v60 }
  0xcc   : > { %v7033_v15 = vadd.f32 %v1311_v14, %v626_v13  ;;  %1739 = vmatmul.bf16.gmra.mxu2 %v1643_v50  ;;  %2736 = vmatmul.bf16.gmra.mxu0 %v2640_v3  ;;  %v7065_v50 = vrot.slane %v2311_v36, 5  ;;  %v1615_v3 = vunpack.c.l.b16 %v1504_v44  ;;  %v1510_v13 = vrot.slane %v6757_v28, 5  ;;  %v5777_v28 = vld [vmem:[%s6572_s12 + $0x3c] sm:$0xe] }
  0xcd   : > { %2054 = vmatmul.bf16.gmra.mxu3 %v6315_v2  ;;  %v6390_v2 = vld [vmem:[%s8036_s1 + $0x228] sm:$0xff]  ;;  %v2309_v36 = vrot.slane %v2308_v17, 4  ;;  %v5793_v44 = vrot.slane %v5777_v28, 9 }
  0xce   : > { %3162 = vmatmul.bf16.gmra.mxu1 %v3066_v4  ;;  %v2612_v4 = vunpack.c.l.b16 %v2290_v48  ;;  %4569 = vmatpush.bf16.msra.mxu0 %v6390_v2  ;;  %v2318_v20 = vor.u32 %v2317_v54, %v7065_v50  ;;  %v1644_v46 = vpack.c.b16 %v1616_v47, %v1615_v3  ;;  %v2936_v48 = vrot.slane %v5691_v11, 5 }
  0xcf   : > { %v666_v38 = vpop.f32.mrf.mxu2  ;;  %v1511_v55 = vsel %vm6924_vm5, %v5473_v37, %v1510_v13  ;;  %v2314_v60 = vsel %vm6605_vm2, %v2309_v36, %v7065_v50  ;;  %v2934_v2 = vsel %vm6924_vm5, %v5793_v44, %v2933_v21  ;;  %v1418_v36 = vld [vmem:[%s6572_s12 + $0x3c] sm:$0xe]  ;;  %v2345_v44 = vshll.u32 %v5694_v27, 16 }
  0xd0   : > { %v1351_v39 = vpop.f32.mrf.mxu3  ;;  %v2641_v30 = vpack.c.b16 %v2613_v6, %v2612_v4  ;;  %v2319_v23 = vrot.slane %v2318_v20, 4  ;;  %v2937_v3 = vsel %vm6924_vm5, %v2935_v45, %v2936_v48  ;;  %v3040_v17 = vunpack.c.l.b16 %v2934_v2 }
  0xd1   : > { %v7049_v9 = vadd.f32 %v1351_v39, %v666_v38  ;;  %v628_v49 = vpop.f32.mrf.mxu0  ;;  %v1512_v38 = vrot.slane %v1510_v13, 4  ;;  %v1617_v13 = vunpack.c.l.b16 %v1511_v55  ;;  %v3041_v20 = vunpack.c.l.b16 %v2937_v3  ;;  %v5695_v55 = vld [vmem:[%s6572_s12 + $0x54] sm:$0xf] }
  0xd2   : > { %v2324_v54 = vsel %vm6605_vm2, %v2319_v23, %v2323_v43  ;;  %v1520_v2 = vrot.slane %v6815_v63, 5 }
  0xd3   : > { %v1313_v51 = vpop.f32.mrf.mxu1  ;;  %v1514_v0 = vsel %vm6924_vm5, %v1512_v38, %v1513_v40  ;;  %v2615_v16 = vunpack.c.l.b16 %v2324_v54  ;;  %v1517_v38 = vrot.slane %v6801_v34, 5  ;;  %v3068_v40 = vpack.c.b16 %v3041_v20, %v3040_v17  ;;  %v6373_v34 = vld [vmem:[%s8036_s1 + $0x1a0] sm:$0xff]  ;;  %v7123_v54 = vld [vmem:[%s6572_s12 + $0x58] sm:$0xf] }
  0xd4   : > { %v7063_v61 = vadd.f32 %v1313_v51, %v628_v49  ;;  %v5692_v49 = vld [vmem:[%s6572_s12 + $0x48] sm:$0xf]  ;;  %v7087_v51 = vld [vmem:[%s6572_s12 + $0x4c] sm:$0xf]  ;;  %3462 = vmatpush.bf16.msra.mxu2 %v6373_v34  ;;  %v2363_v17 = vshrl.u32 %v7123_v54, 16 }
  0xd5   : > { %v2326_v47 = vshrl.u32 %v5692_v49, 16  ;;  %v2329_v4 = vshll.u32 %v5692_v49, 16  ;;  %v2335_v6 = vshll.u32 %v7087_v51, 16  ;;  %v2339_v7 = vshrl.u32 %v7087_v51, 16  ;;  %v1419_v34 = vld [vmem:[%s6572_s12 + $0x48] sm:$0xe] }
  0xd6   : > { %v2940_v49 = vrot.slane %v7087_v51, 5 }
  0xd7   : > { %v668_v14 = vpop.f32.mrf.mxu2  ;;  %v2337_v12 = vrot.slane %v2335_v6, 5  ;;  %v2341_v21 = vrot.slane %v2339_v7, 4 }
  0xd8   : > { %v1353_v25 = vpop.f32.mrf.mxu3  ;;  %v2942_v7 = vrot.slane %v2940_v49, 4 }
  0xd9   : > { %v7074_v22 = vadd.f32 %v1353_v25, %v668_v14  ;;  %v631_v32 = vpop.f32.mrf.mxu0  ;;  %v1618_v14 = vunpack.c.l.b16 %v1514_v0  ;;  %v2614_v25 = vunpack.c.l.b16 %v2314_v60  ;;  %v2342_v43 = vor.u32 %v2341_v21, %v2337_v12 }
  0xda   : > { %v5474_v0 = vrot.slane %v1418_v36, 9  ;;  %v1519_v60 = vrot.slane %v1517_v38, 4  ;;  %v6389_v36 = vld [vmem:[%s8036_s1 + $0x220] sm:$0xff] }
  0xdb   : > { %v1316_v35 = vpop.f32.mrf.mxu1  ;;  %v2642_v37 = vpack.c.b16 %v2615_v16, %v2614_v25  ;;  %v2343_v51 = vrot.slane %v2342_v43, 4  ;;  %v2353_v25 = vshll.u32 %v5695_v55, 16  ;;  %v2359_v16 = vshll.u32 %v7123_v54, 16  ;;  %4570 = vmatpush.bf16.msra.mxu0 %v6389_v36 }
  0xdc   : > { %v7082_v39 = vadd.f32 %v1316_v35, %v631_v32  ;;  %1744 = vmatmul.bf16.gmra.mxu2 %v1644_v46  ;;  %2741 = vmatmul.bf16.gmra.mxu0 %v2641_v30  ;;  %v2328_v46 = vrot.slane %v2326_v47, 4  ;;  %v1645_v32 = vpack.c.b16 %v1618_v14, %v1617_v13  ;;  %v6317_v35 = vld [vmem:[%s6572_s12 + $0x3c] sm:$0xff]  ;;  %v2347_v47 = vrot.slane %v2345_v44, 5 }
  0xdd   : > { %2059 = vmatmul.bf16.gmra.mxu3 %v6316_v24  ;;  %v2331_v24 = vrot.slane %v2329_v4, 5  ;;  %v6381_v4 = vld [vmem:[%s8036_s1 + $0x1e0] sm:$0xff]  ;;  %v1518_v20 = vsel %vm6924_vm5, %v5474_v0, %v1517_v38  ;;  %v2355_v38 = vrot.slane %v2353_v25, 5 }
  0xde   : > { %3167 = vmatmul.bf16.gmra.mxu1 %v3067_v31  ;;  %4144 = vmatpush.bf16.msra.mxu3 %v6381_v4  ;;  %v6318_v4 = vld [vmem:[%s6572_s12 + $0x48] sm:$0xff] }
  0xdf   : > { %v671_v52 = vpop.f32.mrf.mxu2  ;;  %v2332_v23 = vor.u32 %v2331_v24, %v2328_v46  ;;  %v1521_v46 = vsel %vm6924_vm5, %v1519_v60, %v1520_v2 }
  0xe0   : > { %v1356_v53 = vpop.f32.mrf.mxu3  ;;  %v1620_v43 = vunpack.c.l.b16 %v1521_v46  ;;  %v1527_v46 = vrot.slane %v6850_v58, 5 }
  0xe1   : > { %v7096_v62 = vadd.f32 %v1356_v53, %v671_v52  ;;  %v633_v8 = vpop.f32.mrf.mxu0  ;;  %v5778_v53 = vld [vmem:[%s6572_s12 + $0x48] sm:$0xe]  ;;  %v2333_v3 = vrot.slane %v2332_v23, 4  ;;  %v1619_v23 = vunpack.c.l.b16 %v1518_v20 }
  0xe2   : > { %v5794_v6 = vrot.slane %v5778_v53, 9  ;;  %v5697_v53 = vld [vmem:[%s6572_s12 + $0x5c] sm:$0x1] }
  0xe3   : > { %v1318_v50 = vpop.f32.mrf.mxu1  ;;  %v2338_v24 = vsel %vm6605_vm2, %v2333_v3, %v2337_v12  ;;  %v2365_v12 = vrot.slane %v2363_v17, 4 }
  0xe4   : > { %v7106_v11 = vadd.f32 %v1318_v50, %v633_v8  ;;  %v2943_v8 = vrot.slane %v5694_v27, 5  ;;  %v2350_v50 = vshrl.u32 %v5695_v55, 16  ;;  %v2616_v44 = vunpack.c.l.b16 %v2338_v24 }
  0xe5   : > { %v1524_v55 = vrot.slane %v6827_v18, 5  ;;  %v5779_v18 = vld [vmem:[%s6572_s12 + $0x54] sm:$0xe] }
  0xe7   : > { %v673_v30 = vpop.f32.mrf.mxu2  ;;  %v1526_v17 = vrot.slane %v1524_v55, 4 }
  0xe8   : > { %v1358_v31 = vpop.f32.mrf.mxu3 }
  0xe9   : > { %v7109_v28 = vadd.f32 %v1358_v31, %v673_v30  ;;  %v636_v45 = vpop.f32.mrf.mxu0  ;;  %v2348_v30 = vsel %vm6605_vm2, %v2343_v51, %v2347_v47  ;;  %v2941_v31 = vsel %vm6924_vm5, %v5794_v6, %v2940_v49  ;;  %v1646_v47 = vpack.c.b16 %v1620_v43, %v1619_v23 }
  0xea   : > { %v2369_v6 = vshll.u32 %v5697_v53, 16  ;;  %v1528_v58 = vsel %vm6924_vm5, %v1526_v17, %v1527_v46 }
  0xeb   : > { %v1321_v48 = vpop.f32.mrf.mxu1 }
  0xec   : > { %v7115_v52 = vadd.f32 %v1321_v48, %v636_v45  ;;  %1749 = vmatmul.bf16.gmra.mxu2 %v1645_v32  ;;  %2746 = vmatmul.bf16.gmra.mxu0 %v2642_v37  ;;  %v2944_v32 = vsel %vm6924_vm5, %v2942_v7, %v2943_v8  ;;  %v2617_v45 = vunpack.c.l.b16 %v2348_v30  ;;  %v3042_v48 = vunpack.c.l.b16 %v2941_v31  ;;  %v6413_v8 = vld [vmem:[%s8039_s4 + $0x20] sm:$0xff] }
  0xed   : > { %2064 = vmatmul.bf16.gmra.mxu3 %v6317_v35  ;;  %v2352_v35 = vrot.slane %v2350_v50, 4  ;;  %v3043_v49 = vunpack.c.l.b16 %v2944_v32  ;;  %v2947_v7 = vrot.slane %v7123_v54, 5  ;;  %4986 = vmatpush.bf16.msra.mxu1 %v6413_v8  ;;  %v2950_v31 = vrot.slane %v5697_v53, 5  ;;  %v5698_v32 = vld [vmem:[%s6572_s12 + $0x60] sm:$0xf] }
  0xee   : > { %3172 = vmatmul.bf16.gmra.mxu1 %v3068_v40  ;;  %v7147_v40 = vrot.slane %v2359_v16, 5  ;;  %v2643_v50 = vpack.c.b16 %v2617_v45, %v2616_v44  ;;  %v5475_v16 = vrot.slane %v1419_v34, 9  ;;  %v2377_v53 = vshll.u32 %v5698_v32, 16 }
  0xef   : > { %v676_v13 = vpop.f32.mrf.mxu2  ;;  %v2356_v2 = vor.u32 %v2355_v38, %v2352_v35  ;;  %v2949_v30 = vrot.slane %v2947_v7, 4  ;;  %v7169_v35 = vld [vmem:[%s6572_s12 + $0x64] sm:$0xf] }
  0xf0   : > { %v1361_v14 = vpop.f32.mrf.mxu3  ;;  %v2366_v3 = vor.u32 %v2365_v12, %v7147_v40  ;;  %v1525_v36 = vsel %vm6924_vm5, %v5475_v16, %v1524_v55  ;;  %v2383_v55 = vshll.u32 %v7169_v35, 16 }
  0xf1   : > { %v7131_v63 = vadd.f32 %v1361_v14, %v676_v13  ;;  %v638_v21 = vpop.f32.mrf.mxu0  ;;  %v3069_v13 = vpack.c.b16 %v3043_v49, %v3042_v48  ;;  %v2357_v24 = vrot.slane %v2356_v2, 4  ;;  %v2951_v48 = vsel %vm6924_vm5, %v2949_v30, %v2950_v31  ;;  %v1420_v30 = vld [vmem:[%s6572_s12 + $0x54] sm:$0xe] }
  0xf2   : > { %v2367_v54 = vrot.slane %v2366_v3, 4  ;;  %v2374_v49 = vshrl.u32 %v5698_v32, 16  ;;  %v1621_v2 = vunpack.c.l.b16 %v1525_v36  ;;  %v1622_v3 = vunpack.c.l.b16 %v1528_v58 }
  0xf3   : > { %v1323_v27 = vpop.f32.mrf.mxu1  ;;  %v2362_v23 = vsel %vm6605_vm2, %v2357_v24, %v7147_v40  ;;  %v6319_v24 = vld [vmem:[%s6572_s12 + $0x54] sm:$0xff]  ;;  %v2954_v58 = vrot.slane %v7169_v35, 5 }
  0xf4   : > { %v7145_v37 = vadd.f32 %v1323_v27, %v638_v21  ;;  %v2371_v21 = vrot.slane %v2369_v6, 5  ;;  %v5795_v27 = vrot.slane %v5779_v18, 9  ;;  %v2376_v8 = vrot.slane %v2374_v49, 4 }
  0xf5   : > { %v1647_v46 = vpack.c.b16 %v1622_v3, %v1621_v2  ;;  %v2956_v3 = vrot.slane %v2954_v58, 4 }
  0xf6   : > { %v2372_v44 = vsel %vm6605_vm2, %v2367_v54, %v2371_v21  ;;  %v2948_v45 = vsel %vm6924_vm5, %v5795_v27, %v2947_v7  ;;  %v3045_v7 = vunpack.c.l.b16 %v2951_v48  ;;  %v1531_v21 = vrot.slane %v6871_v26, 5  ;;  %v6372_v26 = vld [vmem:[%s8036_s1 + $0x198] sm:$0xff] }
  0xf7   : > { %v678_v0 = vpop.f32.mrf.mxu2  ;;  %v3044_v6 = vunpack.c.l.b16 %v2948_v45  ;;  %v5701_v45 = vld [vmem:[%s6572_s12 + $0x6c] sm:$0xf]  ;;  %v5476_v48 = vrot.slane %v1420_v30, 9  ;;  %3463 = vmatpush.bf16.msra.mxu2 %v6372_v26  ;;  %v5703_v26 = vld [vmem:[%s6572_s12 + $0x74] sm:$0x1] }
  0xf8   : > { %v1363_v60 = vpop.f32.mrf.mxu3  ;;  %v1533_v49 = vrot.slane %v1531_v21, 4 }
  0xf9   : > { %v7156_v51 = vadd.f32 %v1363_v60, %v678_v0  ;;  %v641_v14 = vpop.f32.mrf.mxu0  ;;  %v2387_v0 = vshrl.u32 %v7169_v35, 16  ;;  %v3070_v27 = vpack.c.b16 %v3045_v7, %v3044_v6 }
  0xfb   : > { %v1326_v25 = vpop.f32.mrf.mxu1  ;;  %v2389_v18 = vrot.slane %v2387_v0, 4 }
  0xfc   : > { %v7164_v20 = vadd.f32 %v1326_v25, %v641_v14  ;;  %1754 = vmatmul.bf16.gmra.mxu2 %v1646_v47  ;;  %2751 = vmatmul.bf16.gmra.mxu0 %v2643_v50  ;;  %v2618_v47 = vunpack.c.l.b16 %v2362_v23  ;;  %v2379_v50 = vrot.slane %v2377_v53, 5  ;;  %v5700_v14 = vld [vmem:[%s6572_s12 + $0x68] sm:$0x1]  ;;  %v7205_v53 = vld [vmem:[%s6572_s12 + $0x70] sm:$0xf] }
  0xfd   : > { %2069 = vmatmul.bf16.gmra.mxu3 %v6318_v4  ;;  %v2619_v4 = vunpack.c.l.b16 %v2372_v44  ;;  %v5780_v44 = vld [vmem:[%s6572_s12 + $0x60] sm:$0xe] }
  0xfe   : > { %3177 = vmatmul.bf16.gmra.mxu1 %v3069_v13  ;;  %v2385_v13 = vrot.slane %v2383_v55, 5  ;;  %v2380_v31 = vor.u32 %v2379_v50, %v2376_v8  ;;  %v1534_v55 = vrot.slane %v6885_v59, 5  ;;  %v5796_v2 = vrot.slane %v5780_v44, 9 }
  0xff   : > { %v681_v38 = vpop.f32.mrf.mxu2  ;;  %v2644_v54 = vpack.c.b16 %v2619_v4, %v2618_v47  ;;  %v2957_v47 = vrot.slane %v5700_v14, 5  ;;  %v2398_v4 = vshrl.u32 %v5701_v45, 16  ;;  %v2401_v8 = vshll.u32 %v5701_v45, 16 }
 0x100   : > { %v1366_v12 = vpop.f32.mrf.mxu3  ;;  %v2390_v32 = vor.u32 %v2389_v18, %v2385_v13  ;;  %v2381_v0 = vrot.slane %v2380_v31, 4  ;;  %v2407_v50 = vshll.u32 %v7205_v53, 16  ;;  %v2411_v18 = vshrl.u32 %v7205_v53, 16 }
 0x101   : > { %v7178_v43 = vadd.f32 %v1366_v12, %v681_v38  ;;  %v643_v60 = vpop.f32.mrf.mxu0  ;;  %v2393_v38 = vshll.u32 %v5700_v14, 16  ;;  %v2958_v30 = vsel %vm6924_vm5, %v2956_v3, %v2957_v47 }
 0x102   : > { %v2391_v35 = vrot.slane %v2390_v32, 4  ;;  %v2386_v14 = vsel %vm6605_vm2, %v2381_v0, %v2385_v13  ;;  %v2403_v32 = vrot.slane %v2401_v8, 5  ;;  %v2413_v13 = vrot.slane %v2411_v18, 4  ;;  %v6388_v0 = vld [vmem:[%s8036_s1 + $0x218] sm:$0xff] }
 0x103   : > { %v1328_v40 = vpop.f32.mrf.mxu1  ;;  %v2620_v44 = vunpack.c.l.b16 %v2386_v14  ;;  %v2961_v8 = vrot.slane %v7205_v53, 5  ;;  %4571 = vmatpush.bf16.msra.mxu0 %v6388_v0 }
 0x104   : > { %v7188_v34 = vadd.f32 %v1328_v40, %v643_v60  ;;  %v2395_v60 = vrot.slane %v2393_v38, 5  ;;  %v6380_v40 = vld [vmem:[%s8036_s1 + $0x1d8] sm:$0xff]  ;;  %v7229_v38 = vrot.slane %v2407_v50, 5 }
 0x105   : > { %4145 = vmatpush.bf16.msra.mxu3 %v6380_v40  ;;  %v1421_v40 = vld [vmem:[%s6572_s12 + $0x60] sm:$0xe] }
 0x106   : > { %v2414_v3 = vor.u32 %v2413_v13, %v7229_v38 }
 0x107   : > { %v683_v25 = vpop.f32.mrf.mxu2 }
 0x108   : > { %v1368_v16 = vpop.f32.mrf.mxu3 }
 0x109   : > { %v7191_v17 = vadd.f32 %v1368_v16, %v683_v25  ;;  %v646_v12 = vpop.f32.mrf.mxu0  ;;  %v1532_v25 = vsel %vm6924_vm5, %v5476_v48, %v1531_v21  ;;  %v1535_v16 = vsel %vm6924_vm5, %v1533_v49, %v1534_v55  ;;  %v2400_v21 = vrot.slane %v2398_v4, 4 }
 0x10a   : > { %v3047_v49 = vunpack.c.l.b16 %v2958_v30 }
 0x10b   : > { %v1331_v36 = vpop.f32.mrf.mxu1 }
 0x10c   : > { %v7197_v23 = vadd.f32 %v1331_v36, %v646_v12  ;;  %1759 = vmatmul.bf16.gmra.mxu2 %v1647_v46  ;;  %2756 = vmatmul.bf16.gmra.mxu0 %v2644_v54  ;;  %v2396_v54 = vsel %vm6605_vm2, %v2391_v35, %v2395_v60  ;;  %v1623_v12 = vunpack.c.l.b16 %v1532_v25  ;;  %v1624_v36 = vunpack.c.l.b16 %v1535_v16  ;;  %v5781_v25 = vld [vmem:[%s6572_s12 + $0x6c] sm:$0xe] }
 0x10d   : > { %2074 = vmatmul.bf16.gmra.mxu3 %v6319_v24  ;;  %v2621_v45 = vunpack.c.l.b16 %v2396_v54  ;;  %v5797_v53 = vrot.slane %v5781_v25, 9 }
 0x10e   : > { %3182 = vmatmul.bf16.gmra.mxu1 %v3070_v27  ;;  %v2955_v27 = vsel %vm6924_vm5, %v5796_v2, %v2954_v58  ;;  %v6459_v58 = vld [vmem:[%s6572_s12 + $0x64] sm:$0xf]  ;;  %v2404_v2 = vor.u32 %v2403_v32, %v2400_v21  ;;  %v1648_v4 = vpack.c.b16 %v1624_v36, %v1623_v12  ;;  %v2415_v32 = vrot.slane %v2414_v3, 4 }
 0x10f   : > { %v686_v6 = vpop.f32.mrf.mxu2  ;;  %v3046_v48 = vunpack.c.l.b16 %v2955_v27  ;;  %v1538_v55 = vrot.slane %v6459_v58, 5  ;;  %v2645_v50 = vpack.c.b16 %v2621_v45, %v2620_v44  ;;  %v6460_v27 = vld [vmem:[%s6572_s12 + $0x68] sm:$0x1]  ;;  %v2963_v12 = vrot.slane %v2961_v8, 4  ;;  %v6412_v44 = vld [vmem:[%s8039_s4 + $0x18] sm:$0xff] }
 0x110   : > { %v1371_v7 = vpop.f32.mrf.mxu3  ;;  %v1541_v30 = vrot.slane %v6460_v27, 5  ;;  %v2405_v21 = vrot.slane %v2404_v2, 4  ;;  %v2964_v36 = vrot.slane %v5703_v26, 5  ;;  %v5704_v45 = vld [vmem:[%s6572_s12 + $0x78] sm:$0xf]  ;;  %v2962_v2 = vsel %vm6924_vm5, %v5797_v53, %v2961_v8  ;;  %4987 = vmatpush.bf16.msra.mxu1 %v6412_v44 }
 0x111   : > { %v7213_v59 = vadd.f32 %v1371_v7, %v686_v6  ;;  %v648_v46 = vpop.f32.mrf.mxu0  ;;  %v6320_v6 = vld [vmem:[%s6572_s12 + $0x60] sm:$0xff]  ;;  %v2417_v7 = vshll.u32 %v5703_v26, 16  ;;  %v3071_v18 = vpack.c.b16 %v3047_v49, %v3046_v48  ;;  %v7251_v48 = vld [vmem:[%s6572_s12 + $0x7c] sm:$0xf] }
 0x112   : > { %v2410_v26 = vsel %vm6605_vm2, %v2405_v21, %v7229_v38  ;;  %v2965_v3 = vsel %vm6924_vm5, %v2963_v12, %v2964_v36  ;;  %v5706_v12 = vld [vmem:[%s6572_s12 + $0x80] sm:$0x1] }
 0x113   : > { %8045 = vst [vmem:[#allocation3_spill] sm:$0xff] %v7213_v59  ;;  %v1333_v24 = vpop.f32.mrf.mxu1  ;;  %v2419_v13 = vrot.slane %v2417_v7, 5  ;;  %v2435_v7 = vshrl.u32 %v7251_v48, 16 }
 0x114   : > { %v7227_v31 = vadd.f32 %v1333_v24, %v648_v46  ;;  %v5477_v46 = vrot.slane %v1421_v40, 9  ;;  %v1540_v24 = vrot.slane %v1538_v55, 4 }
 0x115   : > { %v2420_v40 = vsel %vm6605_vm2, %v2415_v32, %v2419_v13  ;;  %v2437_v32 = vrot.slane %v2435_v7, 4  ;;  %v5782_v7 = vld [vmem:[%s6572_s12 + $0x78] sm:$0xe] }
 0x116   : > { %v1539_v0 = vsel %vm6924_vm5, %v5477_v46, %v1538_v55  ;;  %v2422_v55 = vshrl.u32 %v5704_v45, 16  ;;  %v2623_v8 = vunpack.c.l.b16 %v2420_v40  ;;  %v3048_v46 = vunpack.c.l.b16 %v2962_v2 }
 0x117   : > { %v688_v35 = vpop.f32.mrf.mxu2  ;;  %v1625_v25 = vunpack.c.l.b16 %v1539_v0  ;;  %v1422_v0 = vld [vmem:[%s6572_s12 + $0x6c] sm:$0xe] }
 0x118   : > { %v1373_v60 = vpop.f32.mrf.mxu3  ;;  %v2424_v27 = vrot.slane %v2422_v55, 4 }
 0x119   : > { %v7238_v47 = vadd.f32 %v1373_v60, %v688_v35  ;;  %v651_v16 = vpop.f32.mrf.mxu0  ;;  %v1542_v35 = vsel %vm6924_vm5, %v1540_v24, %v1541_v30  ;;  %v3049_v24 = vunpack.c.l.b16 %v2965_v3 }
 0x11b   : > { %8046 = vst [vmem:[#allocation4_spill] sm:$0xff] %v7238_v47  ;;  %v1336_v14 = vpop.f32.mrf.mxu1 }
 0x11c   : > { %v7243_v54 = vadd.f32 %v1336_v14, %v651_v16  ;;  %1764 = vmatmul.bf16.gmra.mxu2 %v1648_v4  ;;  %2761 = vmatmul.bf16.gmra.mxu0 %v2645_v50  ;;  %v2425_v4 = vshll.u32 %v5704_v45, 16  ;;  %v1626_v16 = vunpack.c.l.b16 %v1542_v35  ;;  %v2622_v14 = vunpack.c.l.b16 %v2410_v26  ;;  %v6321_v45 = vld [vmem:[%s6572_s12 + $0x6c] sm:$0xff] }
 0x11d   : > { %2079 = vmatmul.bf16.gmra.mxu3 %v6320_v6  ;;  %v2431_v6 = vshll.u32 %v7251_v48, 16  ;;  %v6461_v35 = vld [vmem:[%s6572_s12 + $0x70] sm:$0xf] }
 0x11e   : > { %3187 = vmatmul.bf16.gmra.mxu1 %v3071_v18  ;;  %v2427_v30 = vrot.slane %v2425_v4, 5  ;;  %v1649_v44 = vpack.c.b16 %v1626_v16, %v1625_v25  ;;  %v1545_v26 = vrot.slane %v6461_v35, 5  ;;  %v2441_v4 = vshll.u32 %v5706_v12, 16  ;;  %v7285_v25 = vld [vmem:[%s6572_s12 + $0x88] sm:$0xf] }
 0x11f   : > { %v691_v49 = vpop.f32.mrf.mxu2  ;;  %v7272_v21 = vrot.slane %v2431_v6, 5  ;;  %v2968_v6 = vrot.slane %v7251_v48, 5  ;;  %v6371_v48 = vld [vmem:[%s8036_s1 + $0x190] sm:$0xff]  ;;  %v2459_v35 = vshrl.u32 %v7285_v25, 16 }
 0x120   : > { %v1376_v58 = vpop.f32.mrf.mxu3  ;;  %v2428_v40 = vor.u32 %v2427_v30, %v2424_v27  ;;  %v1547_v16 = vrot.slane %v1545_v26, 4  ;;  %v2443_v27 = vrot.slane %v2441_v4, 5  ;;  %v5798_v30 = vrot.slane %v5782_v7, 9  ;;  %3464 = vmatpush.bf16.msra.mxu2 %v6371_v48 }
 0x121   : > { %v7260_v60 = vadd.f32 %v1376_v58, %v691_v49  ;;  %v653_v38 = vpop.f32.mrf.mxu0  ;;  %v2646_v49 = vpack.c.b16 %v2623_v8, %v2622_v14  ;;  %v3072_v58 = vpack.c.b16 %v3049_v24, %v3048_v46  ;;  %v2438_v2 = vor.u32 %v2437_v32, %v7272_v21  ;;  %v6462_v14 = vld [vmem:[%s6572_s12 + $0x74] sm:$0x1] }
 0x122   : > { %v1548_v8 = vrot.slane %v6462_v14, 5  ;;  %v2429_v46 = vrot.slane %v2428_v40, 4  ;;  %v2970_v32 = vrot.slane %v2968_v6, 4 }
 0x123   : > { %8047 = vst [vmem:[#allocation5_spill] sm:$0xff] %v7260_v60  ;;  %v1338_v50 = vpop.f32.mrf.mxu1  ;;  %v2439_v24 = vrot.slane %v2438_v2, 4 }
 0x124   : > { %v7270_v18 = vadd.f32 %v1338_v50, %v653_v38  ;;  %v5478_v38 = vrot.slane %v1422_v0, 9  ;;  %v5707_v50 = vld [vmem:[%s6572_s12 + $0x84] sm:$0xf]  ;;  %v2455_v0 = vshll.u32 %v7285_v25, 16  ;;  %v1549_v2 = vsel %vm6924_vm5, %v1547_v16, %v1548_v8 }
 0x125   : > { %v2434_v4 = vsel %vm6605_vm2, %v2429_v46, %v7272_v21  ;;  %v2461_v8 = vrot.slane %v2459_v35, 4 }
 0x126   : > { %v7310_v16 = vrot.slane %v2455_v0, 5 }
 0x127   : > { %v693_v13 = vpop.f32.mrf.mxu2 }
 0x128   : > { %v1378_v53 = vpop.f32.mrf.mxu3  ;;  %v2462_v0 = vor.u32 %v2461_v8, %v7310_v16 }
 0x129   : > { %v7275_v36 = vadd.f32 %v1378_v53, %v693_v13  ;;  %v2727_v3 = vpop.f32.mrf.mxu0  ;;  %v2971_v13 = vrot.slane %v5706_v12, 5  ;;  %v6379_v53 = vld [vmem:[%s8036_s1 + $0x1d0] sm:$0xff]  ;;  %v1546_v12 = vsel %vm6924_vm5, %v5478_v38, %v1545_v26 }
 0x12a   : > { %4146 = vmatpush.bf16.msra.mxu3 %v6379_v53  ;;  %v1627_v46 = vunpack.c.l.b16 %v1546_v12  ;;  %v1628_v53 = vunpack.c.l.b16 %v1549_v2  ;;  %v2975_v2 = vrot.slane %v7285_v25, 5  ;;  %v2463_v59 = vrot.slane %v2462_v0, 4 }
 0x12b   : > { %8048 = vst [vmem:[#allocation6_spill] sm:$0xff] %v7275_v36  ;;  %v3153_v55 = vpop.f32.mrf.mxu1  ;;  %v2444_v36 = vsel %vm6605_vm2, %v2439_v24, %v2443_v27  ;;  %v2972_v26 = vsel %vm6924_vm5, %v2970_v32, %v2971_v13  ;;  %v6387_v32 = vld [vmem:[%s8036_s1 + $0x210] sm:$0xff] }
 0x12c   : > { %1769 = vmatmul.bf16.gmra.mxu2 %v1649_v44  ;;  %2766 = vmatmul.bf16.gmra.mxu0 %v2646_v49  ;;  %v2446_v49 = vshrl.u32 %v5707_v50, 16  ;;  %v2625_v24 = vunpack.c.l.b16 %v2444_v36  ;;  %v1650_v12 = vpack.c.b16 %v1628_v53, %v1627_v46  ;;  %v2977_v53 = vrot.slane %v2975_v2, 4 }
 0x12d   : > { %2084 = vmatmul.bf16.gmra.mxu3 %v6321_v45  ;;  %4572 = vmatpush.bf16.msra.mxu0 %v6387_v32  ;;  %v7333_v32 = vld [vmem:[%s6572_s12 + $0x94] sm:$0xf] }
 0x12e   : > { %3192 = vmatmul.bf16.gmra.mxu1 %v3072_v58  ;;  %v2449_v58 = vshll.u32 %v5707_v50, 16  ;;  %v2448_v38 = vrot.slane %v2446_v49, 4 }
 0x12f   : > { %v1730_v44 = vpop.f32.mrf.mxu2 }
 0x130   : > { %v2045_v45 = vpop.f32.mrf.mxu3  ;;  %v1810_v40 = vadd.f32 %v1730_v44, %v6951_v57  ;;  %v2969_v57 = vsel %vm6924_vm5, %v5798_v30, %v2968_v6  ;;  %v2451_v48 = vrot.slane %v2449_v58, 5  ;;  %v5709_v44 = vld [vmem:[%s6572_s12 + $0x8c] sm:$0x1]  ;;  %v6463_v6 = vld [vmem:[%s6572_s12 + $0x7c] sm:$0xf] }
 0x131   : > { %v2729_v50 = vpop.f32.mrf.mxu0  ;;  %v3050_v27 = vunpack.c.l.b16 %v2969_v57  ;;  %v1552_v30 = vrot.slane %v6463_v6, 5  ;;  %v2465_v35 = vshll.u32 %v5709_v44, 16  ;;  %v5783_v57 = vld [vmem:[%s6572_s12 + $0x84] sm:$0xe] }
 0x132   : > { %v2125_v7 = vadd.f32 %v2045_v45, %v1810_v40  ;;  %v2624_v45 = vunpack.c.l.b16 %v2434_v4  ;;  %v3051_v40 = vunpack.c.l.b16 %v2972_v26  ;;  %v2452_v58 = vor.u32 %v2451_v48, %v2448_v38  ;;  %v6464_v38 = vld [vmem:[%s6572_s12 + $0x80] sm:$0x1] }
 0x133   : > { %v3155_v14 = vpop.f32.mrf.mxu1  ;;  %v1554_v47 = vrot.slane %v1552_v30, 4  ;;  %v1555_v48 = vrot.slane %v6464_v38, 5  ;;  %v5799_v25 = vrot.slane %v5783_v57, 9 }
 0x134   : > { %v2807_v21 = vadd.f32 %v2727_v3, %v2125_v7  ;;  %v1423_v3 = vld [vmem:[%s6572_s12 + $0x78] sm:$0xe]  ;;  %v2647_v4 = vpack.c.b16 %v2625_v24, %v2624_v45  ;;  %v3073_v7 = vpack.c.b16 %v3051_v40, %v3050_v27  ;;  %v2453_v8 = vrot.slane %v2452_v58, 4  ;;  %v6411_v27 = vld [vmem:[%s8039_s4 + $0x10] sm:$0xff] }
 0x135   : > { %v2978_v45 = vrot.slane %v5709_v44, 5  ;;  %v5710_v40 = vld [vmem:[%s6572_s12 + $0x90] sm:$0xf]  ;;  %v2976_v0 = vsel %vm6924_vm5, %v5799_v25, %v2975_v2  ;;  %4988 = vmatpush.bf16.msra.mxu1 %v6411_v27  ;;  %v5712_v25 = vld [vmem:[%s6572_s12 + $0x98] sm:$0x1] }
 0x136   : > { %v7313_v60 = vadd.f32 %v3153_v55, %v2807_v21  ;;  %v6322_v55 = vld [vmem:[%s6572_s12 + $0x78] sm:$0xff]  ;;  %v3052_v57 = vunpack.c.l.b16 %v2976_v0 }
 0x137   : > { %v1732_v13 = vpop.f32.mrf.mxu2 }
 0x138   : > { %8049 = vst [vmem:[#allocation7_spill] sm:$0xff] %v7313_v60  ;;  %v2047_v49 = vpop.f32.mrf.mxu3  ;;  %v1811_v36 = vadd.f32 %v1732_v13, %v6981_v33  ;;  %v5479_v60 = vrot.slane %v1423_v3, 9  ;;  %v2467_v33 = vrot.slane %v2465_v35, 5  ;;  %v1556_v3 = vsel %vm6924_vm5, %v1554_v47, %v1555_v48 }
 0x139   : > { %v2732_v21 = vpop.f32.mrf.mxu0  ;;  %v2979_v35 = vsel %vm6924_vm5, %v2977_v53, %v2978_v45  ;;  %v2479_v47 = vshll.u32 %v7333_v32, 16 }
 0x13a   : > { %v2126_v26 = vadd.f32 %v2047_v49, %v1811_v36  ;;  %v2468_v58 = vsel %vm6605_vm2, %v2463_v59, %v2467_v33  ;;  %v2483_v36 = vshrl.u32 %v7333_v32, 16 }
 0x13b   : > { %v3158_v6 = vpop.f32.mrf.mxu1  ;;  %v2627_v2 = vunpack.c.l.b16 %v2468_v58 }
 0x13c   : > { %v2808_v46 = vadd.f32 %v2729_v50, %v2126_v26  ;;  %1774 = vmatmul.bf16.gmra.mxu2 %v1650_v12  ;;  %2771 = vmatmul.bf16.gmra.mxu0 %v2647_v4  ;;  %v1553_v50 = vsel %vm6924_vm5, %v5479_v60, %v1552_v30  ;;  %v2470_v60 = vshrl.u32 %v5710_v40, 16  ;;  %v2473_v30 = vshll.u32 %v5710_v40, 16 }
 0x13d   : > { %2089 = vmatmul.bf16.gmra.mxu3 %v6322_v55  ;;  %v1629_v55 = vunpack.c.l.b16 %v1553_v50  ;;  %v1630_v4 = vunpack.c.l.b16 %v1556_v3  ;;  %v3053_v26 = vunpack.c.l.b16 %v2979_v35  ;;  %v2485_v33 = vrot.slane %v2483_v36, 4 }
 0x13e   : > { %3197 = vmatmul.bf16.gmra.mxu1 %v3073_v7  ;;  %v7326_v24 = vadd.f32 %v3155_v14, %v2808_v46  ;;  %v2458_v14 = vsel %vm6605_vm2, %v2453_v8, %v7310_v16  ;;  %v2472_v38 = vrot.slane %v2470_v60, 4  ;;  %v2475_v48 = vrot.slane %v2473_v30, 5 }
 0x13f   : > { %v1735_v13 = vpop.f32.mrf.mxu2  ;;  %v2626_v59 = vunpack.c.l.b16 %v2458_v14  ;;  %v7351_v8 = vrot.slane %v2479_v47, 5  ;;  %v1651_v40 = vpack.c.b16 %v1630_v4, %v1629_v55  ;;  %v3074_v3 = vpack.c.b16 %v3053_v26, %v3052_v57  ;;  %v1424_v14 = vld [vmem:[%s6572_s12 + $0x84] sm:$0xe]  ;;  %v5713_v55 = vld [vmem:[%s6572_s12 + $0x9c] sm:$0xf] }
 0x140   : > { %v2050_v49 = vpop.f32.mrf.mxu3  ;;  %v1812_v44 = vadd.f32 %v1735_v13, %v7000_v10  ;;  %v2982_v30 = vrot.slane %v7333_v32, 5  ;;  %v5480_v36 = vrot.slane %v1424_v14, 9  ;;  %v7365_v4 = vld [vmem:[%s6572_s12 + $0xa0] sm:$0xf] }
 0x141   : > { %v2734_v12 = vpop.f32.mrf.mxu0  ;;  %v2648_v13 = vpack.c.b16 %v2627_v2, %v2626_v59  ;;  %v2486_v58 = vor.u32 %v2485_v33, %v7351_v8  ;;  %v6466_v59 = vld [vmem:[%s6572_s12 + $0x8c] sm:$0x1]  ;;  %v2985_v33 = vrot.slane %v5712_v25, 5 }
 0x142   : > { %v2127_v16 = vadd.f32 %v2050_v49, %v1812_v44  ;;  %v6465_v49 = vld [vmem:[%s6572_s12 + $0x88] sm:$0xf]  ;;  %v2476_v44 = vor.u32 %v2475_v48, %v2472_v38  ;;  %v2984_v32 = vrot.slane %v2982_v30, 4 }
 0x143   : > { %v3160_v10 = vpop.f32.mrf.mxu1  ;;  %v1559_v50 = vrot.slane %v6465_v49, 5  ;;  %v2487_v57 = vrot.slane %v2486_v58, 4 }
 0x144   : > { %v2809_v7 = vadd.f32 %v2732_v21, %v2127_v16  ;;  %v6323_v21 = vld [vmem:[%s6572_s12 + $0x84] sm:$0xff]  ;;  %v2477_v2 = vrot.slane %v2476_v44, 4 }
 0x145   : > { %v1561_v16 = vrot.slane %v1559_v50, 4 }
 0x146   : > { %v7353_v46 = vadd.f32 %v3158_v6, %v2809_v7  ;;  %v2489_v6 = vshll.u32 %v5712_v25, 16  ;;  %v1562_v7 = vrot.slane %v6466_v59, 5  ;;  %v1560_v25 = vsel %vm6924_vm5, %v5480_v36, %v1559_v50 }
 0x147   : > { %v1737_v53 = vpop.f32.mrf.mxu2  ;;  %v2482_v14 = vsel %vm6605_vm2, %v2477_v2, %v7351_v8  ;;  %v2986_v50 = vsel %vm6924_vm5, %v2984_v32, %v2985_v33  ;;  %v6386_v32 = vld [vmem:[%s8036_s1 + $0x208] sm:$0xff] }
 0x148   : > { %v2052_v45 = vpop.f32.mrf.mxu3  ;;  %v1813_v27 = vadd.f32 %v1737_v53, %v7024_v41  ;;  %v5784_v41 = vld [vmem:[%s6572_s12 + $0x90] sm:$0xe]  ;;  %v2491_v26 = vrot.slane %v2489_v6, 5  ;;  %v6378_v53 = vld [vmem:[%s8036_s1 + $0x1c8] sm:$0xff]  ;;  %v2628_v2 = vunpack.c.l.b16 %v2482_v14  ;;  %4573 = vmatpush.bf16.msra.mxu0 %v6386_v32  ;;  %v5785_v14 = vld [vmem:[%s6572_s12 + $0x9c] sm:$0xe] }
 0x149   : > { %v2737_v35 = vpop.f32.mrf.mxu0  ;;  %v5800_v48 = vrot.slane %v5784_v41, 9  ;;  %4147 = vmatpush.bf16.msra.mxu3 %v6378_v53  ;;  %v7415_v32 = vld [vmem:[%s6572_s12 + $0xac] sm:$0xf] }
 0x14a   : > { %v2128_v0 = vadd.f32 %v2052_v45, %v1813_v27 }
 0x14b   : > { %v3163_v60 = vpop.f32.mrf.mxu1 }
 0x14c   : > { %v2810_v47 = vadd.f32 %v2734_v12, %v2128_v0  ;;  %1779 = vmatmul.bf16.gmra.mxu2 %v1651_v40  ;;  %2776 = vmatmul.bf16.gmra.mxu0 %v2648_v13  ;;  %v6370_v12 = vld [vmem:[%s8036_s1 + $0x188] sm:$0xff]  ;;  %v2494_v40 = vshrl.u32 %v5713_v55, 16  ;;  %v2503_v13 = vshll.u32 %v7365_v4, 16  ;;  %v2492_v0 = vsel %vm6605_vm2, %v2487_v57, %v2491_v26 }
 0x14d   : > { %2094 = vmatmul.bf16.gmra.mxu3 %v6323_v21  ;;  %v2497_v21 = vshll.u32 %v5713_v55, 16  ;;  %3465 = vmatpush.bf16.msra.mxu2 %v6370_v12  ;;  %v1631_v55 = vunpack.c.l.b16 %v1560_v25  ;;  %v2629_v57 = vunpack.c.l.b16 %v2492_v0  ;;  %v3055_v12 = vunpack.c.l.b16 %v2986_v50 }
 0x14e   : > { %3202 = vmatmul.bf16.gmra.mxu1 %v3074_v3  ;;  %v7368_v38 = vadd.f32 %v3160_v10, %v2810_v47  ;;  %v2507_v10 = vshrl.u32 %v7365_v4, 16  ;;  %v1563_v3 = vsel %vm6924_vm5, %v1561_v16, %v1562_v7  ;;  %v2496_v41 = vrot.slane %v2494_v40, 4  ;;  %v5715_v7 = vld [vmem:[%s6572_s12 + $0xa4] sm:$0x1] }
 0x14f   : > { %v1740_v45 = vpop.f32.mrf.mxu2  ;;  %v2499_v47 = vrot.slane %v2497_v21, 5  ;;  %v7392_v36 = vrot.slane %v2503_v13, 5  ;;  %v1632_v59 = vunpack.c.l.b16 %v1563_v3  ;;  %v2513_v21 = vshll.u32 %v5715_v7, 16 }
 0x150   : > { %v2055_v27 = vpop.f32.mrf.mxu3  ;;  %v1814_v49 = vadd.f32 %v1740_v45, %v7033_v15  ;;  %v2983_v15 = vsel %vm6924_vm5, %v5800_v48, %v2982_v30  ;;  %v2509_v16 = vrot.slane %v2507_v10, 4  ;;  %v6467_v30 = vld [vmem:[%s6572_s12 + $0x94] sm:$0xf]  ;;  %v2649_v25 = vpack.c.b16 %v2629_v57, %v2628_v2 }
 0x151   : > { %v2739_v58 = vpop.f32.mrf.mxu0  ;;  %v3054_v26 = vunpack.c.l.b16 %v2983_v15  ;;  %v1566_v48 = vrot.slane %v6467_v30, 5  ;;  %v1652_v10 = vpack.c.b16 %v1632_v59, %v1631_v55  ;;  %v2992_v2 = vrot.slane %v5715_v7, 5 }
 0x152   : > { %v2129_v44 = vadd.f32 %v2055_v27, %v1814_v49  ;;  %v2500_v27 = vor.u32 %v2499_v47, %v2496_v41  ;;  %v2510_v40 = vor.u32 %v2509_v16, %v7392_v36  ;;  %v2989_v49 = vrot.slane %v7365_v4, 5  ;;  %v6468_v41 = vld [vmem:[%s6572_s12 + $0x98] sm:$0x1] }
 0x153   : > { %v3165_v6 = vpop.f32.mrf.mxu1  ;;  %v3075_v3 = vpack.c.b16 %v3055_v12, %v3054_v26  ;;  %v1569_v47 = vrot.slane %v6468_v41, 5  ;;  %v5801_v4 = vrot.slane %v5785_v14, 9  ;;  %v6410_v26 = vld [vmem:[%s8039_s4 + $0x8] sm:$0xff] }
 0x154   : > { %v2811_v8 = vadd.f32 %v2737_v35, %v2129_v44  ;;  %v1425_v35 = vld [vmem:[%s6572_s12 + $0x90] sm:$0xe]  ;;  %v2501_v16 = vrot.slane %v2500_v27, 4  ;;  %v2511_v30 = vrot.slane %v2510_v40, 4  ;;  %v2991_v59 = vrot.slane %v2989_v49, 4  ;;  %4989 = vmatpush.bf16.msra.mxu1 %v6410_v26 }
 0x155   : > { %v5481_v50 = vrot.slane %v1425_v35, 9  ;;  %v5716_v12 = vld [vmem:[%s6572_s12 + $0xa8] sm:$0xf]  ;;  %v2990_v40 = vsel %vm6924_vm5, %v5801_v4, %v2989_v49  ;;  %v5718_v4 = vld [vmem:[%s6572_s12 + $0xb0] sm:$0x1] }
 0x156   : > { %v7395_v53 = vadd.f32 %v3163_v60, %v2811_v8  ;;  %v6324_v60 = vld [vmem:[%s6572_s12 + $0x90] sm:$0xff]  ;;  %v1568_v8 = vrot.slane %v1566_v48, 4 }
 0x157   : > { %v1742_v33 = vpop.f32.mrf.mxu2 }
 0x158   : > { %v2057_v45 = vpop.f32.mrf.mxu3  ;;  %v1815_v13 = vadd.f32 %v1742_v33, %v7063_v61  ;;  %v2515_v61 = vrot.slane %v2513_v21, 5  ;;  %v1570_v35 = vsel %vm6924_vm5, %v1568_v8, %v1569_v47  ;;  %v2993_v21 = vsel %vm6924_vm5, %v2991_v59, %v2992_v2 }
 0x159   : > { %v2742_v0 = vpop.f32.mrf.mxu0  ;;  %v1634_v14 = vunpack.c.l.b16 %v1570_v35  ;;  %v3056_v8 = vunpack.c.l.b16 %v2990_v40  ;;  %v3057_v41 = vunpack.c.l.b16 %v2993_v21 }
 0x15a   : > { %v2130_v44 = vadd.f32 %v2057_v45, %v1815_v13  ;;  %v2516_v27 = vsel %vm6605_vm2, %v2511_v30, %v2515_v61  ;;  %v2521_v13 = vshll.u32 %v5716_v12, 16 }
 0x15b   : > { %v3168_v15 = vpop.f32.mrf.mxu1  ;;  %v2631_v49 = vunpack.c.l.b16 %v2516_v27  ;;  %v3076_v35 = vpack.c.b16 %v3057_v41, %v3056_v8 }
 0x15c   : > { %v2812_v55 = vadd.f32 %v2739_v58, %v2130_v44  ;;  %1784 = vmatmul.bf16.gmra.mxu2 %v1652_v10  ;;  %2781 = vmatmul.bf16.gmra.mxu0 %v2649_v25  ;;  %v1567_v58 = vsel %vm6924_vm5, %v5481_v50, %v1566_v48  ;;  %v2518_v48 = vshrl.u32 %v5716_v12, 16  ;;  %v2527_v10 = vshll.u32 %v7415_v32, 16 }
 0x15d   : > { %2099 = vmatmul.bf16.gmra.mxu3 %v6324_v60  ;;  %v2531_v60 = vshrl.u32 %v7415_v32, 16 }
 0x15e   : > { %3207 = vmatmul.bf16.gmra.mxu1 %v3075_v3  ;;  %v7408_v57 = vadd.f32 %v3165_v6, %v2812_v55  ;;  %v2506_v6 = vsel %vm6605_vm2, %v2501_v16, %v7392_v36  ;;  %v1633_v3 = vunpack.c.l.b16 %v1567_v58  ;;  %v2520_v47 = vrot.slane %v2518_v48, 4 }
 0x15f   : > { %v1745_v33 = vpop.f32.mrf.mxu2  ;;  %v2630_v44 = vunpack.c.l.b16 %v2506_v6  ;;  %v2523_v16 = vrot.slane %v2521_v13, 5  ;;  %v7433_v30 = vrot.slane %v2527_v10, 5  ;;  %v2533_v61 = vrot.slane %v2531_v60, 4  ;;  %v1426_v6 = vld [vmem:[%s6572_s12 + $0x9c] sm:$0xe] }
 0x160   : > { %v2060_v45 = vpop.f32.mrf.mxu3  ;;  %v1816_v7 = vadd.f32 %v1745_v33, %v7082_v39  ;;  %v1653_v12 = vpack.c.b16 %v1634_v14, %v1633_v3  ;;  %v2996_v13 = vrot.slane %v7415_v32, 5  ;;  %v5482_v60 = vrot.slane %v1426_v6, 9  ;;  %v5719_v3 = vld [vmem:[%s6572_s12 + $0xb4] sm:$0xf]  ;;  %v7447_v14 = vld [vmem:[%s6572_s12 + $0xb8] sm:$0xf] }
 0x161   : > { %v2744_v25 = vpop.f32.mrf.mxu0  ;;  %v2650_v33 = vpack.c.b16 %v2631_v49, %v2630_v44  ;;  %v2534_v27 = vor.u32 %v2533_v61, %v7433_v30  ;;  %v6470_v44 = vld [vmem:[%s6572_s12 + $0xa4] sm:$0x1]  ;;  %v2999_v61 = vrot.slane %v5718_v4, 5 }
 0x162   : > { %v2131_v36 = vadd.f32 %v2060_v45, %v1816_v7  ;;  %v6469_v45 = vld [vmem:[%s6572_s12 + $0xa0] sm:$0xf]  ;;  %v2524_v7 = vor.u32 %v2523_v16, %v2520_v47  ;;  %v2998_v32 = vrot.slane %v2996_v13, 4 }
 0x163   : > { %v3170_v39 = vpop.f32.mrf.mxu1  ;;  %v1573_v58 = vrot.slane %v6469_v45, 5  ;;  %v2535_v8 = vrot.slane %v2534_v27, 4 }
 0x164   : > { %v2813_v50 = vadd.f32 %v2742_v0, %v2131_v36  ;;  %v6325_v0 = vld [vmem:[%s6572_s12 + $0x9c] sm:$0xff]  ;;  %v2525_v49 = vrot.slane %v2524_v7, 4 }
 0x165   : > { %v1575_v36 = vrot.slane %v1573_v58, 4 }
 0x166   : > { %v7435_v55 = vadd.f32 %v3168_v15, %v2813_v50  ;;  %v2537_v15 = vshll.u32 %v5718_v4, 16  ;;  %v1576_v50 = vrot.slane %v6470_v44, 5  ;;  %v1574_v4 = vsel %vm6924_vm5, %v5482_v60, %v1573_v58 }
 0x167   : > { %v1747_v59 = vpop.f32.mrf.mxu2  ;;  %v2530_v6 = vsel %vm6605_vm2, %v2525_v49, %v7433_v30  ;;  %v3000_v58 = vsel %vm6924_vm5, %v2998_v32, %v2999_v61  ;;  %v6385_v32 = vld [vmem:[%s8036_s1 + $0x200] sm:$0xff] }
 0x168   : > { %v2062_v2 = vpop.f32.mrf.mxu3  ;;  %v1817_v26 = vadd.f32 %v1747_v59, %v7106_v11  ;;  %v5786_v11 = vld [vmem:[%s6572_s12 + $0xa8] sm:$0xe]  ;;  %v2539_v41 = vrot.slane %v2537_v15, 5  ;;  %v6377_v59 = vld [vmem:[%s8036_s1 + $0x1c0] sm:$0xff]  ;;  %v2632_v49 = vunpack.c.l.b16 %v2530_v6  ;;  %4574 = vmatpush.bf16.msra.mxu0 %v6385_v32  ;;  %v5787_v6 = vld [vmem:[%s6572_s12 + $0xb4] sm:$0xe] }
 0x169   : > { %v2747_v21 = vpop.f32.mrf.mxu0  ;;  %v5802_v16 = vrot.slane %v5786_v11, 9  ;;  %4148 = vmatpush.bf16.msra.mxu3 %v6377_v59  ;;  %v7497_v32 = vld [vmem:[%s6572_s12 + $0xc4] sm:$0xf] }
 0x16a   : > { %v2132_v40 = vadd.f32 %v2062_v2, %v1817_v26 }
 0x16b   : > { %v3173_v48 = vpop.f32.mrf.mxu1 }
 0x16c   : > { %v2814_v10 = vadd.f32 %v2744_v25, %v2132_v40  ;;  %1789 = vmatmul.bf16.gmra.mxu2 %v1653_v12  ;;  %2786 = vmatmul.bf16.gmra.mxu0 %v2650_v33  ;;  %v6369_v25 = vld [vmem:[%s8036_s1 + $0x180] sm:$0xff]  ;;  %v2542_v12 = vshrl.u32 %v5719_v3, 16  ;;  %v2551_v33 = vshll.u32 %v7447_v14, 16  ;;  %v2540_v40 = vsel %vm6605_vm2, %v2535_v8, %v2539_v41 }
 0x16d   : > { %2104 = vmatmul.bf16.gmra.mxu3 %v6325_v0  ;;  %v2545_v0 = vshll.u32 %v5719_v3, 16  ;;  %3466 = vmatpush.bf16.msra.mxu2 %v6369_v25  ;;  %v1635_v3 = vunpack.c.l.b16 %v1574_v4  ;;  %v2633_v8 = vunpack.c.l.b16 %v2540_v40  ;;  %v3059_v25 = vunpack.c.l.b16 %v3000_v58 }
 0x16e   : > { %3212 = vmatmul.bf16.gmra.mxu1 %v3076_v35  ;;  %v7450_v47 = vadd.f32 %v3170_v39, %v2814_v10  ;;  %v2555_v39 = vshrl.u32 %v7447_v14, 16  ;;  %v1577_v35 = vsel %vm6924_vm5, %v1575_v36, %v1576_v50  ;;  %v2544_v11 = vrot.slane %v2542_v12, 4  ;;  %v5721_v50 = vld [vmem:[%s6572_s12 + $0xbc] sm:$0x1] }
 0x16f   : > { %v1750_v2 = vpop.f32.mrf.mxu2  ;;  %v2547_v10 = vrot.slane %v2545_v0, 5  ;;  %v7474_v60 = vrot.slane %v2551_v33, 5  ;;  %v1636_v44 = vunpack.c.l.b16 %v1577_v35  ;;  %v2561_v0 = vshll.u32 %v5721_v50, 16 }
 0x170   : > { %v2065_v26 = vpop.f32.mrf.mxu3  ;;  %v1818_v45 = vadd.f32 %v1750_v2, %v7115_v52  ;;  %v2997_v52 = vsel %vm6924_vm5, %v5802_v16, %v2996_v13  ;;  %v2557_v36 = vrot.slane %v2555_v39, 4  ;;  %v6471_v13 = vld [vmem:[%s6572_s12 + $0xac] sm:$0xf]  ;;  %v2651_v4 = vpack.c.b16 %v2633_v8, %v2632_v49 }
 0x171   : > { %v2749_v27 = vpop.f32.mrf.mxu0  ;;  %v3058_v41 = vunpack.c.l.b16 %v2997_v52  ;;  %v1580_v16 = vrot.slane %v6471_v13, 5  ;;  %v1654_v39 = vpack.c.b16 %v1636_v44, %v1635_v3  ;;  %v3006_v49 = vrot.slane %v5721_v50, 5 }
 0x172   : > { %v2133_v7 = vadd.f32 %v2065_v26, %v1818_v45  ;;  %v2548_v26 = vor.u32 %v2547_v10, %v2544_v11  ;;  %v2558_v12 = vor.u32 %v2557_v36, %v7474_v60  ;;  %v3003_v45 = vrot.slane %v7447_v14, 5  ;;  %v6472_v11 = vld [vmem:[%s6572_s12 + $0xb0] sm:$0x1] }
 0x173   : > { %v3175_v15 = vpop.f32.mrf.mxu1  ;;  %v3077_v35 = vpack.c.b16 %v3059_v25, %v3058_v41  ;;  %v1583_v10 = vrot.slane %v6472_v11, 5  ;;  %v5803_v14 = vrot.slane %v5787_v6, 9  ;;  %v6409_v41 = vld [vmem:[%s8039_s4] sm:$0xff] }
 0x174   : > { %v2815_v30 = vadd.f32 %v2747_v21, %v2133_v7  ;;  %v1427_v21 = vld [vmem:[%s6572_s12 + $0xa8] sm:$0xe]  ;;  %v2549_v36 = vrot.slane %v2548_v26, 4  ;;  %v2559_v13 = vrot.slane %v2558_v12, 4  ;;  %v3005_v44 = vrot.slane %v3003_v45, 4  ;;  %4990 = vmatpush.bf16.msra.mxu1 %v6409_v41 }
 0x175   : > { %v5483_v58 = vrot.slane %v1427_v21, 9  ;;  %v5722_v25 = vld [vmem:[%s6572_s12 + $0xc0] sm:$0xf]  ;;  %v3004_v12 = vsel %vm6924_vm5, %v5803_v14, %v3003_v45  ;;  %v5724_v14 = vld [vmem:[%s6572_s12 + $0xc8] sm:$0x1] }
 0x176   : > { %v7477_v59 = vadd.f32 %v3173_v48, %v2815_v30  ;;  %v6326_v48 = vld [vmem:[%s6572_s12 + $0xa8] sm:$0xff]  ;;  %v1582_v30 = vrot.slane %v1580_v16, 4 }
 0x177   : > { %v1752_v61 = vpop.f32.mrf.mxu2 }
 0x178   : > { %v2067_v2 = vpop.f32.mrf.mxu3  ;;  %v1819_v33 = vadd.f32 %v1752_v61, %v7145_v37  ;;  %v2563_v37 = vrot.slane %v2561_v0, 5  ;;  %v1584_v21 = vsel %vm6924_vm5, %v1582_v30, %v1583_v10  ;;  %v3007_v0 = vsel %vm6924_vm5, %v3005_v44, %v3006_v49 }
 0x179   : > { %v2752_v40 = vpop.f32.mrf.mxu0  ;;  %v1638_v6 = vunpack.c.l.b16 %v1584_v21  ;;  %v3060_v30 = vunpack.c.l.b16 %v3004_v12  ;;  %v3061_v11 = vunpack.c.l.b16 %v3007_v0 }
 0x17a   : > { %v2134_v7 = vadd.f32 %v2067_v2, %v1819_v33  ;;  %v2564_v26 = vsel %vm6605_vm2, %v2559_v13, %v2563_v37  ;;  %v2569_v33 = vshll.u32 %v5722_v25, 16 }
 0x17b   : > { %v3178_v52 = vpop.f32.mrf.mxu1  ;;  %v2635_v45 = vunpack.c.l.b16 %v2564_v26  ;;  %v3078_v21 = vpack.c.b16 %v3061_v11, %v3060_v30 }
 0x17c   : > { %v2816_v3 = vadd.f32 %v2749_v27, %v2134_v7  ;;  %1794 = vmatmul.bf16.gmra.mxu2 %v1654_v39  ;;  %2791 = vmatmul.bf16.gmra.mxu0 %v2651_v4  ;;  %v1581_v27 = vsel %vm6924_vm5, %v5483_v58, %v1580_v16  ;;  %v2566_v16 = vshrl.u32 %v5722_v25, 16  ;;  %v2575_v39 = vshll.u32 %v7497_v32, 16 }
 0x17d   : > { %2109 = vmatmul.bf16.gmra.mxu3 %v6326_v48  ;;  %v2579_v48 = vshrl.u32 %v7497_v32, 16 }
 0x17e   : > { %3217 = vmatmul.bf16.gmra.mxu1 %v3077_v35  ;;  %v7490_v8 = vadd.f32 %v3175_v15, %v2816_v3  ;;  %v2554_v15 = vsel %vm6605_vm2, %v2549_v36, %v7474_v60  ;;  %v1637_v35 = vunpack.c.l.b16 %v1581_v27  ;;  %v2568_v10 = vrot.slane %v2566_v16, 4 }
 0x17f   : > { %v1755_v61 = vpop.f32.mrf.mxu2  ;;  %v2634_v7 = vunpack.c.l.b16 %v2554_v15  ;;  %v2571_v36 = vrot.slane %v2569_v33, 5  ;;  %v7515_v13 = vrot.slane %v2575_v39, 5  ;;  %v2581_v37 = vrot.slane %v2579_v48, 4  ;;  %v1428_v15 = vld [vmem:[%s6572_s12 + $0xb4] sm:$0xe] }
 0x180   : > { %v2070_v2 = vpop.f32.mrf.mxu3  ;;  %v1820_v50 = vadd.f32 %v1755_v61, %v7164_v20  ;;  %v1655_v25 = vpack.c.b16 %v1638_v6, %v1637_v35  ;;  %v3010_v33 = vrot.slane %v7497_v32, 5  ;;  %v5484_v48 = vrot.slane %v1428_v15, 9  ;;  %v5997_v35 = vld [vmem:[%s6572_s12 + $0x18] sm:$0xf]  ;;  %v7529_v6 = vld [vmem:[%s6572_s12 + $0x1c] sm:$0xf] }
 0x181   : > { %v2754_v4 = vpop.f32.mrf.mxu0  ;;  %v2652_v61 = vpack.c.b16 %v2635_v45, %v2634_v7  ;;  %v2582_v26 = vor.u32 %v2581_v37, %v7515_v13  ;;  %v6474_v7 = vld [vmem:[%s6572_s12 + $0xbc] sm:$0x1]  ;;  %v3013_v37 = vrot.slane %v5724_v14, 5 }
 0x182   : > { %v2135_v60 = vadd.f32 %v2070_v2, %v1820_v50  ;;  %v6473_v2 = vld [vmem:[%s6572_s12 + $0xb8] sm:$0xf]  ;;  %v2572_v50 = vor.u32 %v2571_v36, %v2568_v10  ;;  %v3012_v32 = vrot.slane %v3010_v33, 4 }
 0x183   : > { %v3180_v20 = vpop.f32.mrf.mxu1  ;;  %v1587_v27 = vrot.slane %v6473_v2, 5  ;;  %v2583_v30 = vrot.slane %v2582_v26, 4 }
 0x184   : > { %v2817_v58 = vadd.f32 %v2752_v40, %v2135_v60  ;;  %v6327_v40 = vld [vmem:[%s6572_s12 + $0xb4] sm:$0xff]  ;;  %v2573_v45 = vrot.slane %v2572_v50, 4 }
 0x185   : > { %v1589_v60 = vrot.slane %v1587_v27, 4  ;;  %v1588_v2 = vsel %vm6924_vm5, %v5484_v48, %v1587_v27  ;;  %v3014_v27 = vsel %vm6924_vm5, %v3012_v32, %v3013_v37 }
 0x186   : > { %v7517_v3 = vadd.f32 %v3178_v52, %v2817_v58  ;;  %v2585_v52 = vshll.u32 %v5724_v14, 16  ;;  %v1590_v58 = vrot.slane %v6474_v7, 5  ;;  %v2578_v14 = vsel %vm6605_vm2, %v2573_v45, %v7515_v13 }
 0x187   : > { %v1757_v44 = vpop.f32.mrf.mxu2  ;;  %v2636_v7 = vunpack.c.l.b16 %v2578_v14 }
 0x188   : > { %v2072_v49 = vpop.f32.mrf.mxu3  ;;  %v1821_v41 = vadd.f32 %v1757_v44, %v7188_v34  ;;  %v5788_v34 = vld [vmem:[%s6572_s12 + $0xc0] sm:$0xe]  ;;  %v2587_v11 = vrot.slane %v2585_v52, 5 }
 0x189   : > { %v2757_v0 = vpop.f32.mrf.mxu0  ;;  %v5804_v36 = vrot.slane %v5788_v34, 9 }
 0x18a   : > { %v2136_v12 = vadd.f32 %v2072_v49, %v1821_v41  ;;  %v3629_v49 = vshrl.u32 %v5997_v35, 16  ;;  %v3632_v41 = vshll.u32 %v5997_v35, 16  ;;  %v2588_v26 = vsel %vm6605_vm2, %v2583_v30, %v2587_v11  ;;  %v5999_v35 = vld [vmem:[%s6572_s12 + $0x20] sm:$0x1] }
 0x18b   : > { %v3183_v16 = vpop.f32.mrf.mxu1  ;;  %v3063_v30 = vunpack.c.l.b16 %v3014_v27  ;;  %v3648_v37 = vshll.u32 %v5999_v35, 16 }
 0x18c   : > { %v2818_v39 = vadd.f32 %v2754_v4, %v2136_v12  ;;  %1799 = vmatmul.bf16.gmra.mxu2 %v1655_v25  ;;  %2796 = vmatmul.bf16.gmra.mxu0 %v2652_v61  ;;  %v3638_v25 = vshll.u32 %v7529_v6, 16  ;;  %v3631_v52 = vrot.slane %v3629_v49, 4  ;;  %v3634_v12 = vrot.slane %v3632_v41, 5 }
 0x18d   : > { %2114 = vmatmul.bf16.gmra.mxu3 %v6327_v40  ;;  %v3642_v40 = vshrl.u32 %v7529_v6, 16  ;;  %v4328_v41 = vrot.slane %v7529_v6, 5 }
 0x18e   : > { %3222 = vmatmul.bf16.gmra.mxu1 %v3078_v21  ;;  %v7532_v10 = vadd.f32 %v3180_v20, %v2818_v39  ;;  %v1591_v20 = vsel %vm6924_vm5, %v1589_v60, %v1590_v58  ;;  %v3640_v34 = vrot.slane %v3638_v25, 5  ;;  %v1639_v60 = vunpack.c.l.b16 %v1588_v2 }
 0x18f   : > { %v1760_v4 = vpop.f32.mrf.mxu2  ;;  %v3644_v39 = vrot.slane %v3642_v40, 4  ;;  %v1640_v13 = vunpack.c.l.b16 %v1591_v20  ;;  %v2637_v58 = vunpack.c.l.b16 %v2588_v26  ;;  %v3650_v26 = vrot.slane %v3648_v37, 5 }
 0x190   : > { %v2075_v44 = vpop.f32.mrf.mxu3  ;;  %v1822_v61 = vadd.f32 %v1760_v4, %v7197_v23  ;;  %v3011_v23 = vsel %vm6924_vm5, %v5804_v36, %v3010_v33  ;;  %v3635_v4 = vor.u32 %v3634_v12, %v3631_v52  ;;  %v4331_v52 = vrot.slane %v5999_v35, 5  ;;  %v6000_v12 = vld [vmem:[%s6572_s12 + $0x24] sm:$0xf] }
 0x191   : > { %v2759_v15 = vpop.f32.mrf.mxu0  ;;  %v3062_v45 = vunpack.c.l.b16 %v3011_v23  ;;  %v3645_v32 = vor.u32 %v3644_v39, %v3640_v34  ;;  %v1656_v49 = vpack.c.b16 %v1640_v13, %v1639_v60  ;;  %v2653_v25 = vpack.c.b16 %v2637_v58, %v2636_v7  ;;  %v7561_v39 = vld [vmem:[%s6572_s12 + $0x28] sm:$0xf] }
 0x192   : > { %v2137_v21 = vadd.f32 %v2075_v44, %v1822_v61  ;;  %v6093_v61 = vld [vmem:[%s6572_s12 + $0x18] sm:$0xe]  ;;  %v3636_v14 = vrot.slane %v3635_v4, 4  ;;  %v3653_v58 = vshrl.u32 %v6000_v12, 16 }
 0x193   : > { %v3185_v50 = vpop.f32.mrf.mxu1  ;;  %v3079_v40 = vpack.c.b16 %v3063_v30, %v3062_v45  ;;  %v6109_v27 = vrot.slane %v6093_v61, 9  ;;  %v3656_v45 = vshll.u32 %v6000_v12, 16  ;;  %v3662_v30 = vshll.u32 %v7561_v39, 16 }
 0x194   : > { %v2819_v48 = vadd.f32 %v2757_v0, %v2137_v21  ;;  %v6328_v0 = vld [vmem:[%s6572_s12 + $0xc0] sm:$0xff]  ;;  %v3646_v21 = vrot.slane %v3645_v32, 4  ;;  %v3641_v13 = vsel %vm6605_vm2, %v3636_v14, %v3640_v34 }
 0x195   : > { %v4329_v35 = vsel %vm6924_vm5, %v6109_v27, %v4328_v41 }
 0x196   : > { %v7551_v11 = vadd.f32 %v3183_v16, %v2819_v48  ;;  %v3651_v7 = vsel %vm6605_vm2, %v3646_v21, %v3650_v26  ;;  %v6353_v26 = vld [vmem:[%s6572_s12 + $0x18] sm:$0xff] }
 0x197   : > { %v1762_v33 = vpop.f32.mrf.mxu2  ;;  %v4030_v37 = vunpack.c.l.b16 %v3651_v7  ;;  %v6094_v7 = vld [vmem:[%s6572_s12 + $0x24] sm:$0xe] }
 0x198   : > { %v2077_v36 = vpop.f32.mrf.mxu3  ;;  %v1823_v44 = vadd.f32 %v1762_v33, %v7227_v31  ;;  %v4330_v31 = vrot.slane %v4328_v41, 4  ;;  %v3666_v33 = vshrl.u32 %v7561_v39, 16  ;;  %v3658_v41 = vrot.slane %v3656_v45, 5 }
 0x199   : > { %v2762_v20 = vpop.f32.mrf.mxu0 }
 0x19a   : > { %v2138_v2 = vadd.f32 %v2077_v36, %v1823_v44  ;;  %v4455_v44 = vunpack.c.l.b16 %v4329_v35 }
 0x19b   : > { %v3188_v16 = vpop.f32.mrf.mxu1 }
 0x19c   : > { %v2820_v23 = vadd.f32 %v2759_v15, %v2138_v2  ;;  %1804 = vmatmul.bf16.gmra.mxu2 %v1656_v49  ;;  %2801 = vmatmul.bf16.gmra.mxu0 %v2653_v25  ;;  %v3664_v25 = vrot.slane %v3662_v30, 5  ;;  %v6002_v2 = vld [vmem:[%s6572_s12 + $0x2c] sm:$0x1] }
 0x19d   : > { %2119 = vmatmul.bf16.gmra.mxu3 %v6328_v0  ;;  %v3655_v0 = vrot.slane %v3653_v58, 4  ;;  %v3672_v12 = vshll.u32 %v6002_v2, 16 }
 0x19e   : > { %3227 = vmatmul.bf16.gmra.mxu1 %v3079_v40  ;;  %v7557_v6 = vadd.f32 %v3185_v50, %v2820_v23  ;;  %v4332_v50 = vsel %vm6924_vm5, %v4330_v31, %v4331_v52  ;;  %v3668_v40 = vrot.slane %v3666_v33, 4  ;;  %v6393_v31 = vld [vmem:[%s7580_s28] sm:$0xff] }
 0x19f   : > { %v1765_v48 = vpop.f32.mrf.mxu2  ;;  %v4456_v49 = vunpack.c.l.b16 %v4332_v50  ;;  %v6003_v50 = vld [vmem:[%s6572_s12 + $0x30] sm:$0xf]  ;;  %v3674_v30 = vrot.slane %v3672_v12, 5  ;;  %v6005_v12 = vld [vmem:[%s6572_s12 + $0x38] sm:$0x1] }
 0x1a0   : > { %v2080_v60 = vpop.f32.mrf.mxu3  ;;  %v1824_v15 = vadd.f32 %v1765_v48, %v7243_v54  ;;  %v4029_v54 = vunpack.c.l.b16 %v3641_v13  ;;  %v3669_v52 = vor.u32 %v3668_v40, %v3664_v25 }
 0x1a1   : > { %v2764_v34 = vpop.f32.mrf.mxu0  ;;  %v4487_v27 = vpack.c.b16 %v4456_v49, %v4455_v44  ;;  %v3680_v49 = vshll.u32 %v6003_v50, 16 }
 0x1a2   : > { %v2139_v36 = vadd.f32 %v2080_v60, %v1824_v15  ;;  %v4061_v23 = vpack.c.b16 %v4030_v37, %v4029_v54  ;;  %v4335_v15 = vrot.slane %v7561_v39, 5  ;;  %v3670_v45 = vrot.slane %v3669_v52, 4 }
 0x1a3   : > { %v3190_v4 = vpop.f32.mrf.mxu1  ;;  %v3677_v39 = vshrl.u32 %v6003_v50, 16 }
 0x1a4   : > { %v2821_v32 = vadd.f32 %v2762_v20, %v2139_v36  ;;  %v6110_v36 = vrot.slane %v6094_v7, 9  ;;  %v4337_v54 = vrot.slane %v4335_v15, 4 }
 0x1a6   : > { %v7575_v61 = vadd.f32 %v3188_v16, %v2821_v32  ;;  %v3659_v16 = vor.u32 %v3658_v41, %v3655_v0  ;;  %v4338_v32 = vrot.slane %v6002_v2, 5 }
 0x1a7   : > { %v1767_v14 = vpop.f32.mrf.mxu2 }
 0x1a8   : > { %v2082_v21 = vpop.f32.mrf.mxu3  ;;  %v1825_v20 = vadd.f32 %v1767_v14, %v7270_v18  ;;  %v7590_v18 = vld [vmem:[%s6572_s12 + $0x34] sm:$0xf]  ;;  %v3660_v58 = vrot.slane %v3659_v16, 4 }
 0x1a9   : > { %v2767_v60 = vpop.f32.mrf.mxu0  ;;  %v3690_v0 = vshrl.u32 %v7590_v18, 16 }
 0x1aa   : > { %v2140_v48 = vadd.f32 %v2082_v21, %v1825_v20  ;;  %v3665_v40 = vsel %vm6605_vm2, %v3660_v58, %v3664_v25  ;;  %v4336_v20 = vsel %vm6924_vm5, %v6110_v36, %v4335_v15 }
 0x1ab   : > { %v3193_v13 = vpop.f32.mrf.mxu1  ;;  %v4031_v52 = vunpack.c.l.b16 %v3665_v40 }
 0x1ac   : > { %v2822_v35 = vadd.f32 %v2764_v34, %v2140_v48  ;;  %3467 = vmatmul.bf16.vlgmr.msra.gmra.mxu2 %v6353_v26  ;;  %4575 = vmatmul.bf16.vlgmr.msra.gmra.mxu0 %v4487_v27  ;;  %v3686_v34 = vshll.u32 %v7590_v18, 16  ;;  %v4339_v26 = vsel %vm6924_vm5, %v4337_v54, %v4338_v32  ;;  %v3682_v27 = vrot.slane %v3680_v49, 5  ;;  %v6354_v54 = vld [vmem:[%s6572_s12 + $0x24] sm:$0xff] }
 0x1ad   : > { %4149 = vmatmul.bf16.vlgmr.msra.gmra.mxu3 %v4061_v23  ;;  %v3679_v23 = vrot.slane %v3677_v39, 4  ;;  %v4457_v48 = vunpack.c.l.b16 %v4336_v20  ;;  %v4458_v7 = vunpack.c.l.b16 %v4339_v26  ;;  %v6095_v39 = vld [vmem:[%s6572_s12 + $0x30] sm:$0xe]  ;;  %v4345_v20 = vrot.slane %v6005_v12, 5  ;;  %v6006_v26 = vld [vmem:[%s6572_s12 + $0x3c] sm:$0xf] }
 0x1ae   : > { %4991 = vmatmul.bf16.vlgmr.msra.gmra.mxu1 %v6393_v31  ;;  %v7592_v33 = vadd.f32 %v3190_v4, %v2822_v35  ;;  %v3675_v4 = vsel %vm6605_vm2, %v3670_v45, %v3674_v30  ;;  %v3688_v31 = vrot.slane %v3686_v34, 5  ;;  %v3696_v30 = vshll.u32 %v6005_v12, 16 }
 0x1af   : > { %v1770_v37 = vpop.f32.mrf.mxu2  ;;  %v4032_v25 = vunpack.c.l.b16 %v3675_v4  ;;  %v3683_v58 = vor.u32 %v3682_v27, %v3679_v23  ;;  %v7617_v23 = vld [vmem:[%s6572_s12 + $0x40] sm:$0xf]  ;;  %v3701_v12 = vshrl.u32 %v6006_v26, 16 }
 0x1b0   : > { %v2085_v44 = vpop.f32.mrf.mxu3  ;;  %v1826_v41 = vadd.f32 %v1770_v37, %v6967_v19  ;;  %v3692_v19 = vrot.slane %v3690_v0, 4  ;;  %v4488_v37 = vpack.c.b16 %v4458_v7, %v4457_v48  ;;  %v3698_v40 = vrot.slane %v3696_v30, 5 }
 0x1b1   : > { %v2769_v21 = vpop.f32.mrf.mxu0  ;;  %v4062_v32 = vpack.c.b16 %v4032_v25, %v4031_v52  ;;  %v3684_v0 = vrot.slane %v3683_v58, 4  ;;  %v3704_v48 = vshll.u32 %v6006_v26, 16  ;;  %v3710_v7 = vshll.u32 %v7617_v23, 16 }
 0x1b2   : > { %v2141_v14 = vadd.f32 %v2085_v44, %v1826_v41  ;;  %v3693_v45 = vor.u32 %v3692_v19, %v3688_v31  ;;  %v6394_v44 = vld [vmem:[%s7580_s28 + $0x8] sm:$0xff] }
 0x1b3   : > { %v3195_v2 = vpop.f32.mrf.mxu1 }
 0x1b4   : > { %v2823_v16 = vadd.f32 %v2767_v60, %v2141_v14  ;;  %v4342_v60 = vrot.slane %v7590_v18, 5  ;;  %v3694_v41 = vrot.slane %v3693_v45, 4  ;;  %v6111_v14 = vrot.slane %v6095_v39, 9 }
 0x1b6   : > { %v7606_v35 = vadd.f32 %v3193_v13, %v2823_v16  ;;  %v3689_v16 = vsel %vm6605_vm2, %v3684_v0, %v3688_v31  ;;  %v4343_v25 = vsel %vm6924_vm5, %v6111_v14, %v4342_v60 }
 0x1b7   : > { %v1772_v50 = vpop.f32.mrf.mxu2  ;;  %v4033_v58 = vunpack.c.l.b16 %v3689_v16 }
 0x1b8   : > { %v2087_v15 = vpop.f32.mrf.mxu3  ;;  %v1827_v36 = vadd.f32 %v1772_v50, %v6992_v56  ;;  %v4344_v56 = vrot.slane %v4342_v60, 4  ;;  %v3714_v50 = vshrl.u32 %v7617_v23, 16  ;;  %v3706_v60 = vrot.slane %v3704_v48, 5 }
 0x1b9   : > { %v2772_v34 = vpop.f32.mrf.mxu0 }
 0x1ba   : > { %v2142_v49 = vadd.f32 %v2087_v15, %v1827_v36  ;;  %v4459_v36 = vunpack.c.l.b16 %v4343_v25 }
 0x1bb   : > { %v3198_v13 = vpop.f32.mrf.mxu1 }
 0x1bc   : > { %v2824_v4 = vadd.f32 %v2769_v21, %v2142_v49  ;;  %3472 = vmatmul.bf16.gmra.mxu2 %v6354_v54  ;;  %4580 = vmatmul.bf16.gmra.mxu0 %v4488_v37  ;;  %v3699_v21 = vsel %vm6605_vm2, %v3694_v41, %v3698_v40  ;;  %v3712_v37 = vrot.slane %v3710_v7, 5  ;;  %v6008_v49 = vld [vmem:[%s6572_s12 + $0x44] sm:$0x1] }
 0x1bd   : > { %4154 = vmatmul.bf16.gmra.mxu3 %v4062_v32  ;;  %v4034_v30 = vunpack.c.l.b16 %v3699_v21  ;;  %v3703_v32 = vrot.slane %v3701_v12, 4  ;;  %v6096_v21 = vld [vmem:[%s6572_s12 + $0x3c] sm:$0xe] }
 0x1be   : > { %4996 = vmatmul.bf16.gmra.mxu1 %v6394_v44  ;;  %v7613_v18 = vadd.f32 %v3195_v2, %v2824_v4  ;;  %v4346_v2 = vsel %vm6924_vm5, %v4344_v56, %v4345_v20  ;;  %v3716_v44 = vrot.slane %v3714_v50, 4  ;;  %v6355_v4 = vld [vmem:[%s6572_s12 + $0x30] sm:$0xff] }
 0x1bf   : > { %v1775_v27 = vpop.f32.mrf.mxu2  ;;  %v4460_v54 = vunpack.c.l.b16 %v4346_v2  ;;  %v6395_v56 = vld [vmem:[%s7580_s28 + $0x10] sm:$0xff]  ;;  %v3707_v20 = vor.u32 %v3706_v60, %v3703_v32  ;;  %v6009_v2 = vld [vmem:[%s6572_s12 + $0x48] sm:$0xf] }
 0x1c0   : > { %v2090_v19 = vpop.f32.mrf.mxu3  ;;  %v1828_v52 = vadd.f32 %v1775_v27, %v7014_v29  ;;  %v3717_v26 = vor.u32 %v3716_v44, %v3712_v37  ;;  %v3720_v27 = vshll.u32 %v6008_v49, 16 }
 0x1c1   : > { %v2774_v31 = vpop.f32.mrf.mxu0  ;;  %v4489_v14 = vpack.c.b16 %v4460_v54, %v4459_v36  ;;  %v3708_v12 = vrot.slane %v3707_v20, 4  ;;  %v3728_v54 = vshll.u32 %v6009_v2, 16 }
 0x1c2   : > { %v2143_v15 = vadd.f32 %v2090_v19, %v1828_v52  ;;  %v3718_v48 = vrot.slane %v3717_v26, 4  ;;  %v3722_v7 = vrot.slane %v3720_v27, 5  ;;  %v6011_v27 = vld [vmem:[%s6572_s12 + $0x50] sm:$0x1] }
 0x1c3   : > { %v3200_v29 = vpop.f32.mrf.mxu1  ;;  %v3713_v44 = vsel %vm6605_vm2, %v3708_v12, %v3712_v37 }
 0x1c4   : > { %v2825_v45 = vadd.f32 %v2772_v34, %v2143_v15  ;;  %v4063_v34 = vpack.c.b16 %v4034_v30, %v4033_v58  ;;  %v6112_v15 = vrot.slane %v6096_v21, 9  ;;  %v4035_v26 = vunpack.c.l.b16 %v3713_v44 }
 0x1c6   : > { %v7630_v39 = vadd.f32 %v3198_v13, %v2825_v45  ;;  %v4349_v13 = vrot.slane %v7617_v23, 5  ;;  %v4352_v45 = vrot.slane %v6008_v49, 5  ;;  %v3725_v23 = vshrl.u32 %v6009_v2, 16 }
 0x1c7   : > { %v1777_v0 = vpop.f32.mrf.mxu2 }
 0x1c8   : > { %v2092_v41 = vpop.f32.mrf.mxu3  ;;  %v1829_v40 = vadd.f32 %v1777_v0, %v7027_v1  ;;  %v7640_v1 = vld [vmem:[%s6572_s12 + $0x4c] sm:$0xf]  ;;  %v4351_v58 = vrot.slane %v4349_v13, 4 }
 0x1c9   : > { %v2777_v16 = vpop.f32.mrf.mxu0  ;;  %v3738_v32 = vshrl.u32 %v7640_v1, 16 }
 0x1ca   : > { %v2144_v19 = vadd.f32 %v2092_v41, %v1829_v40  ;;  %v4350_v40 = vsel %vm6924_vm5, %v6112_v15, %v4349_v13 }
 0x1cb   : > { %v3203_v52 = vpop.f32.mrf.mxu1 }
 0x1cc   : > { %v2826_v25 = vadd.f32 %v2774_v31, %v2144_v19  ;;  %3477 = vmatmul.bf16.gmra.mxu2 %v6355_v4  ;;  %4585 = vmatmul.bf16.gmra.mxu0 %v4489_v14  ;;  %v3734_v31 = vshll.u32 %v7640_v1, 16  ;;  %v4353_v4 = vsel %vm6924_vm5, %v4351_v58, %v4352_v45  ;;  %v3730_v14 = vrot.slane %v3728_v54, 5  ;;  %v6356_v58 = vld [vmem:[%s6572_s12 + $0x3c] sm:$0xff] }
 0x1cd   : > { %4159 = vmatmul.bf16.gmra.mxu3 %v4063_v34  ;;  %v3727_v34 = vrot.slane %v3725_v23, 4  ;;  %v4461_v19 = vunpack.c.l.b16 %v4350_v40  ;;  %v4462_v21 = vunpack.c.l.b16 %v4353_v4  ;;  %v6097_v23 = vld [vmem:[%s6572_s12 + $0x48] sm:$0xe]  ;;  %v4359_v40 = vrot.slane %v6011_v27, 5  ;;  %v6012_v4 = vld [vmem:[%s6572_s12 + $0x54] sm:$0xf] }
 0x1ce   : > { %5001 = vmatmul.bf16.gmra.mxu1 %v6395_v56  ;;  %v7642_v50 = vadd.f32 %v3200_v29, %v2826_v25  ;;  %v3723_v29 = vsel %vm6605_vm2, %v3718_v48, %v3722_v7  ;;  %v3736_v56 = vrot.slane %v3734_v31, 5  ;;  %v3744_v7 = vshll.u32 %v6011_v27, 16 }
 0x1cf   : > { %v1780_v30 = vpop.f32.mrf.mxu2  ;;  %v4036_v37 = vunpack.c.l.b16 %v3723_v29  ;;  %v3731_v12 = vor.u32 %v3730_v14, %v3727_v34  ;;  %v7667_v34 = vld [vmem:[%s6572_s12 + $0x58] sm:$0xf]  ;;  %v3749_v27 = vshrl.u32 %v6012_v4, 16 }
 0x1d0   : > { %v2095_v36 = vpop.f32.mrf.mxu3  ;;  %v1830_v60 = vadd.f32 %v1780_v30, %v7049_v9  ;;  %v3740_v9 = vrot.slane %v3738_v32, 4  ;;  %v4490_v30 = vpack.c.b16 %v4462_v21, %v4461_v19  ;;  %v3746_v44 = vrot.slane %v3744_v7, 5 }
 0x1d1   : > { %v2779_v41 = vpop.f32.mrf.mxu0  ;;  %v4064_v45 = vpack.c.b16 %v4036_v37, %v4035_v26  ;;  %v3732_v32 = vrot.slane %v3731_v12, 4  ;;  %v3752_v19 = vshll.u32 %v6012_v4, 16  ;;  %v3758_v21 = vshll.u32 %v7667_v34, 16 }
 0x1d2   : > { %v2145_v0 = vadd.f32 %v2095_v36, %v1830_v60  ;;  %v3741_v48 = vor.u32 %v3740_v9, %v3736_v56  ;;  %v6396_v36 = vld [vmem:[%s7580_s28 + $0x18] sm:$0xff] }
 0x1d3   : > { %v3205_v49 = vpop.f32.mrf.mxu1 }
 0x1d4   : > { %v2827_v20 = vadd.f32 %v2777_v16, %v2145_v0  ;;  %v4356_v16 = vrot.slane %v7640_v1, 5  ;;  %v3742_v60 = vrot.slane %v3741_v48, 4  ;;  %v6113_v0 = vrot.slane %v6097_v23, 9 }
 0x1d6   : > { %v7656_v25 = vadd.f32 %v3203_v52, %v2827_v20  ;;  %v3737_v20 = vsel %vm6605_vm2, %v3732_v32, %v3736_v56  ;;  %v4357_v37 = vsel %vm6924_vm5, %v6113_v0, %v4356_v16 }
 0x1d7   : > { %v1782_v2 = vpop.f32.mrf.mxu2  ;;  %v4037_v12 = vunpack.c.l.b16 %v3737_v20 }
 0x1d8   : > { %v2097_v13 = vpop.f32.mrf.mxu3  ;;  %v1831_v15 = vadd.f32 %v1782_v2, %v7074_v22  ;;  %v4358_v22 = vrot.slane %v4356_v16, 4  ;;  %v3762_v2 = vshrl.u32 %v7667_v34, 16  ;;  %v3754_v16 = vrot.slane %v3752_v19, 5 }
 0x1d9   : > { %v2782_v31 = vpop.f32.mrf.mxu0 }
 0x1da   : > { %v2146_v54 = vadd.f32 %v2097_v13, %v1831_v15  ;;  %v4463_v15 = vunpack.c.l.b16 %v4357_v37 }
 0x1db   : > { %v3208_v52 = vpop.f32.mrf.mxu1 }
 0x1dc   : > { %v2828_v29 = vadd.f32 %v2779_v41, %v2146_v54  ;;  %3482 = vmatmul.bf16.gmra.mxu2 %v6356_v58  ;;  %4590 = vmatmul.bf16.gmra.mxu0 %v4490_v30  ;;  %v3747_v41 = vsel %vm6605_vm2, %v3742_v60, %v3746_v44  ;;  %v3760_v30 = vrot.slane %v3758_v21, 5  ;;  %v6014_v54 = vld [vmem:[%s6572_s12 + $0x5c] sm:$0x1] }
 0x1dd   : > { %4164 = vmatmul.bf16.gmra.mxu3 %v4064_v45  ;;  %v4038_v7 = vunpack.c.l.b16 %v3747_v41  ;;  %v3751_v45 = vrot.slane %v3749_v27, 4  ;;  %v6098_v41 = vld [vmem:[%s6572_s12 + $0x54] sm:$0xe] }
 0x1de   : > { %5006 = vmatmul.bf16.gmra.mxu1 %v6396_v36  ;;  %v7663_v1 = vadd.f32 %v3205_v49, %v2828_v29  ;;  %v4360_v49 = vsel %vm6924_vm5, %v4358_v22, %v4359_v40  ;;  %v3764_v36 = vrot.slane %v3762_v2, 4  ;;  %v6357_v29 = vld [vmem:[%s6572_s12 + $0x48] sm:$0xff]  ;;  %v6397_v22 = vld [vmem:[%s7580_s28 + $0x20] sm:$0xff] }
 0x1df   : > { %v1785_v14 = vpop.f32.mrf.mxu2  ;;  %v4464_v58 = vunpack.c.l.b16 %v4360_v49  ;;  %v3755_v40 = vor.u32 %v3754_v16, %v3751_v45  ;;  %v6015_v49 = vld [vmem:[%s6572_s12 + $0x60] sm:$0xf] }
 0x1e0   : > { %v2100_v9 = vpop.f32.mrf.mxu3  ;;  %v1832_v26 = vadd.f32 %v1785_v14, %v7096_v62  ;;  %v3765_v4 = vor.u32 %v3764_v36, %v3760_v30  ;;  %v3768_v14 = vshll.u32 %v6014_v54, 16 }
 0x1e1   : > { %v2784_v56 = vpop.f32.mrf.mxu0  ;;  %v4491_v0 = vpack.c.b16 %v4464_v58, %v4463_v15  ;;  %v3756_v27 = vrot.slane %v3755_v40, 4  ;;  %v3776_v58 = vshll.u32 %v6015_v49, 16 }
 0x1e2   : > { %v2147_v13 = vadd.f32 %v2100_v9, %v1832_v26  ;;  %v3766_v19 = vrot.slane %v3765_v4, 4  ;;  %v3770_v21 = vrot.slane %v3768_v14, 5  ;;  %v6017_v14 = vld [vmem:[%s6572_s12 + $0x68] sm:$0x1] }
 0x1e3   : > { %v3210_v62 = vpop.f32.mrf.mxu1  ;;  %v3761_v36 = vsel %vm6605_vm2, %v3756_v27, %v3760_v30 }
 0x1e4   : > { %v2829_v48 = vadd.f32 %v2782_v31, %v2147_v13  ;;  %v4065_v31 = vpack.c.b16 %v4038_v7, %v4037_v12  ;;  %v6114_v13 = vrot.slane %v6098_v41, 9  ;;  %v4039_v4 = vunpack.c.l.b16 %v3761_v36 }
 0x1e6   : > { %v7680_v23 = vadd.f32 %v3208_v52, %v2829_v48  ;;  %v4363_v52 = vrot.slane %v7667_v34, 5  ;;  %v4366_v48 = vrot.slane %v6014_v54, 5  ;;  %v3773_v34 = vshrl.u32 %v6015_v49, 16 }
 0x1e7   : > { %v1787_v32 = vpop.f32.mrf.mxu2 }
 0x1e8   : > { %v2102_v60 = vpop.f32.mrf.mxu3  ;;  %v1833_v44 = vadd.f32 %v1787_v32, %v7109_v28  ;;  %v7690_v28 = vld [vmem:[%s6572_s12 + $0x64] sm:$0xf]  ;;  %v4365_v12 = vrot.slane %v4363_v52, 4 }
 0x1e9   : > { %v2787_v20 = vpop.f32.mrf.mxu0  ;;  %v3786_v45 = vshrl.u32 %v7690_v28, 16 }
 0x1ea   : > { %v2148_v9 = vadd.f32 %v2102_v60, %v1833_v44  ;;  %v4364_v44 = vsel %vm6924_vm5, %v6114_v13, %v4363_v52 }
 0x1eb   : > { %v3213_v26 = vpop.f32.mrf.mxu1 }
 0x1ec   : > { %v2830_v37 = vadd.f32 %v2784_v56, %v2148_v9  ;;  %3487 = vmatmul.bf16.gmra.mxu2 %v6357_v29  ;;  %4595 = vmatmul.bf16.gmra.mxu0 %v4491_v0  ;;  %v3782_v56 = vshll.u32 %v7690_v28, 16  ;;  %v4367_v29 = vsel %vm6924_vm5, %v4365_v12, %v4366_v48  ;;  %v3778_v0 = vrot.slane %v3776_v58, 5  ;;  %v6358_v12 = vld [vmem:[%s6572_s12 + $0x54] sm:$0xff] }
 0x1ed   : > { %4169 = vmatmul.bf16.gmra.mxu3 %v4065_v31  ;;  %v3775_v31 = vrot.slane %v3773_v34, 4  ;;  %v4465_v9 = vunpack.c.l.b16 %v4364_v44  ;;  %v4466_v41 = vunpack.c.l.b16 %v4367_v29  ;;  %v6099_v34 = vld [vmem:[%s6572_s12 + $0x60] sm:$0xe]  ;;  %v4373_v44 = vrot.slane %v6017_v14, 5  ;;  %v6018_v29 = vld [vmem:[%s6572_s12 + $0x6c] sm:$0xf] }
 0x1ee   : > { %5011 = vmatmul.bf16.gmra.mxu1 %v6397_v22  ;;  %v7692_v2 = vadd.f32 %v3210_v62, %v2830_v37  ;;  %v3771_v62 = vsel %vm6605_vm2, %v3766_v19, %v3770_v21  ;;  %v3784_v22 = vrot.slane %v3782_v56, 5  ;;  %v3792_v21 = vshll.u32 %v6017_v14, 16 }
 0x1ef   : > { %v1790_v7 = vpop.f32.mrf.mxu2  ;;  %v4040_v30 = vunpack.c.l.b16 %v3771_v62  ;;  %v3779_v27 = vor.u32 %v3778_v0, %v3775_v31  ;;  %v7717_v31 = vld [vmem:[%s6572_s12 + $0x70] sm:$0xf]  ;;  %v3797_v14 = vshrl.u32 %v6018_v29, 16 }
 0x1f0   : > { %v2105_v15 = vpop.f32.mrf.mxu3  ;;  %v1834_v16 = vadd.f32 %v1790_v7, %v7131_v63  ;;  %v3788_v63 = vrot.slane %v3786_v45, 4  ;;  %v4492_v7 = vpack.c.b16 %v4466_v41, %v4465_v9  ;;  %v3794_v36 = vrot.slane %v3792_v21, 5 }
 0x1f1   : > { %v2789_v60 = vpop.f32.mrf.mxu0  ;;  %v4066_v48 = vpack.c.b16 %v4040_v30, %v4039_v4  ;;  %v3780_v45 = vrot.slane %v3779_v27, 4  ;;  %v3800_v9 = vshll.u32 %v6018_v29, 16  ;;  %v3806_v41 = vshll.u32 %v7717_v31, 16 }
 0x1f2   : > { %v2149_v32 = vadd.f32 %v2105_v15, %v1834_v16  ;;  %v3789_v19 = vor.u32 %v3788_v63, %v3784_v22  ;;  %v6398_v15 = vld [vmem:[%s7580_s28 + $0x28] sm:$0xff] }
 0x1f3   : > { %v3215_v54 = vpop.f32.mrf.mxu1 }
 0x1f4   : > { %v2831_v40 = vadd.f32 %v2787_v20, %v2149_v32  ;;  %v4370_v20 = vrot.slane %v7690_v28, 5  ;;  %v3790_v16 = vrot.slane %v3789_v19, 4  ;;  %v6115_v32 = vrot.slane %v6099_v34, 9 }
 0x1f6   : > { %v7706_v37 = vadd.f32 %v3213_v26, %v2831_v40  ;;  %v3785_v40 = vsel %vm6605_vm2, %v3780_v45, %v3784_v22  ;;  %v4371_v30 = vsel %vm6924_vm5, %v6115_v32, %v4370_v20 }
 0x1f7   : > { %v1792_v49 = vpop.f32.mrf.mxu2  ;;  %v4041_v27 = vunpack.c.l.b16 %v3785_v40 }
 0x1f8   : > { %v2107_v52 = vpop.f32.mrf.mxu3  ;;  %v1835_v13 = vadd.f32 %v1792_v49, %v7156_v51  ;;  %v4372_v51 = vrot.slane %v4370_v20, 4  ;;  %v3810_v49 = vshrl.u32 %v7717_v31, 16  ;;  %v3802_v20 = vrot.slane %v3800_v9, 5 }
 0x1f9   : > { %v2792_v56 = vpop.f32.mrf.mxu0 }
 0x1fa   : > { %v2150_v58 = vadd.f32 %v2107_v52, %v1835_v13  ;;  %v4467_v13 = vunpack.c.l.b16 %v4371_v30 }
 0x1fb   : > { %v3218_v26 = vpop.f32.mrf.mxu1 }
 0x1fc   : > { %v2832_v62 = vadd.f32 %v2789_v60, %v2150_v58  ;;  %3492 = vmatmul.bf16.gmra.mxu2 %v6358_v12  ;;  %4600 = vmatmul.bf16.gmra.mxu0 %v4492_v7  ;;  %v3795_v60 = vsel %vm6605_vm2, %v3790_v16, %v3794_v36  ;;  %v3808_v7 = vrot.slane %v3806_v41, 5  ;;  %v6020_v58 = vld [vmem:[%s6572_s12 + $0x74] sm:$0x1] }
 0x1fd   : > { %4174 = vmatmul.bf16.gmra.mxu3 %v4066_v48  ;;  %v4042_v21 = vunpack.c.l.b16 %v3795_v60  ;;  %v3799_v48 = vrot.slane %v3797_v14, 4  ;;  %v6100_v60 = vld [vmem:[%s6572_s12 + $0x6c] sm:$0xe] }
 0x1fe   : > { %5016 = vmatmul.bf16.gmra.mxu1 %v6398_v15  ;;  %v7713_v28 = vadd.f32 %v3215_v54, %v2832_v62  ;;  %v4374_v54 = vsel %vm6924_vm5, %v4372_v51, %v4373_v44  ;;  %v3812_v15 = vrot.slane %v3810_v49, 4  ;;  %v6359_v62 = vld [vmem:[%s6572_s12 + $0x60] sm:$0xff]  ;;  %v6399_v51 = vld [vmem:[%s7580_s28 + $0x30] sm:$0xff] }
 0x1ff   : > { %v1795_v0 = vpop.f32.mrf.mxu2  ;;  %v4468_v12 = vunpack.c.l.b16 %v4374_v54  ;;  %v3803_v44 = vor.u32 %v3802_v20, %v3799_v48  ;;  %v6021_v54 = vld [vmem:[%s6572_s12 + $0x78] sm:$0xf]  ;;  %v8050_v20 = vld [vmem:[#allocation3_spill] sm:$0xff] }
 0x200   : > { %v2110_v63 = vpop.f32.mrf.mxu3  ;;  %v1836_v4 = vadd.f32 %v1795_v0, %v7178_v43  ;;  %v3813_v29 = vor.u32 %v3812_v15, %v3808_v7  ;;  %v3816_v0 = vshll.u32 %v6020_v58, 16 }
 0x201   : > { %v2794_v22 = vpop.f32.mrf.mxu0  ;;  %v4493_v32 = vpack.c.b16 %v4468_v12, %v4467_v13  ;;  %v3804_v14 = vrot.slane %v3803_v44, 4  ;;  %v3824_v12 = vshll.u32 %v6021_v54, 16 }
 0x202   : > { %v2151_v52 = vadd.f32 %v2110_v63, %v1836_v4  ;;  %v3814_v9 = vrot.slane %v3813_v29, 4  ;;  %v3818_v41 = vrot.slane %v3816_v0, 5 }
 0x203   : > { %v3220_v43 = vpop.f32.mrf.mxu1 }
 0x204   : > { %v2833_v19 = vadd.f32 %v2792_v56, %v2151_v52  ;;  %v4067_v56 = vpack.c.b16 %v4042_v21, %v4041_v27  ;;  %v6116_v52 = vrot.slane %v6100_v60, 9  ;;  %v6023_v60 = vld [vmem:[%s6572_s12 + $0x80] sm:$0x1] }
 0x206   : > { %v7730_v34 = vadd.f32 %v3218_v26, %v2833_v19  ;;  %v4377_v26 = vrot.slane %v7717_v31, 5  ;;  %v4380_v19 = vrot.slane %v6020_v58, 5  ;;  %v3821_v31 = vshrl.u32 %v6021_v54, 16 }
 0x207   : > { %v1797_v45 = vpop.f32.mrf.mxu2 }
 0x208   : > { %v2112_v16 = vpop.f32.mrf.mxu3  ;;  %v1837_v36 = vadd.f32 %v1797_v45, %v7191_v17  ;;  %v7740_v17 = vld [vmem:[%s6572_s12 + $0x7c] sm:$0xf]  ;;  %v4379_v27 = vrot.slane %v4377_v26, 4  ;;  %v3809_v45 = vsel %vm6605_vm2, %v3804_v14, %v3808_v7 }
 0x209   : > { %v2797_v40 = vpop.f32.mrf.mxu0  ;;  %v3834_v48 = vshrl.u32 %v7740_v17, 16 }
 0x20a   : > { %v2152_v63 = vadd.f32 %v2112_v16, %v1837_v36 }
 0x20b   : > { %v3223_v4 = vpop.f32.mrf.mxu1  ;;  %v3836_v29 = vrot.slane %v3834_v48, 4  ;;  %v6101_v48 = vld [vmem:[%s6572_s12 + $0x78] sm:$0xe] }
 0x20c   : > { %v2834_v30 = vadd.f32 %v2794_v22, %v2152_v63  ;;  %3497 = vmatmul.bf16.gmra.mxu2 %v6359_v62  ;;  %4605 = vmatmul.bf16.gmra.mxu0 %v4493_v32  ;;  %v3830_v22 = vshll.u32 %v7740_v17, 16  ;;  %v4378_v62 = vsel %vm6924_vm5, %v6116_v52, %v4377_v26  ;;  %v3823_v32 = vrot.slane %v3821_v31, 4 }
 0x20d   : > { %4179 = vmatmul.bf16.gmra.mxu3 %v4067_v56  ;;  %v4381_v56 = vsel %vm6924_vm5, %v4379_v27, %v4380_v19  ;;  %v4043_v63 = vunpack.c.l.b16 %v3809_v45  ;;  %v3840_v27 = vshll.u32 %v6023_v60, 16  ;;  %v8051_v19 = vld [vmem:[#allocation4_spill] sm:$0xff] }
 0x20e   : > { %5021 = vmatmul.bf16.gmra.mxu1 %v6399_v51  ;;  %v7742_v49 = vadd.f32 %v3220_v43, %v2834_v30  ;;  %v3819_v43 = vsel %vm6605_vm2, %v3814_v9, %v3818_v41  ;;  %v3826_v51 = vrot.slane %v3824_v12, 5  ;;  %v3832_v44 = vrot.slane %v3830_v22, 5  ;;  %v6400_v22 = vld [vmem:[%s7580_s28 + $0x38] sm:$0xff] }
 0x20f   : > { %v1800_v21 = vpop.f32.mrf.mxu2  ;;  %v4044_v7 = vunpack.c.l.b16 %v3819_v43  ;;  %v4469_v30 = vunpack.c.l.b16 %v4378_v62  ;;  %v4470_v54 = vunpack.c.l.b16 %v4381_v56  ;;  %v6117_v56 = vrot.slane %v6101_v48, 9 }
 0x210   : > { %v2115_v13 = vpop.f32.mrf.mxu3  ;;  %v1838_v15 = vadd.f32 %v1800_v21, %v8050_v20  ;;  %v3827_v41 = vor.u32 %v3826_v51, %v3823_v32  ;;  %v3837_v52 = vor.u32 %v3836_v29, %v3832_v44  ;;  %v4387_v51 = vrot.slane %v6023_v60, 5  ;;  %v6024_v29 = vld [vmem:[%s6572_s12 + $0x84] sm:$0xf] }
 0x211   : > { %v2799_v36 = vpop.f32.mrf.mxu0  ;;  %v4068_v31 = vpack.c.b16 %v4044_v7, %v4043_v63  ;;  %v4494_v12 = vpack.c.b16 %v4470_v54, %v4469_v30  ;;  %v8052_v54 = vld [vmem:[#allocation5_spill] sm:$0xff] }
 0x212   : > { %v2153_v16 = vadd.f32 %v2115_v13, %v1838_v15  ;;  %v6360_v13 = vld [vmem:[%s6572_s12 + $0x6c] sm:$0xff]  ;;  %v3828_v45 = vrot.slane %v3827_v41, 4  ;;  %v3838_v43 = vrot.slane %v3837_v52, 4  ;;  %v3848_v41 = vshll.u32 %v6024_v29, 16 }
 0x213   : > { %v3225_v58 = vpop.f32.mrf.mxu1 }
 0x214   : > { %v2835_v0 = vadd.f32 %v2797_v40, %v2153_v16  ;;  %v4384_v40 = vrot.slane %v7740_v17, 5  ;;  %v3842_v16 = vrot.slane %v3840_v27, 5  ;;  %v3833_v30 = vsel %vm6605_vm2, %v3828_v45, %v3832_v44 }
 0x216   : > { %v7756_v14 = vadd.f32 %v3223_v4, %v2835_v0  ;;  %v4386_v32 = vrot.slane %v4384_v40, 4  ;;  %v7767_v0 = vld [vmem:[%s6572_s12 + $0x88] sm:$0xf]  ;;  %v4385_v60 = vsel %vm6924_vm5, %v6117_v56, %v4384_v40 }
 0x217   : > { %v1802_v9 = vpop.f32.mrf.mxu2  ;;  %v3854_v52 = vshll.u32 %v7767_v0, 16  ;;  %v3858_v27 = vshrl.u32 %v7767_v0, 16 }
 0x218   : > { %v2117_v26 = vpop.f32.mrf.mxu3  ;;  %v1839_v21 = vadd.f32 %v1802_v9, %v8051_v19 }
 0x219   : > { %v2802_v15 = vpop.f32.mrf.mxu0  ;;  %v3856_v45 = vrot.slane %v3854_v52, 5 }
 0x21a   : > { %v2154_v20 = vadd.f32 %v2117_v26, %v1839_v21  ;;  %v3845_v26 = vshrl.u32 %v6024_v29, 16 }
 0x21b   : > { %v3228_v4 = vpop.f32.mrf.mxu1 }
 0x21c   : > { %v2836_v62 = vadd.f32 %v2799_v36, %v2154_v20  ;;  %3502 = vmatmul.bf16.gmra.mxu2 %v6360_v13  ;;  %4610 = vmatmul.bf16.gmra.mxu0 %v4494_v12  ;;  %v3843_v36 = vsel %vm6605_vm2, %v3838_v43, %v3842_v16  ;;  %v4045_v13 = vunpack.c.l.b16 %v3833_v30  ;;  %v3847_v48 = vrot.slane %v3845_v26, 4  ;;  %v6401_v30 = vld [vmem:[%s7580_s28 + $0x40] sm:$0xff] }
 0x21d   : > { %4184 = vmatmul.bf16.gmra.mxu3 %v4068_v31  ;;  %v4046_v12 = vunpack.c.l.b16 %v3843_v36  ;;  %v3850_v20 = vrot.slane %v3848_v41, 5  ;;  %v3860_v43 = vrot.slane %v3858_v27, 4  ;;  %v6102_v41 = vld [vmem:[%s6572_s12 + $0x84] sm:$0xe]  ;;  %v6027_v27 = vld [vmem:[%s6572_s12 + $0x90] sm:$0xf] }
 0x21e   : > { %5026 = vmatmul.bf16.gmra.mxu1 %v6400_v22  ;;  %v7763_v17 = vadd.f32 %v3225_v58, %v2836_v62  ;;  %v4388_v58 = vsel %vm6924_vm5, %v4386_v32, %v4387_v51  ;;  %v4471_v22 = vunpack.c.l.b16 %v4385_v60  ;;  %v6026_v62 = vld [vmem:[%s6572_s12 + $0x8c] sm:$0x1]  ;;  %v8053_v51 = vld [vmem:[#allocation6_spill] sm:$0xff] }
 0x21f   : > { %v1805_v63 = vpop.f32.mrf.mxu2  ;;  %v4472_v40 = vunpack.c.l.b16 %v4388_v58  ;;  %v3864_v36 = vshll.u32 %v6026_v62, 16 }
 0x220   : > { %v2120_v7 = vpop.f32.mrf.mxu3  ;;  %v1840_v9 = vadd.f32 %v1805_v63, %v8052_v54  ;;  %v6361_v63 = vld [vmem:[%s6572_s12 + $0x78] sm:$0xff]  ;;  %v3851_v54 = vor.u32 %v3850_v20, %v3847_v48  ;;  %v4394_v20 = vrot.slane %v6026_v62, 5  ;;  %v7804_v62 = vld [vmem:[%s8037_s2] ss:$0 sm:$0xff] }
 0x221   : > { %v2804_v44 = vpop.f32.mrf.mxu0 }
 0x222   : > { %v2155_v19 = vadd.f32 %v2120_v7, %v1840_v9  ;;  %v4495_v7 = vpack.c.b16 %v4472_v40, %v4471_v22  ;;  %v3861_v9 = vor.u32 %v3860_v43, %v3856_v45  ;;  %v6118_v40 = vrot.slane %v6102_v41, 9 }
 0x223   : > { %v3230_v21 = vpop.f32.mrf.mxu1 }
 0x224   : > { %v2837_v31 = vadd.f32 %v2802_v15, %v2155_v19  ;;  %v4069_v15 = vpack.c.b16 %v4046_v12, %v4045_v13  ;;  %v7790_v19 = vld [vmem:[%s6572_s12 + $0x94] sm:$0xf]  ;;  %v3852_v13 = vrot.slane %v3851_v54, 4  ;;  %v3866_v12 = vrot.slane %v3864_v36, 5 }
 0x226   : > { %v7780_v16 = vadd.f32 %v3228_v4, %v2837_v31  ;;  %v4391_v4 = vrot.slane %v7767_v0, 5  ;;  %v3862_v31 = vrot.slane %v3861_v9, 4  ;;  %v3869_v0 = vshrl.u32 %v6027_v27, 16 }
 0x227   : > { %v1807_v56 = vpop.f32.mrf.mxu2 }
 0x228   : > { %v2122_v32 = vpop.f32.mrf.mxu3  ;;  %v1841_v29 = vadd.f32 %v1807_v56, %v8053_v51  ;;  %v4393_v48 = vrot.slane %v4391_v4, 4  ;;  %v3882_v51 = vshrl.u32 %v7790_v19, 16  ;;  %v4392_v9 = vsel %vm6924_vm5, %v6118_v40, %v4391_v4 }
 0x229   : > { %v4576_v58 = vpop.f32.mrf.mxu0 }
 0x22a   : > { %v2156_v60 = vadd.f32 %v2122_v32, %v1841_v29  ;;  %v3872_v32 = vshll.u32 %v6027_v27, 16  ;;  %v8054_v29 = vld [vmem:[#allocation7_spill] sm:$0xff]  ;;  %v4395_v36 = vsel %vm6924_vm5, %v4393_v48, %v4394_v20 }
 0x22b   : > { %v4992_v26 = vpop.f32.mrf.mxu1 }
 0x22c   : > { %v2838_v52 = vadd.f32 %v2804_v44, %v2156_v60  ;;  %3507 = vmatmul.bf16.gmra.mxu2 %v6361_v63  ;;  %4615 = vmatmul.bf16.gmra.mxu0 %v4495_v7  ;;  %v3878_v44 = vshll.u32 %v7790_v19, 16  ;;  %v3871_v60 = vrot.slane %v3869_v0, 4 }
 0x22d   : > { %4189 = vmatmul.bf16.gmra.mxu3 %v4069_v15  ;;  %v3857_v15 = vsel %vm6605_vm2, %v3852_v13, %v3856_v45  ;;  %v3874_v45 = vrot.slane %v3872_v32, 5 }
 0x22e   : > { %5031 = vmatmul.bf16.gmra.mxu1 %v6401_v30  ;;  %v7792_v22 = vadd.f32 %v3230_v21, %v2838_v52  ;;  %v3867_v21 = vsel %vm6605_vm2, %v3862_v31, %v3866_v12  ;;  %v3880_v41 = vrot.slane %v3878_v44, 5  ;;  %v3884_v52 = vrot.slane %v3882_v51, 4  ;;  %v6029_v12 = vld [vmem:[%s6572_s12 + $0x98] sm:$0x1]  ;;  %v6362_v44 = vld [vmem:[%s6572_s12 + $0x84] sm:$0xff] }
 0x22f   : > { %v3468_v43 = vpop.f32.mrf.mxu2  ;;  %v4047_v13 = vunpack.c.l.b16 %v3857_v15  ;;  %v4048_v31 = vunpack.c.l.b16 %v3867_v21  ;;  %v3888_v20 = vshll.u32 %v6029_v12, 16  ;;  %v4398_v51 = vrot.slane %v7790_v19, 5  ;;  %v6402_v21 = vld [vmem:[%s7580_s28 + $0x48] sm:$0xff] }
 0x230   : > { %v4150_v56 = vpop.f32.mrf.mxu3  ;;  %v3548_v63 = vadd.f32 %v3468_v43, %v8054_v29  ;;  %v4473_v43 = vunpack.c.l.b16 %v4392_v9  ;;  %v3885_v48 = vor.u32 %v3884_v52, %v3880_v41 }
 0x231   : > { %v4578_v30 = vpop.f32.mrf.mxu0  ;;  %v3890_v52 = vrot.slane %v3888_v20, 5 }
 0x232   : > { %v4230_v7 = vadd.f32 %v4150_v56, %v3548_v63  ;;  %v4474_v56 = vunpack.c.l.b16 %v4395_v36  ;;  %v3875_v63 = vor.u32 %v3874_v45, %v3871_v60  ;;  %v3886_v45 = vrot.slane %v3885_v48, 4 }
 0x233   : > { %v4994_v54 = vpop.f32.mrf.mxu1 }
 0x234   : > { %v4656_v27 = vadd.f32 %v4576_v58, %v4230_v7  ;;  %v4070_v58 = vpack.c.b16 %v4048_v31, %v4047_v13  ;;  %v4496_v15 = vpack.c.b16 %v4474_v56, %v4473_v43  ;;  %v6103_v7 = vld [vmem:[%s6572_s12 + $0x90] sm:$0xe]  ;;  %v4400_v13 = vrot.slane %v4398_v51, 4  ;;  %v6030_v56 = vld [vmem:[%s6572_s12 + $0x9c] sm:$0xf] }
 0x235   : > { %v4401_v31 = vrot.slane %v6029_v12, 5 }
 0x236   : > { %v4759_v29 = vadd.f32 %v7804_v62, %v4656_v27  ;;  %v6119_v27 = vrot.slane %v6103_v7, 9 }
 0x237   : > { %v3470_v4 = vpop.f32.mrf.mxu2 }
 0x238   : > { %v4152_v40 = vpop.f32.mrf.mxu3  ;;  %v5072_v0 = vadd.f32 %v4992_v26, %v4759_v29  ;;  %v3549_v32 = vadd.f32 %v3470_v4, %v7326_v24  ;;  %v3876_v24 = vrot.slane %v3875_v63, 4  ;;  %v7827_v29 = vld [vmem:[%s6572_s12 + $0xa0] sm:$0xf]  ;;  %v4399_v12 = vsel %vm6924_vm5, %v6119_v27, %v4398_v51 }
 0x239   : > { %v4581_v60 = vpop.f32.mrf.mxu0  ;;  %v4475_v51 = vunpack.c.l.b16 %v4399_v12 }
 0x23a   : > { %v5104_v9 = vmax.f32 %v5072_v0, 0.0  ;;  %v4231_v36 = vadd.f32 %v4152_v40, %v3549_v32  ;;  %v3881_v63 = vsel %vm6605_vm2, %v3876_v24, %v3880_v41  ;;  %v4402_v0 = vsel %vm6924_vm5, %v4400_v13, %v4401_v31  ;;  %v6032_v31 = vld [vmem:[%s6572_s12 + $0xa4] sm:$0x1] }
 0x23b   : > { %v4997_v26 = vpop.f32.mrf.mxu1  ;;  %v3893_v32 = vshrl.u32 %v6030_v56, 16  ;;  %v4476_v24 = vunpack.c.l.b16 %v4402_v0  ;;  %v3912_v0 = vshll.u32 %v6032_v31, 16 }
 0x23c   : > { %5136 = vst [vmem:[%s7819_s9] sm:$0xff] %v5104_v9  ;;  %v4657_v19 = vadd.f32 %v4578_v30, %v4231_v36  ;;  %3512 = vmatmul.bf16.gmra.mxu2 %v6362_v44  ;;  %4620 = vmatmul.bf16.gmra.mxu0 %v4496_v15  ;;  %v3891_v30 = vsel %vm6605_vm2, %v3886_v45, %v3890_v52  ;;  %v3896_v44 = vshll.u32 %v6030_v56, 16  ;;  %v3906_v15 = vshrl.u32 %v7827_v29, 16 }
 0x23d   : > { %4194 = vmatmul.bf16.gmra.mxu3 %v4070_v58  ;;  %v3902_v58 = vshll.u32 %v7827_v29, 16  ;;  %v4050_v36 = vunpack.c.l.b16 %v3891_v30  ;;  %v3895_v45 = vrot.slane %v3893_v32, 4  ;;  %v4497_v30 = vpack.c.b16 %v4476_v24, %v4475_v51 }
 0x23e   : > { %5036 = vmatmul.bf16.gmra.mxu1 %v6402_v21  ;;  %v4760_v43 = vadd.f32 %v7804_v62, %v4657_v19  ;;  %v3898_v52 = vrot.slane %v3896_v44, 5  ;;  %v3908_v27 = vrot.slane %v3906_v15, 4  ;;  %v3914_v51 = vrot.slane %v3912_v0, 5 }
 0x23f   : > { %v3473_v4 = vpop.f32.mrf.mxu2  ;;  %v3904_v19 = vrot.slane %v3902_v58, 5 }
 0x240   : > { %v4155_v40 = vpop.f32.mrf.mxu3  ;;  %v5073_v48 = vadd.f32 %v4994_v54, %v4760_v43  ;;  %v3550_v20 = vadd.f32 %v3473_v4, %v7353_v46  ;;  %v4049_v54 = vunpack.c.l.b16 %v3881_v63  ;;  %v6363_v63 = vld [vmem:[%s6572_s12 + $0x90] sm:$0xff] }
 0x241   : > { %v4583_v7 = vpop.f32.mrf.mxu0  ;;  %v3909_v12 = vor.u32 %v3908_v27, %v3904_v19  ;;  %v4408_v27 = vrot.slane %v6032_v31, 5 }
 0x242   : > { %v5105_v41 = vmax.f32 %v5073_v48, 0.0  ;;  %v4232_v21 = vadd.f32 %v4155_v40, %v3550_v20  ;;  %v6403_v48 = vld [vmem:[%s7580_s28 + $0x50] sm:$0xff]  ;;  %v3899_v20 = vor.u32 %v3898_v52, %v3895_v45 }
 0x243   : > { %v4999_v9 = vpop.f32.mrf.mxu1 }
 0x244   : > { %5137 = vst [vmem:[%s7819_s9 + $0x8] sm:$0xff] %v5105_v41  ;;  %v4658_v46 = vadd.f32 %v4581_v60, %v4232_v21  ;;  %v4071_v60 = vpack.c.b16 %v4050_v36, %v4049_v54  ;;  %v4405_v41 = vrot.slane %v7827_v29, 5  ;;  %v6104_v21 = vld [vmem:[%s6572_s12 + $0x9c] sm:$0xe]  ;;  %v7851_v54 = vld [vmem:[%s6572_s12 + $0xac] sm:$0xf] }
 0x245   : > { %v3910_v36 = vrot.slane %v3909_v12, 4  ;;  %v6120_v45 = vrot.slane %v6104_v21, 9 }
 0x246   : > { %v4761_v13 = vadd.f32 %v7804_v62, %v4658_v46  ;;  %v3900_v46 = vrot.slane %v3899_v20, 4  ;;  %v4407_v52 = vrot.slane %v4405_v41, 4 }
 0x247   : > { %v3475_v43 = vpop.f32.mrf.mxu2  ;;  %v4406_v0 = vsel %vm6924_vm5, %v6120_v45, %v4405_v41 }
 0x248   : > { %v4157_v56 = vpop.f32.mrf.mxu3  ;;  %v5074_v4 = vadd.f32 %v4997_v26, %v4761_v13  ;;  %v3551_v40 = vadd.f32 %v3475_v43, %v7368_v38  ;;  %v6033_v38 = vld [vmem:[%s6572_s12 + $0xa8] sm:$0xf] }
 0x249   : > { %v4586_v58 = vpop.f32.mrf.mxu0  ;;  %v3917_v43 = vshrl.u32 %v6033_v38, 16 }
 0x24a   : > { %v5106_v32 = vmax.f32 %v5074_v4, 0.0  ;;  %v4233_v44 = vadd.f32 %v4157_v56, %v3551_v40  ;;  %v3920_v56 = vshll.u32 %v6033_v38, 16  ;;  %v3930_v4 = vshrl.u32 %v7851_v54, 16 }
 0x24b   : > { %v5002_v15 = vpop.f32.mrf.mxu1 }
 0x24c   : > { %5138 = vst [vmem:[%s7819_s9 + $0x10] sm:$0xff] %v5106_v32  ;;  %v4659_v26 = vadd.f32 %v4583_v7, %v4233_v44  ;;  %3517 = vmatmul.bf16.gmra.mxu2 %v6363_v63  ;;  %4625 = vmatmul.bf16.gmra.mxu0 %v4497_v30  ;;  %v3926_v7 = vshll.u32 %v7851_v54, 16  ;;  %v3915_v30 = vsel %vm6605_vm2, %v3910_v36, %v3914_v51  ;;  %v3922_v44 = vrot.slane %v3920_v56, 5  ;;  %v6364_v56 = vld [vmem:[%s6572_s12 + $0x9c] sm:$0xff] }
 0x24d   : > { %4199 = vmatmul.bf16.gmra.mxu3 %v4071_v60  ;;  %v3905_v60 = vsel %vm6605_vm2, %v3900_v46, %v3904_v19  ;;  %v4409_v32 = vsel %vm6924_vm5, %v4407_v52, %v4408_v27  ;;  %v3932_v21 = vrot.slane %v3930_v4, 4  ;;  %v4052_v38 = vunpack.c.l.b16 %v3915_v30  ;;  %v6035_v46 = vld [vmem:[%s6572_s12 + $0xb0] sm:$0x1] }
 0x24e   : > { %5041 = vmatmul.bf16.gmra.mxu1 %v6403_v48  ;;  %v4762_v24 = vadd.f32 %v7804_v62, %v4659_v26  ;;  %v4051_v26 = vunpack.c.l.b16 %v3905_v60  ;;  %v4477_v36 = vunpack.c.l.b16 %v4406_v0  ;;  %v4478_v51 = vunpack.c.l.b16 %v4409_v32 }
 0x24f   : > { %v3478_v13 = vpop.f32.mrf.mxu2  ;;  %v3936_v27 = vshll.u32 %v6035_v46, 16 }
 0x250   : > { %v4160_v29 = vpop.f32.mrf.mxu3  ;;  %v5075_v40 = vadd.f32 %v4999_v9, %v4762_v24  ;;  %v3552_v63 = vadd.f32 %v3478_v13, %v7395_v53  ;;  %v3919_v9 = vrot.slane %v3917_v43, 4  ;;  %v3928_v53 = vrot.slane %v3926_v7, 5 }
 0x251   : > { %v4588_v20 = vpop.f32.mrf.mxu0  ;;  %v4412_v7 = vrot.slane %v7851_v54, 5  ;;  %v4498_v4 = vpack.c.b16 %v4478_v51, %v4477_v36 }
 0x252   : > { %v5107_v31 = vmax.f32 %v5075_v40, 0.0  ;;  %v4234_v48 = vadd.f32 %v4160_v29, %v3552_v63  ;;  %v3923_v13 = vor.u32 %v3922_v44, %v3919_v9  ;;  %v3933_v52 = vor.u32 %v3932_v21, %v3928_v53  ;;  %v6404_v40 = vld [vmem:[%s7580_s28 + $0x58] sm:$0xff]  ;;  %v6105_v63 = vld [vmem:[%s6572_s12 + $0xa8] sm:$0xe] }
 0x253   : > { %v5004_v12 = vpop.f32.mrf.mxu1  ;;  %v3938_v9 = vrot.slane %v3936_v27, 5  ;;  %v4414_v44 = vrot.slane %v4412_v7, 4  ;;  %v4415_v21 = vrot.slane %v6035_v46, 5 }
 0x254   : > { %5139 = vst [vmem:[%s7819_s9 + $0x18] sm:$0xff] %v5107_v31  ;;  %v4660_v19 = vadd.f32 %v4586_v58, %v4234_v48  ;;  %v4072_v58 = vpack.c.b16 %v4052_v38, %v4051_v26  ;;  %v3924_v0 = vrot.slane %v3923_v13, 4  ;;  %v3934_v32 = vrot.slane %v3933_v52, 4  ;;  %v7877_v26 = vld [vmem:[%s6572_s12 + $0xb8] sm:$0xf] }
 0x255   : > { %v3950_v27 = vshll.u32 %v7877_v26, 16 }
 0x256   : > { %v4763_v24 = vadd.f32 %v7804_v62, %v4660_v19  ;;  %v6036_v19 = vld [vmem:[%s6572_s12 + $0xb4] sm:$0xf]  ;;  %v3929_v51 = vsel %vm6605_vm2, %v3924_v0, %v3928_v53 }
 0x257   : > { %v3480_v41 = vpop.f32.mrf.mxu2  ;;  %v3941_v13 = vshrl.u32 %v6036_v19, 16  ;;  %v3944_v52 = vshll.u32 %v6036_v19, 16 }
 0x258   : > { %v4162_v45 = vpop.f32.mrf.mxu3  ;;  %v5076_v29 = vadd.f32 %v5002_v15, %v4763_v24  ;;  %v3553_v43 = vadd.f32 %v3480_v41, %v7408_v57  ;;  %v6121_v57 = vrot.slane %v6105_v63, 9 }
 0x259   : > { %v4591_v31 = vpop.f32.mrf.mxu0  ;;  %v3943_v63 = vrot.slane %v3941_v13, 4  ;;  %v4419_v13 = vrot.slane %v7877_v26, 5 }
 0x25a   : > { %v5108_v60 = vmax.f32 %v5076_v29, 0.0  ;;  %v4235_v30 = vadd.f32 %v4162_v45, %v3553_v43  ;;  %v4413_v46 = vsel %vm6924_vm5, %v6121_v57, %v4412_v7  ;;  %v4416_v45 = vsel %vm6924_vm5, %v4414_v44, %v4415_v21 }
 0x25b   : > { %v5007_v48 = vpop.f32.mrf.mxu1  ;;  %v3954_v29 = vshrl.u32 %v7877_v26, 16  ;;  %v4479_v7 = vunpack.c.l.b16 %v4413_v46 }
 0x25c   : > { %5140 = vst [vmem:[%s7819_s9 + $0x20] sm:$0xff] %v5108_v60  ;;  %v4661_v15 = vadd.f32 %v4588_v20, %v4235_v30  ;;  %3522 = vmatmul.bf16.gmra.mxu2 %v6364_v56  ;;  %4630 = vmatmul.bf16.gmra.mxu0 %v4498_v4  ;;  %v3939_v20 = vsel %vm6605_vm2, %v3934_v32, %v3938_v9  ;;  %v3946_v60 = vrot.slane %v3944_v52, 5  ;;  %v3952_v30 = vrot.slane %v3950_v27, 5  ;;  %v6038_v9 = vld [vmem:[%s6572_s12 + $0xbc] sm:$0x1] }
 0x25d   : > { %4204 = vmatmul.bf16.gmra.mxu3 %v4072_v58  ;;  %v4054_v4 = vunpack.c.l.b16 %v3939_v20  ;;  %v3956_v0 = vrot.slane %v3954_v29, 4  ;;  %v3960_v20 = vshll.u32 %v6038_v9, 16  ;;  %v6106_v52 = vld [vmem:[%s6572_s12 + $0xb4] sm:$0xe]  ;;  %v7901_v27 = vld [vmem:[%s6572_s12 + $0xc4] sm:$0xf] }
 0x25e   : > { %5046 = vmatmul.bf16.gmra.mxu1 %v6404_v40  ;;  %v4764_v54 = vadd.f32 %v7804_v62, %v4661_v15  ;;  %v4480_v40 = vunpack.c.l.b16 %v4416_v45 }
 0x25f   : > { %v3483_v38 = vpop.f32.mrf.mxu2 }
 0x260   : > { %v4165_v36 = vpop.f32.mrf.mxu3  ;;  %v5077_v24 = vadd.f32 %v5004_v12, %v4764_v54  ;;  %v3554_v41 = vadd.f32 %v3483_v38, %v7435_v55  ;;  %v4053_v12 = vunpack.c.l.b16 %v3929_v51  ;;  %v6365_v54 = vld [vmem:[%s6572_s12 + $0xa8] sm:$0xff]  ;;  %v4499_v19 = vpack.c.b16 %v4480_v40, %v4479_v7  ;;  %v6405_v38 = vld [vmem:[%s7580_s28 + $0x60] sm:$0xff] }
 0x261   : > { %v4593_v56 = vpop.f32.mrf.mxu0  ;;  %v3957_v51 = vor.u32 %v3956_v0, %v3952_v30  ;;  %v4422_v7 = vrot.slane %v6038_v9, 5  ;;  %v3978_v0 = vshrl.u32 %v7901_v27, 16 }
 0x262   : > { %v5109_v53 = vmax.f32 %v5077_v24, 0.0  ;;  %v4236_v43 = vadd.f32 %v4165_v36, %v3554_v41  ;;  %v3947_v36 = vor.u32 %v3946_v60, %v3943_v63 }
 0x263   : > { %v5009_v58 = vpop.f32.mrf.mxu1 }
 0x264   : > { %5141 = vst [vmem:[%s7819_s9 + $0x28] sm:$0xff] %v5109_v53  ;;  %v4662_v55 = vadd.f32 %v4591_v31, %v4236_v43  ;;  %v4073_v31 = vpack.c.b16 %v4054_v4, %v4053_v12  ;;  %v3948_v29 = vrot.slane %v3947_v36, 4  ;;  %v3958_v53 = vrot.slane %v3957_v51, 4 }
 0x265   : > { %v3962_v43 = vrot.slane %v3960_v20, 5  ;;  %v4421_v4 = vrot.slane %v4419_v13, 4  ;;  %v3980_v51 = vrot.slane %v3978_v0, 4 }
 0x266   : > { %v4765_v32 = vadd.f32 %v7804_v62, %v4662_v55  ;;  %v6122_v55 = vrot.slane %v6106_v52, 9 }
 0x267   : > { %v3485_v15 = vpop.f32.mrf.mxu2 }
 0x268   : > { %v4167_v57 = vpop.f32.mrf.mxu3  ;;  %v5078_v44 = vadd.f32 %v5007_v48, %v4765_v32  ;;  %v3555_v21 = vadd.f32 %v3485_v15, %v7450_v47  ;;  %v6039_v47 = vld [vmem:[%s6572_s12 + $0xc0] sm:$0xf] }
 0x269   : > { %v4596_v46 = vpop.f32.mrf.mxu0  ;;  %v3965_v63 = vshrl.u32 %v6039_v47, 16  ;;  %v3968_v60 = vshll.u32 %v6039_v47, 16 }
 0x26a   : > { %v5110_v24 = vmax.f32 %v5078_v44, 0.0  ;;  %v4237_v41 = vadd.f32 %v4167_v57, %v3555_v21  ;;  %v3953_v57 = vsel %vm6605_vm2, %v3948_v29, %v3952_v30  ;;  %v3963_v44 = vsel %vm6605_vm2, %v3958_v53, %v3962_v43 }
 0x26b   : > { %v5012_v45 = vpop.f32.mrf.mxu1  ;;  %v3970_v36 = vrot.slane %v3968_v60, 5  ;;  %v4055_v20 = vunpack.c.l.b16 %v3953_v57  ;;  %v6107_v60 = vld [vmem:[%s6572_s12 + $0xc0] sm:$0xe] }
 0x26c   : > { %5142 = vst [vmem:[%s7819_s9 + $0x30] sm:$0xff] %v5110_v24  ;;  %v4663_v48 = vadd.f32 %v4593_v56, %v4237_v41  ;;  %3527 = vmatmul.bf16.gmra.mxu2 %v6365_v54  ;;  %4635 = vmatmul.bf16.gmra.mxu0 %v4499_v19  ;;  %v3974_v56 = vshll.u32 %v7901_v27, 16  ;;  %v4420_v19 = vsel %vm6924_vm5, %v6122_v55, %v4419_v13  ;;  %v4056_v24 = vunpack.c.l.b16 %v3963_v44  ;;  %v6041_v41 = vld [vmem:[%s6572_s12 + $0xc8] sm:$0x1] }
 0x26d   : > { %4209 = vmatmul.bf16.gmra.mxu3 %v4073_v31  ;;  %v4481_v52 = vunpack.c.l.b16 %v4420_v19  ;;  %v4429_v19 = vrot.slane %v6041_v41, 5 }
 0x26e   : > { %5051 = vmatmul.bf16.gmra.mxu1 %v6405_v38  ;;  %v4766_v12 = vadd.f32 %v7804_v62, %v4663_v48  ;;  %v4423_v38 = vsel %vm6924_vm5, %v4421_v4, %v4422_v7  ;;  %v6366_v7 = vld [vmem:[%s6572_s12 + $0xb4] sm:$0xff] }
 0x26f   : > { %v3488_v40 = vpop.f32.mrf.mxu2  ;;  %v4482_v48 = vunpack.c.l.b16 %v4423_v38  ;;  %v6042_v38 = vld [vmem:[%s6572_s12 + $0xcc] sm:$0xf] }
 0x270   : > { %v4170_v26 = vpop.f32.mrf.mxu3  ;;  %v5079_v32 = vadd.f32 %v5009_v58, %v4766_v12  ;;  %v3556_v15 = vadd.f32 %v3488_v40, %v7477_v59  ;;  %v3967_v58 = vrot.slane %v3965_v63, 4  ;;  %v3976_v59 = vrot.slane %v3974_v56, 5  ;;  %v6406_v63 = vld [vmem:[%s7580_s28 + $0x68] sm:$0xff] }
 0x271   : > { %v4598_v54 = vpop.f32.mrf.mxu0  ;;  %v3984_v12 = vshll.u32 %v6041_v41, 16  ;;  %v4426_v40 = vrot.slane %v7901_v27, 5 }
 0x272   : > { %v5111_v9 = vmax.f32 %v5079_v32, 0.0  ;;  %v4238_v21 = vadd.f32 %v4170_v26, %v3556_v15  ;;  %v3971_v53 = vor.u32 %v3970_v36, %v3967_v58  ;;  %v3981_v43 = vor.u32 %v3980_v51, %v3976_v59  ;;  %v7927_v58 = vld [vmem:[%s6572_s12 + $0xd0] sm:$0xf] }
 0x273   : > { %v5014_v31 = vpop.f32.mrf.mxu1  ;;  %v4500_v26 = vpack.c.b16 %v4482_v48, %v4481_v52  ;;  %v3989_v48 = vshrl.u32 %v6042_v38, 16 }
 0x274   : > { %5143 = vst [vmem:[%s7819_s9 + $0x38] sm:$0xff] %v5111_v9  ;;  %v4664_v30 = vadd.f32 %v4596_v46, %v4238_v21  ;;  %v4074_v46 = vpack.c.b16 %v4056_v24, %v4055_v20  ;;  %v3972_v57 = vrot.slane %v3971_v53, 4  ;;  %v3982_v44 = vrot.slane %v3981_v43, 4 }
 0x275   : > { %v3986_v9 = vrot.slane %v3984_v12, 5  ;;  %v4428_v21 = vrot.slane %v4426_v40, 4 }
 0x276   : > { %v4767_v47 = vadd.f32 %v7804_v62, %v4664_v30  ;;  %v3977_v30 = vsel %vm6605_vm2, %v3972_v57, %v3976_v59 }
 0x277   : > { %v3490_v13 = vpop.f32.mrf.mxu2  ;;  %v4430_v52 = vsel %vm6924_vm5, %v4428_v21, %v4429_v19  ;;  %v6407_v21 = vld [vmem:[%s7580_s28 + $0x70] sm:$0xff] }
 0x278   : > { %v4172_v29 = vpop.f32.mrf.mxu3  ;;  %v5080_v55 = vadd.f32 %v5012_v45, %v4767_v47  ;;  %v3557_v4 = vadd.f32 %v3490_v13, %v7490_v8  ;;  %v6123_v8 = vrot.slane %v6107_v60, 9  ;;  %v3992_v47 = vshll.u32 %v6042_v38, 16 }
 0x279   : > { %v4601_v32 = vpop.f32.mrf.mxu0  ;;  %v3998_v13 = vshll.u32 %v7927_v58, 16 }
 0x27a   : > { %v5112_v56 = vmax.f32 %v5080_v55, 0.0  ;;  %v4239_v0 = vadd.f32 %v4172_v29, %v3557_v4  ;;  %v4427_v41 = vsel %vm6924_vm5, %v6123_v8, %v4426_v40  ;;  %v4002_v29 = vshrl.u32 %v7927_v58, 16 }
 0x27b   : > { %v5017_v15 = vpop.f32.mrf.mxu1  ;;  %v4483_v4 = vunpack.c.l.b16 %v4427_v41  ;;  %v3994_v40 = vrot.slane %v3992_v47, 5 }
 0x27c   : > { %5144 = vst [vmem:[%s7819_s9 + $0x40] sm:$0xff] %v5112_v56  ;;  %v4665_v45 = vadd.f32 %v4598_v54, %v4239_v0  ;;  %3532 = vmatmul.bf16.gmra.mxu2 %v6366_v7  ;;  %4640 = vmatmul.bf16.gmra.mxu0 %v4500_v26  ;;  %v3987_v54 = vsel %vm6605_vm2, %v3982_v44, %v3986_v9  ;;  %v4484_v7 = vunpack.c.l.b16 %v4430_v52  ;;  %v4000_v26 = vrot.slane %v3998_v13, 5  ;;  %v6044_v56 = vld [vmem:[%s6572_s12 + $0xd4] sm:$0x1] }
 0x27d   : > { %4214 = vmatmul.bf16.gmra.mxu3 %v4074_v46  ;;  %v4058_v55 = vunpack.c.l.b16 %v3987_v54  ;;  %v3991_v46 = vrot.slane %v3989_v48, 4  ;;  %v4008_v38 = vshll.u32 %v6044_v56, 16 }
 0x27e   : > { %5056 = vmatmul.bf16.gmra.mxu1 %v6406_v63  ;;  %v4768_v27 = vadd.f32 %v7804_v62, %v4665_v45  ;;  %v4004_v63 = vrot.slane %v4002_v29, 4  ;;  %v6367_v45 = vld [vmem:[%s6572_s12 + $0xc0] sm:$0xff]  ;;  %v4501_v8 = vpack.c.b16 %v4484_v7, %v4483_v4  ;;  %v4436_v29 = vrot.slane %v6044_v56, 5 }
 0x27f   : > { %v3493_v36 = vpop.f32.mrf.mxu2  ;;  %v3995_v19 = vor.u32 %v3994_v40, %v3991_v46  ;;  %v4010_v52 = vrot.slane %v4008_v38, 5 }
 0x280   : > { %v4175_v51 = vpop.f32.mrf.mxu3  ;;  %v5081_v20 = vadd.f32 %v5014_v31, %v4768_v27  ;;  %v3558_v24 = vadd.f32 %v3493_v36, %v7517_v3  ;;  %v4057_v31 = vunpack.c.l.b16 %v3977_v30  ;;  %v4005_v27 = vor.u32 %v4004_v63, %v4000_v26 }
 0x281   : > { %v4603_v43 = vpop.f32.mrf.mxu0 }
 0x282   : > { %v5113_v59 = vmax.f32 %v5081_v20, 0.0  ;;  %v4240_v53 = vadd.f32 %v4175_v51, %v3558_v24  ;;  %v4433_v20 = vrot.slane %v7927_v58, 5  ;;  %v6108_v24 = vld [vmem:[%s6572_s12 + $0xcc] sm:$0xe] }
 0x283   : > { %v5019_v12 = vpop.f32.mrf.mxu1  ;;  %v6124_v47 = vrot.slane %v6108_v24, 9 }
 0x284   : > { %5145 = vst [vmem:[%s7819_s9 + $0x48] sm:$0xff] %v5113_v59  ;;  %v4666_v3 = vadd.f32 %v4601_v32, %v4240_v53  ;;  %v4075_v32 = vpack.c.b16 %v4058_v55, %v4057_v31  ;;  %v4435_v13 = vrot.slane %v4433_v20, 4 }
 0x285   : > { %v4434_v40 = vsel %vm6924_vm5, %v6124_v47, %v4433_v20 }
 0x286   : > { %v4769_v60 = vadd.f32 %v7804_v62, %v4666_v3 }
 0x287   : > { %v3495_v0 = vpop.f32.mrf.mxu2 }
 0x288   : > { %v4177_v57 = vpop.f32.mrf.mxu3  ;;  %v5082_v44 = vadd.f32 %v5017_v15, %v4769_v60  ;;  %v3559_v9 = vadd.f32 %v3495_v0, %v7532_v10  ;;  %v3996_v10 = vrot.slane %v3995_v19, 4  ;;  %v4006_v15 = vrot.slane %v4005_v27, 4 }
 0x289   : > { %v4606_v30 = vpop.f32.mrf.mxu0 }
 0x28a   : > { %v5114_v36 = vmax.f32 %v5082_v44, 0.0  ;;  %v4241_v51 = vadd.f32 %v4177_v57, %v3559_v9  ;;  %v4011_v3 = vsel %vm6605_vm2, %v4006_v15, %v4010_v52 }
 0x28b   : > { %v5022_v54 = vpop.f32.mrf.mxu1  ;;  %v4060_v60 = vunpack.c.l.b16 %v4011_v3 }
 0x28c   : > { %5146 = vst [vmem:[%s7819_s9 + $0x50] sm:$0xff] %v5114_v36  ;;  %v4667_v41 = vadd.f32 %v4603_v43, %v4241_v51  ;;  %3537 = vmatmul.bf16.gmra.mxu2 %v6367_v45  ;;  %4645 = vmatmul.bf16.gmra.mxu0 %v4501_v8  ;;  %v4001_v43 = vsel %vm6605_vm2, %v3996_v10, %v4000_v26  ;;  %v4485_v26 = vunpack.c.l.b16 %v4434_v40  ;;  %v6368_v45 = vld [vmem:[%s6572_s12 + $0xcc] sm:$0xff] }
 0x28d   : > { %4219 = vmatmul.bf16.gmra.mxu3 %v4075_v32  ;;  %v4059_v63 = vunpack.c.l.b16 %v4001_v43 }
 0x28e   : > { %5061 = vmatmul.bf16.gmra.mxu1 %v6407_v21  ;;  %v4770_v48 = vadd.f32 %v7804_v62, %v4667_v41 }
 0x28f   : > { %v3498_v59 = vpop.f32.mrf.mxu2  ;;  %v4076_v32 = vpack.c.b16 %v4060_v60, %v4059_v63 }
 0x290   : > { %v4180_v53 = vpop.f32.mrf.mxu3  ;;  %v5083_v31 = vadd.f32 %v5019_v12, %v4770_v48  ;;  %v3560_v58 = vadd.f32 %v3498_v59, %v7551_v11  ;;  %v4437_v12 = vsel %vm6924_vm5, %v4435_v13, %v4436_v29 }
 0x291   : > { %v4608_v7 = vpop.f32.mrf.mxu0  ;;  %v4486_v42 = vunpack.c.l.b16 %v4437_v12 }
 0x292   : > { %v5115_v55 = vmax.f32 %v5083_v31, 0.0  ;;  %v4242_v4 = vadd.f32 %v4180_v53, %v3560_v58 }
 0x293   : > { %v5024_v46 = vpop.f32.mrf.mxu1  ;;  %v4502_v8 = vpack.c.b16 %v4486_v42, %v4485_v26 }
 0x294   : > { %5147 = vst [vmem:[%s7819_s9 + $0x58] sm:$0xff] %v5115_v55  ;;  %v4668_v11 = vadd.f32 %v4606_v30, %v4242_v4 }
 0x296   : > { %v4771_v56 = vadd.f32 %v7804_v62, %v4668_v11 }
 0x297   : > { %v3500_v0 = vpop.f32.mrf.mxu2 }
 0x298   : > { %v4182_v57 = vpop.f32.mrf.mxu3  ;;  %v5084_v44 = vadd.f32 %v5022_v54, %v4771_v56  ;;  %v3561_v9 = vadd.f32 %v3500_v0, %v7557_v6 }
 0x299   : > { %v4611_v27 = vpop.f32.mrf.mxu0 }
 0x29a   : > { %v5116_v21 = vmax.f32 %v5084_v44, 0.0  ;;  %v4243_v19 = vadd.f32 %v4182_v57, %v3561_v9 }
 0x29b   : > { %v5027_v38 = vpop.f32.mrf.mxu1 }
 0x29c   : > { %5148 = vst [vmem:[%s7819_s9 + $0x60] sm:$0xff] %v5116_v21  ;;  %v4669_v36 = vadd.f32 %v4608_v7, %v4243_v19  ;;  %3542 = vmatmul.bf16.gmra.mxu2 %v6368_v45  ;;  %4650 = vmatmul.bf16.gmra.mxu0 %v4502_v8 }
 0x29d   : > { %4224 = vmatmul.bf16.gmra.mxu3 %v4076_v32 }
 0x29e   : > { %5066 = vmatmul.bf16.gmra.mxu1 %v6408_v5  ;;  %v4772_v51 = vadd.f32 %v7804_v62, %v4669_v36 }
 0x29f   : > { %v3503_v30 = vpop.f32.mrf.mxu2 }
 0x2a0   : > { %v4185_v54 = vpop.f32.mrf.mxu3  ;;  %v5085_v6 = vadd.f32 %v5024_v46, %v4772_v51  ;;  %v3562_v20 = vadd.f32 %v3503_v30, %v7575_v61 }
 0x2a1   : > { %v4613_v10 = vpop.f32.mrf.mxu0 }
 0x2a2   : > { %v5117_v24 = vmax.f32 %v5085_v6, 0.0  ;;  %v4244_v41 = vadd.f32 %v4185_v54, %v3562_v20 }
 0x2a3   : > { %v5029_v15 = vpop.f32.mrf.mxu1 }
 0x2a4   : > { %5149 = vst [vmem:[%s7819_s9 + $0x68] sm:$0xff] %v5117_v24  ;;  %v4670_v52 = vadd.f32 %v4611_v27, %v4244_v41 }
 0x2a6   : > { %v4773_v48 = vadd.f32 %v7804_v62, %v4670_v52 }
 0x2a7   : > { %v3505_v47 = vpop.f32.mrf.mxu2 }
 0x2a8   : > { %v4187_v13 = vpop.f32.mrf.mxu3  ;;  %v5086_v29 = vadd.f32 %v5027_v38, %v4773_v48  ;;  %v3563_v59 = vadd.f32 %v3505_v47, %v7592_v33 }
 0x2a9   : > { %v4616_v58 = vpop.f32.mrf.mxu0 }
 0x2aa   : > { %v5118_v53 = vmax.f32 %v5086_v29, 0.0  ;;  %v4245_v31 = vadd.f32 %v4187_v13, %v3563_v59 }
 0x2ab   : > { %v5032_v43 = vpop.f32.mrf.mxu1 }
 0x2ac   : > { %5150 = vst [vmem:[%s7819_s9 + $0x70] sm:$0xff] %v5118_v53  ;;  %v4671_v61 = vadd.f32 %v4613_v10, %v4245_v31 }
 0x2ae   : > { %v4774_v3 = vadd.f32 %v7804_v62, %v4671_v61 }
 0x2af   : > { %v3508_v55 = vpop.f32.mrf.mxu2 }
 0x2b0   : > { %v4190_v4 = vpop.f32.mrf.mxu3  ;;  %v5087_v7 = vadd.f32 %v5029_v15, %v4774_v3  ;;  %v3564_v46 = vadd.f32 %v3508_v55, %v7606_v35 }
 0x2b1   : > { %v4618_v11 = vpop.f32.mrf.mxu0 }
 0x2b2   : > { %v5119_v40 = vmax.f32 %v5087_v7, 0.0  ;;  %v4246_v12 = vadd.f32 %v4190_v4, %v3564_v46 }
 0x2b3   : > { %v5034_v63 = vpop.f32.mrf.mxu1 }
 0x2b4   : > { %5151 = vst [vmem:[%s7819_s9 + $0x78] sm:$0xff] %v5119_v40  ;;  %v4672_v33 = vadd.f32 %v4616_v58, %v4246_v12 }
 0x2b6   : > { %v4775_v60 = vadd.f32 %v7804_v62, %v4672_v33 }
 0x2b7   : > { %v3510_v26 = vpop.f32.mrf.mxu2 }
 0x2b8   : > { %v4192_v42 = vpop.f32.mrf.mxu3  ;;  %v5088_v56 = vadd.f32 %v5032_v43, %v4775_v60  ;;  %v3565_v0 = vadd.f32 %v3510_v26, %v7613_v18 }
 0x2b9   : > { %v4621_v9 = vpop.f32.mrf.mxu0 }
 0x2ba   : > { %v5120_v57 = vmax.f32 %v5088_v56, 0.0  ;;  %v4247_v44 = vadd.f32 %v4192_v42, %v3565_v0 }
 0x2bb   : > { %v5037_v45 = vpop.f32.mrf.mxu1 }
 0x2bc   : > { %5152 = vst [vmem:[%s7819_s9 + $0x80] sm:$0xff] %v5120_v57  ;;  %v4673_v35 = vadd.f32 %v4618_v11, %v4247_v44 }
 0x2be   : > { %v4776_v32 = vadd.f32 %v7804_v62, %v4673_v35 }
 0x2bf   : > { %v3513_v8 = vpop.f32.mrf.mxu2 }
 0x2c0   : > { %v4195_v5 = vpop.f32.mrf.mxu3  ;;  %v5089_v21 = vadd.f32 %v5034_v63, %v4776_v32  ;;  %v3566_v19 = vadd.f32 %v3513_v8, %v7630_v39 }
 0x2c1   : > { %v4623_v36 = vpop.f32.mrf.mxu0 }
 0x2c2   : > { %v5121_v27 = vmax.f32 %v5089_v21, 0.0  ;;  %v4248_v38 = vadd.f32 %v4195_v5, %v3566_v19 }
 0x2c3   : > { %v5039_v51 = vpop.f32.mrf.mxu1 }
 0x2c4   : > { %5153 = vst [vmem:[%s7819_s9 + $0x88] sm:$0xff] %v5121_v27  ;;  %v4674_v18 = vadd.f32 %v4621_v9, %v4248_v38 }
 0x2c6   : > { %v4777_v30 = vadd.f32 %v7804_v62, %v4674_v18 }
 0x2c7   : > { %v3515_v54 = vpop.f32.mrf.mxu2 }
 0x2c8   : > { %v4197_v6 = vpop.f32.mrf.mxu3  ;;  %v5090_v20 = vadd.f32 %v5037_v45, %v4777_v30  ;;  %v3567_v24 = vadd.f32 %v3515_v54, %v7642_v50 }
 0x2c9   : > { %v4626_v15 = vpop.f32.mrf.mxu0 }
 0x2ca   : > { %v5122_v41 = vmax.f32 %v5090_v20, 0.0  ;;  %v4249_v10 = vadd.f32 %v4197_v6, %v3567_v24 }
 0x2cb   : > { %v5042_v52 = vpop.f32.mrf.mxu1 }
 0x2cc   : > { %5154 = vst [vmem:[%s7819_s9 + $0x90] sm:$0xff] %v5122_v41  ;;  %v4675_v39 = vadd.f32 %v4623_v36, %v4249_v10 }
 0x2ce   : > { %v4778_v48 = vadd.f32 %v7804_v62, %v4675_v39 }
 0x2cf   : > { %v3518_v47 = vpop.f32.mrf.mxu2 }
 0x2d0   : > { %v4200_v13 = vpop.f32.mrf.mxu3  ;;  %v5091_v29 = vadd.f32 %v5039_v51, %v4778_v48  ;;  %v3568_v59 = vadd.f32 %v3518_v47, %v7656_v25 }
 0x2d1   : > { %v4628_v58 = vpop.f32.mrf.mxu0 }
 0x2d2   : > { %v5123_v53 = vmax.f32 %v5091_v29, 0.0  ;;  %v4250_v31 = vadd.f32 %v4200_v13, %v3568_v59  ;;  %v8004_v59 = vld [vmem:[%s8037_s2] ss:$0 sm:$0xff] }
 0x2d3   : > { %v5044_v43 = vpop.f32.mrf.mxu1 }
 0x2d4   : > { %5155 = vst [vmem:[%s7819_s9 + $0x98] sm:$0xff] %v5123_v53  ;;  %v4676_v50 = vadd.f32 %v4626_v15, %v4250_v31 }
 0x2d6   : > { %v4779_v61 = vadd.f32 %v7804_v62, %v4676_v50 }
 0x2d7   : > { %v3520_v3 = vpop.f32.mrf.mxu2 }
 0x2d8   : > { %v4202_v55 = vpop.f32.mrf.mxu3  ;;  %v5092_v4 = vadd.f32 %v5042_v52, %v4779_v61  ;;  %v3569_v7 = vadd.f32 %v3520_v3, %v7663_v1 }
 0x2d9   : > { %v4631_v12 = vpop.f32.mrf.mxu0 }
 0x2da   : > { %v5124_v46 = vmax.f32 %v5092_v4, 0.0  ;;  %v4251_v40 = vadd.f32 %v4202_v55, %v3569_v7 }
 0x2db   : > { %v5047_v11 = vpop.f32.mrf.mxu1 }
 0x2dc   : > { %5156 = vst [vmem:[%s7819_s9 + $0xa0] sm:$0xff] %v5124_v46  ;;  %v4677_v25 = vadd.f32 %v4628_v58, %v4251_v40 }
 0x2de   : > { %v4780_v63 = vadd.f32 %v7804_v62, %v4677_v25 }
 0x2df   : > { %v3523_v33 = vpop.f32.mrf.mxu2 }
 0x2e0   : > { %v4205_v60 = vpop.f32.mrf.mxu3  ;;  %v5093_v26 = vadd.f32 %v5044_v43, %v4780_v63  ;;  %v3570_v42 = vadd.f32 %v3523_v33, %v7680_v23 }
 0x2e1   : > { %v4633_v57 = vpop.f32.mrf.mxu0 }
 0x2e2   : > { %v5125_v56 = vmax.f32 %v5093_v26, 0.0  ;;  %v4252_v0 = vadd.f32 %v4205_v60, %v3570_v42 }
 0x2e3   : > { %v5049_v44 = vpop.f32.mrf.mxu1 }
 0x2e4   : > { %5157 = vst [vmem:[%s7819_s9 + $0xa8] sm:$0xff] %v5125_v56  ;;  %v4678_v1 = vadd.f32 %v4631_v12, %v4252_v0 }
 0x2e6   : > { %v4781_v9 = vadd.f32 %v7804_v62, %v4678_v1 }
 0x2e7   : > { %v3525_v45 = vpop.f32.mrf.mxu2 }
 0x2e8   : > { %v4207_v35 = vpop.f32.mrf.mxu3  ;;  %v5094_v32 = vadd.f32 %v5047_v11, %v4781_v9  ;;  %v3571_v8 = vadd.f32 %v3525_v45, %v7692_v2 }
 0x2e9   : > { %v4636_v19 = vpop.f32.mrf.mxu0 }
 0x2ea   : > { %v5126_v5 = vmax.f32 %v5094_v32, 0.0  ;;  %v4253_v21 = vadd.f32 %v4207_v35, %v3571_v8 }
 0x2eb   : > { %v5052_v27 = vpop.f32.mrf.mxu1 }
 0x2ec   : > { %5158 = vst [vmem:[%s7819_s9 + $0xb0] sm:$0xff] %v5126_v5  ;;  %v4679_v23 = vadd.f32 %v4633_v57, %v4253_v21 }
 0x2ee   : > { %v4782_v38 = vadd.f32 %v7804_v62, %v4679_v23 }
 0x2ef   : > { %v3528_v36 = vpop.f32.mrf.mxu2 }
 0x2f0   : > { %v4210_v51 = vpop.f32.mrf.mxu3  ;;  %v5095_v18 = vadd.f32 %v5049_v44, %v4782_v38  ;;  %v3572_v30 = vadd.f32 %v3528_v36, %v7706_v37 }
 0x2f1   : > { %v4638_v20 = vpop.f32.mrf.mxu0 }
 0x2f2   : > { %v5127_v54 = vmax.f32 %v5095_v18, 0.0  ;;  %v4254_v6 = vadd.f32 %v4210_v51, %v3572_v30 }
 0x2f3   : > { %v5054_v24 = vpop.f32.mrf.mxu1 }
 0x2f4   : > { %5159 = vst [vmem:[%s7819_s9 + $0xb8] sm:$0xff] %v5127_v54  ;;  %v4680_v2 = vadd.f32 %v4636_v19, %v4254_v6 }
 0x2f6   : > { %v4783_v41 = vadd.f32 %v7804_v62, %v4680_v2 }
 0x2f7   : > { %v3530_v10 = vpop.f32.mrf.mxu2 }
 0x2f8   : > { %v4212_v15 = vpop.f32.mrf.mxu3  ;;  %v5096_v52 = vadd.f32 %v5052_v27, %v4783_v41  ;;  %v3573_v39 = vadd.f32 %v3530_v10, %v7713_v28 }
 0x2f9   : > { %v4641_v13 = vpop.f32.mrf.mxu0 }
 0x2fa   : > { %v5128_v48 = vmax.f32 %v5096_v52, 0.0  ;;  %v4255_v47 = vadd.f32 %v4212_v15, %v3573_v39 }
 0x2fb   : > { %v5057_v37 = vpop.f32.mrf.mxu1 }
 0x2fc   : > { %5160 = vst [vmem:[%s7819_s9 + $0xc0] sm:$0xff] %v5128_v48  ;;  %v4681_v29 = vadd.f32 %v4638_v20, %v4255_v47 }
 0x2fe   : > { %v4784_v53 = vadd.f32 %v8004_v59, %v4681_v29 }
 0x2ff   : > { %v3533_v62 = vpop.f32.mrf.mxu2 }
 0x300   : > { %v4215_v31 = vpop.f32.mrf.mxu3  ;;  %v5097_v58 = vadd.f32 %v5054_v24, %v4784_v53  ;;  %v3574_v28 = vadd.f32 %v3533_v62, %v7730_v34 }
 0x301   : > { %v4643_v61 = vpop.f32.mrf.mxu0 }
 0x302   : > { %v5129_v43 = vmax.f32 %v5097_v58, 0.0  ;;  %v4256_v50 = vadd.f32 %v4215_v31, %v3574_v28 }
 0x303   : > { %v5059_v4 = vpop.f32.mrf.mxu1 }
 0x304   : > { %5161 = vst [vmem:[%s7819_s9 + $0xc8] sm:$0xff] %v5129_v43  ;;  %v4682_v3 = vadd.f32 %v4641_v13, %v4256_v50 }
 0x306   : > { %v4785_v55 = vadd.f32 %v8004_v59, %v4682_v3 }
 0x307   : > { %v3535_v7 = vpop.f32.mrf.mxu2 }
 0x308   : > { %v4217_v46 = vpop.f32.mrf.mxu3  ;;  %v5098_v40 = vadd.f32 %v5057_v37, %v4785_v55  ;;  %v3575_v12 = vadd.f32 %v3535_v7, %v7742_v49 }
 0x309   : > { %v4646_v33 = vpop.f32.mrf.mxu0 }
 0x30a   : > { %v5130_v11 = vmax.f32 %v5098_v40, 0.0  ;;  %v4257_v25 = vadd.f32 %v4217_v46, %v3575_v12 }
 0x30b   : > { %v5062_v0 = vpop.f32.mrf.mxu1 }
 0x30c   : > { %5162 = vst [vmem:[%s7819_s9 + $0xd0] sm:$0xff] %v5130_v11  ;;  %v4683_v63 = vadd.f32 %v4643_v61, %v4257_v25 }
 0x30e   : > { %v4786_v34 = vadd.f32 %v8004_v59, %v4683_v63 }
 0x30f   : > { %v3538_v60 = vpop.f32.mrf.mxu2 }
 0x310   : > { %v4220_v26 = vpop.f32.mrf.mxu3  ;;  %v5099_v42 = vadd.f32 %v5059_v4, %v4786_v34  ;;  %v3576_v56 = vadd.f32 %v3538_v60, %v7756_v14 }
 0x311   : > { %v4648_v9 = vpop.f32.mrf.mxu0 }
 0x312   : > { %v5131_v57 = vmax.f32 %v5099_v42, 0.0  ;;  %v4258_v44 = vadd.f32 %v4220_v26, %v3576_v56 }
 0x313   : > { %v5064_v19 = vpop.f32.mrf.mxu1 }
 0x314   : > { %5163 = vst [vmem:[%s7819_s9 + $0xd8] sm:$0xff] %v5131_v57  ;;  %v4684_v1 = vadd.f32 %v4646_v33, %v4258_v44 }
 0x316   : > { %v4787_v49 = vadd.f32 %v8004_v59, %v4684_v1 }
 0x317   : > { %v3540_v45 = vpop.f32.mrf.mxu2 }
 0x318   : > { %v4222_v35 = vpop.f32.mrf.mxu3  ;;  %v5100_v32 = vadd.f32 %v5062_v0, %v4787_v49  ;;  %v3577_v8 = vadd.f32 %v3540_v45, %v7763_v17 }
 0x319   : > { %v4651_v18 = vpop.f32.mrf.mxu0 }
 0x31a   : > { %v5132_v5 = vmax.f32 %v5100_v32, 0.0  ;;  %v4259_v21 = vadd.f32 %v4222_v35, %v3577_v8 }
 0x31b   : > { %v5067_v17 = vpop.f32.mrf.mxu1 }
 0x31c   : > { %5164 = vst [vmem:[%s7819_s9 + $0xe0] sm:$0xff] %v5132_v5  ;;  %v4685_v27 = vadd.f32 %v4648_v9, %v4259_v21 }
 0x31e   : > { %v4788_v14 = vadd.f32 %v8004_v59, %v4685_v27 }
 0x31f   : > { %v3543_v23 = vpop.f32.mrf.mxu2 }
 0x320   : > { %v4225_v38 = vpop.f32.mrf.mxu3  ;;  %v5101_v36 = vadd.f32 %v5064_v19, %v4788_v14  ;;  %v3578_v51 = vadd.f32 %v3543_v23, %v7780_v16 }
 0x321   : > { %v4653_v39 = vpop.f32.mrf.mxu0 }
 0x322   : > { %v5133_v30 = vmax.f32 %v5101_v36, 0.0  ;;  %v4260_v54 = vadd.f32 %v4225_v38, %v3578_v51 }
 0x323   : > { %v5069_v47 = vpop.f32.mrf.mxu1 }
 0x324   : > { %5165 = vst [vmem:[%s7819_s9 + $0xe8] sm:$0xff] %v5133_v30  ;;  %v4686_v6 = vadd.f32 %v4651_v18, %v4260_v54 }
 0x326   : > { %v4789_v20 = vadd.f32 %v8004_v59, %v4686_v6 }
 0x327   : > { %v3545_v24 = vpop.f32.mrf.mxu2 }
 0x328   : > { %v5102_v2 = vadd.f32 %v5067_v17, %v4789_v20  ;;  %v3579_v41 = vadd.f32 %v3545_v24, %v7792_v22  ;;  %v4227_v10 = vpop.f32.mrf.mxu3 }
 0x32a   : > { %v5134_v15 = vmax.f32 %v5102_v2, 0.0  ;;  %v4261_v52 = vadd.f32 %v4227_v10, %v3579_v41 }
 0x32c   : > { %5166 = vst [vmem:[%s7819_s9 + $0xf0] sm:$0xff] %v5134_v15  ;;  %v4687_v48 = vadd.f32 %v4653_v39, %v4261_v52 }
 0x32e   : > { %v4790_v16 = vadd.f32 %v8004_v59, %v4687_v48 }
 0x330   : > { %v5103_v13 = vadd.f32 %v5069_v47, %v4790_v16 }
 0x332   : > { %v5135_v29 = vmax.f32 %v5103_v13, 0.0 }
 0x334   : > { %5167 = vst [vmem:[%s7819_s9 + $0xf8] sm:$0xff] %v5135_v29 }
 0x335 PF: > { %s15_s20 = sadd.s32 1, %s6498_s20   ;;  %s8055_s18 = smov %s6494_s19 }
 0x336   : > { %p12_p5 = scmp.ge.s32.totalorder %s15_s20, 4   ;;  %s8056_s19 = smov %s8058_s21 }
 0x338   :  { %14 = sbr.rel (!%p12_p5) target bundleno = 2 (0x2), region = 100 }

</bundles_post_ra>
